<compile_context>
chip_gen: v7x
topology: tpu7x:2x2x1
jax: 0.10.0
libtpu: 0.0.40
codegen_flags: <defaults>
</compile_context>

<pallas_src>
import math

import numpy as np
import jax
import jax.numpy as jnp
from jax.experimental import pallas as pl
from jax.experimental.pallas import tpu as pltpu

EPS = 1e-5


def _out_len(L, K, S, P):
    return (L + 2 * P - K) // S + 1


# ---------------------------------------------------------------------------
# Parameters (same init as torchvision ResNet; conv weights pre-flattened to
# (K*Cin, Cout) bf16 so every conv is a single MXU matmul on an im2col slab).
# ---------------------------------------------------------------------------
def _kaiming_conv_flat(key, cout, cin, k):
    # kaiming_normal_(mode='fan_out', nonlinearity='relu'), fan_out = cout * k
    std = math.sqrt(2.0 / (cout * k))
    w = std * jax.random.normal(key, (cout, cin, k), dtype=jnp.float32)
    # (Cout, Cin, K) -> (K, Cin, Cout) -> (K*Cin, Cout); row index = k*Cin + c.
    return jnp.transpose(w, (2, 1, 0)).reshape(k * cin, cout).astype(jnp.bfloat16)


def _bn_params(c):
    return {"gamma": jnp.ones((1, c), jnp.float32),
            "beta": jnp.zeros((1, c), jnp.float32)}


def make_resnet_params(key, block, layers, in_features, num_outputs):
    keys = iter(jax.random.split(key, 512))
    exp = 1 if block == "basic" else 4
    params = {}
    inplanes = 64
    params["conv1"] = _kaiming_conv_flat(next(keys), 64, in_features, 7)
    params["bn1"] = _bn_params(64)

    def make_layer(planes, blocks, stride):
        nonlocal inplanes
        blocks_p = []
        for i in range(blocks):
            s = stride if i == 0 else 1
            bp = {"stride": s}
            if block == "basic":
                bp["conv1"] = _kaiming_conv_flat(next(keys), planes, inplanes, 3)
                bp["bn1"] = _bn_params(planes)
                bp["conv2"] = _kaiming_conv_flat(next(keys), planes, planes, 3)
                bp["bn2"] = _bn_params(planes)
                out_planes = planes
            else:  # bottleneck, groups=1, base_width=64 -> width == planes
                width = planes
                bp["conv1"] = _kaiming_conv_flat(next(keys), width, inplanes, 1)
                bp["bn1"] = _bn_params(width)
                bp["conv2"] = _kaiming_conv_flat(next(keys), width, width, 3)
                bp["bn2"] = _bn_params(width)
                bp["conv3"] = _kaiming_conv_flat(next(keys), planes * 4, width, 1)
                bp["bn3"] = _bn_params(planes * 4)
                out_planes = planes * 4
            if i == 0 and (s != 1 or inplanes != out_planes):
                bp["ds_conv"] = _kaiming_conv_flat(next(keys), out_planes, inplanes, 1)
                bp["ds_bn"] = _bn_params(out_planes)
            inplanes = out_planes
            blocks_p.append(bp)
        return blocks_p

    params["layer1"] = make_layer(64, layers[0], 1)
    params["layer2"] = make_layer(128, layers[1], 2)
    params["layer3"] = make_layer(256, layers[2], 2)
    params["layer4"] = make_layer(512, layers[3], 2)

    fan_in = 512 * exp
    bound = 1.0 / math.sqrt(fan_in)
    params["fc_w"] = jax.random.uniform(next(keys), (fan_in, num_outputs),
                                        jnp.float32, -bound, bound)
    params["fc_b"] = jax.random.uniform(next(keys), (1, num_outputs),
                                        jnp.float32, -bound, bound)
    return params


# ---------------------------------------------------------------------------
# Whole-network fused forward (single pallas_call)
# ---------------------------------------------------------------------------
def resnet_forward(params, x_ncl, block="basic"):
    """x_ncl: (B, Cin, L) float32, PyTorch Conv1d layout."""
    B, Cin, L0 = x_ncl.shape
    num_outputs = params["fc_w"].shape[1]

    # ---- wrapper-side prep of the (tiny, one-off) network input ----------
    # conv1 (K=7, S=2, P=3) as a single matmul on an im2col slab (B*L1, 7*Cin)
    L1 = _out_len(L0, 7, 2, 3)
    x_nlc = jnp.transpose(x_ncl, (0, 2, 1)).astype(jnp.float32)      # (B, L0, Cin)
    x_pad = jnp.pad(x_nlc, ((0, 0), (3, 3), (0, 0)))
    cols = [x_pad[:, k:k + 2 * L1:2, :] for k in range(7)]           # stride-2 taps
    x_im2col = jnp.concatenate(cols, axis=-1).reshape(B * L1, 7 * Cin)
    x_im2col = x_im2col.astype(jnp.bfloat16)

    L2 = _out_len(L1, 3, 2, 1)                                       # after maxpool

    # ---- flatten everything the kernel needs into one positional list ----
    args = []

    def add(a):
        args.append(a)
        return len(args) - 1

    # One-hot row-gather matrices realising shifted/strided conv taps on the
    # flat (B*L, C) activation.  Built once at trace time from the static
    # geometry, deduped across convs with identical geometry, passed as tiny
    # bf16 inputs (exact selection of bf16 values through the MXU).
    gather_cache = {}

    def tap_specs(L_in, K, S, P):
        geo = (L_in, K, S, P)
        if geo in gather_cache:
            return gather_cache[geo]
        L_out = _out_len(L_in, K, S, P)
        M_in, M_out = B * L_in, B * L_out
        specs = []
        for k in range(K):
            G = np.zeros((M_out, M_in), np.float32)
            for b in range(B):
                for j in range(L_out):
                    src = j * S + k - P
                    if 0 <= src < L_in:
                        G[b * L_out + j, b * L_in + src] = 1.0
            if not G.any():
                specs.append(("zero", None))
            elif M_out == M_in and np.array_equal(G, np.eye(M_in, dtype=np.float32)):
                specs.append(("id", None))
            else:
                specs.append(("mat", add(jnp.asarray(G, dtype=jnp.bfloat16))))
        gather_cache[geo] = (L_out, specs)
        return gather_cache[geo]

    def conv_entry(w, bn, L_in, K, S, P, relu):
        L_out, specs = tap_specs(L_in, K, S, P)
        entry = {"w": add(w), "g": add(bn["gamma"]), "b": add(bn["beta"]),
                 "taps": specs, "m_out": B * L_out, "relu": relu}
        return entry, L_out

    x_idx = add(x_im2col)
    w1_idx = add(params["conv1"])
    g1_idx = add(params["bn1"]["gamma"])
    b1_idx = add(params["bn1"]["beta"])

    blocks_plan = []
    L = L2
    for lname in ("layer1", "layer2", "layer3", "layer4"):
        for bp in params[lname]:
            s = bp["stride"]
            if block == "basic":
                e1, Lm = conv_entry(bp["conv1"], bp["bn1"], L, 3, s, 1, True)
                e2, Lo = conv_entry(bp["conv2"], bp["bn2"], Lm, 3, 1, 1, True)
                convs = [e1, e2]
            else:
                e1, La = conv_entry(bp["conv1"], bp["bn1"], L, 1, 1, 0, True)
                e2, Lb = conv_entry(bp["conv2"], bp["bn2"], La, 3, s, 1, True)
                e3, Lo = conv_entry(bp["conv3"], bp["bn3"], Lb, 1, 1, 0, True)
                convs = [e1, e2, e3]
            ds = None
            if "ds_conv" in bp:
                ds, Ld = conv_entry(bp["ds_conv"], bp["ds_bn"], L, 1, s, 0, False)
                assert Ld == Lo
            blocks_plan.append({"convs": convs, "ds": ds})
            L = Lo
    L_final = L

    fcw_idx = add(params["fc_w"])
    fcb_idx = add(params["fc_b"])
    n_in = len(args)

    # -----------------------------------------------------------------
    # Fused kernel body: the whole network; activations stay in VMEM.
    # -----------------------------------------------------------------
    def kernel(*refs):
        o_ref = refs[n_in]

        def bn_act(h, g_idx, b_idx, relu, residual=None):
            # training-mode BatchNorm1d over all B*L rows (biased variance),
            # two-pass f32 on the single (M, C) accumulator.
            inv_m = 1.0 / h.shape[0]
            mean = jnp.sum(h, axis=0, keepdims=True) * inv_m
            var = jnp.sum((h - mean) ** 2, axis=0, keepdims=True) * inv_m
            scale = refs[g_idx][...] * jax.lax.rsqrt(var + EPS)
            shift = refs[b_idx][...] - mean * scale
            y = h * scale + shift
            if residual is not None:
                y = y + residual
            if relu:
                y = jnp.maximum(y, 0.0)
            return y

        def conv_bn(x, entry, residual=None):
            xb = x.astype(jnp.bfloat16)
            cin = x.shape[1]
            taps = []
            for kind, gi in entry["taps"]:
                if kind == "id":
                    taps.append(xb)
                elif kind == "zero":
                    taps.append(jnp.zeros((entry["m_out"], cin), jnp.bfloat16))
                else:  # exact one-hot row gather via a tiny MXU matmul
                    t = jnp.dot(refs[gi][...], xb,
                                preferred_element_type=jnp.float32)
                    taps.append(t.astype(jnp.bfloat16))
            xi = taps[0] if len(taps) == 1 else jnp.concatenate(taps, axis=1)
            h = jnp.dot(xi, refs[entry["w"]][...],
                        preferred_element_type=jnp.float32)          # (M, Cout)
            return bn_act(h, entry["g"], entry["b"], entry["relu"], residual)

        # ---- stem: conv1 (pre-im2col'd input) + BN + ReLU ----
        h = jnp.dot(refs[x_idx][...], refs[w1_idx][...],
                    preferred_element_type=jnp.float32)              # (B*L1, 64)
        h = bn_act(h, g1_idx, b1_idx, True)

        # ---- maxpool k3 s2 p1: static row-slice windows (exact, f32) ----
        rows = []
        for b in range(B):
            for j in range(L2):
                lo = max(0, 2 * j - 1)
                hi = min(L1, 2 * j + 2)
                win = h[b * L1 + lo: b * L1 + hi, :]
                rows.append(jnp.max(win, axis=0, keepdims=True))
        x = jnp.concatenate(rows, axis=0)                            # (B*L2, 64)

        # ---- residual blocks ----
        for blk in blocks_plan:
            convs = blk["convs"]
            identity = conv_bn(x, blk["ds"]) if blk["ds"] is not None else x
            out = conv_bn(x, convs[0])
            for e in convs[1:-1]:
                out = conv_bn(out, e)
            x = conv_bn(out, convs[-1], residual=identity)           # +res, ReLU

        # ---- adaptive avg pool(1) + flatten + fc ----
        if L_final == 1:
            pooled = x                                               # (B, C)
        else:
            pcs = [jnp.mean(x[b * L_final:(b + 1) * L_final, :],
                            axis=0, keepdims=True) for b in range(B)]
            pooled = jnp.concatenate(pcs, axis=0)
        o_ref[...] = (jnp.dot(pooled, refs[fcw_idx][...],
                              preferred_element_type=jnp.float32)
                      + refs[fcb_idx][...])

    return pl.pallas_call(
        kernel,
        out_shape=jax.ShapeDtypeStruct((B, num_outputs), jnp.float32),
        compiler_params=pltpu.CompilerParams(vmem_limit_bytes=32 * 1024 * 1024),
    )(*args)


# ---------------------------------------------------------------------------
if __name__ == "__main__":
    key = jax.random.PRNGKey(0)
    pkey, xkey = jax.random.split(key)

    BLOCK = "basic"          # BasicBlock (expansion = 1)
    LAYERS = (1, 1, 1, 1)    # small ResNet; channel plan 64/128/256/512 fixed
    IN_FEATURES = 4
    NUM_OUTPUTS = 10

    params = make_resnet_params(pkey, BLOCK, LAYERS, IN_FEATURES, NUM_OUTPUTS)
    x = jax.random.normal(xkey, (2, IN_FEATURES, 16), jnp.float32)   # NCL input

    out = resnet_forward(params, x, block=BLOCK)
    out = jax.block_until_ready(out)

    assert out.shape == (2, NUM_OUTPUTS), out.shape
    assert bool(jnp.all(jnp.isfinite(out)))
    print("KERNEL_OK")
</pallas_src>

<mosaic_0001>
module attributes {stable_mosaic.version = 11 : i64} {
  func.func @kernel(%arg0: memref<16x28xbf16, #tpu.memory_space<vmem>>, %arg1: memref<28x64xbf16, #tpu.memory_space<vmem>>, %arg2: memref<1x64xf32, #tpu.memory_space<vmem>>, %arg3: memref<1x64xf32, #tpu.memory_space<vmem>>, %arg4: memref<8x8xbf16, #tpu.memory_space<vmem>>, %arg5: memref<8x8xbf16, #tpu.memory_space<vmem>>, %arg6: memref<192x64xbf16, #tpu.memory_space<vmem>>, %arg7: memref<1x64xf32, #tpu.memory_space<vmem>>, %arg8: memref<1x64xf32, #tpu.memory_space<vmem>>, %arg9: memref<192x64xbf16, #tpu.memory_space<vmem>>, %arg10: memref<1x64xf32, #tpu.memory_space<vmem>>, %arg11: memref<1x64xf32, #tpu.memory_space<vmem>>, %arg12: memref<4x8xbf16, #tpu.memory_space<vmem>>, %arg13: memref<4x8xbf16, #tpu.memory_space<vmem>>, %arg14: memref<4x8xbf16, #tpu.memory_space<vmem>>, %arg15: memref<192x128xbf16, #tpu.memory_space<vmem>>, %arg16: memref<1x128xf32, #tpu.memory_space<vmem>>, %arg17: memref<1x128xf32, #tpu.memory_space<vmem>>, %arg18: memref<4x4xbf16, #tpu.memory_space<vmem>>, %arg19: memref<4x4xbf16, #tpu.memory_space<vmem>>, %arg20: memref<384x128xbf16, #tpu.memory_space<vmem>>, %arg21: memref<1x128xf32, #tpu.memory_space<vmem>>, %arg22: memref<1x128xf32, #tpu.memory_space<vmem>>, %arg23: memref<4x8xbf16, #tpu.memory_space<vmem>>, %arg24: memref<64x128xbf16, #tpu.memory_space<vmem>>, %arg25: memref<1x128xf32, #tpu.memory_space<vmem>>, %arg26: memref<1x128xf32, #tpu.memory_space<vmem>>, %arg27: memref<2x4xbf16, #tpu.memory_space<vmem>>, %arg28: memref<2x4xbf16, #tpu.memory_space<vmem>>, %arg29: memref<384x256xbf16, #tpu.memory_space<vmem>>, %arg30: memref<1x256xf32, #tpu.memory_space<vmem>>, %arg31: memref<1x256xf32, #tpu.memory_space<vmem>>, %arg32: memref<768x256xbf16, #tpu.memory_space<vmem>>, %arg33: memref<1x256xf32, #tpu.memory_space<vmem>>, %arg34: memref<1x256xf32, #tpu.memory_space<vmem>>, %arg35: memref<2x4xbf16, #tpu.memory_space<vmem>>, %arg36: memref<128x256xbf16, #tpu.memory_space<vmem>>, %arg37: memref<1x256xf32, #tpu.memory_space<vmem>>, %arg38: memref<1x256xf32, #tpu.memory_space<vmem>>, %arg39: memref<768x512xbf16, #tpu.memory_space<vmem>>, %arg40: memref<1x512xf32, #tpu.memory_space<vmem>>, %arg41: memref<1x512xf32, #tpu.memory_space<vmem>>, %arg42: memref<1536x512xbf16, #tpu.memory_space<vmem>>, %arg43: memref<1x512xf32, #tpu.memory_space<vmem>>, %arg44: memref<1x512xf32, #tpu.memory_space<vmem>>, %arg45: memref<256x512xbf16, #tpu.memory_space<vmem>>, %arg46: memref<1x512xf32, #tpu.memory_space<vmem>>, %arg47: memref<1x512xf32, #tpu.memory_space<vmem>>, %arg48: memref<512x10xf32, #tpu.memory_space<vmem>>, %arg49: memref<1x10xf32, #tpu.memory_space<vmem>>, %arg50: memref<2x10xf32, #tpu.memory_space<vmem>>) attributes {dimension_semantics = [], scalar_prefetch = 0 : i64, scratch_operands = 0 : i64, tpu.core_type = #tpu.core_type<tc>} {
    %c0 = arith.constant 0 : index
    %c0_0 = arith.constant 0 : index
    %0 = vector.load %arg0[%c0, %c0_0] : memref<16x28xbf16, #tpu.memory_space<vmem>>, vector<16x28xbf16>
    %c0_1 = arith.constant 0 : index
    %c0_2 = arith.constant 0 : index
    %1 = vector.load %arg1[%c0_1, %c0_2] : memref<28x64xbf16, #tpu.memory_space<vmem>>, vector<28x64xbf16>
    %cst = arith.constant dense<0.000000e+00> : vector<16x64xf32>
    %2 = tpu.matmul %0, %1, %cst {dimension_numbers = #tpu.dot_dimension_numbers<[1], [0], [0], [1], [0, 0, 1, 1], [], []>} : vector<16x28xbf16>, vector<28x64xbf16>, vector<16x64xf32> -> vector<16x64xf32>
    %cst_3 = arith.constant dense<0.000000e+00> : vector<64xf32>
    %3 = vector.multi_reduction <add>, %2, %cst_3 [0] : vector<16x64xf32> to vector<64xf32>
    %4 = vector.shape_cast %3 : vector<64xf32> to vector<1x64xf32>
    %cst_4 = arith.constant 6.250000e-02 : f32
    %5 = vector.broadcast %cst_4 : f32 to vector<1x64xf32>
    %6 = arith.mulf %4, %5 : vector<1x64xf32>
    %7 = vector.broadcast %6 : vector<1x64xf32> to vector<16x64xf32>
    %8 = arith.subf %2, %7 : vector<16x64xf32>
    %9 = arith.mulf %8, %8 : vector<16x64xf32>
    %cst_5 = arith.constant dense<0.000000e+00> : vector<64xf32>
    %10 = vector.multi_reduction <add>, %9, %cst_5 [0] : vector<16x64xf32> to vector<64xf32>
    %11 = vector.shape_cast %10 : vector<64xf32> to vector<1x64xf32>
    %cst_6 = arith.constant 6.250000e-02 : f32
    %12 = vector.broadcast %cst_6 : f32 to vector<1x64xf32>
    %13 = arith.mulf %11, %12 : vector<1x64xf32>
    %c0_7 = arith.constant 0 : index
    %c0_8 = arith.constant 0 : index
    %14 = vector.load %arg2[%c0_7, %c0_8] : memref<1x64xf32, #tpu.memory_space<vmem>>, vector<1x64xf32>
    %cst_9 = arith.constant 9.99999974E-6 : f32
    %15 = vector.broadcast %cst_9 : f32 to vector<1x64xf32>
    %16 = arith.addf %13, %15 : vector<1x64xf32>
    %17 = math.rsqrt %16 : vector<1x64xf32>
    %18 = arith.mulf %14, %17 : vector<1x64xf32>
    %c0_10 = arith.constant 0 : index
    %c0_11 = arith.constant 0 : index
    %19 = vector.load %arg3[%c0_10, %c0_11] : memref<1x64xf32, #tpu.memory_space<vmem>>, vector<1x64xf32>
    %20 = arith.mulf %6, %18 : vector<1x64xf32>
    %21 = arith.subf %19, %20 : vector<1x64xf32>
    %22 = vector.broadcast %18 : vector<1x64xf32> to vector<16x64xf32>
    %23 = arith.mulf %2, %22 : vector<16x64xf32>
    %24 = vector.broadcast %21 : vector<1x64xf32> to vector<16x64xf32>
    %25 = arith.addf %23, %24 : vector<16x64xf32>
    %cst_12 = arith.constant 0.000000e+00 : f32
    %26 = vector.broadcast %cst_12 : f32 to vector<16x64xf32>
    %27 = arith.maximumf %25, %26 : vector<16x64xf32>
    %28 = vector.extract_strided_slice %27 {offsets = [0, 0], sizes = [2, 64], strides = [1, 1]} : vector<16x64xf32> to vector<2x64xf32>
    %cst_13 = arith.constant dense<0xFF800000> : vector<64xf32>
    %29 = vector.multi_reduction <maximumf>, %28, %cst_13 [0] : vector<2x64xf32> to vector<64xf32>
    %30 = vector.shape_cast %29 : vector<64xf32> to vector<1x64xf32>
    %31 = vector.extract_strided_slice %27 {offsets = [1, 0], sizes = [3, 64], strides = [1, 1]} : vector<16x64xf32> to vector<3x64xf32>
    %cst_14 = arith.constant dense<0xFF800000> : vector<64xf32>
    %32 = vector.multi_reduction <maximumf>, %31, %cst_14 [0] : vector<3x64xf32> to vector<64xf32>
    %33 = vector.shape_cast %32 : vector<64xf32> to vector<1x64xf32>
    %34 = vector.extract_strided_slice %27 {offsets = [3, 0], sizes = [3, 64], strides = [1, 1]} : vector<16x64xf32> to vector<3x64xf32>
    %cst_15 = arith.constant dense<0xFF800000> : vector<64xf32>
    %35 = vector.multi_reduction <maximumf>, %34, %cst_15 [0] : vector<3x64xf32> to vector<64xf32>
    %36 = vector.shape_cast %35 : vector<64xf32> to vector<1x64xf32>
    %37 = vector.extract_strided_slice %27 {offsets = [5, 0], sizes = [3, 64], strides = [1, 1]} : vector<16x64xf32> to vector<3x64xf32>
    %cst_16 = arith.constant dense<0xFF800000> : vector<64xf32>
    %38 = vector.multi_reduction <maximumf>, %37, %cst_16 [0] : vector<3x64xf32> to vector<64xf32>
    %39 = vector.shape_cast %38 : vector<64xf32> to vector<1x64xf32>
    %40 = vector.extract_strided_slice %27 {offsets = [8, 0], sizes = [2, 64], strides = [1, 1]} : vector<16x64xf32> to vector<2x64xf32>
    %cst_17 = arith.constant dense<0xFF800000> : vector<64xf32>
    %41 = vector.multi_reduction <maximumf>, %40, %cst_17 [0] : vector<2x64xf32> to vector<64xf32>
    %42 = vector.shape_cast %41 : vector<64xf32> to vector<1x64xf32>
    %43 = vector.extract_strided_slice %27 {offsets = [9, 0], sizes = [3, 64], strides = [1, 1]} : vector<16x64xf32> to vector<3x64xf32>
    %cst_18 = arith.constant dense<0xFF800000> : vector<64xf32>
    %44 = vector.multi_reduction <maximumf>, %43, %cst_18 [0] : vector<3x64xf32> to vector<64xf32>
    %45 = vector.shape_cast %44 : vector<64xf32> to vector<1x64xf32>
    %46 = vector.extract_strided_slice %27 {offsets = [11, 0], sizes = [3, 64], strides = [1, 1]} : vector<16x64xf32> to vector<3x64xf32>
    %cst_19 = arith.constant dense<0xFF800000> : vector<64xf32>
    %47 = vector.multi_reduction <maximumf>, %46, %cst_19 [0] : vector<3x64xf32> to vector<64xf32>
    %48 = vector.shape_cast %47 : vector<64xf32> to vector<1x64xf32>
    %49 = vector.extract_strided_slice %27 {offsets = [13, 0], sizes = [3, 64], strides = [1, 1]} : vector<16x64xf32> to vector<3x64xf32>
    %cst_20 = arith.constant dense<0xFF800000> : vector<64xf32>
    %50 = vector.multi_reduction <maximumf>, %49, %cst_20 [0] : vector<3x64xf32> to vector<64xf32>
    %51 = vector.shape_cast %50 : vector<64xf32> to vector<1x64xf32>
    %52 = tpu.concatenate %30, %33, %36, %39, %42, %45, %48, %51 in 0 : vector<1x64xf32>, vector<1x64xf32>, vector<1x64xf32>, vector<1x64xf32>, vector<1x64xf32>, vector<1x64xf32>, vector<1x64xf32>, vector<1x64xf32> -> vector<8x64xf32>
    %53 = arith.truncf %52 : vector<8x64xf32> to vector<8x64xbf16>
    %c0_21 = arith.constant 0 : index
    %c0_22 = arith.constant 0 : index
    %54 = vector.load %arg4[%c0_21, %c0_22] : memref<8x8xbf16, #tpu.memory_space<vmem>>, vector<8x8xbf16>
    %cst_23 = arith.constant dense<0.000000e+00> : vector<8x64xf32>
    %55 = tpu.matmul %54, %53, %cst_23 {dimension_numbers = #tpu.dot_dimension_numbers<[1], [0], [0], [1], [0, 0, 1, 1], [], []>} : vector<8x8xbf16>, vector<8x64xbf16>, vector<8x64xf32> -> vector<8x64xf32>
    %56 = arith.truncf %55 : vector<8x64xf32> to vector<8x64xbf16>
    %c0_24 = arith.constant 0 : index
    %c0_25 = arith.constant 0 : index
    %57 = vector.load %arg5[%c0_24, %c0_25] : memref<8x8xbf16, #tpu.memory_space<vmem>>, vector<8x8xbf16>
    %cst_26 = arith.constant dense<0.000000e+00> : vector<8x64xf32>
    %58 = tpu.matmul %57, %53, %cst_26 {dimension_numbers = #tpu.dot_dimension_numbers<[1], [0], [0], [1], [0, 0, 1, 1], [], []>} : vector<8x8xbf16>, vector<8x64xbf16>, vector<8x64xf32> -> vector<8x64xf32>
    %59 = arith.truncf %58 : vector<8x64xf32> to vector<8x64xbf16>
    %60 = tpu.concatenate %56, %53, %59 in 1 : vector<8x64xbf16>, vector<8x64xbf16>, vector<8x64xbf16> -> vector<8x192xbf16>
    %c0_27 = arith.constant 0 : index
    %c0_28 = arith.constant 0 : index
    %61 = vector.load %arg6[%c0_27, %c0_28] : memref<192x64xbf16, #tpu.memory_space<vmem>>, vector<192x64xbf16>
    %cst_29 = arith.constant dense<0.000000e+00> : vector<8x64xf32>
    %62 = tpu.matmul %60, %61, %cst_29 {dimension_numbers = #tpu.dot_dimension_numbers<[1], [0], [0], [1], [0, 0, 1, 1], [], []>} : vector<8x192xbf16>, vector<192x64xbf16>, vector<8x64xf32> -> vector<8x64xf32>
    %cst_30 = arith.constant dense<0.000000e+00> : vector<64xf32>
    %63 = vector.multi_reduction <add>, %62, %cst_30 [0] : vector<8x64xf32> to vector<64xf32>
    %64 = vector.shape_cast %63 : vector<64xf32> to vector<1x64xf32>
    %cst_31 = arith.constant 1.250000e-01 : f32
    %65 = vector.broadcast %cst_31 : f32 to vector<1x64xf32>
    %66 = arith.mulf %64, %65 : vector<1x64xf32>
    %67 = vector.broadcast %66 : vector<1x64xf32> to vector<8x64xf32>
    %68 = arith.subf %62, %67 : vector<8x64xf32>
    %69 = arith.mulf %68, %68 : vector<8x64xf32>
    %cst_32 = arith.constant dense<0.000000e+00> : vector<64xf32>
    %70 = vector.multi_reduction <add>, %69, %cst_32 [0] : vector<8x64xf32> to vector<64xf32>
    %71 = vector.shape_cast %70 : vector<64xf32> to vector<1x64xf32>
    %cst_33 = arith.constant 1.250000e-01 : f32
    %72 = vector.broadcast %cst_33 : f32 to vector<1x64xf32>
    %73 = arith.mulf %71, %72 : vector<1x64xf32>
    %c0_34 = arith.constant 0 : index
    %c0_35 = arith.constant 0 : index
    %74 = vector.load %arg7[%c0_34, %c0_35] : memref<1x64xf32, #tpu.memory_space<vmem>>, vector<1x64xf32>
    %cst_36 = arith.constant 9.99999974E-6 : f32
    %75 = vector.broadcast %cst_36 : f32 to vector<1x64xf32>
    %76 = arith.addf %73, %75 : vector<1x64xf32>
    %77 = math.rsqrt %76 : vector<1x64xf32>
    %78 = arith.mulf %74, %77 : vector<1x64xf32>
    %c0_37 = arith.constant 0 : index
    %c0_38 = arith.constant 0 : index
    %79 = vector.load %arg8[%c0_37, %c0_38] : memref<1x64xf32, #tpu.memory_space<vmem>>, vector<1x64xf32>
    %80 = arith.mulf %66, %78 : vector<1x64xf32>
    %81 = arith.subf %79, %80 : vector<1x64xf32>
    %82 = vector.broadcast %78 : vector<1x64xf32> to vector<8x64xf32>
    %83 = arith.mulf %62, %82 : vector<8x64xf32>
    %84 = vector.broadcast %81 : vector<1x64xf32> to vector<8x64xf32>
    %85 = arith.addf %83, %84 : vector<8x64xf32>
    %cst_39 = arith.constant 0.000000e+00 : f32
    %86 = vector.broadcast %cst_39 : f32 to vector<8x64xf32>
    %87 = arith.maximumf %85, %86 : vector<8x64xf32>
    %88 = arith.truncf %87 : vector<8x64xf32> to vector<8x64xbf16>
    %c0_40 = arith.constant 0 : index
    %c0_41 = arith.constant 0 : index
    %89 = vector.load %arg4[%c0_40, %c0_41] : memref<8x8xbf16, #tpu.memory_space<vmem>>, vector<8x8xbf16>
    %cst_42 = arith.constant dense<0.000000e+00> : vector<8x64xf32>
    %90 = tpu.matmul %89, %88, %cst_42 {dimension_numbers = #tpu.dot_dimension_numbers<[1], [0], [0], [1], [0, 0, 1, 1], [], []>} : vector<8x8xbf16>, vector<8x64xbf16>, vector<8x64xf32> -> vector<8x64xf32>
    %91 = arith.truncf %90 : vector<8x64xf32> to vector<8x64xbf16>
    %c0_43 = arith.constant 0 : index
    %c0_44 = arith.constant 0 : index
    %92 = vector.load %arg5[%c0_43, %c0_44] : memref<8x8xbf16, #tpu.memory_space<vmem>>, vector<8x8xbf16>
    %cst_45 = arith.constant dense<0.000000e+00> : vector<8x64xf32>
    %93 = tpu.matmul %92, %88, %cst_45 {dimension_numbers = #tpu.dot_dimension_numbers<[1], [0], [0], [1], [0, 0, 1, 1], [], []>} : vector<8x8xbf16>, vector<8x64xbf16>, vector<8x64xf32> -> vector<8x64xf32>
    %94 = arith.truncf %93 : vector<8x64xf32> to vector<8x64xbf16>
    %95 = tpu.concatenate %91, %88, %94 in 1 : vector<8x64xbf16>, vector<8x64xbf16>, vector<8x64xbf16> -> vector<8x192xbf16>
    %c0_46 = arith.constant 0 : index
    %c0_47 = arith.constant 0 : index
    %96 = vector.load %arg9[%c0_46, %c0_47] : memref<192x64xbf16, #tpu.memory_space<vmem>>, vector<192x64xbf16>
    %cst_48 = arith.constant dense<0.000000e+00> : vector<8x64xf32>
    %97 = tpu.matmul %95, %96, %cst_48 {dimension_numbers = #tpu.dot_dimension_numbers<[1], [0], [0], [1], [0, 0, 1, 1], [], []>} : vector<8x192xbf16>, vector<192x64xbf16>, vector<8x64xf32> -> vector<8x64xf32>
    %cst_49 = arith.constant dense<0.000000e+00> : vector<64xf32>
    %98 = vector.multi_reduction <add>, %97, %cst_49 [0] : vector<8x64xf32> to vector<64xf32>
    %99 = vector.shape_cast %98 : vector<64xf32> to vector<1x64xf32>
    %cst_50 = arith.constant 1.250000e-01 : f32
    %100 = vector.broadcast %cst_50 : f32 to vector<1x64xf32>
    %101 = arith.mulf %99, %100 : vector<1x64xf32>
    %102 = vector.broadcast %101 : vector<1x64xf32> to vector<8x64xf32>
    %103 = arith.subf %97, %102 : vector<8x64xf32>
    %104 = arith.mulf %103, %103 : vector<8x64xf32>
    %cst_51 = arith.constant dense<0.000000e+00> : vector<64xf32>
    %105 = vector.multi_reduction <add>, %104, %cst_51 [0] : vector<8x64xf32> to vector<64xf32>
    %106 = vector.shape_cast %105 : vector<64xf32> to vector<1x64xf32>
    %cst_52 = arith.constant 1.250000e-01 : f32
    %107 = vector.broadcast %cst_52 : f32 to vector<1x64xf32>
    %108 = arith.mulf %106, %107 : vector<1x64xf32>
    %c0_53 = arith.constant 0 : index
    %c0_54 = arith.constant 0 : index
    %109 = vector.load %arg10[%c0_53, %c0_54] : memref<1x64xf32, #tpu.memory_space<vmem>>, vector<1x64xf32>
    %cst_55 = arith.constant 9.99999974E-6 : f32
    %110 = vector.broadcast %cst_55 : f32 to vector<1x64xf32>
    %111 = arith.addf %108, %110 : vector<1x64xf32>
    %112 = math.rsqrt %111 : vector<1x64xf32>
    %113 = arith.mulf %109, %112 : vector<1x64xf32>
    %c0_56 = arith.constant 0 : index
    %c0_57 = arith.constant 0 : index
    %114 = vector.load %arg11[%c0_56, %c0_57] : memref<1x64xf32, #tpu.memory_space<vmem>>, vector<1x64xf32>
    %115 = arith.mulf %101, %113 : vector<1x64xf32>
    %116 = arith.subf %114, %115 : vector<1x64xf32>
    %117 = vector.broadcast %113 : vector<1x64xf32> to vector<8x64xf32>
    %118 = arith.mulf %97, %117 : vector<8x64xf32>
    %119 = vector.broadcast %116 : vector<1x64xf32> to vector<8x64xf32>
    %120 = arith.addf %118, %119 : vector<8x64xf32>
    %121 = arith.addf %120, %52 : vector<8x64xf32>
    %cst_58 = arith.constant 0.000000e+00 : f32
    %122 = vector.broadcast %cst_58 : f32 to vector<8x64xf32>
    %123 = arith.maximumf %121, %122 : vector<8x64xf32>
    %124 = arith.truncf %123 : vector<8x64xf32> to vector<8x64xbf16>
    %c0_59 = arith.constant 0 : index
    %c0_60 = arith.constant 0 : index
    %125 = vector.load %arg23[%c0_59, %c0_60] : memref<4x8xbf16, #tpu.memory_space<vmem>>, vector<4x8xbf16>
    %cst_61 = arith.constant dense<0.000000e+00> : vector<4x64xf32>
    %126 = tpu.matmul %125, %124, %cst_61 {dimension_numbers = #tpu.dot_dimension_numbers<[1], [0], [0], [1], [0, 0, 1, 1], [], []>} : vector<4x8xbf16>, vector<8x64xbf16>, vector<4x64xf32> -> vector<4x64xf32>
    %127 = arith.truncf %126 : vector<4x64xf32> to vector<4x64xbf16>
    %c0_62 = arith.constant 0 : index
    %c0_63 = arith.constant 0 : index
    %128 = vector.load %arg24[%c0_62, %c0_63] : memref<64x128xbf16, #tpu.memory_space<vmem>>, vector<64x128xbf16>
    %cst_64 = arith.constant dense<0.000000e+00> : vector<4x128xf32>
    %129 = tpu.matmul %127, %128, %cst_64 {dimension_numbers = #tpu.dot_dimension_numbers<[1], [0], [0], [1], [0, 0, 1, 1], [], []>} : vector<4x64xbf16>, vector<64x128xbf16>, vector<4x128xf32> -> vector<4x128xf32>
    %cst_65 = arith.constant dense<0.000000e+00> : vector<128xf32>
    %130 = vector.multi_reduction <add>, %129, %cst_65 [0] : vector<4x128xf32> to vector<128xf32>
    %131 = vector.shape_cast %130 : vector<128xf32> to vector<1x128xf32>
    %cst_66 = arith.constant 2.500000e-01 : f32
    %132 = vector.broadcast %cst_66 : f32 to vector<1x128xf32>
    %133 = arith.mulf %131, %132 : vector<1x128xf32>
    %134 = vector.broadcast %133 : vector<1x128xf32> to vector<4x128xf32>
    %135 = arith.subf %129, %134 : vector<4x128xf32>
    %136 = arith.mulf %135, %135 : vector<4x128xf32>
    %cst_67 = arith.constant dense<0.000000e+00> : vector<128xf32>
    %137 = vector.multi_reduction <add>, %136, %cst_67 [0] : vector<4x128xf32> to vector<128xf32>
    %138 = vector.shape_cast %137 : vector<128xf32> to vector<1x128xf32>
    %cst_68 = arith.constant 2.500000e-01 : f32
    %139 = vector.broadcast %cst_68 : f32 to vector<1x128xf32>
    %140 = arith.mulf %138, %139 : vector<1x128xf32>
    %c0_69 = arith.constant 0 : index
    %c0_70 = arith.constant 0 : index
    %141 = vector.load %arg25[%c0_69, %c0_70] : memref<1x128xf32, #tpu.memory_space<vmem>>, vector<1x128xf32>
    %cst_71 = arith.constant 9.99999974E-6 : f32
    %142 = vector.broadcast %cst_71 : f32 to vector<1x128xf32>
    %143 = arith.addf %140, %142 : vector<1x128xf32>
    %144 = math.rsqrt %143 : vector<1x128xf32>
    %145 = arith.mulf %141, %144 : vector<1x128xf32>
    %c0_72 = arith.constant 0 : index
    %c0_73 = arith.constant 0 : index
    %146 = vector.load %arg26[%c0_72, %c0_73] : memref<1x128xf32, #tpu.memory_space<vmem>>, vector<1x128xf32>
    %147 = arith.mulf %133, %145 : vector<1x128xf32>
    %148 = arith.subf %146, %147 : vector<1x128xf32>
    %149 = vector.broadcast %145 : vector<1x128xf32> to vector<4x128xf32>
    %150 = arith.mulf %129, %149 : vector<4x128xf32>
    %151 = vector.broadcast %148 : vector<1x128xf32> to vector<4x128xf32>
    %152 = arith.addf %150, %151 : vector<4x128xf32>
    %153 = arith.truncf %123 : vector<8x64xf32> to vector<8x64xbf16>
    %c0_74 = arith.constant 0 : index
    %c0_75 = arith.constant 0 : index
    %154 = vector.load %arg12[%c0_74, %c0_75] : memref<4x8xbf16, #tpu.memory_space<vmem>>, vector<4x8xbf16>
    %cst_76 = arith.constant dense<0.000000e+00> : vector<4x64xf32>
    %155 = tpu.matmul %154, %153, %cst_76 {dimension_numbers = #tpu.dot_dimension_numbers<[1], [0], [0], [1], [0, 0, 1, 1], [], []>} : vector<4x8xbf16>, vector<8x64xbf16>, vector<4x64xf32> -> vector<4x64xf32>
    %156 = arith.truncf %155 : vector<4x64xf32> to vector<4x64xbf16>
    %c0_77 = arith.constant 0 : index
    %c0_78 = arith.constant 0 : index
    %157 = vector.load %arg13[%c0_77, %c0_78] : memref<4x8xbf16, #tpu.memory_space<vmem>>, vector<4x8xbf16>
    %cst_79 = arith.constant dense<0.000000e+00> : vector<4x64xf32>
    %158 = tpu.matmul %157, %153, %cst_79 {dimension_numbers = #tpu.dot_dimension_numbers<[1], [0], [0], [1], [0, 0, 1, 1], [], []>} : vector<4x8xbf16>, vector<8x64xbf16>, vector<4x64xf32> -> vector<4x64xf32>
    %159 = arith.truncf %158 : vector<4x64xf32> to vector<4x64xbf16>
    %c0_80 = arith.constant 0 : index
    %c0_81 = arith.constant 0 : index
    %160 = vector.load %arg14[%c0_80, %c0_81] : memref<4x8xbf16, #tpu.memory_space<vmem>>, vector<4x8xbf16>
    %cst_82 = arith.constant dense<0.000000e+00> : vector<4x64xf32>
    %161 = tpu.matmul %160, %153, %cst_82 {dimension_numbers = #tpu.dot_dimension_numbers<[1], [0], [0], [1], [0, 0, 1, 1], [], []>} : vector<4x8xbf16>, vector<8x64xbf16>, vector<4x64xf32> -> vector<4x64xf32>
    %162 = arith.truncf %161 : vector<4x64xf32> to vector<4x64xbf16>
    %163 = tpu.concatenate %156, %159, %162 in 1 : vector<4x64xbf16>, vector<4x64xbf16>, vector<4x64xbf16> -> vector<4x192xbf16>
    %c0_83 = arith.constant 0 : index
    %c0_84 = arith.constant 0 : index
    %164 = vector.load %arg15[%c0_83, %c0_84] : memref<192x128xbf16, #tpu.memory_space<vmem>>, vector<192x128xbf16>
    %cst_85 = arith.constant dense<0.000000e+00> : vector<4x128xf32>
    %165 = tpu.matmul %163, %164, %cst_85 {dimension_numbers = #tpu.dot_dimension_numbers<[1], [0], [0], [1], [0, 0, 1, 1], [], []>} : vector<4x192xbf16>, vector<192x128xbf16>, vector<4x128xf32> -> vector<4x128xf32>
    %cst_86 = arith.constant dense<0.000000e+00> : vector<128xf32>
    %166 = vector.multi_reduction <add>, %165, %cst_86 [0] : vector<4x128xf32> to vector<128xf32>
    %167 = vector.shape_cast %166 : vector<128xf32> to vector<1x128xf32>
    %cst_87 = arith.constant 2.500000e-01 : f32
    %168 = vector.broadcast %cst_87 : f32 to vector<1x128xf32>
    %169 = arith.mulf %167, %168 : vector<1x128xf32>
    %170 = vector.broadcast %169 : vector<1x128xf32> to vector<4x128xf32>
    %171 = arith.subf %165, %170 : vector<4x128xf32>
    %172 = arith.mulf %171, %171 : vector<4x128xf32>
    %cst_88 = arith.constant dense<0.000000e+00> : vector<128xf32>
    %173 = vector.multi_reduction <add>, %172, %cst_88 [0] : vector<4x128xf32> to vector<128xf32>
    %174 = vector.shape_cast %173 : vector<128xf32> to vector<1x128xf32>
    %cst_89 = arith.constant 2.500000e-01 : f32
    %175 = vector.broadcast %cst_89 : f32 to vector<1x128xf32>
    %176 = arith.mulf %174, %175 : vector<1x128xf32>
    %c0_90 = arith.constant 0 : index
    %c0_91 = arith.constant 0 : index
    %177 = vector.load %arg16[%c0_90, %c0_91] : memref<1x128xf32, #tpu.memory_space<vmem>>, vector<1x128xf32>
    %cst_92 = arith.constant 9.99999974E-6 : f32
    %178 = vector.broadcast %cst_92 : f32 to vector<1x128xf32>
    %179 = arith.addf %176, %178 : vector<1x128xf32>
    %180 = math.rsqrt %179 : vector<1x128xf32>
    %181 = arith.mulf %177, %180 : vector<1x128xf32>
    %c0_93 = arith.constant 0 : index
    %c0_94 = arith.constant 0 : index
    %182 = vector.load %arg17[%c0_93, %c0_94] : memref<1x128xf32, #tpu.memory_space<vmem>>, vector<1x128xf32>
    %183 = arith.mulf %169, %181 : vector<1x128xf32>
    %184 = arith.subf %182, %183 : vector<1x128xf32>
    %185 = vector.broadcast %181 : vector<1x128xf32> to vector<4x128xf32>
    %186 = arith.mulf %165, %185 : vector<4x128xf32>
    %187 = vector.broadcast %184 : vector<1x128xf32> to vector<4x128xf32>
    %188 = arith.addf %186, %187 : vector<4x128xf32>
    %cst_95 = arith.constant 0.000000e+00 : f32
    %189 = vector.broadcast %cst_95 : f32 to vector<4x128xf32>
    %190 = arith.maximumf %188, %189 : vector<4x128xf32>
    %191 = arith.truncf %190 : vector<4x128xf32> to vector<4x128xbf16>
    %c0_96 = arith.constant 0 : index
    %c0_97 = arith.constant 0 : index
    %192 = vector.load %arg18[%c0_96, %c0_97] : memref<4x4xbf16, #tpu.memory_space<vmem>>, vector<4x4xbf16>
    %cst_98 = arith.constant dense<0.000000e+00> : vector<4x128xf32>
    %193 = tpu.matmul %192, %191, %cst_98 {dimension_numbers = #tpu.dot_dimension_numbers<[1], [0], [0], [1], [0, 0, 1, 1], [], []>} : vector<4x4xbf16>, vector<4x128xbf16>, vector<4x128xf32> -> vector<4x128xf32>
    %194 = arith.truncf %193 : vector<4x128xf32> to vector<4x128xbf16>
    %c0_99 = arith.constant 0 : index
    %c0_100 = arith.constant 0 : index
    %195 = vector.load %arg19[%c0_99, %c0_100] : memref<4x4xbf16, #tpu.memory_space<vmem>>, vector<4x4xbf16>
    %cst_101 = arith.constant dense<0.000000e+00> : vector<4x128xf32>
    %196 = tpu.matmul %195, %191, %cst_101 {dimension_numbers = #tpu.dot_dimension_numbers<[1], [0], [0], [1], [0, 0, 1, 1], [], []>} : vector<4x4xbf16>, vector<4x128xbf16>, vector<4x128xf32> -> vector<4x128xf32>
    %197 = arith.truncf %196 : vector<4x128xf32> to vector<4x128xbf16>
    %198 = tpu.concatenate %194, %191, %197 in 1 : vector<4x128xbf16>, vector<4x128xbf16>, vector<4x128xbf16> -> vector<4x384xbf16>
    %c0_102 = arith.constant 0 : index
    %c0_103 = arith.constant 0 : index
    %199 = vector.load %arg20[%c0_102, %c0_103] : memref<384x128xbf16, #tpu.memory_space<vmem>>, vector<384x128xbf16>
    %cst_104 = arith.constant dense<0.000000e+00> : vector<4x128xf32>
    %200 = tpu.matmul %198, %199, %cst_104 {dimension_numbers = #tpu.dot_dimension_numbers<[1], [0], [0], [1], [0, 0, 1, 1], [], []>} : vector<4x384xbf16>, vector<384x128xbf16>, vector<4x128xf32> -> vector<4x128xf32>
    %cst_105 = arith.constant dense<0.000000e+00> : vector<128xf32>
    %201 = vector.multi_reduction <add>, %200, %cst_105 [0] : vector<4x128xf32> to vector<128xf32>
    %202 = vector.shape_cast %201 : vector<128xf32> to vector<1x128xf32>
    %cst_106 = arith.constant 2.500000e-01 : f32
    %203 = vector.broadcast %cst_106 : f32 to vector<1x128xf32>
    %204 = arith.mulf %202, %203 : vector<1x128xf32>
    %205 = vector.broadcast %204 : vector<1x128xf32> to vector<4x128xf32>
    %206 = arith.subf %200, %205 : vector<4x128xf32>
    %207 = arith.mulf %206, %206 : vector<4x128xf32>
    %cst_107 = arith.constant dense<0.000000e+00> : vector<128xf32>
    %208 = vector.multi_reduction <add>, %207, %cst_107 [0] : vector<4x128xf32> to vector<128xf32>
    %209 = vector.shape_cast %208 : vector<128xf32> to vector<1x128xf32>
    %cst_108 = arith.constant 2.500000e-01 : f32
    %210 = vector.broadcast %cst_108 : f32 to vector<1x128xf32>
    %211 = arith.mulf %209, %210 : vector<1x128xf32>
    %c0_109 = arith.constant 0 : index
    %c0_110 = arith.constant 0 : index
    %212 = vector.load %arg21[%c0_109, %c0_110] : memref<1x128xf32, #tpu.memory_space<vmem>>, vector<1x128xf32>
    %cst_111 = arith.constant 9.99999974E-6 : f32
    %213 = vector.broadcast %cst_111 : f32 to vector<1x128xf32>
    %214 = arith.addf %211, %213 : vector<1x128xf32>
    %215 = math.rsqrt %214 : vector<1x128xf32>
    %216 = arith.mulf %212, %215 : vector<1x128xf32>
    %c0_112 = arith.constant 0 : index
    %c0_113 = arith.constant 0 : index
    %217 = vector.load %arg22[%c0_112, %c0_113] : memref<1x128xf32, #tpu.memory_space<vmem>>, vector<1x128xf32>
    %218 = arith.mulf %204, %216 : vector<1x128xf32>
    %219 = arith.subf %217, %218 : vector<1x128xf32>
    %220 = vector.broadcast %216 : vector<1x128xf32> to vector<4x128xf32>
    %221 = arith.mulf %200, %220 : vector<4x128xf32>
    %222 = vector.broadcast %219 : vector<1x128xf32> to vector<4x128xf32>
    %223 = arith.addf %221, %222 : vector<4x128xf32>
    %224 = arith.addf %223, %152 : vector<4x128xf32>
    %cst_114 = arith.constant 0.000000e+00 : f32
    %225 = vector.broadcast %cst_114 : f32 to vector<4x128xf32>
    %226 = arith.maximumf %224, %225 : vector<4x128xf32>
    %227 = arith.truncf %226 : vector<4x128xf32> to vector<4x128xbf16>
    %c0_115 = arith.constant 0 : index
    %c0_116 = arith.constant 0 : index
    %228 = vector.load %arg35[%c0_115, %c0_116] : memref<2x4xbf16, #tpu.memory_space<vmem>>, vector<2x4xbf16>
    %cst_117 = arith.constant dense<0.000000e+00> : vector<2x128xf32>
    %229 = tpu.matmul %228, %227, %cst_117 {dimension_numbers = #tpu.dot_dimension_numbers<[1], [0], [0], [1], [0, 0, 1, 1], [], []>} : vector<2x4xbf16>, vector<4x128xbf16>, vector<2x128xf32> -> vector<2x128xf32>
    %230 = arith.truncf %229 : vector<2x128xf32> to vector<2x128xbf16>
    %c0_118 = arith.constant 0 : index
    %c0_119 = arith.constant 0 : index
    %231 = vector.load %arg36[%c0_118, %c0_119] : memref<128x256xbf16, #tpu.memory_space<vmem>>, vector<128x256xbf16>
    %cst_120 = arith.constant dense<0.000000e+00> : vector<2x256xf32>
    %232 = tpu.matmul %230, %231, %cst_120 {dimension_numbers = #tpu.dot_dimension_numbers<[1], [0], [0], [1], [0, 0, 1, 1], [], []>} : vector<2x128xbf16>, vector<128x256xbf16>, vector<2x256xf32> -> vector<2x256xf32>
    %cst_121 = arith.constant dense<0.000000e+00> : vector<256xf32>
    %233 = vector.multi_reduction <add>, %232, %cst_121 [0] : vector<2x256xf32> to vector<256xf32>
    %234 = vector.shape_cast %233 : vector<256xf32> to vector<1x256xf32>
    %cst_122 = arith.constant 5.000000e-01 : f32
    %235 = vector.broadcast %cst_122 : f32 to vector<1x256xf32>
    %236 = arith.mulf %234, %235 : vector<1x256xf32>
    %237 = vector.broadcast %236 : vector<1x256xf32> to vector<2x256xf32>
    %238 = arith.subf %232, %237 : vector<2x256xf32>
    %239 = arith.mulf %238, %238 : vector<2x256xf32>
    %cst_123 = arith.constant dense<0.000000e+00> : vector<256xf32>
    %240 = vector.multi_reduction <add>, %239, %cst_123 [0] : vector<2x256xf32> to vector<256xf32>
    %241 = vector.shape_cast %240 : vector<256xf32> to vector<1x256xf32>
    %cst_124 = arith.constant 5.000000e-01 : f32
    %242 = vector.broadcast %cst_124 : f32 to vector<1x256xf32>
    %243 = arith.mulf %241, %242 : vector<1x256xf32>
    %c0_125 = arith.constant 0 : index
    %c0_126 = arith.constant 0 : index
    %244 = vector.load %arg37[%c0_125, %c0_126] : memref<1x256xf32, #tpu.memory_space<vmem>>, vector<1x256xf32>
    %cst_127 = arith.constant 9.99999974E-6 : f32
    %245 = vector.broadcast %cst_127 : f32 to vector<1x256xf32>
    %246 = arith.addf %243, %245 : vector<1x256xf32>
    %247 = math.rsqrt %246 : vector<1x256xf32>
    %248 = arith.mulf %244, %247 : vector<1x256xf32>
    %c0_128 = arith.constant 0 : index
    %c0_129 = arith.constant 0 : index
    %249 = vector.load %arg38[%c0_128, %c0_129] : memref<1x256xf32, #tpu.memory_space<vmem>>, vector<1x256xf32>
    %250 = arith.mulf %236, %248 : vector<1x256xf32>
    %251 = arith.subf %249, %250 : vector<1x256xf32>
    %252 = vector.broadcast %248 : vector<1x256xf32> to vector<2x256xf32>
    %253 = arith.mulf %232, %252 : vector<2x256xf32>
    %254 = vector.broadcast %251 : vector<1x256xf32> to vector<2x256xf32>
    %255 = arith.addf %253, %254 : vector<2x256xf32>
    %256 = arith.truncf %226 : vector<4x128xf32> to vector<4x128xbf16>
    %cst_130 = arith.constant 0.000000e+00 : bf16
    %257 = vector.broadcast %cst_130 : bf16 to vector<2x128xbf16>
    %c0_131 = arith.constant 0 : index
    %c0_132 = arith.constant 0 : index
    %258 = vector.load %arg27[%c0_131, %c0_132] : memref<2x4xbf16, #tpu.memory_space<vmem>>, vector<2x4xbf16>
    %cst_133 = arith.constant dense<0.000000e+00> : vector<2x128xf32>
    %259 = tpu.matmul %258, %256, %cst_133 {dimension_numbers = #tpu.dot_dimension_numbers<[1], [0], [0], [1], [0, 0, 1, 1], [], []>} : vector<2x4xbf16>, vector<4x128xbf16>, vector<2x128xf32> -> vector<2x128xf32>
    %260 = arith.truncf %259 : vector<2x128xf32> to vector<2x128xbf16>
    %c0_134 = arith.constant 0 : index
    %c0_135 = arith.constant 0 : index
    %261 = vector.load %arg28[%c0_134, %c0_135] : memref<2x4xbf16, #tpu.memory_space<vmem>>, vector<2x4xbf16>
    %cst_136 = arith.constant dense<0.000000e+00> : vector<2x128xf32>
    %262 = tpu.matmul %261, %256, %cst_136 {dimension_numbers = #tpu.dot_dimension_numbers<[1], [0], [0], [1], [0, 0, 1, 1], [], []>} : vector<2x4xbf16>, vector<4x128xbf16>, vector<2x128xf32> -> vector<2x128xf32>
    %263 = arith.truncf %262 : vector<2x128xf32> to vector<2x128xbf16>
    %264 = tpu.concatenate %257, %260, %263 in 1 : vector<2x128xbf16>, vector<2x128xbf16>, vector<2x128xbf16> -> vector<2x384xbf16>
    %c0_137 = arith.constant 0 : index
    %c0_138 = arith.constant 0 : index
    %265 = vector.load %arg29[%c0_137, %c0_138] : memref<384x256xbf16, #tpu.memory_space<vmem>>, vector<384x256xbf16>
    %cst_139 = arith.constant dense<0.000000e+00> : vector<2x256xf32>
    %266 = tpu.matmul %264, %265, %cst_139 {dimension_numbers = #tpu.dot_dimension_numbers<[1], [0], [0], [1], [0, 0, 1, 1], [], []>} : vector<2x384xbf16>, vector<384x256xbf16>, vector<2x256xf32> -> vector<2x256xf32>
    %cst_140 = arith.constant dense<0.000000e+00> : vector<256xf32>
    %267 = vector.multi_reduction <add>, %266, %cst_140 [0] : vector<2x256xf32> to vector<256xf32>
    %268 = vector.shape_cast %267 : vector<256xf32> to vector<1x256xf32>
    %cst_141 = arith.constant 5.000000e-01 : f32
    %269 = vector.broadcast %cst_141 : f32 to vector<1x256xf32>
    %270 = arith.mulf %268, %269 : vector<1x256xf32>
    %271 = vector.broadcast %270 : vector<1x256xf32> to vector<2x256xf32>
    %272 = arith.subf %266, %271 : vector<2x256xf32>
    %273 = arith.mulf %272, %272 : vector<2x256xf32>
    %cst_142 = arith.constant dense<0.000000e+00> : vector<256xf32>
    %274 = vector.multi_reduction <add>, %273, %cst_142 [0] : vector<2x256xf32> to vector<256xf32>
    %275 = vector.shape_cast %274 : vector<256xf32> to vector<1x256xf32>
    %cst_143 = arith.constant 5.000000e-01 : f32
    %276 = vector.broadcast %cst_143 : f32 to vector<1x256xf32>
    %277 = arith.mulf %275, %276 : vector<1x256xf32>
    %c0_144 = arith.constant 0 : index
    %c0_145 = arith.constant 0 : index
    %278 = vector.load %arg30[%c0_144, %c0_145] : memref<1x256xf32, #tpu.memory_space<vmem>>, vector<1x256xf32>
    %cst_146 = arith.constant 9.99999974E-6 : f32
    %279 = vector.broadcast %cst_146 : f32 to vector<1x256xf32>
    %280 = arith.addf %277, %279 : vector<1x256xf32>
    %281 = math.rsqrt %280 : vector<1x256xf32>
    %282 = arith.mulf %278, %281 : vector<1x256xf32>
    %c0_147 = arith.constant 0 : index
    %c0_148 = arith.constant 0 : index
    %283 = vector.load %arg31[%c0_147, %c0_148] : memref<1x256xf32, #tpu.memory_space<vmem>>, vector<1x256xf32>
    %284 = arith.mulf %270, %282 : vector<1x256xf32>
    %285 = arith.subf %283, %284 : vector<1x256xf32>
    %286 = vector.broadcast %282 : vector<1x256xf32> to vector<2x256xf32>
    %287 = arith.mulf %266, %286 : vector<2x256xf32>
    %288 = vector.broadcast %285 : vector<1x256xf32> to vector<2x256xf32>
    %289 = arith.addf %287, %288 : vector<2x256xf32>
    %cst_149 = arith.constant 0.000000e+00 : f32
    %290 = vector.broadcast %cst_149 : f32 to vector<2x256xf32>
    %291 = arith.maximumf %289, %290 : vector<2x256xf32>
    %292 = arith.truncf %291 : vector<2x256xf32> to vector<2x256xbf16>
    %cst_150 = arith.constant 0.000000e+00 : bf16
    %293 = vector.broadcast %cst_150 : bf16 to vector<2x256xbf16>
    %cst_151 = arith.constant 0.000000e+00 : bf16
    %294 = vector.broadcast %cst_151 : bf16 to vector<2x256xbf16>
    %295 = tpu.concatenate %293, %292, %294 in 1 : vector<2x256xbf16>, vector<2x256xbf16>, vector<2x256xbf16> -> vector<2x768xbf16>
    %c0_152 = arith.constant 0 : index
    %c0_153 = arith.constant 0 : index
    %296 = vector.load %arg32[%c0_152, %c0_153] : memref<768x256xbf16, #tpu.memory_space<vmem>>, vector<768x256xbf16>
    %cst_154 = arith.constant dense<0.000000e+00> : vector<2x256xf32>
    %297 = tpu.matmul %295, %296, %cst_154 {dimension_numbers = #tpu.dot_dimension_numbers<[1], [0], [0], [1], [0, 0, 1, 1], [], []>} : vector<2x768xbf16>, vector<768x256xbf16>, vector<2x256xf32> -> vector<2x256xf32>
    %cst_155 = arith.constant dense<0.000000e+00> : vector<256xf32>
    %298 = vector.multi_reduction <add>, %297, %cst_155 [0] : vector<2x256xf32> to vector<256xf32>
    %299 = vector.shape_cast %298 : vector<256xf32> to vector<1x256xf32>
    %cst_156 = arith.constant 5.000000e-01 : f32
    %300 = vector.broadcast %cst_156 : f32 to vector<1x256xf32>
    %301 = arith.mulf %299, %300 : vector<1x256xf32>
    %302 = vector.broadcast %301 : vector<1x256xf32> to vector<2x256xf32>
    %303 = arith.subf %297, %302 : vector<2x256xf32>
    %304 = arith.mulf %303, %303 : vector<2x256xf32>
    %cst_157 = arith.constant dense<0.000000e+00> : vector<256xf32>
    %305 = vector.multi_reduction <add>, %304, %cst_157 [0] : vector<2x256xf32> to vector<256xf32>
    %306 = vector.shape_cast %305 : vector<256xf32> to vector<1x256xf32>
    %cst_158 = arith.constant 5.000000e-01 : f32
    %307 = vector.broadcast %cst_158 : f32 to vector<1x256xf32>
    %308 = arith.mulf %306, %307 : vector<1x256xf32>
    %c0_159 = arith.constant 0 : index
    %c0_160 = arith.constant 0 : index
    %309 = vector.load %arg33[%c0_159, %c0_160] : memref<1x256xf32, #tpu.memory_space<vmem>>, vector<1x256xf32>
    %cst_161 = arith.constant 9.99999974E-6 : f32
    %310 = vector.broadcast %cst_161 : f32 to vector<1x256xf32>
    %311 = arith.addf %308, %310 : vector<1x256xf32>
    %312 = math.rsqrt %311 : vector<1x256xf32>
    %313 = arith.mulf %309, %312 : vector<1x256xf32>
    %c0_162 = arith.constant 0 : index
    %c0_163 = arith.constant 0 : index
    %314 = vector.load %arg34[%c0_162, %c0_163] : memref<1x256xf32, #tpu.memory_space<vmem>>, vector<1x256xf32>
    %315 = arith.mulf %301, %313 : vector<1x256xf32>
    %316 = arith.subf %314, %315 : vector<1x256xf32>
    %317 = vector.broadcast %313 : vector<1x256xf32> to vector<2x256xf32>
    %318 = arith.mulf %297, %317 : vector<2x256xf32>
    %319 = vector.broadcast %316 : vector<1x256xf32> to vector<2x256xf32>
    %320 = arith.addf %318, %319 : vector<2x256xf32>
    %321 = arith.addf %320, %255 : vector<2x256xf32>
    %cst_164 = arith.constant 0.000000e+00 : f32
    %322 = vector.broadcast %cst_164 : f32 to vector<2x256xf32>
    %323 = arith.maximumf %321, %322 : vector<2x256xf32>
    %324 = arith.truncf %323 : vector<2x256xf32> to vector<2x256xbf16>
    %c0_165 = arith.constant 0 : index
    %c0_166 = arith.constant 0 : index
    %325 = vector.load %arg45[%c0_165, %c0_166] : memref<256x512xbf16, #tpu.memory_space<vmem>>, vector<256x512xbf16>
    %cst_167 = arith.constant dense<0.000000e+00> : vector<2x512xf32>
    %326 = tpu.matmul %324, %325, %cst_167 {dimension_numbers = #tpu.dot_dimension_numbers<[1], [0], [0], [1], [0, 0, 1, 1], [], []>} : vector<2x256xbf16>, vector<256x512xbf16>, vector<2x512xf32> -> vector<2x512xf32>
    %cst_168 = arith.constant dense<0.000000e+00> : vector<512xf32>
    %327 = vector.multi_reduction <add>, %326, %cst_168 [0] : vector<2x512xf32> to vector<512xf32>
    %328 = vector.shape_cast %327 : vector<512xf32> to vector<1x512xf32>
    %cst_169 = arith.constant 5.000000e-01 : f32
    %329 = vector.broadcast %cst_169 : f32 to vector<1x512xf32>
    %330 = arith.mulf %328, %329 : vector<1x512xf32>
    %331 = vector.broadcast %330 : vector<1x512xf32> to vector<2x512xf32>
    %332 = arith.subf %326, %331 : vector<2x512xf32>
    %333 = arith.mulf %332, %332 : vector<2x512xf32>
    %cst_170 = arith.constant dense<0.000000e+00> : vector<512xf32>
    %334 = vector.multi_reduction <add>, %333, %cst_170 [0] : vector<2x512xf32> to vector<512xf32>
    %335 = vector.shape_cast %334 : vector<512xf32> to vector<1x512xf32>
    %cst_171 = arith.constant 5.000000e-01 : f32
    %336 = vector.broadcast %cst_171 : f32 to vector<1x512xf32>
    %337 = arith.mulf %335, %336 : vector<1x512xf32>
    %c0_172 = arith.constant 0 : index
    %c0_173 = arith.constant 0 : index
    %338 = vector.load %arg46[%c0_172, %c0_173] : memref<1x512xf32, #tpu.memory_space<vmem>>, vector<1x512xf32>
    %cst_174 = arith.constant 9.99999974E-6 : f32
    %339 = vector.broadcast %cst_174 : f32 to vector<1x512xf32>
    %340 = arith.addf %337, %339 : vector<1x512xf32>
    %341 = math.rsqrt %340 : vector<1x512xf32>
    %342 = arith.mulf %338, %341 : vector<1x512xf32>
    %c0_175 = arith.constant 0 : index
    %c0_176 = arith.constant 0 : index
    %343 = vector.load %arg47[%c0_175, %c0_176] : memref<1x512xf32, #tpu.memory_space<vmem>>, vector<1x512xf32>
    %344 = arith.mulf %330, %342 : vector<1x512xf32>
    %345 = arith.subf %343, %344 : vector<1x512xf32>
    %346 = vector.broadcast %342 : vector<1x512xf32> to vector<2x512xf32>
    %347 = arith.mulf %326, %346 : vector<2x512xf32>
    %348 = vector.broadcast %345 : vector<1x512xf32> to vector<2x512xf32>
    %349 = arith.addf %347, %348 : vector<2x512xf32>
    %350 = arith.truncf %323 : vector<2x256xf32> to vector<2x256xbf16>
    %cst_177 = arith.constant 0.000000e+00 : bf16
    %351 = vector.broadcast %cst_177 : bf16 to vector<2x256xbf16>
    %cst_178 = arith.constant 0.000000e+00 : bf16
    %352 = vector.broadcast %cst_178 : bf16 to vector<2x256xbf16>
    %353 = tpu.concatenate %351, %350, %352 in 1 : vector<2x256xbf16>, vector<2x256xbf16>, vector<2x256xbf16> -> vector<2x768xbf16>
    %c0_179 = arith.constant 0 : index
    %c0_180 = arith.constant 0 : index
    %354 = vector.load %arg39[%c0_179, %c0_180] : memref<768x512xbf16, #tpu.memory_space<vmem>>, vector<768x512xbf16>
    %cst_181 = arith.constant dense<0.000000e+00> : vector<2x512xf32>
    %355 = tpu.matmul %353, %354, %cst_181 {dimension_numbers = #tpu.dot_dimension_numbers<[1], [0], [0], [1], [0, 0, 1, 1], [], []>} : vector<2x768xbf16>, vector<768x512xbf16>, vector<2x512xf32> -> vector<2x512xf32>
    %cst_182 = arith.constant dense<0.000000e+00> : vector<512xf32>
    %356 = vector.multi_reduction <add>, %355, %cst_182 [0] : vector<2x512xf32> to vector<512xf32>
    %357 = vector.shape_cast %356 : vector<512xf32> to vector<1x512xf32>
    %cst_183 = arith.constant 5.000000e-01 : f32
    %358 = vector.broadcast %cst_183 : f32 to vector<1x512xf32>
    %359 = arith.mulf %357, %358 : vector<1x512xf32>
    %360 = vector.broadcast %359 : vector<1x512xf32> to vector<2x512xf32>
    %361 = arith.subf %355, %360 : vector<2x512xf32>
    %362 = arith.mulf %361, %361 : vector<2x512xf32>
    %cst_184 = arith.constant dense<0.000000e+00> : vector<512xf32>
    %363 = vector.multi_reduction <add>, %362, %cst_184 [0] : vector<2x512xf32> to vector<512xf32>
    %364 = vector.shape_cast %363 : vector<512xf32> to vector<1x512xf32>
    %cst_185 = arith.constant 5.000000e-01 : f32
    %365 = vector.broadcast %cst_185 : f32 to vector<1x512xf32>
    %366 = arith.mulf %364, %365 : vector<1x512xf32>
    %c0_186 = arith.constant 0 : index
    %c0_187 = arith.constant 0 : index
    %367 = vector.load %arg40[%c0_186, %c0_187] : memref<1x512xf32, #tpu.memory_space<vmem>>, vector<1x512xf32>
    %cst_188 = arith.constant 9.99999974E-6 : f32
    %368 = vector.broadcast %cst_188 : f32 to vector<1x512xf32>
    %369 = arith.addf %366, %368 : vector<1x512xf32>
    %370 = math.rsqrt %369 : vector<1x512xf32>
    %371 = arith.mulf %367, %370 : vector<1x512xf32>
    %c0_189 = arith.constant 0 : index
    %c0_190 = arith.constant 0 : index
    %372 = vector.load %arg41[%c0_189, %c0_190] : memref<1x512xf32, #tpu.memory_space<vmem>>, vector<1x512xf32>
    %373 = arith.mulf %359, %371 : vector<1x512xf32>
    %374 = arith.subf %372, %373 : vector<1x512xf32>
    %375 = vector.broadcast %371 : vector<1x512xf32> to vector<2x512xf32>
    %376 = arith.mulf %355, %375 : vector<2x512xf32>
    %377 = vector.broadcast %374 : vector<1x512xf32> to vector<2x512xf32>
    %378 = arith.addf %376, %377 : vector<2x512xf32>
    %cst_191 = arith.constant 0.000000e+00 : f32
    %379 = vector.broadcast %cst_191 : f32 to vector<2x512xf32>
    %380 = arith.maximumf %378, %379 : vector<2x512xf32>
    %381 = arith.truncf %380 : vector<2x512xf32> to vector<2x512xbf16>
    %cst_192 = arith.constant 0.000000e+00 : bf16
    %382 = vector.broadcast %cst_192 : bf16 to vector<2x512xbf16>
    %cst_193 = arith.constant 0.000000e+00 : bf16
    %383 = vector.broadcast %cst_193 : bf16 to vector<2x512xbf16>
    %384 = tpu.concatenate %382, %381, %383 in 1 : vector<2x512xbf16>, vector<2x512xbf16>, vector<2x512xbf16> -> vector<2x1536xbf16>
    %c0_194 = arith.constant 0 : index
    %c0_195 = arith.constant 0 : index
    %385 = vector.load %arg42[%c0_194, %c0_195] : memref<1536x512xbf16, #tpu.memory_space<vmem>>, vector<1536x512xbf16>
    %cst_196 = arith.constant dense<0.000000e+00> : vector<2x512xf32>
    %386 = tpu.matmul %384, %385, %cst_196 {dimension_numbers = #tpu.dot_dimension_numbers<[1], [0], [0], [1], [0, 0, 1, 1], [], []>} : vector<2x1536xbf16>, vector<1536x512xbf16>, vector<2x512xf32> -> vector<2x512xf32>
    %cst_197 = arith.constant dense<0.000000e+00> : vector<512xf32>
    %387 = vector.multi_reduction <add>, %386, %cst_197 [0] : vector<2x512xf32> to vector<512xf32>
    %388 = vector.shape_cast %387 : vector<512xf32> to vector<1x512xf32>
    %cst_198 = arith.constant 5.000000e-01 : f32
    %389 = vector.broadcast %cst_198 : f32 to vector<1x512xf32>
    %390 = arith.mulf %388, %389 : vector<1x512xf32>
    %391 = vector.broadcast %390 : vector<1x512xf32> to vector<2x512xf32>
    %392 = arith.subf %386, %391 : vector<2x512xf32>
    %393 = arith.mulf %392, %392 : vector<2x512xf32>
    %cst_199 = arith.constant dense<0.000000e+00> : vector<512xf32>
    %394 = vector.multi_reduction <add>, %393, %cst_199 [0] : vector<2x512xf32> to vector<512xf32>
    %395 = vector.shape_cast %394 : vector<512xf32> to vector<1x512xf32>
    %cst_200 = arith.constant 5.000000e-01 : f32
    %396 = vector.broadcast %cst_200 : f32 to vector<1x512xf32>
    %397 = arith.mulf %395, %396 : vector<1x512xf32>
    %c0_201 = arith.constant 0 : index
    %c0_202 = arith.constant 0 : index
    %398 = vector.load %arg43[%c0_201, %c0_202] : memref<1x512xf32, #tpu.memory_space<vmem>>, vector<1x512xf32>
    %cst_203 = arith.constant 9.99999974E-6 : f32
    %399 = vector.broadcast %cst_203 : f32 to vector<1x512xf32>
    %400 = arith.addf %397, %399 : vector<1x512xf32>
    %401 = math.rsqrt %400 : vector<1x512xf32>
    %402 = arith.mulf %398, %401 : vector<1x512xf32>
    %c0_204 = arith.constant 0 : index
    %c0_205 = arith.constant 0 : index
    %403 = vector.load %arg44[%c0_204, %c0_205] : memref<1x512xf32, #tpu.memory_space<vmem>>, vector<1x512xf32>
    %404 = arith.mulf %390, %402 : vector<1x512xf32>
    %405 = arith.subf %403, %404 : vector<1x512xf32>
    %406 = vector.broadcast %402 : vector<1x512xf32> to vector<2x512xf32>
    %407 = arith.mulf %386, %406 : vector<2x512xf32>
    %408 = vector.broadcast %405 : vector<1x512xf32> to vector<2x512xf32>
    %409 = arith.addf %407, %408 : vector<2x512xf32>
    %410 = arith.addf %409, %349 : vector<2x512xf32>
    %cst_206 = arith.constant 0.000000e+00 : f32
    %411 = vector.broadcast %cst_206 : f32 to vector<2x512xf32>
    %412 = arith.maximumf %410, %411 : vector<2x512xf32>
    %c0_207 = arith.constant 0 : index
    %c0_208 = arith.constant 0 : index
    %413 = vector.load %arg48[%c0_207, %c0_208] : memref<512x10xf32, #tpu.memory_space<vmem>>, vector<512x10xf32>
    %cst_209 = arith.constant dense<0.000000e+00> : vector<2x10xf32>
    %414 = tpu.matmul %412, %413, %cst_209 {dimension_numbers = #tpu.dot_dimension_numbers<[1], [0], [0], [1], [0, 0, 1, 1], [], []>} : vector<2x512xf32>, vector<512x10xf32>, vector<2x10xf32> -> vector<2x10xf32>
    %c0_210 = arith.constant 0 : index
    %c0_211 = arith.constant 0 : index
    %415 = vector.load %arg49[%c0_210, %c0_211] : memref<1x10xf32, #tpu.memory_space<vmem>>, vector<1x10xf32>
    %416 = vector.broadcast %415 : vector<1x10xf32> to vector<2x10xf32>
    %417 = arith.addf %414, %416 : vector<2x10xf32>
    %c0_212 = arith.constant 0 : index
    %c0_213 = arith.constant 0 : index
    %418 = vector.load %arg50[%c0_212, %c0_213] : memref<2x10xf32, #tpu.memory_space<vmem>>, vector<2x10xf32>
    tpu.vector_store %arg50[%c0_212, %c0_213], %417 {strides = array<i32>} : memref<2x10xf32, #tpu.memory_space<vmem>>, vector<2x10xf32>,
    return
  }
}

</mosaic_0001>

<bundles_post_ra>
// kernel: tpu_custom_call.1
= control target key start
LH: loop header
LB: loop body
LE: loop exit
PB: predicated region body
PF: predicated region fallthrough
CT: control target
= control target key end

     0   :  { %s13455_s6 = smov 1   ;;  %s13456_s10 = smov 2   ;;  %s14640_s0 = inlined_call_operand.smem [shape: u32[51], index: -1, kind: input, shape index: {}] }
   0x1   :  { %s13571_s5 = sld [smem:[%s14640_s0]]   ;;  %s13457_s14 = smov 3  }
   0x2   :  { %s13576_s9 = sld [smem:[%s14640_s0 + %s13455_s6]]   ;;  %s13458_s18 = smov 4  }
   0x3   :  { %s13581_s13 = sld [smem:[%s14640_s0 + %s13456_s10]]   ;;  %s13459_s22 = smov 5  }
   0x4   :  { %s13586_s17 = sld [smem:[%s14640_s0 + %s13457_s14]]   ;;  %s13460_s26 = smov 6  }
   0x5   :  { %s13591_s21 = sld [smem:[%s14640_s0 + %s13458_s18]]   ;;  %s13461_s30 = smov 7  }
   0x6   :  { %s13596_s25 = sld [smem:[%s14640_s0 + %s13459_s22]]   ;;  %s13462_s4 = smov 8  }
   0x7   :  { %14674 = sst [smem:[#allocation100_spill]] %s13571_s5  ;;  %s13463_s10 = smov 9  }
   0x8   :  { %s13601_s29 = sld [smem:[%s14640_s0 + %s13460_s26]]   ;;  %s13464_s15 = smov 10  }
   0x9   :  { %14675 = sst [smem:[#allocation101_spill]] %s13581_s13  ;;  %s13465_s20 = smov 11  }
   0xa   :  { %s13606_s3 = sld [smem:[%s14640_s0 + %s13461_s30]]   ;;  %s13466_s26 = smov 12  }
   0xb   :  { %14676 = sst [smem:[#allocation102_spill]] %s13591_s21  ;;  %s13467_s1 = smov 13  }
   0xc   :  { %s13611_s8 = sld [smem:[%s14640_s0 + %s13462_s4]]   ;;  %s13468_s7 = smov 14  }
   0xd   :  { %s13616_s14 = sld [smem:[%s14640_s0 + %s13463_s10]]   ;;  %s13470_s22 = smov 16  }
   0xe   :  { %14677 = sst [smem:[#allocation103_spill]] %s13601_s29  ;;  %s13471_s28 = smov 17  }
   0xf   :  { %s13621_s19 = sld [smem:[%s14640_s0 + %s13464_s15]]   ;;  %s13469_s15 = smov 15  }
  0x10   :  { %14678 = sst [smem:[#allocation104_spill]] %s13606_s3 }
  0x11   :  { %s13626_s24 = sld [smem:[%s14640_s0 + %s13465_s20]]  }
  0x12   :  { %s13631_s30 = sld [smem:[%s14640_s0 + %s13466_s26]]  }
  0x13   :  { %14679 = sst [smem:[#allocation105_spill]] %s13616_s14 }
  0x14   :  { %s13636_s6 = sld [smem:[%s14640_s0 + %s13467_s1]]  }
  0x15   :  { %14680 = sst [smem:[#allocation106_spill]] %s13621_s19 }
  0x16   :  { %s13641_s12 = sld [smem:[%s14640_s0 + %s13468_s7]]   ;;  %s13472_s7 = smov 18  }
  0x17   :  { %s13646_s20 = sld [smem:[%s14640_s0 + %s13469_s15]]   ;;  %s13473_s15 = smov 19  }
  0x18   :  { %14681 = sst [smem:[#allocation107_spill]] %s13631_s30 }
  0x19   :  { %s13651_s27 = sld [smem:[%s14640_s0 + %s13470_s22]]   ;;  %s13474_s22 = smov 20  }
  0x1a   :  { %s13656_s4 = sld [smem:[%s14640_s0 + %s13471_s28]]   ;;  %s13475_s28 = smov 21  }
  0x1b   :  { %s13661_s14 = sld [smem:[%s14640_s0 + %s13472_s7]]   ;;  %s13476_s7 = smov 22  }
  0x1c   :  { %14682 = sst [smem:[#allocation108_spill]] %s13641_s12 }
  0x1d   :  { %s13666_s29 = sld [smem:[%s14640_s0 + %s13473_s15]]   ;;  %s13477_s15 = smov 23  }
  0x1e   :  { %s13676_s12 = sld [smem:[%s14640_s0 + %s13475_s28]]   ;;  %s13479_s28 = smov 25  }
  0x1f   :  { %14683 = sst [smem:[#allocation109_spill]] %s13651_s27 }
  0x20   :  { %s13671_s27 = sld [smem:[%s14640_s0 + %s13474_s22]]   ;;  %s13478_s22 = smov 24  }
  0x21   :  { %14684 = sst [smem:[#allocation110_spill]] %s13661_s14 }
  0x22   :  { %s13681_s14 = sld [smem:[%s14640_s0 + %s13476_s7]]   ;;  %s13480_s7 = smov 26  }
  0x23   :  { %s13686_s30 = sld [smem:[%s14640_s0 + %s13477_s15]]   ;;  %s13481_s15 = smov 27  }
  0x24   :  { %s13696_s19 = sld [smem:[%s14640_s0 + %s13479_s28]]   ;;  %s13483_s28 = smov 29  }
  0x25   :  { %s13706_s3 = sld [smem:[%s14640_s0 + %s13481_s15]]   ;;  %s13485_s15 = smov 31  }
  0x26   :  { %14685 = sst [smem:[#allocation111_spill]] %s13671_s27 }
  0x27   :  { %s13691_s27 = sld [smem:[%s14640_s0 + %s13478_s22]]   ;;  %s13482_s22 = smov 28  }
  0x28   :  { %14686 = sst [smem:[#allocation112_spill]] %s13681_s14 }
  0x29   :  { %s13701_s14 = sld [smem:[%s14640_s0 + %s13480_s7]]   ;;  %s13484_s7 = smov 30  }
  0x2a   :  { %s13716_s21 = sld [smem:[%s14640_s0 + %s13483_s28]]   ;;  %s13487_s28 = smov 33  }
  0x2b   :  { %s13726_s13 = sld [smem:[%s14640_s0 + %s13485_s15]]   ;;  %s13489_s15 = smov 35  }
  0x2c   :  { %s13736_s5 = sld [smem:[%s14640_s0 + %s13487_s28]]   ;;  %s13491_s28 = smov 37  }
  0x2d   :  { %14687 = sst [smem:[#allocation113_spill]] %s13691_s27 }
  0x2e   :  { %s13711_s27 = sld [smem:[%s14640_s0 + %s13482_s22]]   ;;  %s13486_s22 = smov 32  }
  0x2f   :  { %14688 = sst [smem:[#allocation114_spill]] %s13701_s14 }
  0x30   :  { %s13721_s14 = sld [smem:[%s14640_s0 + %s13484_s7]]   ;;  %s13488_s7 = smov 34  }
  0x31   :  { %14691 = sst [smem:[#allocation117_spill]] %s13726_s13 }
  0x32   :  { %14693 = sst [smem:[#allocation119_spill]] %s13736_s5 }
  0x33   :  { %s13746_s13 = sld [smem:[%s14640_s0 + %s13489_s15]]   ;;  %s13493_s15 = smov 39  }
  0x34   :  { %14689 = sst [smem:[#allocation115_spill]] %s13711_s27 }
  0x35   :  { %s13731_s27 = sld [smem:[%s14640_s0 + %s13486_s22]]   ;;  %s13490_s22 = smov 36  }
  0x36   :  { %14690 = sst [smem:[#allocation116_spill]] %s13721_s14 }
  0x37   :  { %s13741_s14 = sld [smem:[%s14640_s0 + %s13488_s7]]   ;;  %s13492_s7 = smov 38  }
  0x38   :  { %s13756_s5 = sld [smem:[%s14640_s0 + %s13491_s28]]   ;;  %s13495_s28 = smov 41  }
  0x39   :  { %14695 = sst [smem:[#allocation121_spill]] %s13746_s13 }
  0x3a   :  { %s13766_s13 = sld [smem:[%s14640_s0 + %s13493_s15]]   ;;  %s13497_s15 = smov 43  }
  0x3b   :  { %14692 = sst [smem:[#allocation118_spill]] %s13731_s27 }
  0x3c   :  { %s13751_s27 = sld [smem:[%s14640_s0 + %s13490_s22]]   ;;  %s13494_s22 = smov 40  }
  0x3d   :  { %14694 = sst [smem:[#allocation120_spill]] %s13741_s14 }
  0x3e   :  { %14697 = sst [smem:[#allocation123_spill]] %s13756_s5 }
  0x3f   :  { %s13761_s14 = sld [smem:[%s14640_s0 + %s13492_s7]]   ;;  %s13496_s7 = smov 42  }
  0x40   :  { %14699 = sst [smem:[#allocation125_spill]] %s13766_s13 }
  0x41   :  { %s13776_s5 = sld [smem:[%s14640_s0 + %s13495_s28]]   ;;  %s13499_s28 = smov 45  }
  0x42   :  { %14696 = sst [smem:[#allocation122_spill]] %s13751_s27 }
  0x43   :  { %s13771_s27 = sld [smem:[%s14640_s0 + %s13494_s22]]   ;;  %s13498_s22 = smov 44  }
  0x44   :  { %s13786_s13 = sld [smem:[%s14640_s0 + %s13497_s15]]   ;;  %s13501_s15 = smov 47  }
  0x45   :  { %14698 = sst [smem:[#allocation124_spill]] %s13761_s14 }
  0x46   :  { %s13781_s14 = sld [smem:[%s14640_s0 + %s13496_s7]]   ;;  %s13500_s7 = smov 46  }
  0x47   :  { %14701 = sst [smem:[#allocation127_spill]] %s13776_s5 }
  0x48   :  { %s13796_s5 = sld [smem:[%s14640_s0 + %s13499_s28]]   ;;  %s13503_s28 = smov 49  }
  0x49   :  { %14700 = sst [smem:[#allocation126_spill]] %s13771_s27 }
  0x4a   :  { %14703 = sst [smem:[#allocation129_spill]] %s13786_s13 }
  0x4b   :  { %s13791_s27 = sld [smem:[%s14640_s0 + %s13498_s22]]   ;;  %s13502_s22 = smov 48  }
  0x4c   :  { %14702 = sst [smem:[#allocation128_spill]] %s13781_s14 }
  0x4d   :  { %s13801_s14 = sld [smem:[%s14640_s0 + %s13500_s7]]   ;;  %s13504_s7 = smov 50  }
  0x4e   :  { %14705 = sst [smem:[#allocation131_spill]] %s13796_s5 }
  0x4f   :  { %s13806_s13 = sld [smem:[%s14640_s0 + %s13501_s15]]  }
  0x50   :  { %s13816_s5 = sld [smem:[%s14640_s0 + %s13503_s28]]  }
  0x51   :  { %14704 = sst [smem:[#allocation130_spill]] %s13791_s27 }
  0x52   :  { %s13811_s27 = sld [smem:[%s14640_s0 + %s13502_s22]]  }
  0x53   :  { %14706 = sst [smem:[#allocation132_spill]] %s13801_s14 }
  0x54   :  { %s13821_s14 = sld [smem:[%s14640_s0 + %s13504_s7]]  }
  0x55   :  { %106 = vsyncpa [#allocation3], 0 }
  0x56   :  { %107 = vsyncpa [#allocation6], 0 }
  0x57   :  { %108 = vsyncpa [#allocation9], 0 }
  0x58   :  { %109 = vsyncpa [#allocation12], 0 }
  0x59   :  { %110 = vsyncpa [#allocation15], 0 }
  0x5a   :  { %111 = vsyncpa [#allocation18], 0 }
  0x5b   :  { %112 = vsyncpa [#allocation21], 0 }
  0x5c   :  { %113 = vsyncpa [#allocation24], 0 }
  0x5d   :  { %114 = vsyncpa [#allocation27], 0 }
  0x5e   :  { %115 = vsyncpa [#allocation30], 0 }
  0x5f   :  { %116 = vsyncpa [#allocation33], 0 }
  0x60   :  { %117 = vsyncpa [#allocation36], 0 }
  0x61   :  { %118 = vsyncpa [#allocation39], 0 }
  0x62   :  { %119 = vsyncpa [#allocation42], 0 }
  0x63   :  { %120 = vsyncpa [#allocation45], 0 }
  0x64   :  { %121 = vsyncpa [#allocation48], 0 }
  0x65   :  { %122 = vsyncpa [#allocation51], 0 }
  0x66   :  { %123 = vsyncpa [#allocation54], 0 }
  0x67   :  { %124 = vsyncpa [#allocation57], 0 }
  0x68   :  { %125 = vsyncpa [#allocation60], 0 }
  0x69   :  { %126 = vsyncpa [#allocation63], 0 }
  0x6a   :  { %127 = vsyncpa [#allocation66], 0 }
  0x6b   :  { %128 = vsyncpa [#allocation69], 0 }
  0x6c   :  { %129 = vsyncpa [#allocation72], 0 }
  0x6d   :  { %130 = vsyncpa [#allocation4], 0  ;;  %s13505_s0 = smov [#allocation5]   ;;  %s13506_s16 = smov [#allocation8]  }
  0x6e   :  { %s148_s15 = sshll.u32 %s13505_s0, 4  ;;  %s171_s18 = sshll.u32 %s13506_s16, 4  ;;  %s149_s15 = int_to_ptr.vmem [resolvable:$true] %s148_s15  ;;  %s13823_s18 = int_to_ptr.vmem [resolvable:$true] %s171_s18 }
  0x6f   :  { %s12349_s22 = scalar_lea.hbm %s13576_s9, 256 }
  0x70   :  { %p12350_p0 = scmp.ne.s32.totalorder %s13576_s9, %s12349_s22  ;;  %p12353_p1 = scmp.lt.u32.totalorder %s12349_s22, %s13576_s9 }
  0x72   :  { %p12355_p2 = pnand %p12353_p1, %p12350_p0 }
  0x74   :  { %12358 = shalt.err (!%p12355_p2)
}
  0x75   :  { %s12359_s23 = scalar_lea.vmem %s149_s15, 256  ;;  %p12364_p4 = scmp.lt.s32.totalorder %s149_s15, %s149_s15 }
  0x76   :  { %p12360_p3 = scmp.ne.s32.totalorder %s149_s15, %s12359_s23  ;;  %p12365_p5 = scmp.lt.s32.totalorder %s12359_s23, %s12359_s23 }
  0x78   :  { %p12366_p6 = por %p12365_p5, %p12364_p4 }
  0x7a   :  { %p12367_p7 = pnand %p12366_p6, %p12360_p3 }
  0x7c   :  { %12370 = shalt.err (!%p12367_p7)
}
  0x7d   :  { %s13507_s26 = smov 64   ;;  %s13508_s28 = smov 4  }
  0x7e   :  { %154 = dma.hbm_to_vmem [thread:$0]  %s13576_s9, 256, %s149_s15, [#allocation6], %s13507_s26, %s13507_s26, %s13508_s28  }
  0x7f   :  { %s12371_s1 = scalar_lea.hbm %s13586_s17, 16 }
  0x80   :  { %p12372_p8 = scmp.ne.s32.totalorder %s13586_s17, %s12371_s1  ;;  %p12375_p9 = scmp.lt.u32.totalorder %s12371_s1, %s13586_s17 }
  0x82   :  { %p12377_p10 = pnand %p12375_p9, %p12372_p8 }
  0x84   :  { %12380 = shalt.err (!%p12377_p10)
}
  0x85   :  { %s12381_s2 = scalar_lea.vmem %s13823_s18, 16  ;;  %s12385_s7 = scalar_lea.vmem %s13823_s18, 32 }
  0x86   :  { %p12382_p11 = scmp.ne.s32.totalorder %s13823_s18, %s12381_s2  ;;  %p12386_p12 = scmp.lt.s32.totalorder %s13823_s18, %s13823_s18 }
  0x87   :  { %p12387_p13 = scmp.lt.s32.totalorder %s12385_s7, %s12381_s2 }
  0x89   :  { %p12388_p0 = por %p12387_p13, %p12386_p12 }
  0x8b   :  { %p12389_p1 = pnand %p12388_p0, %p12382_p11 }
  0x8d   :  { %12392 = shalt.err (!%p12389_p1)
}
  0x8e   :  { %174 = dma.hbm_to_vmem [thread:$0]  %s13586_s17, 16, %s13823_s18, [#allocation9]  }
  0x8f   :  { %s13509_s9 = smov [#allocation11]   ;;  %s13510_s11 = smov [#allocation14]  }
  0x90   :  { %s191_s10 = sshll.u32 %s13509_s9, 4  ;;  %s213_s0 = sshll.u32 %s13510_s11, 4  ;;  %s192_s10 = int_to_ptr.vmem [resolvable:$true] %s191_s10  ;;  %s214_s0 = int_to_ptr.vmem [resolvable:$true] %s213_s0 }
  0x91   :  { %s12393_s15 = scalar_lea.hbm %s13596_s25, 64 }
  0x92   :  { %p12394_p2 = scmp.ne.s32.totalorder %s13596_s25, %s12393_s15  ;;  %p12397_p3 = scmp.lt.u32.totalorder %s12393_s15, %s13596_s25 }
  0x94   :  { %p12399_p4 = pnand %p12397_p3, %p12394_p2 }
  0x96   :  { %12402 = shalt.err (!%p12399_p4)
}
  0x97   :  { %s12403_s16 = scalar_lea.vmem %s192_s10, 64  ;;  %p12408_p6 = scmp.lt.s32.totalorder %s192_s10, %s192_s10 }
  0x98   :  { %p12404_p5 = scmp.ne.s32.totalorder %s192_s10, %s12403_s16  ;;  %p12409_p7 = scmp.lt.s32.totalorder %s12403_s16, %s12403_s16 }
  0x9a   :  { %p12410_p8 = por %p12409_p7, %p12408_p6 }
  0x9c   :  { %p12411_p9 = pnand %p12410_p8, %p12404_p5 }
  0x9e   :  { %12414 = shalt.err (!%p12411_p9)
}
  0x9f   :  { %194 = dma.hbm_to_vmem [thread:$0]  %s13596_s25, 64, %s192_s10, [#allocation12]  }
  0xa0   :  { %s12415_s17 = scalar_lea.hbm %s13611_s8, 16 }
  0xa1   :  { %p12416_p10 = scmp.ne.s32.totalorder %s13611_s8, %s12415_s17  ;;  %p12419_p11 = scmp.lt.u32.totalorder %s12415_s17, %s13611_s8 }
  0xa3   :  { %p12421_p12 = pnand %p12419_p11, %p12416_p10 }
  0xa5   :  { %12424 = shalt.err (!%p12421_p12)
}
  0xa6   :  { %s12425_s18 = scalar_lea.vmem %s214_s0, 16  ;;  %s12429_s22 = scalar_lea.vmem %s214_s0, 32 }
  0xa7   :  { %p12426_p13 = scmp.ne.s32.totalorder %s214_s0, %s12425_s18  ;;  %p12430_p0 = scmp.lt.s32.totalorder %s214_s0, %s214_s0 }
  0xa8   :  { %p12431_p1 = scmp.lt.s32.totalorder %s12429_s22, %s12425_s18 }
  0xaa   :  { %p12432_p2 = por %p12431_p1, %p12430_p0 }
  0xac   :  { %p12433_p3 = pnand %p12432_p2, %p12426_p13 }
  0xae   :  { %12436 = shalt.err (!%p12433_p3)
}
  0xaf   :  { %216 = dma.hbm_to_vmem [thread:$0]  %s13611_s8, 16, %s214_s0, [#allocation15]  }
  0xb0   :  { %s13511_s23 = smov [#allocation17]   ;;  %s13512_s1 = smov [#allocation20]  }
  0xb1   :  { %s235_s25 = sshll.u32 %s13511_s23, 4  ;;  %s255_s2 = sshll.u32 %s13512_s1, 4  ;;  %s236_s25 = int_to_ptr.vmem [resolvable:$true] %s235_s25  ;;  %s256_s2 = int_to_ptr.vmem [resolvable:$true] %s255_s2 }
  0xb2   :  { %s12437_s7 = scalar_lea.hbm %s13626_s24, 16 }
  0xb3   :  { %p12438_p4 = scmp.ne.s32.totalorder %s13626_s24, %s12437_s7  ;;  %p12441_p5 = scmp.lt.u32.totalorder %s12437_s7, %s13626_s24 }
  0xb5   :  { %p12443_p6 = pnand %p12441_p5, %p12438_p4 }
  0xb7   :  { %12446 = shalt.err (!%p12443_p6)
}
  0xb8   :  { %s12447_s9 = scalar_lea.vmem %s236_s25, 16  ;;  %s12451_s10 = scalar_lea.vmem %s236_s25, 32 }
  0xb9   :  { %p12448_p7 = scmp.ne.s32.totalorder %s236_s25, %s12447_s9  ;;  %p12452_p8 = scmp.lt.s32.totalorder %s236_s25, %s236_s25 }
  0xba   :  { %p12453_p9 = scmp.lt.s32.totalorder %s12451_s10, %s12447_s9 }
  0xbc   :  { %p12454_p10 = por %p12453_p9, %p12452_p8 }
  0xbe   :  { %p12455_p11 = pnand %p12454_p10, %p12448_p7 }
  0xc0   :  { %12458 = shalt.err (!%p12455_p11)
}
  0xc1   :  { %238 = dma.hbm_to_vmem [thread:$0]  %s13626_s24, 16, %s236_s25, [#allocation18]  }
  0xc2   :  { %s12459_s8 = scalar_lea.hbm %s13636_s6, 32 }
  0xc3   :  { %p12460_p12 = scmp.ne.s32.totalorder %s13636_s6, %s12459_s8  ;;  %p12463_p13 = scmp.lt.u32.totalorder %s12459_s8, %s13636_s6 }
  0xc5   :  { %p12465_p0 = pnand %p12463_p13, %p12460_p12 }
  0xc7   :  { %12468 = shalt.err (!%p12465_p0)
}
  0xc8   :  { %s12469_s11 = scalar_lea.vmem %s256_s2, 32  ;;  %p12474_p2 = scmp.lt.s32.totalorder %s256_s2, %s256_s2 }
  0xc9   :  { %p12470_p1 = scmp.ne.s32.totalorder %s256_s2, %s12469_s11  ;;  %p12475_p3 = scmp.lt.s32.totalorder %s12469_s11, %s12469_s11 }
  0xcb   :  { %p12476_p4 = por %p12475_p3, %p12474_p2 }
  0xcd   :  { %p12477_p5 = pnand %p12476_p4, %p12470_p1 }
  0xcf   :  { %12480 = shalt.err (!%p12477_p5)
}
  0xd0   :  { %258 = dma.hbm_to_vmem [thread:$0]  %s13636_s6, 32, %s256_s2, [#allocation21]  }
  0xd1   :  { %s13513_s0 = smov [#allocation23]   ;;  %s13514_s24 = smov [#allocation26]  }
  0xd2   :  { %s274_s15 = sshll.u32 %s13513_s0, 4  ;;  %s297_s16 = sshll.u32 %s13514_s24, 4  ;;  %s275_s15 = int_to_ptr.vmem [resolvable:$true] %s274_s15  ;;  %s298_s16 = int_to_ptr.vmem [resolvable:$true] %s297_s16 }
  0xd3   :  { %s12481_s17 = scalar_lea.hbm %s13646_s20, 1536 }
  0xd4   :  { %p12482_p6 = scmp.ne.s32.totalorder %s13646_s20, %s12481_s17  ;;  %p12485_p7 = scmp.lt.u32.totalorder %s12481_s17, %s13646_s20 }
  0xd6   :  { %p12487_p8 = pnand %p12485_p7, %p12482_p6 }
  0xd8   :  { %12490 = shalt.err (!%p12487_p8)
}
  0xd9   :  { %s12491_s18 = scalar_lea.vmem %s275_s15, 1536  ;;  %p12496_p10 = scmp.lt.s32.totalorder %s275_s15, %s275_s15 }
  0xda   :  { %p12492_p9 = scmp.ne.s32.totalorder %s275_s15, %s12491_s18  ;;  %p12497_p11 = scmp.lt.s32.totalorder %s12491_s18, %s12491_s18 }
  0xdc   :  { %p12498_p12 = por %p12497_p11, %p12496_p10 }
  0xde   :  { %p12499_p13 = pnand %p12498_p12, %p12492_p9 }
  0xe0   :  { %12502 = shalt.err (!%p12499_p13)
}
  0xe1   :  { %280 = dma.hbm_to_vmem [thread:$0]  %s13646_s20, 1536, %s275_s15, [#allocation24], %s13507_s26, %s13507_s26, %s13508_s28  }
  0xe2   :  { %s12503_s6 = scalar_lea.hbm %s13656_s4, 16 }
  0xe3   :  { %p12504_p0 = scmp.ne.s32.totalorder %s13656_s4, %s12503_s6  ;;  %p12507_p1 = scmp.lt.u32.totalorder %s12503_s6, %s13656_s4 }
  0xe5   :  { %p12509_p2 = pnand %p12507_p1, %p12504_p0 }
  0xe7   :  { %12512 = shalt.err (!%p12509_p2)
}
  0xe8   :  { %s12513_s22 = scalar_lea.vmem %s298_s16, 16  ;;  %s12517_s23 = scalar_lea.vmem %s298_s16, 32 }
  0xe9   :  { %p12514_p3 = scmp.ne.s32.totalorder %s298_s16, %s12513_s22  ;;  %p12518_p4 = scmp.lt.s32.totalorder %s298_s16, %s298_s16 }
  0xea   :  { %p12519_p5 = scmp.lt.s32.totalorder %s12517_s23, %s12513_s22 }
  0xec   :  { %p12520_p6 = por %p12519_p5, %p12518_p4 }
  0xee   :  { %p12521_p7 = pnand %p12520_p6, %p12514_p3 }
  0xf0   :  { %12524 = shalt.err (!%p12521_p7)
}
  0xf1   :  { %300 = dma.hbm_to_vmem [thread:$0]  %s13656_s4, 16, %s298_s16, [#allocation27]  }
  0xf2   :  { %s13515_s25 = smov [#allocation29]   ;;  %s13516_s1 = smov [#allocation32]  }
  0xf3   :  { %s317_s20 = sshll.u32 %s13515_s25, 4  ;;  %s339_s2 = sshll.u32 %s13516_s1, 4  ;;  %s318_s20 = int_to_ptr.vmem [resolvable:$true] %s317_s20  ;;  %s340_s2 = int_to_ptr.vmem [resolvable:$true] %s339_s2 }
  0xf4   :  { %s12525_s7 = scalar_lea.hbm %s13666_s29, 32 }
  0xf5   :  { %p12526_p8 = scmp.ne.s32.totalorder %s13666_s29, %s12525_s7  ;;  %p12529_p9 = scmp.lt.u32.totalorder %s12525_s7, %s13666_s29 }
  0xf7   :  { %p12531_p10 = pnand %p12529_p9, %p12526_p8 }
  0xf9   :  { %12534 = shalt.err (!%p12531_p10)
}
  0xfa   :  { %s12535_s9 = scalar_lea.vmem %s318_s20, 32  ;;  %p12540_p12 = scmp.lt.s32.totalorder %s318_s20, %s318_s20 }
  0xfb   :  { %p12536_p11 = scmp.ne.s32.totalorder %s318_s20, %s12535_s9  ;;  %p12541_p13 = scmp.lt.s32.totalorder %s12535_s9, %s12535_s9 }
  0xfd   :  { %p12542_p0 = por %p12541_p13, %p12540_p12 }
  0xff   :  { %p12543_p1 = pnand %p12542_p0, %p12536_p11 }
 0x101   :  { %12546 = shalt.err (!%p12543_p1)
}
 0x102   :  { %320 = dma.hbm_to_vmem [thread:$0]  %s13666_s29, 32, %s318_s20, [#allocation30]  }
 0x103   :  { %s12547_s4 = scalar_lea.hbm %s13676_s12, 16 }
 0x104   :  { %p12548_p2 = scmp.ne.s32.totalorder %s13676_s12, %s12547_s4  ;;  %p12551_p3 = scmp.lt.u32.totalorder %s12547_s4, %s13676_s12 }
 0x106   :  { %p12553_p4 = pnand %p12551_p3, %p12548_p2 }
 0x108   :  { %12556 = shalt.err (!%p12553_p4)
}
 0x109   :  { %s12557_s10 = scalar_lea.vmem %s340_s2, 16  ;;  %s12561_s8 = scalar_lea.vmem %s340_s2, 32 }
 0x10a   :  { %p12558_p5 = scmp.ne.s32.totalorder %s340_s2, %s12557_s10  ;;  %p12562_p6 = scmp.lt.s32.totalorder %s340_s2, %s340_s2 }
 0x10b   :  { %p12563_p7 = scmp.lt.s32.totalorder %s12561_s8, %s12557_s10 }
 0x10d   :  { %p12564_p8 = por %p12563_p7, %p12562_p6 }
 0x10f   :  { %p12565_p9 = pnand %p12564_p8, %p12558_p5 }
 0x111   :  { %12568 = shalt.err (!%p12565_p9)
}
 0x112   :  { %342 = dma.hbm_to_vmem [thread:$0]  %s13676_s12, 16, %s340_s2, [#allocation33]  }
 0x113   :  { %s13517_s11 = smov [#allocation35]   ;;  %s13518_s0 = smov [#allocation38]  }
 0x114   :  { %s359_s29 = sshll.u32 %s13517_s11, 4  ;;  %s381_s15 = sshll.u32 %s13518_s0, 4  ;;  %s360_s29 = int_to_ptr.vmem [resolvable:$true] %s359_s29  ;;  %s382_s15 = int_to_ptr.vmem [resolvable:$true] %s381_s15 }
 0x115   :  { %s12569_s24 = scalar_lea.hbm %s13686_s30, 32 }
 0x116   :  { %p12570_p10 = scmp.ne.s32.totalorder %s13686_s30, %s12569_s24  ;;  %p12573_p11 = scmp.lt.u32.totalorder %s12569_s24, %s13686_s30 }
 0x118   :  { %p12575_p12 = pnand %p12573_p11, %p12570_p10 }
 0x11a   :  { %12578 = shalt.err (!%p12575_p12)
}
 0x11b   :  { %s12579_s16 = scalar_lea.vmem %s360_s29, 32  ;;  %p12584_p0 = scmp.lt.s32.totalorder %s360_s29, %s360_s29 }
 0x11c   :  { %p12580_p13 = scmp.ne.s32.totalorder %s360_s29, %s12579_s16  ;;  %p12585_p1 = scmp.lt.s32.totalorder %s12579_s16, %s12579_s16 }
 0x11e   :  { %p12586_p2 = por %p12585_p1, %p12584_p0 }
 0x120   :  { %p12587_p3 = pnand %p12586_p2, %p12580_p13 }
 0x122   :  { %12590 = shalt.err (!%p12587_p3)
}
 0x123   :  { %362 = dma.hbm_to_vmem [thread:$0]  %s13686_s30, 32, %s360_s29, [#allocation36]  }
 0x124   :  { %s12591_s12 = scalar_lea.hbm %s13696_s19, 16 }
 0x125   :  { %p12592_p4 = scmp.ne.s32.totalorder %s13696_s19, %s12591_s12  ;;  %p12595_p5 = scmp.lt.u32.totalorder %s12591_s12, %s13696_s19 }
 0x127   :  { %p12597_p6 = pnand %p12595_p5, %p12592_p4 }
 0x129   :  { %12600 = shalt.err (!%p12597_p6)
}
 0x12a   :  { %s12601_s17 = scalar_lea.vmem %s382_s15, 16  ;;  %s12605_s18 = scalar_lea.vmem %s382_s15, 32 }
 0x12b   :  { %p12602_p7 = scmp.ne.s32.totalorder %s382_s15, %s12601_s17  ;;  %p12606_p8 = scmp.lt.s32.totalorder %s382_s15, %s382_s15 }
 0x12c   :  { %p12607_p9 = scmp.lt.s32.totalorder %s12605_s18, %s12601_s17 }
 0x12e   :  { %p12608_p10 = por %p12607_p9, %p12606_p8 }
 0x130   :  { %p12609_p11 = pnand %p12608_p10, %p12602_p7 }
 0x132   :  { %12612 = shalt.err (!%p12609_p11)
}
 0x133   :  { %384 = dma.hbm_to_vmem [thread:$0]  %s13696_s19, 16, %s382_s15, [#allocation39]  }
 0x134   :  { %s13519_s6 = smov [#allocation41]   ;;  %s13520_s22 = smov [#allocation44]  }
 0x135   :  { %s401_s30 = sshll.u32 %s13519_s6, 4  ;;  %s420_s23 = sshll.u32 %s13520_s22, 4  ;;  %s402_s30 = int_to_ptr.vmem [resolvable:$true] %s401_s30  ;;  %s13885_s23 = int_to_ptr.vmem [resolvable:$true] %s420_s23 }
 0x136   :  { %s12613_s25 = scalar_lea.hbm %s13706_s3, 16 }
 0x137   :  { %p12614_p12 = scmp.ne.s32.totalorder %s13706_s3, %s12613_s25  ;;  %p12617_p13 = scmp.lt.u32.totalorder %s12613_s25, %s13706_s3 }
 0x139   :  { %p12619_p0 = pnand %p12617_p13, %p12614_p12 }
 0x13b   :  { %12622 = shalt.err (!%p12619_p0)
}
 0x13c   :  { %s12623_s20 = scalar_lea.vmem %s402_s30, 16  ;;  %s12627_s1 = scalar_lea.vmem %s402_s30, 32 }
 0x13d   :  { %p12624_p1 = scmp.ne.s32.totalorder %s402_s30, %s12623_s20  ;;  %p12628_p2 = scmp.lt.s32.totalorder %s402_s30, %s402_s30 }
 0x13e   :  { %p12629_p3 = scmp.lt.s32.totalorder %s12627_s1, %s12623_s20 }
 0x140   :  { %p12630_p4 = por %p12629_p3, %p12628_p2 }
 0x142   :  { %p12631_p5 = pnand %p12630_p4, %p12624_p1 }
 0x144   :  { %12634 = shalt.err (!%p12631_p5)
}
 0x145   :  { %404 = dma.hbm_to_vmem [thread:$0]  %s13706_s3, 16, %s402_s30, [#allocation42]  }
 0x146   :  { %s12635_s19 = scalar_lea.hbm %s13716_s21, 6144 }
 0x147   :  { %p12636_p6 = scmp.ne.s32.totalorder %s13716_s21, %s12635_s19  ;;  %p12639_p7 = scmp.lt.u32.totalorder %s12635_s19, %s13716_s21 }
 0x149   :  { %p12641_p8 = pnand %p12639_p7, %p12636_p6 }
 0x14b   :  { %12644 = shalt.err (!%p12641_p8)
}
 0x14c   :  { %s12645_s2 = scalar_lea.vmem %s13885_s23, 6144  ;;  %p12650_p10 = scmp.lt.s32.totalorder %s13885_s23, %s13885_s23 }
 0x14d   :  { %p12646_p9 = scmp.ne.s32.totalorder %s13885_s23, %s12645_s2  ;;  %p12651_p11 = scmp.lt.s32.totalorder %s12645_s2, %s12645_s2 }
 0x14f   :  { %p12652_p12 = por %p12651_p11, %p12650_p10 }
 0x151   :  { %p12653_p13 = pnand %p12652_p12, %p12646_p9 }
 0x153   :  { %12656 = shalt.err (!%p12653_p13)
}
 0x154   :  { %s13521_s7 = smov 128   ;;  %s14707_s3 = sld [smem:[#allocation117_spill]] }
 0x155   :  { %s13522_s9 = smov 8   ;;  %s13523_s4 = smov [#allocation47]  }
 0x156   :  { %426 = dma.hbm_to_vmem [thread:$0]  %s13716_s21, 6144, %s13885_s23, [#allocation45], %s13521_s7, %s13521_s7, %s13522_s9  }
 0x157   :  { %s443_s10 = sshll.u32 %s13523_s4, 4  ;;  %s13524_s8 = smov [#allocation50]   ;;  %s444_s10 = int_to_ptr.vmem [resolvable:$true] %s443_s10 }
 0x158   :  { %s465_s11 = sshll.u32 %s13524_s8, 4  ;;  %s466_s11 = int_to_ptr.vmem [resolvable:$true] %s465_s11 }
 0x15a   :  { %s12657_s29 = scalar_lea.hbm %s14707_s3, 32 }
 0x15b   :  { %p12658_p0 = scmp.ne.s32.totalorder %s14707_s3, %s12657_s29  ;;  %p12661_p1 = scmp.lt.u32.totalorder %s12657_s29, %s14707_s3 }
 0x15d   :  { %p12663_p2 = pnand %p12661_p1, %p12658_p0 }
 0x15f   :  { %12666 = shalt.err (!%p12663_p2)
}
 0x160   :  { %s12667_s0 = scalar_lea.vmem %s444_s10, 32  ;;  %p12672_p4 = scmp.lt.s32.totalorder %s444_s10, %s444_s10 }
 0x161   :  { %p12668_p3 = scmp.ne.s32.totalorder %s444_s10, %s12667_s0  ;;  %p12673_p5 = scmp.lt.s32.totalorder %s12667_s0, %s12667_s0 }
 0x163   :  { %p12674_p6 = por %p12673_p5, %p12672_p4 }
 0x165   :  { %p12675_p7 = pnand %p12674_p6, %p12668_p3 }
 0x167   :  { %12678 = shalt.err (!%p12675_p7)
}
 0x168   :  { %s14708_s21 = sld [smem:[#allocation119_spill]] }
 0x169   :  { %446 = dma.hbm_to_vmem [thread:$0]  %s14707_s3, 32, %s444_s10, [#allocation48]  }
 0x16e   :  { %s12679_s15 = scalar_lea.hbm %s14708_s21, 32 }
 0x16f   :  { %p12680_p8 = scmp.ne.s32.totalorder %s14708_s21, %s12679_s15  ;;  %p12683_p9 = scmp.lt.u32.totalorder %s12679_s15, %s14708_s21 }
 0x171   :  { %p12685_p10 = pnand %p12683_p9, %p12680_p8 }
 0x173   :  { %12688 = shalt.err (!%p12685_p10)
}
 0x174   :  { %s12689_s24 = scalar_lea.vmem %s466_s11, 32  ;;  %p12694_p12 = scmp.lt.s32.totalorder %s466_s11, %s466_s11 }
 0x175   :  { %p12690_p11 = scmp.ne.s32.totalorder %s466_s11, %s12689_s24  ;;  %p12695_p13 = scmp.lt.s32.totalorder %s12689_s24, %s12689_s24 }
 0x177   :  { %p12696_p0 = por %p12695_p13, %p12694_p12 }
 0x179   :  { %p12697_p1 = pnand %p12696_p0, %p12690_p11 }
 0x17b   :  { %12700 = shalt.err (!%p12697_p1)
}
 0x17c   :  { %s14709_s16 = sld [smem:[#allocation121_spill]]  ;;  %s13525_s12 = smov [#allocation53]  }
 0x17d   :  { %468 = dma.hbm_to_vmem [thread:$0]  %s14708_s21, 32, %s466_s11, [#allocation51]  }
 0x17e   :  { %s485_s17 = sshll.u32 %s13525_s12, 4  ;;  %s13526_s18 = smov [#allocation56]   ;;  %s486_s17 = int_to_ptr.vmem [resolvable:$true] %s485_s17 }
 0x17f   :  { %s507_s6 = sshll.u32 %s13526_s18, 4  ;;  %s508_s6 = int_to_ptr.vmem [resolvable:$true] %s507_s6 }
 0x182   :  { %s12701_s30 = scalar_lea.hbm %s14709_s16, 16 }
 0x183   :  { %p12702_p2 = scmp.ne.s32.totalorder %s14709_s16, %s12701_s30  ;;  %p12705_p3 = scmp.lt.u32.totalorder %s12701_s30, %s14709_s16 }
 0x185   :  { %p12707_p4 = pnand %p12705_p3, %p12702_p2 }
 0x187   :  { %12710 = shalt.err (!%p12707_p4)
}
 0x188   :  { %s12711_s22 = scalar_lea.vmem %s486_s17, 16  ;;  %s12715_s23 = scalar_lea.vmem %s486_s17, 32 }
 0x189   :  { %p12712_p5 = scmp.ne.s32.totalorder %s486_s17, %s12711_s22  ;;  %p12716_p6 = scmp.lt.s32.totalorder %s486_s17, %s486_s17 }
 0x18a   :  { %p12717_p7 = scmp.lt.s32.totalorder %s12715_s23, %s12711_s22 }
 0x18c   :  { %p12718_p8 = por %p12717_p7, %p12716_p6 }
 0x18e   :  { %p12719_p9 = pnand %p12718_p8, %p12712_p5 }
 0x190   :  { %12722 = shalt.err (!%p12719_p9)
}
 0x191   :  { %s14710_s25 = sld [smem:[#allocation123_spill]] }
 0x192   :  { %488 = dma.hbm_to_vmem [thread:$0]  %s14709_s16, 16, %s486_s17, [#allocation54]  }
 0x197   :  { %s12723_s20 = scalar_lea.hbm %s14710_s25, 32 }
 0x198   :  { %p12724_p10 = scmp.ne.s32.totalorder %s14710_s25, %s12723_s20  ;;  %p12727_p11 = scmp.lt.u32.totalorder %s12723_s20, %s14710_s25 }
 0x19a   :  { %p12729_p12 = pnand %p12727_p11, %p12724_p10 }
 0x19c   :  { %12732 = shalt.err (!%p12729_p12)
}
 0x19d   :  { %s12733_s1 = scalar_lea.vmem %s508_s6, 32  ;;  %p12738_p0 = scmp.lt.s32.totalorder %s508_s6, %s508_s6 }
 0x19e   :  { %p12734_p13 = scmp.ne.s32.totalorder %s508_s6, %s12733_s1  ;;  %p12739_p1 = scmp.lt.s32.totalorder %s12733_s1, %s12733_s1 }
 0x1a0   :  { %p12740_p2 = por %p12739_p1, %p12738_p0 }
 0x1a2   :  { %p12741_p3 = pnand %p12740_p2, %p12734_p13 }
 0x1a4   :  { %12744 = shalt.err (!%p12741_p3)
}
 0x1a5   :  { %s14711_s19 = sld [smem:[#allocation125_spill]]  ;;  %s13527_s2 = smov [#allocation59]  }
 0x1a6   :  { %510 = dma.hbm_to_vmem [thread:$0]  %s14710_s25, 32, %s508_s6, [#allocation57]  }
 0x1a7   :  { %s526_s3 = sshll.u32 %s13527_s2, 4  ;;  %s527_s3 = int_to_ptr.vmem [resolvable:$true] %s526_s3 }
 0x1ab   :  { %s12745_s4 = scalar_lea.hbm %s14711_s19, 24576 }
 0x1ac   :  { %p12746_p4 = scmp.ne.s32.totalorder %s14711_s19, %s12745_s4  ;;  %p12749_p5 = scmp.lt.u32.totalorder %s12745_s4, %s14711_s19 }
 0x1ae   :  { %p12751_p6 = pnand %p12749_p5, %p12746_p4 }
 0x1b0   :  { %12754 = shalt.err (!%p12751_p6)
}
 0x1b1   :  { %s12755_s10 = scalar_lea.vmem %s527_s3, 24576  ;;  %p12760_p8 = scmp.lt.s32.totalorder %s527_s3, %s527_s3 }
 0x1b2   :  { %p12756_p7 = scmp.ne.s32.totalorder %s527_s3, %s12755_s10  ;;  %p12761_p9 = scmp.lt.s32.totalorder %s12755_s10, %s12755_s10 }
 0x1b4   :  { %p12762_p10 = por %p12761_p9, %p12760_p8 }
 0x1b6   :  { %p12763_p11 = pnand %p12762_p10, %p12756_p7 }
 0x1b8   :  { %12766 = shalt.err (!%p12763_p11)
}
 0x1b9   :  { %s13528_s8 = smov 256   ;;  %s14712_s11 = sld [smem:[#allocation127_spill]] }
 0x1ba   :  { %s13529_s29 = smov 16   ;;  %s13530_s0 = smov [#allocation62]  }
 0x1bb   :  { %532 = dma.hbm_to_vmem [thread:$0]  %s14711_s19, 24576, %s527_s3, [#allocation60], %s13528_s8, %s13528_s8, %s13529_s29  }
 0x1bc   :  { %s549_s21 = sshll.u32 %s13530_s0, 4  ;;  %s13531_s15 = smov [#allocation65]   ;;  %s550_s21 = int_to_ptr.vmem [resolvable:$true] %s549_s21 }
 0x1bd   :  { %s571_s24 = sshll.u32 %s13531_s15, 4  ;;  %s572_s24 = int_to_ptr.vmem [resolvable:$true] %s571_s24 }
 0x1bf   :  { %s12767_s16 = scalar_lea.hbm %s14712_s11, 64 }
 0x1c0   :  { %p12768_p12 = scmp.ne.s32.totalorder %s14712_s11, %s12767_s16  ;;  %p12771_p13 = scmp.lt.u32.totalorder %s12767_s16, %s14712_s11 }
 0x1c2   :  { %p12773_p0 = pnand %p12771_p13, %p12768_p12 }
 0x1c4   :  { %12776 = shalt.err (!%p12773_p0)
}
 0x1c5   :  { %s12777_s12 = scalar_lea.vmem %s550_s21, 64  ;;  %p12782_p2 = scmp.lt.s32.totalorder %s550_s21, %s550_s21 }
 0x1c6   :  { %p12778_p1 = scmp.ne.s32.totalorder %s550_s21, %s12777_s12  ;;  %p12783_p3 = scmp.lt.s32.totalorder %s12777_s12, %s12777_s12 }
 0x1c8   :  { %p12784_p4 = por %p12783_p3, %p12782_p2 }
 0x1ca   :  { %p12785_p5 = pnand %p12784_p4, %p12778_p1 }
 0x1cc   :  { %12788 = shalt.err (!%p12785_p5)
}
 0x1cd   :  { %s14713_s17 = sld [smem:[#allocation129_spill]] }
 0x1ce   :  { %552 = dma.hbm_to_vmem [thread:$0]  %s14712_s11, 64, %s550_s21, [#allocation63]  }
 0x1d3   :  { %s12789_s18 = scalar_lea.hbm %s14713_s17, 64 }
 0x1d4   :  { %p12790_p6 = scmp.ne.s32.totalorder %s14713_s17, %s12789_s18  ;;  %p12793_p7 = scmp.lt.u32.totalorder %s12789_s18, %s14713_s17 }
 0x1d6   :  { %p12795_p8 = pnand %p12793_p7, %p12790_p6 }
 0x1d8   :  { %12798 = shalt.err (!%p12795_p8)
}
 0x1d9   :  { %s12799_s6 = scalar_lea.vmem %s572_s24, 64  ;;  %p12804_p10 = scmp.lt.s32.totalorder %s572_s24, %s572_s24 }
 0x1da   :  { %p12800_p9 = scmp.ne.s32.totalorder %s572_s24, %s12799_s6  ;;  %p12805_p11 = scmp.lt.s32.totalorder %s12799_s6, %s12799_s6 }
 0x1dc   :  { %p12806_p12 = por %p12805_p11, %p12804_p10 }
 0x1de   :  { %p12807_p13 = pnand %p12806_p12, %p12800_p9 }
 0x1e0   :  { %12810 = shalt.err (!%p12807_p13)
}
 0x1e1   :  { %s14714_s30 = sld [smem:[#allocation131_spill]]  ;;  %s13532_s22 = smov [#allocation68]  }
 0x1e2   :  { %574 = dma.hbm_to_vmem [thread:$0]  %s14713_s17, 64, %s572_s24, [#allocation66]  }
 0x1e3   :  { %s590_s23 = sshll.u32 %s13532_s22, 4  ;;  %s13533_s25 = smov [#allocation71]   ;;  %s591_s23 = int_to_ptr.vmem [resolvable:$true] %s590_s23 }
 0x1e4   :  { %s613_s20 = sshll.u32 %s13533_s25, 4  ;;  %s614_s20 = int_to_ptr.vmem [resolvable:$true] %s613_s20 }
 0x1e7   :  { %s12811_s1 = scalar_lea.hbm %s14714_s30, 8192 }
 0x1e8   :  { %p12812_p0 = scmp.ne.s32.totalorder %s14714_s30, %s12811_s1  ;;  %p12815_p1 = scmp.lt.u32.totalorder %s12811_s1, %s14714_s30 }
 0x1ea   :  { %p12817_p2 = pnand %p12815_p1, %p12812_p0 }
 0x1ec   :  { %12820 = shalt.err (!%p12817_p2)
}
 0x1ed   :  { %s12821_s19 = scalar_lea.vmem %s591_s23, 8192  ;;  %p12826_p4 = scmp.lt.s32.totalorder %s591_s23, %s591_s23 }
 0x1ee   :  { %p12822_p3 = scmp.ne.s32.totalorder %s591_s23, %s12821_s19  ;;  %p12827_p5 = scmp.lt.s32.totalorder %s12821_s19, %s12821_s19 }
 0x1f0   :  { %p12828_p6 = por %p12827_p5, %p12826_p4 }
 0x1f2   :  { %p12829_p7 = pnand %p12828_p6, %p12822_p3 }
 0x1f4   :  { %12832 = shalt.err (!%p12829_p7)
}
 0x1f5   :  { %596 = dma.hbm_to_vmem [thread:$0]  %s14714_s30, 8192, %s591_s23, [#allocation69], %s13528_s8, %s13528_s8, %s13529_s29  }
 0x1f6   :  { %s12833_s2 = scalar_lea.hbm %s13806_s13, 64 }
 0x1f7   :  { %p12834_p8 = scmp.ne.s32.totalorder %s13806_s13, %s12833_s2  ;;  %p12837_p9 = scmp.lt.u32.totalorder %s12833_s2, %s13806_s13 }
 0x1f9   :  { %p12839_p10 = pnand %p12837_p9, %p12834_p8 }
 0x1fb   :  { %12842 = shalt.err (!%p12839_p10)
}
 0x1fc   :  { %s12843_s3 = scalar_lea.vmem %s614_s20, 64  ;;  %p12848_p12 = scmp.lt.s32.totalorder %s614_s20, %s614_s20 }
 0x1fd   :  { %p12844_p11 = scmp.ne.s32.totalorder %s614_s20, %s12843_s3  ;;  %p12849_p13 = scmp.lt.s32.totalorder %s12843_s3, %s12843_s3 }
 0x1ff   :  { %p12850_p0 = por %p12849_p13, %p12848_p12 }
 0x201   :  { %p12851_p1 = pnand %p12850_p0, %p12844_p11 }
 0x203   :  { %12854 = shalt.err (!%p12851_p1)
}
 0x204   :  { %s14715_s4 = sld [smem:[#allocation100_spill]]  ;;  %s13534_s10 = smov [#allocation2]  }
 0x205   :  { %616 = dma.hbm_to_vmem [thread:$0]  %s13806_s13, 64, %s614_s20, [#allocation72]  }
 0x206   :  { %s136_s11 = sshll.u32 %s13534_s10, 4  ;;  %s13535_s0 = smov [#allocation7]   ;;  %s137_s11 = int_to_ptr.vmem [resolvable:$true] %s136_s11 }
 0x207   :  { %s161_s21 = sshll.u32 %s13535_s0, 4  ;;  %s162_s21 = int_to_ptr.vmem [resolvable:$true] %s161_s21 }
 0x20a   :  { %s12855_s15 = scalar_lea.hbm %s14715_s4, 128 }
 0x20b   :  { %p12856_p2 = scmp.ne.s32.totalorder %s14715_s4, %s12855_s15  ;;  %p12859_p3 = scmp.lt.u32.totalorder %s12855_s15, %s14715_s4 }
 0x20d   :  { %p12861_p4 = pnand %p12859_p3, %p12856_p2 }
 0x20f   :  { %12864 = shalt.err (!%p12861_p4)
}
 0x210   :  { %s12865_s24 = scalar_lea.vmem %s137_s11, 128  ;;  %p12870_p6 = scmp.lt.s32.totalorder %s137_s11, %s137_s11 }
 0x211   :  { %p12866_p5 = scmp.ne.s32.totalorder %s137_s11, %s12865_s24  ;;  %p12871_p7 = scmp.lt.s32.totalorder %s12865_s24, %s12865_s24 }
 0x213   :  { %p12872_p8 = por %p12871_p7, %p12870_p6 }
 0x215   :  { %p12873_p9 = pnand %p12872_p8, %p12866_p5 }
 0x217   :  { %12876 = shalt.err (!%p12873_p9)
}
 0x218   :  { %s14716_s13 = sld [smem:[#allocation101_spill]] }
 0x219   :  { %142 = dma.hbm_to_vmem [thread:$0]  %s14715_s4, 128, %s137_s11, [#allocation3], %s13507_s26, %s13507_s26, %s13508_s28  }
 0x21e   :  { %s12877_s16 = scalar_lea.hbm %s14716_s13, 16 }
 0x21f   :  { %p12878_p10 = scmp.ne.s32.totalorder %s14716_s13, %s12877_s16  ;;  %p12881_p11 = scmp.lt.u32.totalorder %s12877_s16, %s14716_s13 }
 0x221   :  { %p12883_p12 = pnand %p12881_p11, %p12878_p10 }
 0x223   :  { %12886 = shalt.err (!%p12883_p12)
}
 0x224   :  { %s12887_s12 = scalar_lea.vmem %s162_s21, 16  ;;  %s12891_s17 = scalar_lea.vmem %s162_s21, 32 }
 0x225   :  { %p12888_p13 = scmp.ne.s32.totalorder %s162_s21, %s12887_s12  ;;  %p12892_p0 = scmp.lt.s32.totalorder %s162_s21, %s162_s21 }
 0x226   :  { %p12893_p1 = scmp.lt.s32.totalorder %s12891_s17, %s12887_s12 }
 0x228   :  { %p12894_p2 = por %p12893_p1, %p12892_p0 }
 0x22a   :  { %p12895_p3 = pnand %p12894_p2, %p12888_p13 }
 0x22c   :  { %12898 = shalt.err (!%p12895_p3)
}
 0x22d   :  { %s14717_s18 = sld [smem:[#allocation102_spill]]  ;;  %s13536_s6 = smov [#allocation10]  }
 0x22e   :  { %164 = dma.hbm_to_vmem [thread:$0]  %s14716_s13, 16, %s162_s21, [#allocation6]  }
 0x22f   :  { %s181_s30 = sshll.u32 %s13536_s6, 4  ;;  %s13537_s22 = smov [#allocation13]   ;;  %s182_s30 = int_to_ptr.vmem [resolvable:$true] %s181_s30 }
 0x230   :  { %s203_s23 = sshll.u32 %s13537_s22, 4  ;;  %s204_s23 = int_to_ptr.vmem [resolvable:$true] %s203_s23 }
 0x233   :  { %s12899_s25 = scalar_lea.hbm %s14717_s18, 64 }
 0x234   :  { %p12900_p4 = scmp.ne.s32.totalorder %s14717_s18, %s12899_s25  ;;  %p12903_p5 = scmp.lt.u32.totalorder %s12899_s25, %s14717_s18 }
 0x236   :  { %p12905_p6 = pnand %p12903_p5, %p12900_p4 }
 0x238   :  { %12908 = shalt.err (!%p12905_p6)
}
 0x239   :  { %s12909_s20 = scalar_lea.vmem %s182_s30, 64  ;;  %p12914_p8 = scmp.lt.s32.totalorder %s182_s30, %s182_s30 }
 0x23a   :  { %p12910_p7 = scmp.ne.s32.totalorder %s182_s30, %s12909_s20  ;;  %p12915_p9 = scmp.lt.s32.totalorder %s12909_s20, %s12909_s20 }
 0x23c   :  { %p12916_p10 = por %p12915_p9, %p12914_p8 }
 0x23e   :  { %p12917_p11 = pnand %p12916_p10, %p12910_p7 }
 0x240   :  { %12920 = shalt.err (!%p12917_p11)
}
 0x241   :  { %s14718_s1 = sld [smem:[#allocation104_spill]] }
 0x242   :  { %184 = dma.hbm_to_vmem [thread:$0]  %s14717_s18, 64, %s182_s30, [#allocation9]  }
 0x247   :  { %s12921_s19 = scalar_lea.hbm %s14718_s1, 16 }
 0x248   :  { %p12922_p12 = scmp.ne.s32.totalorder %s14718_s1, %s12921_s19  ;;  %p12925_p13 = scmp.lt.u32.totalorder %s12921_s19, %s14718_s1 }
 0x24a   :  { %p12927_p0 = pnand %p12925_p13, %p12922_p12 }
 0x24c   :  { %12930 = shalt.err (!%p12927_p0)
}
 0x24d   :  { %s12931_s2 = scalar_lea.vmem %s204_s23, 16  ;;  %s12935_s3 = scalar_lea.vmem %s204_s23, 32 }
 0x24e   :  { %p12932_p1 = scmp.ne.s32.totalorder %s204_s23, %s12931_s2  ;;  %p12936_p2 = scmp.lt.s32.totalorder %s204_s23, %s204_s23 }
 0x24f   :  { %p12937_p3 = scmp.lt.s32.totalorder %s12935_s3, %s12931_s2 }
 0x251   :  { %p12938_p4 = por %p12937_p3, %p12936_p2 }
 0x253   :  { %p12939_p5 = pnand %p12938_p4, %p12932_p1 }
 0x255   :  { %12942 = shalt.err (!%p12939_p5)
}
 0x256   :  { %s14719_s4 = sld [smem:[#allocation106_spill]]  ;;  %s13538_s10 = smov [#allocation16]  }
 0x257   :  { %206 = dma.hbm_to_vmem [thread:$0]  %s14718_s1, 16, %s204_s23, [#allocation12]  }
 0x258   :  { %s225_s11 = sshll.u32 %s13538_s10, 4  ;;  %s13539_s0 = smov [#allocation19]   ;;  %s226_s11 = int_to_ptr.vmem [resolvable:$true] %s225_s11 }
 0x259   :  { %s245_s21 = sshll.u32 %s13539_s0, 4  ;;  %s246_s21 = int_to_ptr.vmem [resolvable:$true] %s245_s21 }
 0x25c   :  { %s12943_s15 = scalar_lea.hbm %s14719_s4, 16 }
 0x25d   :  { %p12944_p6 = scmp.ne.s32.totalorder %s14719_s4, %s12943_s15  ;;  %p12947_p7 = scmp.lt.u32.totalorder %s12943_s15, %s14719_s4 }
 0x25f   :  { %p12949_p8 = pnand %p12947_p7, %p12944_p6 }
 0x261   :  { %12952 = shalt.err (!%p12949_p8)
}
 0x262   :  { %s12953_s24 = scalar_lea.vmem %s226_s11, 16  ;;  %s12957_s13 = scalar_lea.vmem %s226_s11, 32 }
 0x263   :  { %p12954_p9 = scmp.ne.s32.totalorder %s226_s11, %s12953_s24  ;;  %p12958_p10 = scmp.lt.s32.totalorder %s226_s11, %s226_s11 }
 0x264   :  { %p12959_p11 = scmp.lt.s32.totalorder %s12957_s13, %s12953_s24 }
 0x266   :  { %p12960_p12 = por %p12959_p11, %p12958_p10 }
 0x268   :  { %p12961_p13 = pnand %p12960_p12, %p12954_p9 }
 0x26a   :  { %12964 = shalt.err (!%p12961_p13)
}
 0x26b   :  { %s14720_s16 = sld [smem:[#allocation107_spill]] }
 0x26c   :  { %228 = dma.hbm_to_vmem [thread:$0]  %s14719_s4, 16, %s226_s11, [#allocation15]  }
 0x271   :  { %s12965_s12 = scalar_lea.hbm %s14720_s16, 32 }
 0x272   :  { %p12966_p0 = scmp.ne.s32.totalorder %s14720_s16, %s12965_s12  ;;  %p12969_p1 = scmp.lt.u32.totalorder %s12965_s12, %s14720_s16 }
 0x274   :  { %p12971_p2 = pnand %p12969_p1, %p12966_p0 }
 0x276   :  { %12974 = shalt.err (!%p12971_p2)
}
 0x277   :  { %s12975_s17 = scalar_lea.vmem %s246_s21, 32  ;;  %p12980_p4 = scmp.lt.s32.totalorder %s246_s21, %s246_s21 }
 0x278   :  { %p12976_p3 = scmp.ne.s32.totalorder %s246_s21, %s12975_s17  ;;  %p12981_p5 = scmp.lt.s32.totalorder %s12975_s17, %s12975_s17 }
 0x27a   :  { %p12982_p6 = por %p12981_p5, %p12980_p4 }
 0x27c   :  { %p12983_p7 = pnand %p12982_p6, %p12976_p3 }
 0x27e   :  { %12986 = shalt.err (!%p12983_p7)
}
 0x27f   :  { %s14721_s18 = sld [smem:[#allocation108_spill]]  ;;  %s13540_s6 = smov [#allocation22]  }
 0x280   :  { %248 = dma.hbm_to_vmem [thread:$0]  %s14720_s16, 32, %s246_s21, [#allocation18]  }
 0x281   :  { %s265_s30 = sshll.u32 %s13540_s6, 4  ;;  %s13541_s22 = smov [#allocation25]   ;;  %s266_s30 = int_to_ptr.vmem [resolvable:$true] %s265_s30 }
 0x282   :  { %s287_s23 = sshll.u32 %s13541_s22, 4  ;;  %s288_s23 = int_to_ptr.vmem [resolvable:$true] %s287_s23 }
 0x285   :  { %s12987_s25 = scalar_lea.hbm %s14721_s18, 32 }
 0x286   :  { %p12988_p8 = scmp.ne.s32.totalorder %s14721_s18, %s12987_s25  ;;  %p12991_p9 = scmp.lt.u32.totalorder %s12987_s25, %s14721_s18 }
 0x288   :  { %p12993_p10 = pnand %p12991_p9, %p12988_p8 }
 0x28a   :  { %12996 = shalt.err (!%p12993_p10)
}
 0x28b   :  { %s12997_s20 = scalar_lea.vmem %s266_s30, 32  ;;  %p13002_p12 = scmp.lt.s32.totalorder %s266_s30, %s266_s30 }
 0x28c   :  { %p12998_p11 = scmp.ne.s32.totalorder %s266_s30, %s12997_s20  ;;  %p13003_p13 = scmp.lt.s32.totalorder %s12997_s20, %s12997_s20 }
 0x28e   :  { %p13004_p0 = por %p13003_p13, %p13002_p12 }
 0x290   :  { %p13005_p1 = pnand %p13004_p0, %p12998_p11 }
 0x292   :  { %13008 = shalt.err (!%p13005_p1)
}
 0x293   :  { %s14722_s1 = sld [smem:[#allocation109_spill]] }
 0x294   :  { %268 = dma.hbm_to_vmem [thread:$0]  %s14721_s18, 32, %s266_s30, [#allocation21]  }
 0x299   :  { %s13009_s19 = scalar_lea.hbm %s14722_s1, 16 }
 0x29a   :  { %p13010_p2 = scmp.ne.s32.totalorder %s14722_s1, %s13009_s19  ;;  %p13013_p3 = scmp.lt.u32.totalorder %s13009_s19, %s14722_s1 }
 0x29c   :  { %p13015_p4 = pnand %p13013_p3, %p13010_p2 }
 0x29e   :  { %13018 = shalt.err (!%p13015_p4)
}
 0x29f   :  { %s13019_s2 = scalar_lea.vmem %s288_s23, 16  ;;  %s13023_s3 = scalar_lea.vmem %s288_s23, 32 }
 0x2a0   :  { %p13020_p5 = scmp.ne.s32.totalorder %s288_s23, %s13019_s2  ;;  %p13024_p6 = scmp.lt.s32.totalorder %s288_s23, %s288_s23 }
 0x2a1   :  { %p13025_p7 = scmp.lt.s32.totalorder %s13023_s3, %s13019_s2 }
 0x2a3   :  { %p13026_p8 = por %p13025_p7, %p13024_p6 }
 0x2a5   :  { %p13027_p9 = pnand %p13026_p8, %p13020_p5 }
 0x2a7   :  { %13030 = shalt.err (!%p13027_p9)
}
 0x2a8   :  { %s14723_s4 = sld [smem:[#allocation110_spill]]  ;;  %s13542_s10 = smov [#allocation28]  }
 0x2a9   :  { %290 = dma.hbm_to_vmem [thread:$0]  %s14722_s1, 16, %s288_s23, [#allocation24]  }
 0x2aa   :  { %s307_s11 = sshll.u32 %s13542_s10, 4  ;;  %s13543_s0 = smov [#allocation31]   ;;  %s308_s11 = int_to_ptr.vmem [resolvable:$true] %s307_s11 }
 0x2ab   :  { %s326_s21 = sshll.u32 %s13543_s0, 4  ;;  %s327_s21 = int_to_ptr.vmem [resolvable:$true] %s326_s21 }
 0x2ae   :  { %s13031_s15 = scalar_lea.hbm %s14723_s4, 32 }
 0x2af   :  { %p13032_p10 = scmp.ne.s32.totalorder %s14723_s4, %s13031_s15  ;;  %p13035_p11 = scmp.lt.u32.totalorder %s13031_s15, %s14723_s4 }
 0x2b1   :  { %p13037_p12 = pnand %p13035_p11, %p13032_p10 }
 0x2b3   :  { %13040 = shalt.err (!%p13037_p12)
}
 0x2b4   :  { %s13041_s24 = scalar_lea.vmem %s308_s11, 32  ;;  %p13046_p0 = scmp.lt.s32.totalorder %s308_s11, %s308_s11 }
 0x2b5   :  { %p13042_p13 = scmp.ne.s32.totalorder %s308_s11, %s13041_s24  ;;  %p13047_p1 = scmp.lt.s32.totalorder %s13041_s24, %s13041_s24 }
 0x2b7   :  { %p13048_p2 = por %p13047_p1, %p13046_p0 }
 0x2b9   :  { %p13049_p3 = pnand %p13048_p2, %p13042_p13 }
 0x2bb   :  { %13052 = shalt.err (!%p13049_p3)
}
 0x2bc   :  { %s14724_s13 = sld [smem:[#allocation111_spill]] }
 0x2bd   :  { %310 = dma.hbm_to_vmem [thread:$0]  %s14723_s4, 32, %s308_s11, [#allocation27]  }
 0x2c2   :  { %s13053_s16 = scalar_lea.hbm %s14724_s13, 3072 }
 0x2c3   :  { %p13054_p4 = scmp.ne.s32.totalorder %s14724_s13, %s13053_s16  ;;  %p13057_p5 = scmp.lt.u32.totalorder %s13053_s16, %s14724_s13 }
 0x2c5   :  { %p13059_p6 = pnand %p13057_p5, %p13054_p4 }
 0x2c7   :  { %13062 = shalt.err (!%p13059_p6)
}
 0x2c8   :  { %s13063_s12 = scalar_lea.vmem %s327_s21, 3072  ;;  %p13068_p8 = scmp.lt.s32.totalorder %s327_s21, %s327_s21 }
 0x2c9   :  { %p13064_p7 = scmp.ne.s32.totalorder %s327_s21, %s13063_s12  ;;  %p13069_p9 = scmp.lt.s32.totalorder %s13063_s12, %s13063_s12 }
 0x2cb   :  { %p13070_p10 = por %p13069_p9, %p13068_p8 }
 0x2cd   :  { %p13071_p11 = pnand %p13070_p10, %p13064_p7 }
 0x2cf   :  { %13074 = shalt.err (!%p13071_p11)
}
 0x2d0   :  { %s14725_s17 = sld [smem:[#allocation112_spill]]  ;;  %s13544_s18 = smov [#allocation34]  }
 0x2d1   :  { %332 = dma.hbm_to_vmem [thread:$0]  %s14724_s13, 3072, %s327_s21, [#allocation30], %s13507_s26, %s13507_s26, %s13508_s28  }
 0x2d2   :  { %s349_s6 = sshll.u32 %s13544_s18, 4  ;;  %s13545_s30 = smov [#allocation37]   ;;  %s350_s6 = int_to_ptr.vmem [resolvable:$true] %s349_s6 }
 0x2d3   :  { %s368_s22 = sshll.u32 %s13545_s30, 4  ;;  %s369_s22 = int_to_ptr.vmem [resolvable:$true] %s368_s22 }
 0x2d6   :  { %s13075_s23 = scalar_lea.hbm %s14725_s17, 16 }
 0x2d7   :  { %p13076_p12 = scmp.ne.s32.totalorder %s14725_s17, %s13075_s23  ;;  %p13079_p13 = scmp.lt.u32.totalorder %s13075_s23, %s14725_s17 }
 0x2d9   :  { %p13081_p0 = pnand %p13079_p13, %p13076_p12 }
 0x2db   :  { %13084 = shalt.err (!%p13081_p0)
}
 0x2dc   :  { %s13085_s25 = scalar_lea.vmem %s350_s6, 16  ;;  %s13089_s20 = scalar_lea.vmem %s350_s6, 32 }
 0x2dd   :  { %p13086_p1 = scmp.ne.s32.totalorder %s350_s6, %s13085_s25  ;;  %p13090_p2 = scmp.lt.s32.totalorder %s350_s6, %s350_s6 }
 0x2de   :  { %p13091_p3 = scmp.lt.s32.totalorder %s13089_s20, %s13085_s25 }
 0x2e0   :  { %p13092_p4 = por %p13091_p3, %p13090_p2 }
 0x2e2   :  { %p13093_p5 = pnand %p13092_p4, %p13086_p1 }
 0x2e4   :  { %13096 = shalt.err (!%p13093_p5)
}
 0x2e5   :  { %s14726_s1 = sld [smem:[#allocation113_spill]] }
 0x2e6   :  { %352 = dma.hbm_to_vmem [thread:$0]  %s14725_s17, 16, %s350_s6, [#allocation33]  }
 0x2eb   :  { %s13097_s19 = scalar_lea.hbm %s14726_s1, 512 }
 0x2ec   :  { %p13098_p6 = scmp.ne.s32.totalorder %s14726_s1, %s13097_s19  ;;  %p13101_p7 = scmp.lt.u32.totalorder %s13097_s19, %s14726_s1 }
 0x2ee   :  { %p13103_p8 = pnand %p13101_p7, %p13098_p6 }
 0x2f0   :  { %13106 = shalt.err (!%p13103_p8)
}
 0x2f1   :  { %s13107_s2 = scalar_lea.vmem %s369_s22, 512  ;;  %p13112_p10 = scmp.lt.s32.totalorder %s369_s22, %s369_s22 }
 0x2f2   :  { %p13108_p9 = scmp.ne.s32.totalorder %s369_s22, %s13107_s2  ;;  %p13113_p11 = scmp.lt.s32.totalorder %s13107_s2, %s13107_s2 }
 0x2f4   :  { %p13114_p12 = por %p13113_p11, %p13112_p10 }
 0x2f6   :  { %p13115_p13 = pnand %p13114_p12, %p13108_p9 }
 0x2f8   :  { %13118 = shalt.err (!%p13115_p13)
}
 0x2f9   :  { %s14727_s3 = sld [smem:[#allocation114_spill]]  ;;  %s13546_s4 = smov [#allocation40]  }
 0x2fa   :  { %374 = dma.hbm_to_vmem [thread:$0]  %s14726_s1, 512, %s369_s22, [#allocation36], %s13507_s26, %s13507_s26, %s13508_s28  }
 0x2fb   :  { %s391_s10 = sshll.u32 %s13546_s4, 4  ;;  %s13547_s11 = smov [#allocation43]   ;;  %s392_s10 = int_to_ptr.vmem [resolvable:$true] %s391_s10 }
 0x2fc   :  { %s411_s0 = sshll.u32 %s13547_s11, 4  ;;  %s412_s0 = int_to_ptr.vmem [resolvable:$true] %s411_s0 }
 0x2ff   :  { %s13119_s21 = scalar_lea.hbm %s14727_s3, 16 }
 0x300   :  { %p13120_p0 = scmp.ne.s32.totalorder %s14727_s3, %s13119_s21  ;;  %p13123_p1 = scmp.lt.u32.totalorder %s13119_s21, %s14727_s3 }
 0x302   :  { %p13125_p2 = pnand %p13123_p1, %p13120_p0 }
 0x304   :  { %13128 = shalt.err (!%p13125_p2)
}
 0x305   :  { %s13129_s15 = scalar_lea.vmem %s392_s10, 16  ;;  %s13133_s24 = scalar_lea.vmem %s392_s10, 32 }
 0x306   :  { %p13130_p3 = scmp.ne.s32.totalorder %s392_s10, %s13129_s15  ;;  %p13134_p4 = scmp.lt.s32.totalorder %s392_s10, %s392_s10 }
 0x307   :  { %p13135_p5 = scmp.lt.s32.totalorder %s13133_s24, %s13129_s15 }
 0x309   :  { %p13136_p6 = por %p13135_p5, %p13134_p4 }
 0x30b   :  { %p13137_p7 = pnand %p13136_p6, %p13130_p3 }
 0x30d   :  { %13140 = shalt.err (!%p13137_p7)
}
 0x30e   :  { %s14728_s28 = sld [smem:[#allocation115_spill]] }
 0x30f   :  { %394 = dma.hbm_to_vmem [thread:$0]  %s14727_s3, 16, %s392_s10, [#allocation39]  }
 0x314   :  { %s13141_s13 = scalar_lea.hbm %s14728_s28, 16 }
 0x315   :  { %p13142_p8 = scmp.ne.s32.totalorder %s14728_s28, %s13141_s13  ;;  %p13145_p9 = scmp.lt.u32.totalorder %s13141_s13, %s14728_s28 }
 0x317   :  { %p13147_p10 = pnand %p13145_p9, %p13142_p8 }
 0x319   :  { %13150 = shalt.err (!%p13147_p10)
}
 0x31a   :  { %s13151_s16 = scalar_lea.vmem %s412_s0, 16  ;;  %s13155_s12 = scalar_lea.vmem %s412_s0, 32 }
 0x31b   :  { %p13152_p11 = scmp.ne.s32.totalorder %s412_s0, %s13151_s16  ;;  %p13156_p12 = scmp.lt.s32.totalorder %s412_s0, %s412_s0 }
 0x31c   :  { %p13157_p13 = scmp.lt.s32.totalorder %s13155_s12, %s13151_s16 }
 0x31e   :  { %p13158_p0 = por %p13157_p13, %p13156_p12 }
 0x320   :  { %p13159_p1 = pnand %p13158_p0, %p13152_p11 }
 0x322   :  { %13162 = shalt.err (!%p13159_p1)
}
 0x323   :  { %s14729_s17 = sld [smem:[#allocation116_spill]]  ;;  %s13548_s18 = smov [#allocation46]  }
 0x324   :  { %414 = dma.hbm_to_vmem [thread:$0]  %s14728_s28, 16, %s412_s0, [#allocation42]  }
 0x325   :  { %s433_s6 = sshll.u32 %s13548_s18, 4  ;;  %s13549_s30 = smov [#allocation49]   ;;  %s434_s6 = int_to_ptr.vmem [resolvable:$true] %s433_s6 }
 0x326   :  { %s452_s22 = sshll.u32 %s13549_s30, 4  ;;  %s453_s22 = int_to_ptr.vmem [resolvable:$true] %s452_s22 }
 0x329   :  { %s13163_s23 = scalar_lea.hbm %s14729_s17, 32 }
 0x32a   :  { %p13164_p2 = scmp.ne.s32.totalorder %s14729_s17, %s13163_s23  ;;  %p13167_p3 = scmp.lt.u32.totalorder %s13163_s23, %s14729_s17 }
 0x32c   :  { %p13169_p4 = pnand %p13167_p3, %p13164_p2 }
 0x32e   :  { %13172 = shalt.err (!%p13169_p4)
}
 0x32f   :  { %s13173_s25 = scalar_lea.vmem %s434_s6, 32  ;;  %p13178_p6 = scmp.lt.s32.totalorder %s434_s6, %s434_s6 }
 0x330   :  { %p13174_p5 = scmp.ne.s32.totalorder %s434_s6, %s13173_s25  ;;  %p13179_p7 = scmp.lt.s32.totalorder %s13173_s25, %s13173_s25 }
 0x332   :  { %p13180_p8 = por %p13179_p7, %p13178_p6 }
 0x334   :  { %p13181_p9 = pnand %p13180_p8, %p13174_p5 }
 0x336   :  { %13184 = shalt.err (!%p13181_p9)
}
 0x337   :  { %s14730_s20 = sld [smem:[#allocation118_spill]] }
 0x338   :  { %436 = dma.hbm_to_vmem [thread:$0]  %s14729_s17, 32, %s434_s6, [#allocation45]  }
 0x33d   :  { %s13185_s1 = scalar_lea.hbm %s14730_s20, 12288 }
 0x33e   :  { %p13186_p10 = scmp.ne.s32.totalorder %s14730_s20, %s13185_s1  ;;  %p13189_p11 = scmp.lt.u32.totalorder %s13185_s1, %s14730_s20 }
 0x340   :  { %p13191_p12 = pnand %p13189_p11, %p13186_p10 }
 0x342   :  { %13194 = shalt.err (!%p13191_p12)
}
 0x343   :  { %s13195_s19 = scalar_lea.vmem %s453_s22, 12288  ;;  %p13200_p0 = scmp.lt.s32.totalorder %s453_s22, %s453_s22 }
 0x344   :  { %p13196_p13 = scmp.ne.s32.totalorder %s453_s22, %s13195_s19  ;;  %p13201_p1 = scmp.lt.s32.totalorder %s13195_s19, %s13195_s19 }
 0x346   :  { %p13202_p2 = por %p13201_p1, %p13200_p0 }
 0x348   :  { %p13203_p3 = pnand %p13202_p2, %p13196_p13 }
 0x34a   :  { %13206 = shalt.err (!%p13203_p3)
}
 0x34b   :  { %s14731_s2 = sld [smem:[#allocation120_spill]]  ;;  %s13550_s3 = smov [#allocation52]  }
 0x34c   :  { %458 = dma.hbm_to_vmem [thread:$0]  %s14730_s20, 12288, %s453_s22, [#allocation48], %s13521_s7, %s13521_s7, %s13522_s9  }
 0x34d   :  { %s475_s4 = sshll.u32 %s13550_s3, 4  ;;  %s13551_s10 = smov [#allocation55]   ;;  %s476_s4 = int_to_ptr.vmem [resolvable:$true] %s475_s4 }
 0x34e   :  { %s494_s11 = sshll.u32 %s13551_s10, 4  ;;  %s495_s11 = int_to_ptr.vmem [resolvable:$true] %s494_s11 }
 0x351   :  { %s13207_s0 = scalar_lea.hbm %s14731_s2, 32 }
 0x352   :  { %p13208_p4 = scmp.ne.s32.totalorder %s14731_s2, %s13207_s0  ;;  %p13211_p5 = scmp.lt.u32.totalorder %s13207_s0, %s14731_s2 }
 0x354   :  { %p13213_p6 = pnand %p13211_p5, %p13208_p4 }
 0x356   :  { %13216 = shalt.err (!%p13213_p6)
}
 0x357   :  { %s13217_s21 = scalar_lea.vmem %s476_s4, 32  ;;  %p13222_p8 = scmp.lt.s32.totalorder %s476_s4, %s476_s4 }
 0x358   :  { %p13218_p7 = scmp.ne.s32.totalorder %s476_s4, %s13217_s21  ;;  %p13223_p9 = scmp.lt.s32.totalorder %s13217_s21, %s13217_s21 }
 0x35a   :  { %p13224_p10 = por %p13223_p9, %p13222_p8 }
 0x35c   :  { %p13225_p11 = pnand %p13224_p10, %p13218_p7 }
 0x35e   :  { %13228 = shalt.err (!%p13225_p11)
}
 0x35f   :  { %s14732_s15 = sld [smem:[#allocation122_spill]] }
 0x360   :  { %478 = dma.hbm_to_vmem [thread:$0]  %s14731_s2, 32, %s476_s4, [#allocation51]  }
 0x365   :  { %s13229_s24 = scalar_lea.hbm %s14732_s15, 2048 }
 0x366   :  { %p13230_p12 = scmp.ne.s32.totalorder %s14732_s15, %s13229_s24  ;;  %p13233_p13 = scmp.lt.u32.totalorder %s13229_s24, %s14732_s15 }
 0x368   :  { %p13235_p0 = pnand %p13233_p13, %p13230_p12 }
 0x36a   :  { %13238 = shalt.err (!%p13235_p0)
}
 0x36b   :  { %s13239_s28 = scalar_lea.vmem %s495_s11, 2048  ;;  %p13244_p2 = scmp.lt.s32.totalorder %s495_s11, %s495_s11 }
 0x36c   :  { %p13240_p1 = scmp.ne.s32.totalorder %s495_s11, %s13239_s28  ;;  %p13245_p3 = scmp.lt.s32.totalorder %s13239_s28, %s13239_s28 }
 0x36e   :  { %p13246_p4 = por %p13245_p3, %p13244_p2 }
 0x370   :  { %p13247_p5 = pnand %p13246_p4, %p13240_p1 }
 0x372   :  { %13250 = shalt.err (!%p13247_p5)
}
 0x373   :  { %s14733_s13 = sld [smem:[#allocation124_spill]]  ;;  %s13552_s16 = smov [#allocation58]  }
 0x374   :  { %500 = dma.hbm_to_vmem [thread:$0]  %s14732_s15, 2048, %s495_s11, [#allocation54], %s13521_s7, %s13521_s7, %s13522_s9  }
 0x375   :  { %s517_s12 = sshll.u32 %s13552_s16, 4  ;;  %s13553_s17 = smov [#allocation61]   ;;  %s518_s12 = int_to_ptr.vmem [resolvable:$true] %s517_s12 }
 0x376   :  { %s539_s18 = sshll.u32 %s13553_s17, 4  ;;  %s540_s18 = int_to_ptr.vmem [resolvable:$true] %s539_s18 }
 0x379   :  { %s13251_s6 = scalar_lea.hbm %s14733_s13, 32 }
 0x37a   :  { %p13252_p6 = scmp.ne.s32.totalorder %s14733_s13, %s13251_s6  ;;  %p13255_p7 = scmp.lt.u32.totalorder %s13251_s6, %s14733_s13 }
 0x37c   :  { %p13257_p8 = pnand %p13255_p7, %p13252_p6 }
 0x37e   :  { %13260 = shalt.err (!%p13257_p8)
}
 0x37f   :  { %s13261_s30 = scalar_lea.vmem %s518_s12, 32  ;;  %p13266_p10 = scmp.lt.s32.totalorder %s518_s12, %s518_s12 }
 0x380   :  { %p13262_p9 = scmp.ne.s32.totalorder %s518_s12, %s13261_s30  ;;  %p13267_p11 = scmp.lt.s32.totalorder %s13261_s30, %s13261_s30 }
 0x382   :  { %p13268_p12 = por %p13267_p11, %p13266_p10 }
 0x384   :  { %p13269_p13 = pnand %p13268_p12, %p13262_p9 }
 0x386   :  { %13272 = shalt.err (!%p13269_p13)
}
 0x387   :  { %s14734_s22 = sld [smem:[#allocation126_spill]] }
 0x388   :  { %520 = dma.hbm_to_vmem [thread:$0]  %s14733_s13, 32, %s518_s12, [#allocation57]  }
 0x38d   :  { %s13273_s7 = scalar_lea.hbm %s14734_s22, 64 }
 0x38e   :  { %p13274_p0 = scmp.ne.s32.totalorder %s14734_s22, %s13273_s7  ;;  %p13277_p1 = scmp.lt.u32.totalorder %s13273_s7, %s14734_s22 }
 0x390   :  { %p13279_p2 = pnand %p13277_p1, %p13274_p0 }
 0x392   :  { %13282 = shalt.err (!%p13279_p2)
}
 0x393   :  { %s13283_s9 = scalar_lea.vmem %s540_s18, 64  ;;  %p13288_p4 = scmp.lt.s32.totalorder %s540_s18, %s540_s18 }
 0x394   :  { %p13284_p3 = scmp.ne.s32.totalorder %s540_s18, %s13283_s9  ;;  %p13289_p5 = scmp.lt.s32.totalorder %s13283_s9, %s13283_s9 }
 0x396   :  { %p13290_p6 = por %p13289_p5, %p13288_p4 }
 0x398   :  { %p13291_p7 = pnand %p13290_p6, %p13284_p3 }
 0x39a   :  { %13294 = shalt.err (!%p13291_p7)
}
 0x39b   :  { %s14735_s23 = sld [smem:[#allocation128_spill]]  ;;  %s13554_s25 = smov [#allocation64]  }
 0x39c   :  { %542 = dma.hbm_to_vmem [thread:$0]  %s14734_s22, 64, %s540_s18, [#allocation60]  }
 0x39d   :  { %s558_s20 = sshll.u32 %s13554_s25, 4  ;;  %s13555_s1 = smov [#allocation67]   ;;  %s559_s20 = int_to_ptr.vmem [resolvable:$true] %s558_s20 }
 0x39e   :  { %s581_s19 = sshll.u32 %s13555_s1, 4  ;;  %s582_s19 = int_to_ptr.vmem [resolvable:$true] %s581_s19 }
 0x3a1   :  { %s13295_s2 = scalar_lea.hbm %s14735_s23, 49152 }
 0x3a2   :  { %p13296_p8 = scmp.ne.s32.totalorder %s14735_s23, %s13295_s2  ;;  %p13299_p9 = scmp.lt.u32.totalorder %s13295_s2, %s14735_s23 }
 0x3a4   :  { %p13301_p10 = pnand %p13299_p9, %p13296_p8 }
 0x3a6   :  { %13304 = shalt.err (!%p13301_p10)
}
 0x3a7   :  { %s13305_s3 = scalar_lea.vmem %s559_s20, 49152  ;;  %p13310_p12 = scmp.lt.s32.totalorder %s559_s20, %s559_s20 }
 0x3a8   :  { %p13306_p11 = scmp.ne.s32.totalorder %s559_s20, %s13305_s3  ;;  %p13311_p13 = scmp.lt.s32.totalorder %s13305_s3, %s13305_s3 }
 0x3aa   :  { %p13312_p0 = por %p13311_p13, %p13310_p12 }
 0x3ac   :  { %p13313_p1 = pnand %p13312_p0, %p13306_p11 }
 0x3ae   :  { %13316 = shalt.err (!%p13313_p1)
}
 0x3af   :  { %s14736_s4 = sld [smem:[#allocation130_spill]] }
 0x3b0   :  { %564 = dma.hbm_to_vmem [thread:$0]  %s14735_s23, 49152, %s559_s20, [#allocation63], %s13528_s8, %s13528_s8, %s13529_s29  }
 0x3b5   :  { %s13317_s10 = scalar_lea.hbm %s14736_s4, 64 }
 0x3b6   :  { %p13318_p2 = scmp.ne.s32.totalorder %s14736_s4, %s13317_s10  ;;  %p13321_p3 = scmp.lt.u32.totalorder %s13317_s10, %s14736_s4 }
 0x3b8   :  { %p13323_p4 = pnand %p13321_p3, %p13318_p2 }
 0x3ba   :  { %13326 = shalt.err (!%p13323_p4)
}
 0x3bb   :  { %s13327_s11 = scalar_lea.vmem %s582_s19, 64  ;;  %p13332_p6 = scmp.lt.s32.totalorder %s582_s19, %s582_s19 }
 0x3bc   :  { %p13328_p5 = scmp.ne.s32.totalorder %s582_s19, %s13327_s11  ;;  %p13333_p7 = scmp.lt.s32.totalorder %s13327_s11, %s13327_s11 }
 0x3be   :  { %p13334_p8 = por %p13333_p7, %p13332_p6 }
 0x3c0   :  { %p13335_p9 = pnand %p13334_p8, %p13328_p5 }
 0x3c2   :  { %13338 = shalt.err (!%p13335_p9)
}
 0x3c3   :  { %s14737_s0 = sld [smem:[#allocation132_spill]]  ;;  %s13556_s21 = smov [#allocation70]  }
 0x3c4   :  { %584 = dma.hbm_to_vmem [thread:$0]  %s14736_s4, 64, %s582_s19, [#allocation66]  }
 0x3c5   :  { %s603_s8 = sshll.u32 %s13556_s21, 4  ;;  %s13557_s29 = smov [#allocation73]   ;;  %s604_s8 = int_to_ptr.vmem [resolvable:$true] %s603_s8 }
 0x3c6   :  { %s625_s15 = sshll.u32 %s13557_s29, 4  ;;  %s626_s15 = int_to_ptr.vmem [resolvable:$true] %s625_s15 }
 0x3c9   :  { %s13339_s24 = scalar_lea.hbm %s14737_s0, 64 }
 0x3ca   :  { %p13340_p10 = scmp.ne.s32.totalorder %s14737_s0, %s13339_s24  ;;  %p13343_p11 = scmp.lt.u32.totalorder %s13339_s24, %s14737_s0 }
 0x3cc   :  { %p13345_p12 = pnand %p13343_p11, %p13340_p10 }
 0x3ce   :  { %13348 = shalt.err (!%p13345_p12)
}
 0x3cf   :  { %s13349_s28 = scalar_lea.vmem %s604_s8, 64  ;;  %p13354_p0 = scmp.lt.s32.totalorder %s604_s8, %s604_s8 }
 0x3d0   :  { %p13350_p13 = scmp.ne.s32.totalorder %s604_s8, %s13349_s28  ;;  %p13355_p1 = scmp.lt.s32.totalorder %s13349_s28, %s13349_s28 }
 0x3d2   :  { %p13356_p2 = por %p13355_p1, %p13354_p0 }
 0x3d4   :  { %p13357_p3 = pnand %p13356_p2, %p13350_p13 }
 0x3d6   :  { %13360 = shalt.err (!%p13357_p3)
}
 0x3d7   :  { %606 = dma.hbm_to_vmem [thread:$0]  %s14737_s0, 64, %s604_s8, [#allocation69]  }
 0x3d8   :  { %s13361_s13 = scalar_lea.hbm %s13816_s5, 16 }
 0x3d9   :  { %p13362_p4 = scmp.ne.s32.totalorder %s13816_s5, %s13361_s13  ;;  %p13365_p5 = scmp.lt.u32.totalorder %s13361_s13, %s13816_s5 }
 0x3db   :  { %p13367_p6 = pnand %p13365_p5, %p13362_p4 }
 0x3dd   :  { %13370 = shalt.err (!%p13367_p6)
}
 0x3de   :  { %s13371_s16 = scalar_lea.vmem %s626_s15, 16  ;;  %s13375_s12 = scalar_lea.vmem %s626_s15, 32 }
 0x3df   :  { %p13372_p7 = scmp.ne.s32.totalorder %s626_s15, %s13371_s16  ;;  %p13376_p8 = scmp.lt.s32.totalorder %s626_s15, %s626_s15 }
 0x3e0   :  { %p13377_p9 = scmp.lt.s32.totalorder %s13375_s12, %s13371_s16 }
 0x3e2   :  { %p13378_p10 = por %p13377_p9, %p13376_p8 }
 0x3e4   :  { %p13379_p11 = pnand %p13378_p10, %p13372_p7 }
 0x3e6   :  { %13382 = shalt.err (!%p13379_p11)
}
 0x3e7   :  { %628 = dma.hbm_to_vmem [thread:$0]  %s13816_s5, 16, %s626_s15, [#allocation72]  }
 0x3e8   :  { %13405 = dma.done.wait [#allocation3], 128  }
 0x3e9   :  { %13406 = vsyncadd [#allocation3], 4294967168 }
 0x3ea   :  { %13407 = dma.done.wait [#allocation6], 272  }
 0x3eb   :  { %13408 = vsyncadd [#allocation6], 4294967024 }
 0x3ec   :  { %13409 = dma.done.wait [#allocation9], 80  }
 0x3ed   :  { %13410 = vsyncadd [#allocation9], 4294967216 }
 0x3ee   :  { %13411 = dma.done.wait [#allocation12], 80  }
 0x3ef   :  { %13412 = vsyncadd [#allocation12], 4294967216 }
 0x3f0   :  { %13413 = dma.done.wait [#allocation15], 32  }
 0x3f1   :  { %13414 = vsyncadd [#allocation15], 4294967264 }
 0x3f2   :  { %13415 = dma.done.wait [#allocation18], 48  }
 0x3f3   :  { %13416 = vsyncadd [#allocation18], 4294967248 }
 0x3f4   :  { %13417 = dma.done.wait [#allocation21], 64  }
 0x3f5   :  { %13418 = vsyncadd [#allocation21], 4294967232 }
 0x3f6   :  { %13419 = dma.done.wait [#allocation24], 1552  }
 0x3f7   :  { %13420 = vsyncadd [#allocation24], 4294965744 }
 0x3f8   :  { %13421 = dma.done.wait [#allocation27], 48  }
 0x3f9   :  { %13422 = vsyncadd [#allocation27], 4294967248 }
 0x3fa   :  { %13423 = dma.done.wait [#allocation30], 3104  }
 0x3fb   :  { %13424 = vsyncadd [#allocation30], 4294964192 }
 0x3fc   :  { %13425 = dma.done.wait [#allocation33], 32  }
 0x3fd   :  { %13426 = vsyncadd [#allocation33], 4294967264 }
 0x3fe   :  { %13427 = dma.done.wait [#allocation36], 544  }
 0x3ff   :  { %13428 = vsyncadd [#allocation36], 4294966752 }
 0x400   :  { %13429 = dma.done.wait [#allocation39], 32  }
 0x401   :  { %13430 = vsyncadd [#allocation39], 4294967264 }
 0x402   :  { %13431 = dma.done.wait [#allocation42], 32  }
 0x403   :  { %13432 = vsyncadd [#allocation42], 4294967264 }
 0x404   :  { %13433 = dma.done.wait [#allocation45], 6176  }
 0x405   :  { %13434 = vsyncadd [#allocation45], 4294961120 }
 0x406   :  { %13435 = dma.done.wait [#allocation48], 12320  }
 0x407   :  { %13436 = vsyncadd [#allocation48], 4294954976 }
 0x408   :  { %13437 = dma.done.wait [#allocation51], 64  }
 0x409   :  { %13438 = vsyncadd [#allocation51], 4294967232 }
 0x40a   :  { %13439 = dma.done.wait [#allocation54], 2064  }
 0x40b   :  { %13440 = vsyncadd [#allocation54], 4294965232 }
 0x40c   :  { %13441 = dma.done.wait [#allocation57], 64  }
 0x40d   :  { %13442 = vsyncadd [#allocation57], 4294967232 }
 0x40e   :  { %13443 = dma.done.wait [#allocation60], 24640  }
 0x40f   :  { %13444 = vsyncadd [#allocation60], 4294942656 }
 0x410   :  { %13445 = dma.done.wait [#allocation63], 49216  }
 0x411   :  { %13446 = vsyncadd [#allocation63], 4294918080 }
 0x412   :  { %13447 = dma.done.wait [#allocation66], 128  }
 0x413   :  { %13448 = vsyncadd [#allocation66], 4294967168 }
 0x414   :  { %13449 = dma.done.wait [#allocation69], 8256  }
 0x415   :  { %13450 = vsyncadd [#allocation69], 4294959040 }
 0x416   :  { %13451 = dma.done.wait [#allocation72], 80  }
 0x417   :  { %13452 = vsyncadd [#allocation72], 4294967216  ;;  %v13558_v0 = vmov 0.0   ;;  %vm13559_vm0 = vmmov 0   ;;  %v11034_v1 = vld [vmem:[#allocation5] sm:$0xff]   ;;  %vm797_vm1 = vcmask 1045504   ;;  %v875_v34 = vlaneseq }
 0x418   :  { %10676 = vmatprep.subr.bf16.mxu0 %v13558_v0  ;;  %10680 = vmatprep.mubr.msk.bf16.mxu0 %vm13559_vm0, %v13558_v0  ;;  %v11035_v2 = vld [vmem:[#allocation5 + $0x8] sm:$0x3f]   ;;  %vm793_vm2 = vcmask 228352   ;;  %v11036_v4 = vld [vmem:[#allocation2] sm:$0xff]   ;;  %vm842_vm3 = vcmask 523264   ;;  %vm892_vm4 = vcmask 517120  }
 0x419   :  { %10696 = vmatprep.subr.bf16.mxu1 %v13558_v0  ;;  %10698 = vmatprep.mubr.msk.bf16.mxu1 %vm13559_vm0, %v13558_v0  ;;  %v799_v3 = vsel %vm797_vm1, %v11035_v2, 0  ;;  %v14074_v35 = vshrl.u32 %v875_v34, 7  ;;  %v867_v36 = vld [vmem:[#allocation7] sm:$0x1]  ;;  %v871_v39 = vld [vmem:[#allocation8] sm:$0x1] }
 0x41a   :  { %10677 = vmatpush3.bf16.msra.mxu0 %v11034_v1  ;;  %vm900_vm5 = vcmask 519169   ;;  %vm908_vm6 = vcmask 521219   ;;  %vm916_vm7 = vcmask 523269   ;;  %vm952_vm8 = vcmask 1040384   ;;  %s14738_s5 = sld [smem:[#allocation103_spill]]  ;;  %s14739_s17 = sld [smem:[#allocation105_spill]] }
 0x41b   :  { %10678 = vmatprep.subr.bf16.mxu0 %v13558_v0  ;;  %v14077_v37 = vsub.s32 0, %v14074_v35  ;;  %vm954_vm9 = vcmask 1041408   ;;  %vm956_vm10 = vcmask 1042432   ;;  %vm958_vm11 = vcmask 1043456  }
 0x41c   :  { %vm960_vm12 = vcmask 1044480   ;;  %vm963_vm13 = vcmask 1046528   ;;  %vm967_vm14 = vcmask 64512   ;;  %vm2005_vm15 = vcmask 31744  }
 0x41e   :  { %10679 = vmatpush3.bf16.msra.mxu0 %v799_v3 }
 0x41f   :  { %10684 = vmatprep.subr.bf16.mxu0 %v13558_v0 }
 0x421   :  { %10681 = vmatmul.mubr.msk.bf16.vlgmr.msra.gmra.mrb[0].mxu0 %vm793_vm2, %v11036_v4 }
 0x422   :  { %10686 = vmatprep.mubr.msk.bf16.mxu0 %vm13559_vm0, %v13558_v0 }
 0x4f4   :  { %v835_v5 = vpop.f32.mrb[0].mxu0 }
 0x4f5   :  { %v10682_v6 = vpop.f32.mrb[1].mxu0  ;;  %v843_v8 = vsel %vm842_vm3, %v835_v5, 0.0 }
 0x4f6   :  { %v838_v7 = vpop.f32.mrb[2].mxu0 }
 0x4f7   :  { %v844_v9 = vsel %vm842_vm3, %v838_v7, 0.0  ;;  %v10683_v10 = vpop.f32.mrb[3].mxu0 }
 0x4f8   :  { %v845_v11 = vadd.f32 %v844_v9, %v843_v8 }
 0x4fa   :  { %v846_v12 = vrot.slane %v845_v11, 4 }
 0x4fc   :  { %v847_v13 = vadd.f32 %v846_v12, %v845_v11 }
 0x4fe   :  { %v848_v14 = vrot.slane %v847_v13, 2 }
 0x500   :  { %v849_v15 = vadd.f32 %v848_v14, %v847_v13 }
 0x502   :  { %v850_v16 = vrot.slane %v849_v15, 1 }
 0x504   :  { %v851_v17 = vadd.f32 %v850_v16, %v849_v15 }
 0x506   :  { %v852_v18 = vmul.f32 0.0625, %v851_v17 }
 0x508   :  { %v853_v19 = vsub.f32 %v835_v5, %v852_v18  ;;  %v854_v20 = vsub.f32 %v838_v7, %v852_v18 }
 0x50a   :  { %v855_v21 = vmul.f32 %v853_v19, %v853_v19  ;;  %v856_v22 = vmul.f32 %v854_v20, %v854_v20 }
 0x50c   :  { %v857_v23 = vsel %vm842_vm3, %v855_v21, 0.0  ;;  %v858_v24 = vsel %vm842_vm3, %v856_v22, 0.0 }
 0x50d   :  { %v859_v25 = vadd.f32 %v858_v24, %v857_v23 }
 0x50f   :  { %v860_v26 = vrot.slane %v859_v25, 4 }
 0x511   :  { %v861_v27 = vadd.f32 %v860_v26, %v859_v25 }
 0x513   :  { %v862_v28 = vrot.slane %v861_v27, 2 }
 0x515   :  { %v863_v29 = vadd.f32 %v862_v28, %v861_v27 }
 0x517   :  { %v864_v30 = vrot.slane %v863_v29, 1 }
 0x519   :  { %v865_v31 = vadd.f32 %v864_v30, %v863_v29 }
 0x51b   :  { %v866_v32 = vmul.f32 0.0625, %v865_v31 }
 0x51d   :  { %v868_v33 = vadd.f32 1e-05, %v866_v32 }
 0x51f   :  { %12301 = vrsqrt.f32 %v868_v33 }
 0x529   :  { %v12302_v38 = vpop.eup %12301 }
 0x52a   :  { %v870_v40 = vmul.f32 %v12302_v38, %v867_v36 }
 0x52c   :  { %v872_v41 = vmul.f32 %v870_v40, %v852_v18  ;;  %v878_v42 = vrot.slane %v870_v40, %v14077_v37 }
 0x52e   :  { %v873_v43 = vsub.f32 %v871_v39, %v872_v41  ;;  %v880_v44 = vmul.f32 %v878_v42, %v835_v5  ;;  %v881_v45 = vmul.f32 %v878_v42, %v838_v7 }
 0x530   :  { %v886_v46 = vrot.slane %v873_v43, %v14077_v37 }
 0x532   :  { %v888_v47 = vadd.f32 %v886_v46, %v880_v44  ;;  %v889_v48 = vadd.f32 %v886_v46, %v881_v45 }
 0x534   :  { %v890_v49 = vmax.f32 %v888_v47, 0.0  ;;  %v891_v50 = vmax.f32 %v889_v48, 0.0 }
 0x536   :  { %v893_v51 = vsel %vm892_vm4, %v890_v49, -inf  ;;  %v901_v52 = vsel %vm900_vm5, %v890_v49, -inf  ;;  %v909_v53 = vsel %vm908_vm6, %v890_v49, -inf  ;;  %v924_v54 = vsel %vm892_vm4, %v891_v50, -inf }
 0x537   :  { %v894_v55 = vrot.slane %v893_v51, 4  ;;  %v902_v56 = vrot.slane %v901_v52, 4  ;;  %v910_v57 = vrot.slane %v909_v53, 4  ;;  %v925_v58 = vrot.slane %v924_v54, 4 }
 0x538   :  { %v931_v59 = vsel %vm900_vm5, %v891_v50, -inf  ;;  %v938_v60 = vsel %vm908_vm6, %v891_v50, -inf  ;;  %v917_v61 = vsel %vm916_vm7, %v890_v49, -inf  ;;  %v945_v62 = vsel %vm916_vm7, %v891_v50, -inf }
 0x539   :  { %v895_v63 = vmax.f32 %v893_v51, %v894_v55  ;;  %v903_v1 = vmax.f32 %v901_v52, %v902_v56  ;;  %v911_v2 = vmax.f32 %v909_v53, %v910_v57  ;;  %v926_v3 = vmax.f32 %v924_v54, %v925_v58  ;;  %v14088_v54 = vld [vmem:[#allocation10] sm:$0xf]  ;;  %v14098_v57 = vld [vmem:[#allocation11] sm:$0xf] }
 0x53a   :  { %v932_v4 = vrot.slane %v931_v59, 4  ;;  %v939_v5 = vrot.slane %v938_v60, 4  ;;  %v918_v6 = vrot.slane %v917_v61, 4  ;;  %v946_v7 = vrot.slane %v945_v62, 4  ;;  %v11037_v58 = vld [vmem:[%s14738_s5] sm:$0xff]  }
 0x53b   :  { %v896_v8 = vrot.slane %v895_v63, 2  ;;  %v904_v9 = vrot.slane %v903_v1, 2  ;;  %v912_v10 = vrot.slane %v911_v2, 2  ;;  %v927_v11 = vrot.slane %v926_v3, 2 }
 0x53c   :  { %v933_v12 = vmax.f32 %v931_v59, %v932_v4  ;;  %v919_v13 = vmax.f32 %v917_v61, %v918_v6  ;;  %v940_v14 = vmax.f32 %v938_v60, %v939_v5  ;;  %v947_v15 = vmax.f32 %v945_v62, %v946_v7  ;;  %v11038_v59 = vld [vmem:[%s14738_s5 + $0x8] sm:$0xff]   ;;  %v11039_v60 = vld [vmem:[%s14738_s5 + $0x10] sm:$0xff]   ;;  %v11040_v61 = vld [vmem:[%s14738_s5 + $0x18] sm:$0xff]  }
 0x53d   :  { %v897_v16 = vmax.f32 %v895_v63, %v896_v8  ;;  %v905_v17 = vmax.f32 %v903_v1, %v904_v9  ;;  %v913_v18 = vmax.f32 %v911_v2, %v912_v10  ;;  %v928_v19 = vmax.f32 %v926_v3, %v927_v11  ;;  %v11041_v62 = vld [vmem:[%s14738_s5 + $0x20] sm:$0xff]   ;;  %v11042_v63 = vld [vmem:[%s14738_s5 + $0x28] sm:$0xff]   ;;  %v11043_v1 = vld [vmem:[%s14738_s5 + $0x30] sm:$0xff]  }
 0x53e   :  { %v920_v20 = vrot.slane %v919_v13, 2  ;;  %v934_v21 = vrot.slane %v933_v12, 2  ;;  %v941_v22 = vrot.slane %v940_v14, 2  ;;  %v948_v23 = vrot.slane %v947_v15, 2  ;;  %v11044_v2 = vld [vmem:[%s14738_s5 + $0x38] sm:$0xff]   ;;  %v11045_v3 = vld [vmem:[%s14738_s5 + $0x40] sm:$0xff]  }
 0x53f   :  { %v898_v24 = vrot.slane %v897_v16, 1  ;;  %v906_v25 = vrot.slane %v905_v17, 1  ;;  %v914_v26 = vrot.slane %v913_v18, 1  ;;  %v929_v34 = vrot.slane %v928_v19, 1  ;;  %v11046_v4 = vld [vmem:[%s14738_s5 + $0x48] sm:$0xff]   ;;  %v11047_v5 = vld [vmem:[%s14738_s5 + $0x50] sm:$0xff]  }
 0x540   :  { %v921_v27 = vmax.f32 %v919_v13, %v920_v20  ;;  %v935_v28 = vmax.f32 %v933_v12, %v934_v21  ;;  %v942_v29 = vmax.f32 %v940_v14, %v941_v22  ;;  %v949_v30 = vmax.f32 %v947_v15, %v948_v23  ;;  %v11048_v6 = vld [vmem:[%s14738_s5 + $0x58] sm:$0xff]  }
 0x541   :  { %v899_v31 = vmax.f32 %v897_v16, %v898_v24  ;;  %v907_v32 = vmax.f32 %v905_v17, %v906_v25  ;;  %v915_v33 = vmax.f32 %v913_v18, %v914_v26  ;;  %v930_v43 = vmax.f32 %v928_v19, %v929_v34 }
 0x542   :  { %v922_v36 = vrot.slane %v921_v27, 1  ;;  %v936_v38 = vrot.slane %v935_v28, 1  ;;  %v943_v39 = vrot.slane %v942_v29, 1  ;;  %v950_v42 = vrot.slane %v949_v30, 1 }
 0x543   :  { %v953_v40 = vsel %vm952_vm8, %v899_v31, %v907_v32  ;;  %v13560_v56 = vmov 0  }
 0x544   :  { %v923_v41 = vmax.f32 %v921_v27, %v922_v36  ;;  %v955_v44 = vsel %vm954_vm9, %v953_v40, %v915_v33  ;;  %v937_v45 = vmax.f32 %v935_v28, %v936_v38  ;;  %v944_v47 = vmax.f32 %v942_v29, %v943_v39 }
 0x545   :  { %v951_v49 = vmax.f32 %v949_v30, %v950_v42 }
 0x546   :  { %v957_v46 = vsel %vm956_vm10, %v955_v44, %v923_v41  ;;  %v1224_v44 = vld [vmem:[#allocation13] sm:$0x1] }
 0x547   :  { %v959_v48 = vsel %vm958_vm11, %v957_v46, %v930_v43 }
 0x548   :  { %v961_v50 = vsel %vm960_vm12, %v959_v48, %v937_v45 }
 0x549   :  { %v962_v51 = vsel %vm797_vm1, %v961_v50, %v944_v47  ;;  %v1228_v47 = vld [vmem:[#allocation14] sm:$0x1] }
 0x54a   :  { %v14084_v52 = vsel %vm963_vm13, %v962_v51, %v951_v49 }
 0x54b   :  { %v965_v53 = vpack.c.bf16 %v14084_v52, %v14084_v52 }
 0x54d   :  { %1061 = vrot.lane.b32.xlu0 %v965_v53, %s13507_s26  ;;  %v972_v55 = vsel %vm958_vm11, %v965_v53, 0 }
 0x54e   :  { %10685 = vmatpush3.bf16.msra.mxu0 %v972_v55 }
 0x54f   :  { %10690 = vmatprep.subr.bf16.mxu0 %v13558_v0 }
 0x551   :  { %10687 = vmatmul.mubr.msk.bf16.vlgmr.msra.gmra.mrb[4].mxu0 %vm967_vm14, %v14088_v54 }
 0x552   :  { %10691 = vmatpush3.bf16.msra.mxu0 %v972_v55  ;;  %10692 = vmatprep.mubr.msk.bf16.mxu0 %vm13559_vm0, %v13558_v0 }
 0x553   :  { %1166 = vmatprep.subr.bf16.mxu0 %v13560_v56 }
 0x559   :  { %10693 = vmatmul.mubr.msk.bf16.vlgmr.msra.gmra.mrb[8].mxu0 %vm967_vm14, %v14098_v57 }
 0x55a   :  { %1167 = vmatpush1.bf16.msra.mxu0 %v11037_v58 }
 0x55b   :  { %1168 = vmatprep.subr.bf16.mxu0 %v13560_v56 }
 0x55e   :  { %1169 = vmatpush1.bf16.msra.mxu0 %v11038_v59 }
 0x55f   :  { %1170 = vmatprep.subr.bf16.mxu0 %v13560_v56 }
 0x562   :  { %1171 = vmatpush1.bf16.msra.mxu0 %v11039_v60 }
 0x563   :  { %1172 = vmatprep.subr.bf16.mxu0 %v13560_v56 }
 0x566   :  { %1173 = vmatpush1.bf16.msra.mxu0 %v11040_v61  ;;  %v11049_v61 = vld [vmem:[%s14739_s17] sm:$0xff]  }
 0x567   :  { %1174 = vmatprep.subr.bf16.mxu0 %v13560_v56 }
 0x56a   :  { %1175 = vmatpush1.bf16.msra.mxu0 %v11041_v62  ;;  %v11050_v62 = vld [vmem:[%s14739_s17 + $0x8] sm:$0xff]  }
 0x56b   :  { %1176 = vmatprep.subr.bf16.mxu0 %v13560_v56 }
 0x56e   :  { %1177 = vmatpush1.bf16.msra.mxu0 %v11042_v63  ;;  %v11052_v63 = vld [vmem:[%s14739_s17 + $0x18] sm:$0xff]  }
 0x56f   :  { %1178 = vmatprep.subr.bf16.mxu0 %v13560_v56 }
 0x572   :  { %1179 = vmatpush1.bf16.msra.mxu0 %v11043_v1  ;;  %v11053_v1 = vld [vmem:[%s14739_s17 + $0x20] sm:$0xff]  }
 0x573   :  { %1180 = vmatprep.subr.bf16.mxu0 %v13560_v56 }
 0x576   :  { %1181 = vmatpush1.bf16.msra.mxu0 %v11044_v2  ;;  %v11055_v2 = vld [vmem:[%s14739_s17 + $0x30] sm:$0xff]  }
 0x577   :  { %1182 = vmatprep.subr.bf16.mxu0 %v13560_v56 }
 0x57a   :  { %1183 = vmatpush1.bf16.msra.mxu0 %v11045_v3  ;;  %v11056_v3 = vld [vmem:[%s14739_s17 + $0x38] sm:$0xff]  }
 0x57b   :  { %1184 = vmatprep.subr.bf16.mxu0 %v13560_v56 }
 0x57e   :  { %1185 = vmatpush1.bf16.msra.mxu0 %v11046_v4  ;;  %v11057_v4 = vld [vmem:[%s14739_s17 + $0x40] sm:$0xff]  }
 0x57f   :  { %1186 = vmatprep.subr.bf16.mxu0 %v13560_v56 }
 0x582   :  { %1187 = vmatpush1.bf16.msra.mxu0 %v11047_v5  ;;  %v11058_v5 = vld [vmem:[%s14739_s17 + $0x48] sm:$0xff]  }
 0x583   :  { %1188 = vmatprep.subr.bf16.mxu0 %v13560_v56 }
 0x586   :  { %1189 = vmatpush1.bf16.msra.mxu0 %v11048_v6  ;;  %v11059_v6 = vld [vmem:[%s14739_s17 + $0x50] sm:$0xff]  }
 0x587   :  { %10708 = vmatprep.subr.bf16.mxu0 %v13558_v0 }
 0x5bf   :  { %v1062_v15 = vpop.permute.xlu0 %1061 }
 0x624   :  { %v1008_v7 = vpop.f32.mrb[4].mxu0 }
 0x625   :  { %v10688_v8 = vpop.f32.mrb[5].mxu0  ;;  %v1014_v11 = vpack.c.bf16 %v1008_v7, %v1008_v7  ;;  %v11060_v7 = vld [vmem:[%s14739_s17 + $0x58] sm:$0xff]  }
 0x626   :  { %v1011_v9 = vpop.f32.mrb[6].mxu0 }
 0x627   :  { %v10689_v10 = vpop.f32.mrb[7].mxu0  ;;  %v1065_v18 = vsel %vm842_vm3, %v1014_v11, %v1062_v15 }
 0x62c   :  { %v1053_v12 = vpop.f32.mrb[8].mxu0 }
 0x62d   :  { %v1059_v13 = vpack.c.bf16 %v1053_v12, %v1053_v12  ;;  %v10694_v14 = vpop.f32.mrb[9].mxu0 }
 0x62e   :  { %v1056_v16 = vpop.f32.mrb[10].mxu0 }
 0x62f   :  { %v10695_v17 = vpop.f32.mrb[11].mxu0  ;;  %9673 = vmatprep.mubr.msk.bf16.mxu0 %vm842_vm3, %v1059_v13 }
 0x630   :  { %1199 = vmatmul.mubr.bf16.vlgmr.msra.gmra.mrb[12].mxu0 %v1065_v18 }
 0x631   :  { %10710 = vmatprep.mubr.msk.bf16.mxu0 %vm13559_vm0, %v13558_v0 }
 0x703   :  { %v1200_v19 = vpop.f32.mrb[12].mxu0 }
 0x704   :  { %v1206_v20 = vsel %vm842_vm3, %v1200_v19, 0.0  ;;  %v1202_v21 = vpop.f32.mrb[13].mxu0 }
 0x705   :  { %v1207_v22 = vrot.slane %v1206_v20, 4  ;;  %v1203_v23 = vpop.f32.mrb[14].mxu0 }
 0x706   :  { %v1204_v24 = vpop.f32.mrb[15].mxu0 }
 0x707   :  { %v1208_v25 = vadd.f32 %v1207_v22, %v1206_v20 }
 0x709   :  { %v1209_v26 = vrot.slane %v1208_v25, 2 }
 0x70b   :  { %v1210_v27 = vadd.f32 %v1209_v26, %v1208_v25 }
 0x70d   :  { %v1211_v28 = vrot.slane %v1210_v27, 1 }
 0x70f   :  { %v1212_v29 = vadd.f32 %v1211_v28, %v1210_v27 }
 0x711   :  { %v1213_v30 = vmul.f32 0.125, %v1212_v29 }
 0x713   :  { %v1214_v31 = vsub.f32 %v1200_v19, %v1213_v30 }
 0x715   :  { %v1215_v32 = vmul.f32 %v1214_v31, %v1214_v31 }
 0x717   :  { %v1216_v33 = vsel %vm842_vm3, %v1215_v32, 0.0 }
 0x718   :  { %v1217_v34 = vrot.slane %v1216_v33, 4 }
 0x71a   :  { %v1218_v36 = vadd.f32 %v1217_v34, %v1216_v33 }
 0x71c   :  { %v1219_v38 = vrot.slane %v1218_v36, 2 }
 0x71e   :  { %v1220_v39 = vadd.f32 %v1219_v38, %v1218_v36 }
 0x720   :  { %v1221_v40 = vrot.slane %v1220_v39, 1 }
 0x722   :  { %v1222_v41 = vadd.f32 %v1221_v40, %v1220_v39 }
 0x724   :  { %v1223_v42 = vmul.f32 0.125, %v1222_v41 }
 0x726   :  { %v1225_v43 = vadd.f32 1e-05, %v1223_v42 }
 0x728   :  { %12303 = vrsqrt.f32 %v1225_v43 }
 0x732   :  { %v12304_v45 = vpop.eup %12303 }
 0x733   :  { %v1227_v46 = vmul.f32 %v12304_v45, %v1224_v44  ;;  %v1496_v45 = vld [vmem:[#allocation16] sm:$0x1] }
 0x735   :  { %v1229_v48 = vmul.f32 %v1227_v46, %v1213_v30  ;;  %v1235_v49 = vrot.slane %v1227_v46, %v14077_v37 }
 0x737   :  { %v1230_v50 = vsub.f32 %v1228_v47, %v1229_v48  ;;  %v1237_v51 = vmul.f32 %v1235_v49, %v1200_v19  ;;  %v1500_v48 = vld [vmem:[#allocation17] sm:$0x1] }
 0x739   :  { %v1242_v53 = vrot.slane %v1230_v50, %v14077_v37 }
 0x73b   :  { %v1244_v55 = vadd.f32 %v1242_v53, %v1237_v51 }
 0x73d   :  { %v1245_v58 = vmax.f32 %v1244_v55, 0.0 }
 0x73f   :  { %v1246_v59 = vpack.c.bf16 %v1245_v58, %v1245_v58 }
 0x741   :  { %1333 = vrot.lane.b32.xlu0 %v1246_v59, %s13507_s26  ;;  %v1248_v60 = vsel %vm958_vm11, %v1246_v59, 0 }
 0x742   :  { %10697 = vmatpush3.bf16.msra.mxu1 %v1248_v60 }
 0x743   :  { %10702 = vmatprep.subr.bf16.mxu1 %v13558_v0 }
 0x745   :  { %10699 = vmatmul.mubr.msk.bf16.vlgmr.msra.gmra.mrb[0].mxu1 %vm967_vm14, %v14088_v54  ;;  %v11051_v54 = vld [vmem:[%s14739_s17 + $0x10] sm:$0xff]  }
 0x746   :  { %10703 = vmatpush3.bf16.msra.mxu1 %v1248_v60  ;;  %10704 = vmatprep.mubr.msk.bf16.mxu1 %vm13559_vm0, %v13558_v0 }
 0x747   :  { %1438 = vmatprep.subr.bf16.mxu1 %v13560_v56 }
 0x74d   :  { %10705 = vmatmul.mubr.msk.bf16.vlgmr.msra.gmra.mrb[4].mxu1 %vm967_vm14, %v14098_v57  ;;  %v11054_v57 = vld [vmem:[%s14739_s17 + $0x28] sm:$0xff]  }
 0x74e   :  { %1439 = vmatpush1.bf16.msra.mxu1 %v11049_v61 }
 0x74f   :  { %1440 = vmatprep.subr.bf16.mxu1 %v13560_v56 }
 0x752   :  { %1441 = vmatpush1.bf16.msra.mxu1 %v11050_v62 }
 0x753   :  { %1442 = vmatprep.subr.bf16.mxu1 %v13560_v56 }
 0x756   :  { %1443 = vmatpush1.bf16.msra.mxu1 %v11051_v54  ;;  %v1520_v54 = vld [vmem:[#allocation35] sm:$0x3] }
 0x757   :  { %1444 = vmatprep.subr.bf16.mxu1 %v13560_v56 }
 0x75a   :  { %1445 = vmatpush1.bf16.msra.mxu1 %v11052_v63  ;;  %v1682_v63 = vld [vmem:[#allocation19] sm:$0x3] }
 0x75b   :  { %1446 = vmatprep.subr.bf16.mxu1 %v13560_v56 }
 0x75e   :  { %1447 = vmatpush1.bf16.msra.mxu1 %v11053_v1  ;;  %v11061_v1 = vld [vmem:[#allocation37] sm:$0xff]  }
 0x75f   :  { %1448 = vmatprep.subr.bf16.mxu1 %v13560_v56 }
 0x762   :  { %1449 = vmatpush1.bf16.msra.mxu1 %v11054_v57  ;;  %v11063_v57 = vld [vmem:[#allocation37 + $0x10] sm:$0xff]  }
 0x763   :  { %1450 = vmatprep.subr.bf16.mxu1 %v13560_v56 }
 0x766   :  { %1451 = vmatpush1.bf16.msra.mxu1 %v11055_v2  ;;  %v11064_v2 = vld [vmem:[#allocation37 + $0x18] sm:$0xff]  }
 0x767   :  { %1452 = vmatprep.subr.bf16.mxu1 %v13560_v56 }
 0x76a   :  { %1453 = vmatpush1.bf16.msra.mxu1 %v11056_v3  ;;  %v1772_v3 = vld [vmem:[#allocation22] sm:$0x3] }
 0x76b   :  { %1454 = vmatprep.subr.bf16.mxu1 %v13560_v56 }
 0x76e   :  { %1455 = vmatpush1.bf16.msra.mxu1 %v11057_v4 }
 0x76f   :  { %1456 = vmatprep.subr.bf16.mxu1 %v13560_v56 }
 0x772   :  { %1457 = vmatpush1.bf16.msra.mxu1 %v11058_v5 }
 0x773   :  { %1458 = vmatprep.subr.bf16.mxu1 %v13560_v56 }
 0x776   :  { %1459 = vmatpush1.bf16.msra.mxu1 %v11059_v6 }
 0x777   :  { %1460 = vmatprep.subr.bf16.mxu1 %v13560_v56 }
 0x77a   :  { %1461 = vmatpush1.bf16.msra.mxu1 %v11060_v7 }
 0x77b   :  { %10726 = vmatprep.subr.bf16.mxu1 %v13558_v0 }
 0x7b3   :  { %v1334_v16 = vpop.permute.xlu0 %1333 }
 0x818   :  { %v1284_v8 = vpop.f32.mrb[0].mxu1 }
 0x819   :  { %v10700_v9 = vpop.f32.mrb[1].mxu1  ;;  %v1290_v12 = vpack.c.bf16 %v1284_v8, %v1284_v8 }
 0x81a   :  { %v1287_v10 = vpop.f32.mrb[2].mxu1  ;;  %v1727_v9 = vld [vmem:[#allocation20] sm:$0x3] }
 0x81b   :  { %v10701_v11 = vpop.f32.mrb[3].mxu1  ;;  %v1337_v19 = vsel %vm842_vm3, %v1290_v12, %v1334_v16  ;;  %v11065_v10 = vld [vmem:[#allocation23] sm:$0xff]  }
 0x820   :  { %v1325_v13 = vpop.f32.mrb[4].mxu1 }
 0x821   :  { %v1331_v14 = vpack.c.bf16 %v1325_v13, %v1325_v13  ;;  %v10706_v15 = vpop.f32.mrb[5].mxu1  ;;  %v11066_v13 = vld [vmem:[#allocation23 + $0x8] sm:$0xff]  }
 0x822   :  { %v1328_v17 = vpop.f32.mrb[6].mxu1 }
 0x823   :  { %v10707_v18 = vpop.f32.mrb[7].mxu1  ;;  %9688 = vmatprep.mubr.msk.bf16.mxu1 %vm842_vm3, %v1331_v14 }
 0x824   :  { %1471 = vmatmul.mubr.bf16.vlgmr.msra.gmra.mrb[8].mxu1 %v1337_v19  ;;  %v11067_v19 = vld [vmem:[#allocation23 + $0x10] sm:$0xff]  }
 0x825   :  { %10728 = vmatprep.mubr.msk.bf16.mxu1 %vm13559_vm0, %v13558_v0 }
 0x8f7   :  { %v1472_v20 = vpop.f32.mrb[8].mxu1 }
 0x8f8   :  { %v1478_v21 = vsel %vm842_vm3, %v1472_v20, 0.0  ;;  %v1474_v22 = vpop.f32.mrb[9].mxu1 }
 0x8f9   :  { %v1479_v23 = vrot.slane %v1478_v21, 4  ;;  %v1475_v24 = vpop.f32.mrb[10].mxu1  ;;  %v11068_v22 = vld [vmem:[#allocation23 + $0x18] sm:$0xff]  }
 0x8fa   :  { %v1476_v25 = vpop.f32.mrb[11].mxu1  ;;  %v11070_v24 = vld [vmem:[#allocation23 + $0x28] sm:$0xff]  }
 0x8fb   :  { %v1480_v26 = vadd.f32 %v1479_v23, %v1478_v21  ;;  %v11069_v23 = vld [vmem:[#allocation23 + $0x20] sm:$0xff]   ;;  %v11071_v25 = vld [vmem:[#allocation23 + $0x30] sm:$0xff]  }
 0x8fd   :  { %v1481_v27 = vrot.slane %v1480_v26, 2 }
 0x8ff   :  { %v1482_v28 = vadd.f32 %v1481_v27, %v1480_v26  ;;  %v11072_v26 = vld [vmem:[#allocation23 + $0x38] sm:$0xff]   ;;  %v11073_v27 = vld [vmem:[#allocation23 + $0x40] sm:$0xff]  }
 0x901   :  { %v1483_v29 = vrot.slane %v1482_v28, 1 }
 0x903   :  { %v1484_v30 = vadd.f32 %v1483_v29, %v1482_v28  ;;  %v11074_v28 = vld [vmem:[#allocation23 + $0x48] sm:$0xff]   ;;  %v11075_v29 = vld [vmem:[#allocation23 + $0x50] sm:$0xff]  }
 0x905   :  { %v1485_v31 = vmul.f32 0.125, %v1484_v30  ;;  %v11076_v30 = vld [vmem:[#allocation23 + $0x58] sm:$0xff]  }
 0x907   :  { %v1486_v32 = vsub.f32 %v1472_v20, %v1485_v31 }
 0x909   :  { %v1487_v33 = vmul.f32 %v1486_v32, %v1486_v32 }
 0x90b   :  { %v1488_v34 = vsel %vm842_vm3, %v1487_v33, 0.0 }
 0x90c   :  { %v1489_v36 = vrot.slane %v1488_v34, 4 }
 0x90e   :  { %v1490_v38 = vadd.f32 %v1489_v36, %v1488_v34 }
 0x910   :  { %v1491_v39 = vrot.slane %v1490_v38, 2 }
 0x912   :  { %v1492_v40 = vadd.f32 %v1491_v39, %v1490_v38 }
 0x914   :  { %v1493_v41 = vrot.slane %v1492_v40, 1 }
 0x916   :  { %v1494_v42 = vadd.f32 %v1493_v41, %v1492_v40 }
 0x918   :  { %v1495_v43 = vmul.f32 0.125, %v1494_v42 }
 0x91a   :  { %v1497_v44 = vadd.f32 1e-05, %v1495_v43 }
 0x91c   :  { %12305 = vrsqrt.f32 %v1497_v44 }
 0x926   :  { %v12306_v46 = vpop.eup %12305 }
 0x927   :  { %v1499_v47 = vmul.f32 %v12306_v46, %v1496_v45  ;;  %v11083_v45 = vld [vmem:[#allocation31 + $0x80] sm:$0xff]   ;;  %v11086_v46 = vld [vmem:[#allocation31 + $0x88] sm:$0xff]  }
 0x929   :  { %v1501_v49 = vmul.f32 %v1499_v47, %v1485_v31  ;;  %v1507_v50 = vrot.slane %v1499_v47, %v14077_v37  ;;  %v11089_v47 = vld [vmem:[#allocation31 + $0x90] sm:$0xff]  }
 0x92b   :  { %v1502_v51 = vsub.f32 %v1500_v48, %v1501_v49  ;;  %v1509_v53 = vmul.f32 %v1507_v50, %v1472_v20  ;;  %v11092_v48 = vld [vmem:[#allocation31 + $0x98] sm:$0xff]   ;;  %v11095_v49 = vld [vmem:[#allocation31 + $0xa0] sm:$0xff]  }
 0x92d   :  { %v1514_v55 = vrot.slane %v1502_v51, %v14077_v37 }
 0x92f   :  { %v1516_v58 = vadd.f32 %v1514_v55, %v1509_v53 }
 0x931   :  { %v1517_v59 = vadd.f32 %v1516_v58, %v14084_v52  ;;  %v11062_v52 = vld [vmem:[#allocation37 + $0x8] sm:$0xff]  }
 0x933   :  { %v1518_v60 = vmax.f32 %v1517_v59, 0.0 }
 0x935   :  { %v1519_v61 = vpack.c.bf16 %v1518_v60, %v1518_v60 }
 0x937   :  { %v1525_v62 = vsel %vm958_vm11, %v1519_v61, 0 }
 0x938   :  { %10709 = vmatpush3.bf16.msra.mxu0 %v1525_v62  ;;  %10727 = vmatpush3.bf16.msra.mxu1 %v1525_v62 }
 0x939   :  { %10738 = vmatprep.subr.bf16.mxu1 %v13558_v0  ;;  %10714 = vmatprep.subr.bf16.mxu0 %v13558_v0 }
 0x93b   :  { %10711 = vmatmul.mubr.msk.bf16.vlgmr.msra.gmra.mrb[16].mxu0 %vm967_vm14, %v1520_v54  ;;  %10729 = vmatmul.mubr.msk.bf16.vlgmr.msra.gmra.mrb[12].mxu1 %vm967_vm14, %v1682_v63 }
 0x93c   :  { %10739 = vmatpush3.bf16.msra.mxu1 %v1525_v62  ;;  %10715 = vmatpush3.bf16.msra.mxu0 %v11061_v1 }
 0x93d   :  { %10716 = vmatprep.subr.bf16.mxu0 %v13558_v0  ;;  %10722 = vmatprep.mubr.msk.bf16.mxu0 %vm13559_vm0, %v13558_v0 }
 0x93e   :  { %10740 = vmatprep.mubr.msk.bf16.mxu1 %vm13559_vm0, %v13558_v0  ;;  %10744 = vmatprep.subr.bf16.mxu1 %v13558_v0 }
 0x940   :  { %10717 = vmatpush3.bf16.msra.mxu0 %v11062_v52 }
 0x941   :  { %10718 = vmatprep.subr.bf16.mxu0 %v13558_v0 }
 0x943   :  { %10741 = vmatmul.mubr.msk.bf16.vlgmr.msra.gmra.mrb[16].mxu1 %vm967_vm14, %v1772_v3 }
 0x944   :  { %10719 = vmatpush3.bf16.msra.mxu0 %v11063_v57  ;;  %10746 = vmatprep.mubr.msk.bf16.mxu1 %vm13559_vm0, %v13558_v0 }
 0x945   :  { %10720 = vmatprep.subr.bf16.mxu0 %v13558_v0 }
 0x948   :  { %10721 = vmatpush3.bf16.msra.mxu0 %v11064_v2 }
 0x949   :  { %10732 = vmatprep.subr.bf16.mxu0 %v13558_v0 }
 0xa0e   :  { %v1561_v4 = vpop.f32.mrb[16].mxu0  ;;  %v1720_v11 = vpop.f32.mrb[12].mxu1 }
 0xa0f   :  { %v1567_v5 = vpack.c.bf16 %v1561_v4, %v1561_v4  ;;  %v10712_v6 = vpop.f32.mrb[17].mxu0  ;;  %v10730_v12 = vpop.f32.mrb[13].mxu1  ;;  %v1726_v42 = vpack.c.bf16 %v1720_v11, %v1720_v11  ;;  %v1981_v11 = vld [vmem:[#allocation25] sm:$0x1] }
 0xa10   :  { %v1564_v7 = vpop.f32.mrb[18].mxu0  ;;  %v1723_v14 = vpop.f32.mrb[14].mxu1 }
 0xa11   :  { %v10713_v8 = vpop.f32.mrb[19].mxu0  ;;  %10723 = vmatmul.mubr.msk.bf16.vlgmr.msra.gmra.mrb[20].mxu0 %vm842_vm3, %v1567_v5  ;;  %v10731_v15 = vpop.f32.mrb[15].mxu1  ;;  %v1985_v14 = vld [vmem:[#allocation26] sm:$0x1] }
 0xa12   :  { %10733 = vmatpush3.bf16.msra.mxu0 %v1525_v62  ;;  %10734 = vmatprep.mubr.msk.bf16.mxu0 %vm13559_vm0, %v13558_v0 }
 0xa13   :  { %1923 = vmatprep.subr.bf16.mxu0 %v13560_v56 }
 0xa16   :  { %v1810_v16 = vpop.f32.mrb[16].mxu1 }
 0xa17   :  { %v1816_v17 = vpack.c.bf16 %v1810_v16, %v1810_v16  ;;  %v10742_v18 = vpop.f32.mrb[17].mxu1 }
 0xa18   :  { %v1813_v20 = vpop.f32.mrb[18].mxu1 }
 0xa19   :  { %10735 = vmatmul.mubr.msk.bf16.vlgmr.msra.gmra.mrb[24].mxu0 %vm967_vm14, %v1727_v9  ;;  %v10743_v21 = vpop.f32.mrb[19].mxu1 }
 0xa1a   :  { %1924 = vmatpush1.bf16.msra.mxu0 %v11065_v10  ;;  %9710 = vmatprep.mubr.msk.bf16.mxu0 %vm842_vm3, %v1816_v17 }
 0xa1b   :  { %1925 = vmatprep.subr.bf16.mxu0 %v13560_v56 }
 0xa1e   :  { %1926 = vmatpush1.bf16.msra.mxu0 %v11066_v13 }
 0xa1f   :  { %1927 = vmatprep.subr.bf16.mxu0 %v13560_v56 }
 0xa22   :  { %1928 = vmatpush1.bf16.msra.mxu0 %v11067_v19 }
 0xa23   :  { %1929 = vmatprep.subr.bf16.mxu0 %v13560_v56 }
 0xa26   :  { %1930 = vmatpush1.bf16.msra.mxu0 %v11068_v22 }
 0xa27   :  { %1931 = vmatprep.subr.bf16.mxu0 %v13560_v56 }
 0xa2a   :  { %1932 = vmatpush1.bf16.msra.mxu0 %v11069_v23 }
 0xa2b   :  { %1933 = vmatprep.subr.bf16.mxu0 %v13560_v56 }
 0xa2e   :  { %1934 = vmatpush1.bf16.msra.mxu0 %v11070_v24  ;;  %v2004_v24 = vld [vmem:[#allocation28] sm:$0x3] }
 0xa2f   :  { %1935 = vmatprep.subr.bf16.mxu0 %v13560_v56 }
 0xa32   :  { %1936 = vmatpush1.bf16.msra.mxu0 %v11071_v25  ;;  %v11077_v25 = vld [vmem:[#allocation31 + $0x40] sm:$0xff]  }
 0xa33   :  { %1937 = vmatprep.subr.bf16.mxu0 %v13560_v56 }
 0xa36   :  { %1938 = vmatpush1.bf16.msra.mxu0 %v11072_v26  ;;  %v2053_v26 = vld [vmem:[#allocation29] sm:$0x3] }
 0xa37   :  { %1939 = vmatprep.subr.bf16.mxu0 %v13560_v56 }
 0xa3a   :  { %1940 = vmatpush1.bf16.msra.mxu0 %v11073_v27  ;;  %v11078_v27 = vld [vmem:[#allocation31] sm:$0xff]  }
 0xa3b   :  { %1941 = vmatprep.subr.bf16.mxu0 %v13560_v56 }
 0xa3e   :  { %1942 = vmatpush1.bf16.msra.mxu0 %v11074_v28  ;;  %v11079_v28 = vld [vmem:[#allocation31 + $0x48] sm:$0xff]  }
 0xa3f   :  { %1943 = vmatprep.subr.bf16.mxu0 %v13560_v56 }
 0xa42   :  { %1944 = vmatpush1.bf16.msra.mxu0 %v11075_v29  ;;  %v11080_v29 = vld [vmem:[#allocation31 + $0x8] sm:$0xff]  }
 0xa43   :  { %1945 = vmatprep.subr.bf16.mxu0 %v13560_v56 }
 0xa46   :  { %1946 = vmatpush1.bf16.msra.mxu0 %v11076_v30  ;;  %v11081_v30 = vld [vmem:[#allocation31 + $0x50] sm:$0xff]  }
 0xa47   :  { %10756 = vmatprep.subr.bf16.mxu0 %v13558_v0 }
 0xae4   :  { %v14212_v31 = vpop.f32.mrb[20].mxu0 }
 0xae5   :  { %v10724_v32 = vpop.f32.mrb[21].mxu0 }
 0xae6   :  { %v1640_v33 = vpop.f32.mrb[22].mxu0  ;;  %v11082_v32 = vld [vmem:[#allocation31 + $0x10] sm:$0xff]  }
 0xae7   :  { %v10725_v34 = vpop.f32.mrb[23].mxu0  ;;  %v11084_v33 = vld [vmem:[#allocation31 + $0x58] sm:$0xff]  }
 0xae8   :  { %v11085_v34 = vld [vmem:[#allocation31 + $0x18] sm:$0xff]  }
 0xaec   :  { %v1765_v36 = vpop.f32.mrb[24].mxu0 }
 0xaed   :  { %v10736_v38 = vpop.f32.mrb[25].mxu0  ;;  %v1771_v39 = vpack.c.bf16 %v1765_v36, %v1765_v36  ;;  %v11087_v36 = vld [vmem:[#allocation31 + $0x60] sm:$0xff]  }
 0xaee   :  { %v1768_v40 = vpop.f32.mrb[26].mxu0  ;;  %v11088_v38 = vld [vmem:[#allocation31 + $0x20] sm:$0xff]  }
 0xaef   :  { %1818 = vrot.lane.b32.xlu1 %v1771_v39, %s13507_s26  ;;  %v10737_v41 = vpop.f32.mrb[27].mxu0  ;;  %v11090_v39 = vld [vmem:[#allocation31 + $0x68] sm:$0xff]  }
 0xaf0   :  { %v11091_v40 = vld [vmem:[#allocation31 + $0x28] sm:$0xff]   ;;  %v11093_v41 = vld [vmem:[#allocation31 + $0x70] sm:$0xff]  }
 0xb61   :  { %v1819_v43 = vpop.permute.xlu1 %1818 }
 0xb62   :  { %v1822_v44 = vsel %vm842_vm3, %v1726_v42, %v1819_v43  ;;  %v11094_v42 = vld [vmem:[#allocation31 + $0x30] sm:$0xff]   ;;  %v11096_v43 = vld [vmem:[#allocation31 + $0x78] sm:$0xff]  }
 0xb63   :  { %1956 = vmatmul.mubr.bf16.vlgmr.msra.gmra.mrb[28].mxu0 %v1822_v44  ;;  %v11097_v44 = vld [vmem:[#allocation31 + $0x38] sm:$0xff]  }
 0xb64   :  { %10772 = vmatprep.mubr.msk.bf16.mxu0 %vm13559_vm0, %v13558_v0  ;;  %10757 = vmatpush3.bf16.msra.mxu0 %v11083_v45  ;;  %v11098_v45 = vld [vmem:[#allocation31 + $0xa8] sm:$0xff]  }
 0xb65   :  { %10758 = vmatprep.subr.bf16.mxu0 %v13558_v0 }
 0xb68   :  { %10759 = vmatpush3.bf16.msra.mxu0 %v11086_v46  ;;  %v11099_v46 = vld [vmem:[#allocation31 + $0xb0] sm:$0xff]  }
 0xb69   :  { %10760 = vmatprep.subr.bf16.mxu0 %v13558_v0 }
 0xb6c   :  { %10761 = vmatpush3.bf16.msra.mxu0 %v11089_v47  ;;  %v11100_v47 = vld [vmem:[#allocation31 + $0xb8] sm:$0xff]  }
 0xb6d   :  { %10762 = vmatprep.subr.bf16.mxu0 %v13558_v0 }
 0xb70   :  { %10763 = vmatpush3.bf16.msra.mxu0 %v11092_v48 }
 0xb71   :  { %10764 = vmatprep.subr.bf16.mxu0 %v13558_v0 }
 0xb74   :  { %10765 = vmatpush3.bf16.msra.mxu0 %v11095_v49 }
 0xb75   :  { %10766 = vmatprep.subr.bf16.mxu0 %v13558_v0 }
 0xb78   :  { %10767 = vmatpush3.bf16.msra.mxu0 %v11098_v45 }
 0xb79   :  { %10768 = vmatprep.subr.bf16.mxu0 %v13558_v0 }
 0xb7c   :  { %10769 = vmatpush3.bf16.msra.mxu0 %v11099_v46 }
 0xb7d   :  { %10770 = vmatprep.subr.bf16.mxu0 %v13558_v0 }
 0xb80   :  { %10771 = vmatpush3.bf16.msra.mxu0 %v11100_v47 }
 0xb81   :  { %10782 = vmatprep.subr.bf16.mxu0 %v13558_v0 }
 0xc36   :  { %v1957_v50 = vpop.f32.mrb[28].mxu0 }
 0xc37   :  { %v1963_v51 = vsel %vm958_vm11, %v1957_v50, 0.0  ;;  %v1959_v53 = vpop.f32.mrb[29].mxu0 }
 0xc38   :  { %v1964_v55 = vrot.slane %v1963_v51, 4  ;;  %v1960_v58 = vpop.f32.mrb[30].mxu0 }
 0xc39   :  { %v1961_v59 = vpop.f32.mrb[31].mxu0 }
 0xc3a   :  { %v1965_v60 = vadd.f32 %v1964_v55, %v1963_v51 }
 0xc3c   :  { %v1966_v61 = vrot.slane %v1965_v60, 2 }
 0xc3e   :  { %v1967_v62 = vadd.f32 %v1966_v61, %v1965_v60 }
 0xc40   :  { %v1968_v54 = vrot.slane %v1967_v62, 1 }
 0xc42   :  { %v1969_v63 = vadd.f32 %v1968_v54, %v1967_v62  ;;  %v1643_v62 = vsel %vm958_vm11, %v14212_v31, 0.0 }
 0xc43   :  { %v1644_v54 = vrot.slane %v1643_v62, 4 }
 0xc44   :  { %v1970_v1 = vmul.f32 0.25, %v1969_v63 }
 0xc45   :  { %v1645_v63 = vadd.f32 %v1644_v54, %v1643_v62 }
 0xc46   :  { %v1971_v52 = vsub.f32 %v1957_v50, %v1970_v1 }
 0xc48   :  { %v1972_v57 = vmul.f32 %v1971_v52, %v1971_v52 }
 0xc4a   :  { %v1973_v2 = vsel %vm958_vm11, %v1972_v57, 0.0 }
 0xc4b   :  { %v1974_v3 = vrot.slane %v1973_v2, 4 }
 0xc4d   :  { %v1975_v4 = vadd.f32 %v1974_v3, %v1973_v2 }
 0xc4f   :  { %v1976_v5 = vrot.slane %v1975_v4, 2 }
 0xc51   :  { %v1977_v6 = vadd.f32 %v1976_v5, %v1975_v4 }
 0xc53   :  { %v1978_v7 = vrot.slane %v1977_v6, 1 }
 0xc55   :  { %v1979_v8 = vadd.f32 %v1978_v7, %v1977_v6 }
 0xc57   :  { %v1980_v9 = vmul.f32 0.25, %v1979_v8 }
 0xc59   :  { %v1982_v10 = vadd.f32 1e-05, %v1980_v9 }
 0xc5b   :  { %12307 = vrsqrt.f32 %v1982_v10 }
 0xc65   :  { %v12308_v12 = vpop.eup %12307 }
 0xc66   :  { %v1984_v13 = vmul.f32 %v12308_v12, %v1981_v11 }
 0xc68   :  { %v1986_v15 = vmul.f32 %v1984_v13, %v1970_v1  ;;  %v1992_v16 = vrot.slane %v1984_v13, %v14077_v37  ;;  %v1646_v1 = vrot.slane %v1645_v63, 2 }
 0xc6a   :  { %v1987_v17 = vsub.f32 %v1985_v14, %v1986_v15  ;;  %v1994_v18 = vmul.f32 %v1992_v16, %v1957_v50  ;;  %v1647_v52 = vadd.f32 %v1646_v1, %v1645_v63 }
 0xc6c   :  { %v1999_v19 = vrot.slane %v1987_v17, %v14077_v37  ;;  %v1648_v57 = vrot.slane %v1647_v52, 1 }
 0xc6e   :  { %v2001_v20 = vadd.f32 %v1999_v19, %v1994_v18  ;;  %v1649_v2 = vadd.f32 %v1648_v57, %v1647_v52 }
 0xc70   :  { %v2002_v21 = vmax.f32 %v2001_v20, 0.0  ;;  %v1650_v3 = vmul.f32 0.25, %v1649_v2 }
 0xc72   :  { %v2003_v22 = vpack.c.bf16 %v2002_v21, %v2002_v21  ;;  %v1651_v4 = vsub.f32 %v14212_v31, %v1650_v3 }
 0xc74   :  { %v2010_v23 = vsel %vm954_vm9, %v2003_v22, 0  ;;  %v1652_v5 = vmul.f32 %v1651_v4, %v1651_v4 }
 0xc75   :  { %10745 = vmatpush3.bf16.msra.mxu1 %v2010_v23 }
 0xc76   :  { %10750 = vmatprep.subr.bf16.mxu1 %v13558_v0  ;;  %v1653_v8 = vsel %vm958_vm11, %v1652_v5, 0.0 }
 0xc77   :  { %v1654_v12 = vrot.slane %v1653_v8, 4 }
 0xc78   :  { %10747 = vmatmul.mubr.msk.bf16.vlgmr.msra.gmra.mrb[20].mxu1 %vm2005_vm15, %v2004_v24 }
 0xc79   :  { %10751 = vmatpush3.bf16.msra.mxu1 %v2010_v23  ;;  %10752 = vmatprep.mubr.msk.bf16.mxu1 %vm13559_vm0, %v13558_v0  ;;  %v1655_v14 = vadd.f32 %v1654_v12, %v1653_v8  ;;  %v11103_v8 = vld [vmem:[#allocation55 + $0x4] ss:$8 sps:$4 sm:$0xff]   ;;  %v11101_v12 = vld [vmem:[#allocation55] ss:$8 sps:$4 sm:$0xff]  }
 0xc7a   :  { %10569 = vmatprep.subr.bf16.mxu1 %v11077_v25 }
 0xc7b   :  { %v1656_v21 = vrot.slane %v1655_v14, 2 }
 0xc7d   :  { %v1657_v24 = vadd.f32 %v1656_v21, %v1655_v14  ;;  %v11109_v14 = vld [vmem:[#allocation55 + $0x24] ss:$8 sps:$4 sm:$0xff]   ;;  %v11116_v21 = vld [vmem:[#allocation55 + $0x50] ss:$8 sps:$4 sm:$0xff]  }
 0xc80   :  { %10753 = vmatmul.mubr.msk.bf16.vlgmr.msra.gmra.mrb[24].mxu1 %vm2005_vm15, %v2053_v26 }
 0xc81   :  { %2322 = vmatprep.mubr.bf16.mxu1 %v2003_v22  ;;  %10570 = vmatpush3.bf16.msra.mxu1 %v11078_v27  ;;  %v1658_v27 = vrot.slane %v1657_v24, 1 }
 0xc82   :  { %10571 = vmatprep.subr.bf16.mxu1 %v11079_v28 }
 0xc85   :  { %10572 = vmatpush3.bf16.msra.mxu1 %v11080_v29 }
 0xc86   :  { %10573 = vmatprep.subr.bf16.mxu1 %v11081_v30  ;;  %v1659_v30 = vadd.f32 %v1658_v27, %v1657_v24  ;;  %v11124_v24 = vld [vmem:[#allocation55 + $0x74] ss:$8 sps:$4 sm:$0xff]  }
 0xc89   :  { %10574 = vmatpush3.bf16.msra.mxu1 %v11082_v32 }
 0xc8a   :  { %10575 = vmatprep.subr.bf16.mxu1 %v11084_v33 }
 0xc8d   :  { %10576 = vmatpush3.bf16.msra.mxu1 %v11085_v34  ;;  %v1660_v34 = vmul.f32 0.25, %v1659_v30 }
 0xc8e   :  { %10577 = vmatprep.subr.bf16.mxu1 %v11087_v36 }
 0xc91   :  { %10578 = vmatpush3.bf16.msra.mxu1 %v11088_v38 }
 0xc92   :  { %10579 = vmatprep.subr.bf16.mxu1 %v11090_v39  ;;  %v1662_v39 = vadd.f32 1e-05, %v1660_v34 }
 0xc94   :  { %12309 = vrsqrt.f32 %v1662_v39 }
 0xc95   :  { %10580 = vmatpush3.bf16.msra.mxu1 %v11091_v40 }
 0xc96   :  { %10581 = vmatprep.subr.bf16.mxu1 %v11093_v41 }
 0xc99   :  { %10582 = vmatpush3.bf16.msra.mxu1 %v11094_v42 }
 0xc9a   :  { %10583 = vmatprep.subr.bf16.mxu1 %v11096_v43 }
 0xc9d   :  { %10584 = vmatpush3.bf16.msra.mxu1 %v11097_v44 }
 0xc9e   :  { %10776 = vmatprep.subr.bf16.mxu1 %v13558_v0  ;;  %v12310_v47 = vpop.eup %12309 }
 0xd4b   :  { %v2046_v48 = vpop.f32.mrb[20].mxu1 }
 0xd4c   :  { %v2052_v49 = vpack.c.bf16 %v2046_v48, %v2046_v48  ;;  %v10748_v50 = vpop.f32.mrb[21].mxu1  ;;  %v1661_v48 = vld [vmem:[#allocation38] sm:$0x1] }
 0xd4d   :  { %v2049_v51 = vpop.f32.mrb[22].mxu1 }
 0xd4e   :  { %v10749_v53 = vpop.f32.mrb[23].mxu1  ;;  %2323 = vmatmul.mubr.bf16.vlgmr.msra.gmra.mrb[28].mxu1 %v2052_v49  ;;  %v1664_v49 = vmul.f32 %v12310_v47, %v1661_v48  ;;  %v1665_v51 = vld [vmem:[#allocation40] sm:$0x1] }
 0xd4f   :  { %10778 = vmatprep.mubr.msk.bf16.mxu1 %vm13559_vm0, %v13558_v0  ;;  %v2388_v53 = vld [vmem:[#allocation32] sm:$0x1] }
 0xd50   :  { %v1666_v50 = vmul.f32 %v1664_v49, %v1650_v3 }
 0xd53   :  { %v2091_v55 = vpop.f32.mrb[24].mxu1 }
 0xd54   :  { %v2097_v58 = vpack.c.bf16 %v2091_v55, %v2091_v55  ;;  %v10754_v59 = vpop.f32.mrb[25].mxu1 }
 0xd55   :  { %v2094_v60 = vpop.f32.mrb[26].mxu1 }
 0xd56   :  { %v10755_v61 = vpop.f32.mrb[27].mxu1  ;;  %10773 = vmatmul.mubr.bf16.vlgmr.msra.gmra.mrb[32].mxu0 %v2097_v58  ;;  %v1667_v58 = vsub.f32 %v1665_v51, %v1666_v50  ;;  %v2392_v60 = vld [vmem:[#allocation34] sm:$0x1]  ;;  %v11134_v50 = vld [vmem:[#allocation44 + $0x30] ss:$8 sps:$4 sm:$0xff]  }
 0xd57   :  { %10784 = vmatprep.mubr.msk.bf16.mxu0 %vm13559_vm0, %v13558_v0  ;;  %v1672_v61 = vrot.slane %v1664_v49, %v14077_v37  ;;  %v11139_v51 = vld [vmem:[#allocation44 + $0x44] ss:$8 sps:$4 sm:$0xff]  }
 0xd58   :  { %v1679_v63 = vrot.slane %v1667_v58, %v14077_v37  ;;  %v11140_v58 = vld [vmem:[#allocation44 + $0x50] ss:$8 sps:$4 sm:$0xff]  }
 0xd59   :  { %v1674_v52 = vmul.f32 %v1672_v61, %v14212_v31  ;;  %v11106_v31 = vld [vmem:[#allocation55 + $0x14] ss:$8 sps:$4 sm:$0xff]  }
 0xd5a   :  { %v11148_v61 = vld [vmem:[#allocation44 + $0x74] ss:$8 sps:$4 sm:$0xff]  }
 0xd5b   :  { %v1681_v3 = vadd.f32 %v1679_v63, %v1674_v52  ;;  %v11149_v63 = vld [vmem:[#allocation44 + $0x80] ss:$8 sps:$4 sm:$0xff]   ;;  %v11152_v52 = vld [vmem:[#allocation44 + $0x90] ss:$8 sps:$4 sm:$0xff]  }
 0xe21   :  { %v10585_v6 = vpop.f32.mrb[28].mxu1 }
 0xe22   :  { %v10586_v7 = vpop.f32.mrb[29].mxu1 }
 0xe23   :  { %v10587_v9 = vadd.f32 %v10586_v7, %v10585_v6  ;;  %v10588_v10 = vpop.f32.mrb[30].mxu1 }
 0xe24   :  { %v10589_v11 = vpop.f32.mrb[31].mxu1  ;;  %v2412_v10 = vld [vmem:[#allocation53] sm:$0x1] }
 0xe25   :  { %v2705_v11 = vld [vmem:[#allocation41] sm:$0x1] }
 0xe29   :  { %v2364_v13 = vpop.f32.mrb[32].mxu0 }
 0xe2a   :  { %v2365_v15 = vadd.f32 %v10587_v9, %v2364_v13  ;;  %v10774_v16 = vpop.f32.mrb[33].mxu0  ;;  %v11104_v13 = vld [vmem:[#allocation55 + $0x10] ss:$8 sps:$4 sm:$0xff]  }
 0xe2b   :  { %v2367_v17 = vpop.f32.mrb[34].mxu0  ;;  %v11107_v16 = vld [vmem:[#allocation55 + $0x20] ss:$8 sps:$4 sm:$0xff]  }
 0xe2c   :  { %v2370_v18 = vsel %vm958_vm11, %v2365_v15, 0.0  ;;  %v10775_v19 = vpop.f32.mrb[35].mxu0  ;;  %v11112_v17 = vld [vmem:[#allocation55 + $0x34] ss:$8 sps:$4 sm:$0xff]  }
 0xe2d   :  { %v2371_v20 = vrot.slane %v2370_v18, 4  ;;  %v11115_v19 = vld [vmem:[#allocation55 + $0x44] ss:$8 sps:$4 sm:$0xff]  }
 0xe2f   :  { %v2372_v22 = vadd.f32 %v2371_v20, %v2370_v18  ;;  %v11110_v18 = vld [vmem:[#allocation55 + $0x30] ss:$8 sps:$4 sm:$0xff]   ;;  %v11118_v20 = vld [vmem:[#allocation55 + $0x54] ss:$8 sps:$4 sm:$0xff]  }
 0xe31   :  { %v2373_v23 = vrot.slane %v2372_v22, 2 }
 0xe33   :  { %v2374_v25 = vadd.f32 %v2373_v23, %v2372_v22  ;;  %v11121_v22 = vld [vmem:[#allocation55 + $0x64] ss:$8 sps:$4 sm:$0xff]   ;;  %v11119_v23 = vld [vmem:[#allocation55 + $0x60] ss:$8 sps:$4 sm:$0xff]  }
 0xe35   :  { %v2375_v26 = vrot.slane %v2374_v25, 1 }
 0xe37   :  { %v2376_v28 = vadd.f32 %v2375_v26, %v2374_v25  ;;  %v11122_v25 = vld [vmem:[#allocation55 + $0x70] ss:$8 sps:$4 sm:$0xff]  }
 0xe38   :  { %v11127_v26 = vld [vmem:[#allocation44 + $0x4] ss:$8 sps:$4 sm:$0xff]  }
 0xe39   :  { %v2377_v29 = vmul.f32 0.25, %v2376_v28  ;;  %v11125_v28 = vld [vmem:[#allocation44] ss:$8 sps:$4 sm:$0xff]  }
 0xe3b   :  { %v2378_v32 = vsub.f32 %v2365_v15, %v2377_v29 }
 0xe3d   :  { %v2379_v33 = vmul.f32 %v2378_v32, %v2378_v32 }
 0xe3f   :  { %v2380_v36 = vsel %vm958_vm11, %v2379_v33, 0.0  ;;  %v11130_v33 = vld [vmem:[#allocation44 + $0x14] ss:$8 sps:$4 sm:$0xff]  }
 0xe40   :  { %v2381_v38 = vrot.slane %v2380_v36, 4 }
 0xe42   :  { %v2382_v40 = vadd.f32 %v2381_v38, %v2380_v36 }
 0xe44   :  { %v2383_v41 = vrot.slane %v2382_v40, 2 }
 0xe46   :  { %v2384_v42 = vadd.f32 %v2383_v41, %v2382_v40 }
 0xe48   :  { %v2385_v43 = vrot.slane %v2384_v42, 1 }
 0xe4a   :  { %v2386_v44 = vadd.f32 %v2385_v43, %v2384_v42  ;;  %v11128_v42 = vld [vmem:[#allocation44 + $0x10] ss:$8 sps:$4 sm:$0xff]   ;;  %v11133_v43 = vld [vmem:[#allocation44 + $0x24] ss:$8 sps:$4 sm:$0xff]  }
 0xe4c   :  { %v2387_v45 = vmul.f32 0.25, %v2386_v44  ;;  %v11131_v44 = vld [vmem:[#allocation44 + $0x20] ss:$8 sps:$4 sm:$0xff]  }
 0xe4e   :  { %v2389_v46 = vadd.f32 1e-05, %v2387_v45 }
 0xe50   :  { %12311 = vrsqrt.f32 %v2389_v46  ;;  %v11136_v46 = vld [vmem:[#allocation44 + $0x34] ss:$8 sps:$4 sm:$0xff]  }
 0xe5a   :  { %v12312_v55 = vpop.eup %12311 }
 0xe5b   :  { %v2391_v59 = vmul.f32 %v12312_v55, %v2388_v53  ;;  %v11137_v53 = vld [vmem:[#allocation44 + $0x40] ss:$8 sps:$4 sm:$0xff]   ;;  %v11142_v55 = vld [vmem:[#allocation44 + $0x54] ss:$8 sps:$4 sm:$0xff]  }
 0xe5d   :  { %v2393_v62 = vmul.f32 %v2391_v59, %v2377_v29  ;;  %v2399_v54 = vrot.slane %v2391_v59, %v14077_v37  ;;  %v11145_v59 = vld [vmem:[#allocation44 + $0x64] ss:$8 sps:$4 sm:$0xff]  }
 0xe5f   :  { %v2394_v1 = vsub.f32 %v2392_v60, %v2393_v62  ;;  %v2401_v57 = vmul.f32 %v2399_v54, %v2365_v15  ;;  %v2750_v15 = vld [vmem:[#allocation43] sm:$0x1]  ;;  %v11143_v60 = vld [vmem:[#allocation44 + $0x60] ss:$8 sps:$4 sm:$0xff]   ;;  %v11146_v62 = vld [vmem:[#allocation44 + $0x70] ss:$8 sps:$4 sm:$0xff]  }
 0xe60   :  { %v11151_v54 = vld [vmem:[#allocation44 + $0x84] ss:$8 sps:$4 sm:$0xff]  }
 0xe61   :  { %v2406_v2 = vrot.slane %v2394_v1, %v14077_v37  ;;  %v11154_v1 = vld [vmem:[#allocation44 + $0x94] ss:$8 sps:$4 sm:$0xff]  }
 0xe63   :  { %v2408_v4 = vadd.f32 %v2406_v2, %v2401_v57  ;;  %v11157_v57 = vld [vmem:[#allocation44 + $0xa4] ss:$8 sps:$4 sm:$0xff]   ;;  %v11155_v2 = vld [vmem:[#allocation44 + $0xa0] ss:$8 sps:$4 sm:$0xff]  }
 0xe65   :  { %v2409_v5 = vadd.f32 %v2408_v4, %v1681_v3  ;;  %v11160_v3 = vld [vmem:[#allocation44 + $0xb4] ss:$8 sps:$4 sm:$0xff]   ;;  %v11158_v4 = vld [vmem:[#allocation44 + $0xb0] ss:$8 sps:$4 sm:$0xff]  }
 0xe67   :  { %v2410_v6 = vmax.f32 %v2409_v5, 0.0  ;;  %v11163_v5 = vld [vmem:[#allocation44 + $0xc4] ss:$8 sps:$4 sm:$0xff]  }
 0xe69   :  { %v2411_v7 = vpack.c.bf16 %v2410_v6, %v2410_v6  ;;  %v11161_v6 = vld [vmem:[#allocation44 + $0xc0] ss:$8 sps:$4 sm:$0xff]  }
 0xe6b   :  { %v2417_v9 = vsel %vm954_vm9, %v2411_v7, 0  ;;  %v11166_v7 = vld [vmem:[#allocation44 + $0xd4] ss:$8 sps:$4 sm:$0xff]  }
 0xe6c   :  { %10777 = vmatpush3.bf16.msra.mxu1 %v2417_v9  ;;  %10783 = vmatpush3.bf16.msra.mxu0 %v2417_v9 }
 0xe6d   :  { %10788 = vmatprep.subr.bf16.mxu0 %v13558_v0  ;;  %2556 = vmatprep.subr.bf16.mxu1 %v11103_v8  ;;  %v11164_v8 = vld [vmem:[#allocation44 + $0xd0] ss:$8 sps:$4 sm:$0xff]  }
 0xe6f   :  { %10779 = vmatmul.mubr.msk.bf16.vlgmr.msra.gmra.mrb[32].mxu1 %vm2005_vm15, %v2412_v10  ;;  %10785 = vmatmul.mubr.msk.bf16.vlgmr.msra.gmra.mrb[36].mxu0 %vm2005_vm15, %v2705_v11  ;;  %v11167_v10 = vld [vmem:[#allocation44 + $0xe0] ss:$8 sps:$4 sm:$0xff]   ;;  %v11172_v11 = vld [vmem:[#allocation44 + $0xf4] ss:$8 sps:$4 sm:$0xff]  }
 0xe70   :  { %10789 = vmatpush3.bf16.msra.mxu0 %v2417_v9  ;;  %10790 = vmatprep.mubr.msk.bf16.mxu0 %vm13559_vm0, %v13558_v0  ;;  %v11113_v0 = vld [vmem:[#allocation55 + $0x40] ss:$8 sps:$4 sm:$0xff]   ;;  %vm9565_vm0 = vcmask 74752  }
 0xe71   :  { %2557 = vmatpush1.bf16.msra.mxu1 %v11101_v12  ;;  %2588 = vmatprep.mubr.bf16.mxu1 %v13560_v56  ;;  %v11169_v9 = vld [vmem:[#allocation44 + $0xe4] ss:$8 sps:$4 sm:$0xff]   ;;  %v11170_v12 = vld [vmem:[#allocation44 + $0xf0] ss:$8 sps:$4 sm:$0xff]  }
 0xe72   :  { %2558 = vmatprep.subr.bf16.mxu1 %v11106_v31  ;;  %v11175_v31 = vld [vmem:[#allocation44 + $0x104] ss:$8 sps:$4 sm:$0xff]  }
 0xe75   :  { %2559 = vmatpush1.bf16.msra.mxu1 %v11104_v13  ;;  %v11173_v13 = vld [vmem:[#allocation44 + $0x100] ss:$8 sps:$4 sm:$0xff]  }
 0xe76   :  { %2560 = vmatprep.subr.bf16.mxu1 %v11109_v14  ;;  %v11178_v14 = vld [vmem:[#allocation44 + $0x114] ss:$8 sps:$4 sm:$0xff]  }
 0xe77   :  { %10791 = vmatmul.mubr.msk.bf16.vlgmr.msra.gmra.mrb[40].mxu0 %vm2005_vm15, %v2750_v15  ;;  %v11176_v15 = vld [vmem:[#allocation44 + $0x110] ss:$8 sps:$4 sm:$0xff]  }
 0xe78   :  { %3885 = vmatprep.mubr.bf16.mxu0 %v13560_v56 }
 0xe79   :  { %2561 = vmatpush1.bf16.msra.mxu1 %v11107_v16  ;;  %v11181_v16 = vld [vmem:[#allocation44 + $0x124] ss:$8 sps:$4 sm:$0xff]  }
 0xe7a   :  { %2562 = vmatprep.subr.bf16.mxu1 %v11112_v17  ;;  %v11179_v17 = vld [vmem:[#allocation44 + $0x120] ss:$8 sps:$4 sm:$0xff]  }
 0xe7d   :  { %2563 = vmatpush1.bf16.msra.mxu1 %v11110_v18  ;;  %v11184_v18 = vld [vmem:[#allocation44 + $0x134] ss:$8 sps:$4 sm:$0xff]  }
 0xe7e   :  { %2564 = vmatprep.subr.bf16.mxu1 %v11115_v19  ;;  %v11182_v19 = vld [vmem:[#allocation44 + $0x130] ss:$8 sps:$4 sm:$0xff]  }
 0xe81   :  { %2565 = vmatpush1.bf16.msra.mxu1 %v11113_v0  ;;  %v11187_v0 = vld [vmem:[#allocation44 + $0x144] ss:$8 sps:$4 sm:$0xff]  }
 0xe82   :  { %2566 = vmatprep.subr.bf16.mxu1 %v11118_v20  ;;  %v11185_v20 = vld [vmem:[#allocation44 + $0x140] ss:$8 sps:$4 sm:$0xff]  }
 0xe85   :  { %2567 = vmatpush1.bf16.msra.mxu1 %v11116_v21  ;;  %v11190_v21 = vld [vmem:[#allocation44 + $0x154] ss:$8 sps:$4 sm:$0xff]  }
 0xe86   :  { %2568 = vmatprep.subr.bf16.mxu1 %v11121_v22  ;;  %v11188_v22 = vld [vmem:[#allocation44 + $0x150] ss:$8 sps:$4 sm:$0xff]  }
 0xe89   :  { %2569 = vmatpush1.bf16.msra.mxu1 %v11119_v23  ;;  %v11193_v23 = vld [vmem:[#allocation44 + $0x164] ss:$8 sps:$4 sm:$0xff]  }
 0xe8a   :  { %2570 = vmatprep.subr.bf16.mxu1 %v11124_v24  ;;  %v11191_v24 = vld [vmem:[#allocation44 + $0x160] ss:$8 sps:$4 sm:$0xff]  }
 0xe8d   :  { %2571 = vmatpush1.bf16.msra.mxu1 %v11122_v25  ;;  %v11196_v25 = vld [vmem:[#allocation44 + $0x174] ss:$8 sps:$4 sm:$0xff]  }
 0xe8e   :  { %3083 = vmatprep.subr.bf16.mxu1 %v11127_v26  ;;  %v11194_v26 = vld [vmem:[#allocation44 + $0x170] ss:$8 sps:$4 sm:$0xff]  }
 0xf42   :  { %v2453_v27 = vpop.f32.mrb[32].mxu1  ;;  %v2743_v29 = vpop.f32.mrb[36].mxu0 }
 0xf43   :  { %v2459_v30 = vpack.c.bf16 %v2453_v27, %v2453_v27  ;;  %v10780_v32 = vpop.f32.mrb[33].mxu1  ;;  %v2749_v34 = vpack.c.bf16 %v2743_v29, %v2743_v29  ;;  %v10786_v36 = vpop.f32.mrb[37].mxu0  ;;  %v11197_v29 = vld [vmem:[#allocation49] ss:$8 sps:$4 sm:$0xff]  }
 0xf44   :  { %v2456_v38 = vpop.f32.mrb[34].mxu1  ;;  %v2746_v39 = vpop.f32.mrb[38].mxu0  ;;  %v11200_v32 = vld [vmem:[#allocation49 + $0x10] ss:$8 sps:$4 sm:$0xff]   ;;  %v11208_v36 = vld [vmem:[#allocation49 + $0x34] ss:$8 sps:$4 sm:$0xff]  }
 0xf45   :  { %2589 = vmatmul.mubr.bf16.vlgmr.msra.gmra.mrb[36].mxu1 %v2459_v30  ;;  %v10781_v40 = vpop.f32.mrb[35].mxu1  ;;  %v10787_v41 = vpop.f32.mrb[39].mxu0  ;;  %v11202_v30 = vld [vmem:[#allocation49 + $0x14] ss:$8 sps:$4 sm:$0xff]   ;;  %v11206_v38 = vld [vmem:[#allocation49 + $0x30] ss:$8 sps:$4 sm:$0xff]  }
 0xf46   :  { %3084 = vmatpush1.bf16.msra.mxu1 %v11125_v28  ;;  %3115 = vmatprep.mubr.bf16.mxu1 %v2749_v34  ;;  %v11199_v28 = vld [vmem:[#allocation49 + $0x4] ss:$8 sps:$4 sm:$0xff]   ;;  %v11203_v34 = vld [vmem:[#allocation49 + $0x20] ss:$8 sps:$4 sm:$0xff]   ;;  %v11214_v41 = vld [vmem:[#allocation49 + $0x54] ss:$8 sps:$4 sm:$0xff]  }
 0xf47   :  { %3085 = vmatprep.subr.bf16.mxu1 %v11130_v33  ;;  %3853 = vmatprep.subr.bf16.mxu0 %v11199_v28  ;;  %v11205_v33 = vld [vmem:[#allocation49 + $0x24] ss:$8 sps:$4 sm:$0xff]   ;;  %v11209_v40 = vld [vmem:[#allocation49 + $0x40] ss:$8 sps:$4 sm:$0xff]   ;;  %v11266_v28 = vld [vmem:[#allocation49 + $0x170] ss:$8 sps:$4 sm:$0xff]  }
 0xf48   :  { %3854 = vmatpush1.bf16.msra.mxu0 %v11197_v29  ;;  %v11211_v39 = vld [vmem:[#allocation49 + $0x44] ss:$8 sps:$4 sm:$0xff]  }
 0xf49   :  { %3855 = vmatprep.subr.bf16.mxu0 %v11202_v30 }
 0xf4a   :  { %3086 = vmatpush1.bf16.msra.mxu1 %v11128_v42  ;;  %v14261_v45 = vpop.f32.mrb[40].mxu0  ;;  %v11212_v42 = vld [vmem:[#allocation49 + $0x50] ss:$8 sps:$4 sm:$0xff]  }
 0xf4b   :  { %3087 = vmatprep.subr.bf16.mxu1 %v11133_v43  ;;  %v10792_v47 = vpop.f32.mrb[41].mxu0  ;;  %v2794_v27 = vpack.c.bf16 %v14261_v45, %v14261_v45  ;;  %v11217_v43 = vld [vmem:[#allocation49 + $0x64] ss:$8 sps:$4 sm:$0xff]   ;;  %v11218_v45 = vld [vmem:[#allocation49 + $0x70] ss:$8 sps:$4 sm:$0xff]  }
 0xf4c   :  { %v2791_v48 = vpop.f32.mrb[42].mxu0  ;;  %3856 = vmatpush1.bf16.msra.mxu0 %v11200_v32  ;;  %v11223_v47 = vld [vmem:[#allocation49 + $0x84] ss:$8 sps:$4 sm:$0xff]  }
 0xf4d   :  { %v10793_v49 = vpop.f32.mrb[43].mxu0  ;;  %3857 = vmatprep.subr.bf16.mxu0 %v11205_v33  ;;  %v11221_v48 = vld [vmem:[#allocation49 + $0x80] ss:$8 sps:$4 sm:$0xff]   ;;  %v11271_v33 = vld [vmem:[#allocation49 + $0x184] ss:$8 sps:$4 sm:$0xff]  }
 0xf4e   :  { %3088 = vmatpush1.bf16.msra.mxu1 %v11131_v44  ;;  %v11215_v44 = vld [vmem:[#allocation49 + $0x60] ss:$8 sps:$4 sm:$0xff]   ;;  %v11226_v49 = vld [vmem:[#allocation49 + $0x94] ss:$8 sps:$4 sm:$0xff]  }
 0xf4f   :  { %3089 = vmatprep.subr.bf16.mxu1 %v11136_v46  ;;  %v11220_v46 = vld [vmem:[#allocation49 + $0x74] ss:$8 sps:$4 sm:$0xff]  }
 0xf50   :  { %3858 = vmatpush1.bf16.msra.mxu0 %v11203_v34 }
 0xf51   :  { %3859 = vmatprep.subr.bf16.mxu0 %v11208_v36  ;;  %v11269_v36 = vld [vmem:[#allocation49 + $0x180] ss:$8 sps:$4 sm:$0xff]  }
 0xf52   :  { %3090 = vmatpush1.bf16.msra.mxu1 %v11134_v50  ;;  %v11224_v50 = vld [vmem:[#allocation49 + $0x90] ss:$8 sps:$4 sm:$0xff]  }
 0xf53   :  { %3091 = vmatprep.subr.bf16.mxu1 %v11139_v51  ;;  %v11229_v51 = vld [vmem:[#allocation49 + $0xa4] ss:$8 sps:$4 sm:$0xff]  }
 0xf54   :  { %3860 = vmatpush1.bf16.msra.mxu0 %v11206_v38 }
 0xf55   :  { %3861 = vmatprep.subr.bf16.mxu0 %v11211_v39 }
 0xf56   :  { %3092 = vmatpush1.bf16.msra.mxu1 %v11137_v53  ;;  %v11227_v53 = vld [vmem:[#allocation49 + $0xa0] ss:$8 sps:$4 sm:$0xff]  }
 0xf57   :  { %3093 = vmatprep.subr.bf16.mxu1 %v11142_v55  ;;  %v11232_v55 = vld [vmem:[#allocation49 + $0xb4] ss:$8 sps:$4 sm:$0xff]  }
 0xf58   :  { %3862 = vmatpush1.bf16.msra.mxu0 %v11209_v40 }
 0xf59   :  { %3863 = vmatprep.subr.bf16.mxu0 %v11214_v41  ;;  %v11274_v41 = vld [vmem:[#allocation49 + $0x194] ss:$8 sps:$4 sm:$0xff]  }
 0xf5a   :  { %3094 = vmatpush1.bf16.msra.mxu1 %v11140_v58  ;;  %v11230_v58 = vld [vmem:[#allocation49 + $0xb0] ss:$8 sps:$4 sm:$0xff]  }
 0xf5b   :  { %3095 = vmatprep.subr.bf16.mxu1 %v11145_v59  ;;  %v11235_v59 = vld [vmem:[#allocation49 + $0xc4] ss:$8 sps:$4 sm:$0xff]  }
 0xf5c   :  { %3864 = vmatpush1.bf16.msra.mxu0 %v11212_v42 }
 0xf5d   :  { %3865 = vmatprep.subr.bf16.mxu0 %v11217_v43  ;;  %v11272_v43 = vld [vmem:[#allocation49 + $0x190] ss:$8 sps:$4 sm:$0xff]  }
 0xf5e   :  { %3096 = vmatpush1.bf16.msra.mxu1 %v11143_v60  ;;  %v11233_v60 = vld [vmem:[#allocation49 + $0xc0] ss:$8 sps:$4 sm:$0xff]  }
 0xf5f   :  { %3097 = vmatprep.subr.bf16.mxu1 %v11148_v61  ;;  %v11238_v61 = vld [vmem:[#allocation49 + $0xd4] ss:$8 sps:$4 sm:$0xff]  }
 0xf60   :  { %3866 = vmatpush1.bf16.msra.mxu0 %v11215_v44 }
 0xf61   :  { %3867 = vmatprep.subr.bf16.mxu0 %v11220_v46 }
 0xf62   :  { %3098 = vmatpush1.bf16.msra.mxu1 %v11146_v62  ;;  %v11236_v62 = vld [vmem:[#allocation49 + $0xd0] ss:$8 sps:$4 sm:$0xff]  }
 0xf63   :  { %3099 = vmatprep.subr.bf16.mxu1 %v11151_v54  ;;  %v11241_v54 = vld [vmem:[#allocation49 + $0xe4] ss:$8 sps:$4 sm:$0xff]  }
 0xf64   :  { %3868 = vmatpush1.bf16.msra.mxu0 %v11218_v45 }
 0xf65   :  { %3869 = vmatprep.subr.bf16.mxu0 %v11223_v47  ;;  %v11277_v47 = vld [vmem:[#allocation49 + $0x1a4] ss:$8 sps:$4 sm:$0xff]  }
 0xf66   :  { %3100 = vmatpush1.bf16.msra.mxu1 %v11149_v63  ;;  %v11239_v63 = vld [vmem:[#allocation49 + $0xe0] ss:$8 sps:$4 sm:$0xff]  }
 0xf67   :  { %3101 = vmatprep.subr.bf16.mxu1 %v11154_v1  ;;  %v11244_v1 = vld [vmem:[#allocation49 + $0xf4] ss:$8 sps:$4 sm:$0xff]  }
 0xf68   :  { %3870 = vmatpush1.bf16.msra.mxu0 %v11221_v48 }
 0xf69   :  { %3871 = vmatprep.subr.bf16.mxu0 %v11226_v49 }
 0xf6a   :  { %3102 = vmatpush1.bf16.msra.mxu1 %v11152_v52  ;;  %v11242_v52 = vld [vmem:[#allocation49 + $0xf0] ss:$8 sps:$4 sm:$0xff]  }
 0xf6b   :  { %3103 = vmatprep.subr.bf16.mxu1 %v11157_v57  ;;  %v11247_v57 = vld [vmem:[#allocation49 + $0x104] ss:$8 sps:$4 sm:$0xff]  }
 0xf6c   :  { %3872 = vmatpush1.bf16.msra.mxu0 %v11224_v50  ;;  %v11275_v50 = vld [vmem:[#allocation49 + $0x1a0] ss:$8 sps:$4 sm:$0xff]  }
 0xf6d   :  { %3873 = vmatprep.subr.bf16.mxu0 %v11229_v51 }
 0xf6e   :  { %3104 = vmatpush1.bf16.msra.mxu1 %v11155_v2  ;;  %v11245_v2 = vld [vmem:[#allocation49 + $0x100] ss:$8 sps:$4 sm:$0xff]  }
 0xf6f   :  { %3105 = vmatprep.subr.bf16.mxu1 %v11160_v3  ;;  %v11250_v3 = vld [vmem:[#allocation49 + $0x114] ss:$8 sps:$4 sm:$0xff]  }
 0xf70   :  { %3874 = vmatpush1.bf16.msra.mxu0 %v11227_v53 }
 0xf71   :  { %3875 = vmatprep.subr.bf16.mxu0 %v11232_v55 }
 0xf72   :  { %3106 = vmatpush1.bf16.msra.mxu1 %v11158_v4  ;;  %v11248_v4 = vld [vmem:[#allocation49 + $0x110] ss:$8 sps:$4 sm:$0xff]  }
 0xf73   :  { %3107 = vmatprep.subr.bf16.mxu1 %v11163_v5  ;;  %v11253_v5 = vld [vmem:[#allocation49 + $0x124] ss:$8 sps:$4 sm:$0xff]  }
 0xf74   :  { %3876 = vmatpush1.bf16.msra.mxu0 %v11230_v58  ;;  %v11280_v58 = vld [vmem:[#allocation49 + $0x1b4] ss:$8 sps:$4 sm:$0xff]  }
 0xf75   :  { %3877 = vmatprep.subr.bf16.mxu0 %v11235_v59 }
 0xf76   :  { %3108 = vmatpush1.bf16.msra.mxu1 %v11161_v6  ;;  %v11251_v6 = vld [vmem:[#allocation49 + $0x120] ss:$8 sps:$4 sm:$0xff]  }
 0xf77   :  { %3109 = vmatprep.subr.bf16.mxu1 %v11166_v7  ;;  %v11256_v7 = vld [vmem:[#allocation49 + $0x134] ss:$8 sps:$4 sm:$0xff]  }
 0xf78   :  { %3878 = vmatpush1.bf16.msra.mxu0 %v11233_v60  ;;  %v11278_v60 = vld [vmem:[#allocation49 + $0x1b0] ss:$8 sps:$4 sm:$0xff]  }
 0xf79   :  { %3879 = vmatprep.subr.bf16.mxu0 %v11238_v61 }
 0xf7a   :  { %3110 = vmatpush1.bf16.msra.mxu1 %v11164_v8  ;;  %v11254_v8 = vld [vmem:[#allocation49 + $0x130] ss:$8 sps:$4 sm:$0xff]  }
 0xf7b   :  { %3111 = vmatprep.subr.bf16.mxu1 %v11169_v9  ;;  %v11259_v9 = vld [vmem:[#allocation49 + $0x144] ss:$8 sps:$4 sm:$0xff]  }
 0xf7c   :  { %3880 = vmatpush1.bf16.msra.mxu0 %v11236_v62 }
 0xf7d   :  { %3881 = vmatprep.subr.bf16.mxu0 %v11241_v54 }
 0xf7e   :  { %3112 = vmatpush1.bf16.msra.mxu1 %v11167_v10  ;;  %v11257_v10 = vld [vmem:[#allocation49 + $0x140] ss:$8 sps:$4 sm:$0xff]  }
 0xf7f   :  { %3113 = vmatprep.subr.bf16.mxu1 %v11172_v11 }
 0xf80   :  { %3882 = vmatpush1.bf16.msra.mxu0 %v11239_v63  ;;  %v11283_v63 = vld [vmem:[#allocation49 + $0x1c4] ss:$8 sps:$4 sm:$0xff]  }
 0xf81   :  { %3883 = vmatprep.subr.bf16.mxu0 %v11244_v1 }
 0xf82   :  { %3114 = vmatpush1.bf16.msra.mxu1 %v11170_v12  ;;  %v11262_v12 = vld [vmem:[#allocation49 + $0x154] ss:$8 sps:$4 sm:$0xff]  }
 0xf83   :  { %3124 = vmatprep.subr.bf16.mxu1 %v11175_v31 }
 0xf84   :  { %3884 = vmatpush1.bf16.msra.mxu0 %v11242_v52  ;;  %v11281_v52 = vld [vmem:[#allocation49 + $0x1c0] ss:$8 sps:$4 sm:$0xff]  }
 0xf85   :  { %3116 = vmatmul.mubr.bf16.vlgmr.msra.gmra.mrb[40].mxu1 %v13560_v56  ;;  %3894 = vmatprep.subr.bf16.mxu0 %v11247_v57 }
 0xf86   :  { %3125 = vmatpush1.bf16.msra.mxu1 %v11173_v13  ;;  %3156 = vmatprep.mubr.bf16.mxu1 %v13560_v56 }
 0xf87   :  { %3126 = vmatprep.subr.bf16.mxu1 %v11178_v14  ;;  %3886 = vmatmul.mubr.bf16.vlgmr.msra.gmra.mrb[44].mxu0 %v13560_v56  ;;  %v11260_v14 = vld [vmem:[#allocation49 + $0x150] ss:$8 sps:$4 sm:$0xff]  }
 0xf88   :  { %3895 = vmatpush1.bf16.msra.mxu0 %v11245_v2 }
 0xf89   :  { %3896 = vmatprep.subr.bf16.mxu0 %v11250_v3  ;;  %v11284_v3 = vld [vmem:[#allocation49 + $0x1d0] ss:$8 sps:$4 sm:$0xff]  }
 0xf8a   :  { %3127 = vmatpush1.bf16.msra.mxu1 %v11176_v15 }
 0xf8b   :  { %3128 = vmatprep.subr.bf16.mxu1 %v11181_v16 }
 0xf8c   :  { %3897 = vmatpush1.bf16.msra.mxu0 %v11248_v4  ;;  %v11286_v4 = vld [vmem:[#allocation49 + $0x1d4] ss:$8 sps:$4 sm:$0xff]  }
 0xf8d   :  { %3898 = vmatprep.subr.bf16.mxu0 %v11253_v5 }
 0xf8e   :  { %3129 = vmatpush1.bf16.msra.mxu1 %v11179_v17 }
 0xf8f   :  { %3130 = vmatprep.subr.bf16.mxu1 %v11184_v18 }
 0xf90   :  { %3899 = vmatpush1.bf16.msra.mxu0 %v11251_v6  ;;  %v11289_v6 = vld [vmem:[#allocation49 + $0x1e4] ss:$8 sps:$4 sm:$0xff]  }
 0xf91   :  { %3900 = vmatprep.subr.bf16.mxu0 %v11256_v7 }
 0xf92   :  { %3131 = vmatpush1.bf16.msra.mxu1 %v11182_v19 }
 0xf93   :  { %3132 = vmatprep.subr.bf16.mxu1 %v11187_v0 }
 0xf94   :  { %3901 = vmatpush1.bf16.msra.mxu0 %v11254_v8 }
 0xf95   :  { %3902 = vmatprep.subr.bf16.mxu0 %v11259_v9 }
 0xf96   :  { %3133 = vmatpush1.bf16.msra.mxu1 %v11185_v20  ;;  %v11265_v20 = vld [vmem:[#allocation49 + $0x164] ss:$8 sps:$4 sm:$0xff]  }
 0xf97   :  { %3134 = vmatprep.subr.bf16.mxu1 %v11190_v21 }
 0xf98   :  { %3903 = vmatpush1.bf16.msra.mxu0 %v11257_v10  ;;  %v11287_v10 = vld [vmem:[#allocation49 + $0x1e0] ss:$8 sps:$4 sm:$0xff]  }
 0xf99   :  { %3904 = vmatprep.subr.bf16.mxu0 %v11262_v12 }
 0xf9a   :  { %3135 = vmatpush1.bf16.msra.mxu1 %v11188_v22  ;;  %v11263_v22 = vld [vmem:[#allocation49 + $0x160] ss:$8 sps:$4 sm:$0xff]  }
 0xf9b   :  { %3136 = vmatprep.subr.bf16.mxu1 %v11193_v23 }
 0xf9c   :  { %3905 = vmatpush1.bf16.msra.mxu0 %v11260_v14  ;;  %v13561_v14 = vmov 1966171168  }
 0xf9d   :  { %3906 = vmatprep.subr.bf16.mxu0 %v11265_v20 }
 0xf9e   :  { %3137 = vmatpush1.bf16.msra.mxu1 %v11191_v24 }
 0xf9f   :  { %3138 = vmatprep.subr.bf16.mxu1 %v11196_v25 }
 0xfa0   :  { %3907 = vmatpush1.bf16.msra.mxu0 %v11263_v22 }
 0xfa2   :  { %3139 = vmatpush1.bf16.msra.mxu1 %v11194_v26  ;;  %v11268_v26 = vld [vmem:[#allocation49 + $0x174] ss:$8 sps:$4 sm:$0xff]  }
 0xfa3   :  { %3908 = vmatprep.subr.bf16.mxu0 %v11268_v26 }
 0xfa4   :  { %3909 = vmatpush1.bf16.msra.mxu0 %v11266_v28 }
 0xfa5   :  { %3157 = vmatmul.mubr.bf16.vlgmr.msra.gmra.mrb[40].mxu1 %v2794_v27  ;;  %3910 = vmatprep.subr.bf16.mxu0 %v11271_v33 }
 0xfa8   :  { %3911 = vmatpush1.bf16.msra.mxu0 %v11269_v36 }
 0xfa9   :  { %3912 = vmatprep.subr.bf16.mxu0 %v11274_v41 }
 0xfac   :  { %3913 = vmatpush1.bf16.msra.mxu0 %v11272_v43 }
 0xfad   :  { %3914 = vmatprep.subr.bf16.mxu0 %v11277_v47 }
 0xfb0   :  { %3915 = vmatpush1.bf16.msra.mxu0 %v11275_v50 }
 0xfb1   :  { %3916 = vmatprep.subr.bf16.mxu0 %v11280_v58 }
 0xfb4   :  { %3917 = vmatpush1.bf16.msra.mxu0 %v11278_v60 }
 0xfb5   :  { %3918 = vmatprep.subr.bf16.mxu0 %v11283_v63 }
 0xfb8   :  { %3919 = vmatpush1.bf16.msra.mxu0 %v11281_v52 }
 0xfb9   :  { %3920 = vmatprep.subr.bf16.mxu0 %v11286_v4 }
 0xfbc   :  { %3921 = vmatpush1.bf16.msra.mxu0 %v11284_v3 }
 0xfbd   :  { %3922 = vmatprep.subr.bf16.mxu0 %v11289_v6 }
 0xfc0   :  { %3923 = vmatpush1.bf16.msra.mxu0 %v11287_v10 }
0x1018   :  { %v14268_v11 = vpop.f32.mrb[36].mxu1 }
0x1019   :  { %v2597_v31 = vsel %vm954_vm9, %v14268_v11, 0.0  ;;  %v14272_v13 = vpop.f32.mrb[37].mxu1 }
0x101a   :  { %v2598_v15 = vrot.slane %v2597_v31, 4  ;;  %v2604_v16 = vsel %vm954_vm9, %v14272_v13, 0.0  ;;  %v2594_v17 = vpop.f32.mrb[38].mxu1 }
0x101b   :  { %v2605_v18 = vrot.slane %v2604_v16, 4  ;;  %v2595_v19 = vpop.f32.mrb[39].mxu1 }
0x101c   :  { %v2599_v0 = vadd.f32 %v2598_v15, %v2597_v31  ;;  %v11292_v31 = vld [vmem:[#allocation49 + $0x1f4] ss:$8 sps:$4 sm:$0xff]   ;;  %v2642_v15 = vunpack.c.l.s4 %v13561_v14 }
0x101d   :  { %v2606_v21 = vadd.f32 %v2605_v18, %v2604_v16  ;;  %v11290_v16 = vld [vmem:[#allocation49 + $0x1f0] ss:$8 sps:$4 sm:$0xff]   ;;  %3924 = vmatprep.subr.bf16.mxu0 %v11292_v31  ;;  %v11295_v18 = vld [vmem:[#allocation49 + $0x204] ss:$8 sps:$4 sm:$0xff]  }
0x101e   :  { %v2600_v23 = vrot.slane %v2599_v0, 2  ;;  %v2643_v17 = vunpack.c.0.s8 %v2642_v15  ;;  %3925 = vmatpush1.bf16.msra.mxu0 %v11290_v16 }
0x101f   :  { %v2607_v24 = vrot.slane %v2606_v21, 2  ;;  %3935 = vmatprep.subr.bf16.mxu0 %v11295_v18 }
0x1020   :  { %v2601_v25 = vadd.f32 %v2600_v23, %v2599_v0  ;;  %v14287_v0 = vsub.s32 %v2643_v17, %v14074_v35  ;;  %v2633_v23 = vld [vmem:[#allocation56] sm:$0x3] }
0x1021   :  { %v2608_v27 = vadd.f32 %v2607_v24, %v2606_v21 }
0x1022   :  { %v2602_v29 = vrot.slane %v2601_v25, 1 }
0x1023   :  { %v2609_v30 = vrot.slane %v2608_v27, 1 }
0x1024   :  { %v2603_v32 = vadd.f32 %v2602_v29, %v2601_v25  ;;  %v14292_v25 = vsub.s32 1, %v14074_v35 }
0x1025   :  { %v2610_v34 = vadd.f32 %v2609_v30, %v2608_v27 }
0x1026   :  { %v14276_v38 = vmul.f32 0.5, %v2603_v32 }
0x1027   :  { %v14278_v39 = vmul.f32 0.5, %v2610_v34 }
0x1028   :  { %v2613_v40 = vsub.f32 %v14268_v11, %v14276_v38 }
0x1029   :  { %v2614_v42 = vsub.f32 %v14272_v13, %v14278_v39 }
0x102a   :  { %v2615_v44 = vmul.f32 %v2613_v40, %v2613_v40  ;;  %v2657_v40 = vld [vmem:[#allocation58] sm:$0x3] }
0x102b   :  { %v2616_v45 = vmul.f32 %v2614_v42, %v2614_v42 }
0x102c   :  { %v2617_v46 = vsel %vm954_vm9, %v2615_v44, 0.0 }
0x102d   :  { %v2618_v48 = vrot.slane %v2617_v46, 4  ;;  %v2624_v49 = vsel %vm954_vm9, %v2616_v45, 0.0 }
0x102e   :  { %v2625_v51 = vrot.slane %v2624_v49, 4 }
0x102f   :  { %v2619_v53 = vadd.f32 %v2618_v48, %v2617_v46 }
0x1030   :  { %v2626_v55 = vadd.f32 %v2625_v51, %v2624_v49 }
0x1031   :  { %v2620_v59 = vrot.slane %v2619_v53, 2 }
0x1032   :  { %v2627_v61 = vrot.slane %v2626_v55, 2 }
0x1033   :  { %v2621_v62 = vadd.f32 %v2620_v59, %v2619_v53 }
0x1034   :  { %v2628_v54 = vadd.f32 %v2627_v61, %v2626_v55 }
0x1035   :  { %v2622_v1 = vrot.slane %v2621_v62, 1 }
0x1036   :  { %v2629_v57 = vrot.slane %v2628_v54, 1 }
0x1037   :  { %v2623_v2 = vadd.f32 %v2622_v1, %v2621_v62 }
0x1038   :  { %v2630_v5 = vadd.f32 %v2629_v57, %v2628_v54 }
0x1039   :  { %v2631_v7 = vmul.f32 0.5, %v2623_v2 }
0x103a   :  { %v2632_v8 = vmul.f32 0.5, %v2630_v5 }
0x103b   :  { %v2634_v9 = vadd.f32 1e-05, %v2631_v7 }
0x103c   :  { %v2635_v12 = vadd.f32 1e-05, %v2632_v8 }
0x103d   :  { %12313 = vrsqrt.f32 %v2634_v9 }
0x103e   :  { %12315 = vrsqrt.f32 %v2635_v12 }
0x1047   :  { %v12314_v19 = vpop.eup %12313 }
0x1048   :  { %v12316_v20 = vpop.eup %12315 }
0x1049   :  { %v2640_v21 = vcombine.low %v12314_v19, %v12316_v20 }
0x104b   :  { %v2647_v22 = vrot.slane %v2640_v21, %v14287_v0 }
0x104d   :  { %v2654_v24 = vrot.slane %v2647_v22, %v14287_v0 }
0x104f   :  { %v2656_v26 = vmul.f32 %v2654_v24, %v2633_v23 }
0x1051   :  { %v2662_v27 = vrot.slane %v2656_v26, %v14077_v37  ;;  %v2666_v28 = vrot.slane %v2656_v26, %v14292_v25 }
0x1053   :  { %v2669_v29 = vmul.f32 %v2662_v27, %v14276_v38  ;;  %v2670_v30 = vmul.f32 %v2666_v28, %v14278_v39  ;;  %v2690_v32 = vmul.f32 %v2662_v27, %v14268_v11  ;;  %v2691_v33 = vmul.f32 %v2666_v28, %v14272_v13 }
0x1055   :  { %v2673_v34 = vcombine.low %v2669_v29, %v2670_v30  ;;  %v3201_v29 = vld [vmem:[#allocation46] sm:$0x3] }
0x1057   :  { %v2680_v36 = vrot.slane %v2673_v34, %v14287_v0 }
0x1059   :  { %v2687_v41 = vrot.slane %v2680_v36, %v14287_v0 }
0x105b   :  { %v2689_v42 = vsub.f32 %v2657_v40, %v2687_v41 }
0x105d   :  { %v2696_v43 = vrot.slane %v2689_v42, %v14077_v37  ;;  %v2700_v44 = vrot.slane %v2689_v42, %v14292_v25 }
0x105f   :  { %v14304_v45 = vadd.f32 %v2700_v44, %v2691_v33  ;;  %v14306_v38 = vadd.f32 %v2696_v43, %v2690_v32 }
0x1078   :  { %v3158_v39 = vpop.f32.mrb[40].mxu1 }
0x1079   :  { %v3165_v11 = vsel %vm954_vm9, %v3158_v39, 0.0  ;;  %v3160_v46 = vpop.f32.mrb[41].mxu1 }
0x107a   :  { %v3166_v13 = vrot.slane %v3165_v11, 4  ;;  %v3172_v47 = vsel %vm954_vm9, %v3160_v46, 0.0  ;;  %v3162_v48 = vpop.f32.mrb[42].mxu1 }
0x107b   :  { %v3173_v49 = vrot.slane %v3172_v47, 4  ;;  %v3163_v50 = vpop.f32.mrb[43].mxu1 }
0x107c   :  { %v3167_v51 = vadd.f32 %v3166_v13, %v3165_v11  ;;  %v3225_v11 = vld [vmem:[#allocation47] sm:$0x3] }
0x107d   :  { %v3174_v53 = vadd.f32 %v3173_v49, %v3172_v47 }
0x107e   :  { %v3168_v55 = vrot.slane %v3167_v51, 2 }
0x107f   :  { %v3175_v58 = vrot.slane %v3174_v53, 2 }
0x1080   :  { %v3169_v59 = vadd.f32 %v3168_v55, %v3167_v51 }
0x1081   :  { %v3176_v60 = vadd.f32 %v3175_v58, %v3174_v53 }
0x1082   :  { %v3170_v61 = vrot.slane %v3169_v59, 1 }
0x1083   :  { %v3177_v62 = vrot.slane %v3176_v60, 1 }
0x1084   :  { %v3171_v54 = vadd.f32 %v3170_v61, %v3169_v59  ;;  %v11293_v59 = vld [vmem:[#allocation49 + $0x200] ss:$8 sps:$4 sm:$0xff]   ;;  %v11301_v61 = vld [vmem:[#allocation49 + $0x224] ss:$8 sps:$4 sm:$0xff]  }
0x1085   :  { %v3178_v63 = vadd.f32 %v3177_v62, %v3176_v60  ;;  %v11299_v62 = vld [vmem:[#allocation49 + $0x220] ss:$8 sps:$4 sm:$0xff]  }
0x1086   :  { %v3179_v1 = vmul.f32 0.5, %v3171_v54  ;;  %v11304_v54 = vld [vmem:[#allocation49 + $0x234] ss:$8 sps:$4 sm:$0xff]  }
0x1087   :  { %v3180_v52 = vmul.f32 0.5, %v3178_v63  ;;  %v11302_v63 = vld [vmem:[#allocation49 + $0x230] ss:$8 sps:$4 sm:$0xff]  }
0x1088   :  { %v3181_v57 = vsub.f32 %v3158_v39, %v3179_v1 }
0x1089   :  { %v3182_v2 = vsub.f32 %v3160_v46, %v3180_v52 }
0x108a   :  { %v3183_v3 = vmul.f32 %v3181_v57, %v3181_v57  ;;  %v11310_v57 = vld [vmem:[#allocation49 + $0x254] ss:$8 sps:$4 sm:$0xff]  }
0x108b   :  { %v3184_v4 = vmul.f32 %v3182_v2, %v3182_v2  ;;  %v11308_v2 = vld [vmem:[#allocation49 + $0x250] ss:$8 sps:$4 sm:$0xff]  }
0x108c   :  { %v3185_v5 = vsel %vm954_vm9, %v3183_v3, 0.0  ;;  %v11313_v3 = vld [vmem:[#allocation49 + $0x264] ss:$8 sps:$4 sm:$0xff]  }
0x108d   :  { %v3186_v6 = vrot.slane %v3185_v5, 4  ;;  %v3192_v7 = vsel %vm954_vm9, %v3184_v4, 0.0  ;;  %v11311_v4 = vld [vmem:[#allocation49 + $0x260] ss:$8 sps:$4 sm:$0xff]  }
0x108e   :  { %v3193_v8 = vrot.slane %v3192_v7, 4 }
0x108f   :  { %v3187_v9 = vadd.f32 %v3186_v6, %v3185_v5  ;;  %v11316_v5 = vld [vmem:[#allocation49 + $0x274] ss:$8 sps:$4 sm:$0xff]   ;;  %v11314_v6 = vld [vmem:[#allocation49 + $0x270] ss:$8 sps:$4 sm:$0xff]  }
0x1090   :  { %v3194_v10 = vadd.f32 %v3193_v8, %v3192_v7  ;;  %v11319_v7 = vld [vmem:[#allocation49 + $0x284] ss:$8 sps:$4 sm:$0xff]   ;;  %v11317_v8 = vld [vmem:[#allocation49 + $0x280] ss:$8 sps:$4 sm:$0xff]  }
0x1091   :  { %v3188_v12 = vrot.slane %v3187_v9, 2 }
0x1092   :  { %v3195_v31 = vrot.slane %v3194_v10, 2 }
0x1093   :  { %v3189_v14 = vadd.f32 %v3188_v12, %v3187_v9  ;;  %v11322_v9 = vld [vmem:[#allocation49 + $0x294] ss:$8 sps:$4 sm:$0xff]   ;;  %v11325_v12 = vld [vmem:[#allocation49 + $0x2a4] ss:$8 sps:$4 sm:$0xff]  }
0x1094   :  { %v3196_v15 = vadd.f32 %v3195_v31, %v3194_v10  ;;  %v11320_v10 = vld [vmem:[#allocation49 + $0x290] ss:$8 sps:$4 sm:$0xff]   ;;  %v11323_v31 = vld [vmem:[#allocation49 + $0x2a0] ss:$8 sps:$4 sm:$0xff]  }
0x1095   :  { %v3190_v16 = vrot.slane %v3189_v14, 1 }
0x1096   :  { %v3197_v17 = vrot.slane %v3196_v15, 1 }
0x1097   :  { %v3191_v18 = vadd.f32 %v3190_v16, %v3189_v14  ;;  %v11328_v14 = vld [vmem:[#allocation49 + $0x2b4] ss:$8 sps:$4 sm:$0xff]   ;;  %v11331_v16 = vld [vmem:[#allocation49 + $0x2c4] ss:$8 sps:$4 sm:$0xff]  }
0x1098   :  { %v3198_v19 = vadd.f32 %v3197_v17, %v3196_v15  ;;  %v11326_v15 = vld [vmem:[#allocation49 + $0x2b0] ss:$8 sps:$4 sm:$0xff]   ;;  %v11329_v17 = vld [vmem:[#allocation49 + $0x2c0] ss:$8 sps:$4 sm:$0xff]  }
0x1099   :  { %v3199_v20 = vmul.f32 0.5, %v3191_v18  ;;  %v11334_v18 = vld [vmem:[#allocation49 + $0x2d4] ss:$8 sps:$4 sm:$0xff]  }
0x109a   :  { %v3200_v21 = vmul.f32 0.5, %v3198_v19  ;;  %v11332_v19 = vld [vmem:[#allocation49 + $0x2d0] ss:$8 sps:$4 sm:$0xff]  }
0x109b   :  { %v3202_v22 = vadd.f32 1e-05, %v3199_v20  ;;  %v11337_v20 = vld [vmem:[#allocation49 + $0x2e4] ss:$8 sps:$4 sm:$0xff]  }
0x109c   :  { %v3203_v23 = vadd.f32 1e-05, %v3200_v21  ;;  %v11335_v21 = vld [vmem:[#allocation49 + $0x2e0] ss:$8 sps:$4 sm:$0xff]  }
0x109d   :  { %12317 = vrsqrt.f32 %v3202_v22  ;;  %v11340_v22 = vld [vmem:[#allocation49 + $0x2f4] ss:$8 sps:$4 sm:$0xff]  }
0x109e   :  { %12319 = vrsqrt.f32 %v3203_v23  ;;  %v11338_v23 = vld [vmem:[#allocation49 + $0x2f0] ss:$8 sps:$4 sm:$0xff]  }
0x10a7   :  { %v12318_v24 = vpop.eup %12317 }
0x10a8   :  { %v12320_v26 = vpop.eup %12319 }
0x10a9   :  { %v3208_v27 = vcombine.low %v12318_v24, %v12320_v26  ;;  %v11343_v24 = vld [vmem:[#allocation59 + $0x4] ss:$16 sps:$4 sm:$0xff]   ;;  %v11341_v26 = vld [vmem:[#allocation59] ss:$16 sps:$4 sm:$0xff]  }
0x10ab   :  { %v3215_v28 = vrot.slane %v3208_v27, %v14287_v0  ;;  %v11346_v27 = vld [vmem:[#allocation59 + $0x24] ss:$16 sps:$4 sm:$0xff]  }
0x10ad   :  { %v3222_v30 = vrot.slane %v3215_v28, %v14287_v0  ;;  %v11344_v28 = vld [vmem:[#allocation59 + $0x20] ss:$16 sps:$4 sm:$0xff]  }
0x10af   :  { %v3224_v32 = vmul.f32 %v3222_v30, %v3201_v29  ;;  %v11349_v29 = vld [vmem:[#allocation59 + $0x44] ss:$16 sps:$4 sm:$0xff]   ;;  %v11347_v30 = vld [vmem:[#allocation59 + $0x40] ss:$16 sps:$4 sm:$0xff]  }
0x10b1   :  { %v3230_v33 = vrot.slane %v3224_v32, %v14077_v37  ;;  %v3234_v34 = vrot.slane %v3224_v32, %v14292_v25  ;;  %v11352_v32 = vld [vmem:[#allocation59 + $0x64] ss:$16 sps:$4 sm:$0xff]  }
0x10b3   :  { %v3237_v36 = vmul.f32 %v3230_v33, %v3179_v1  ;;  %v3238_v40 = vmul.f32 %v3234_v34, %v3180_v52  ;;  %v3259_v41 = vmul.f32 %v3234_v34, %v3160_v46  ;;  %v3258_v42 = vmul.f32 %v3230_v33, %v3158_v39  ;;  %v11298_v46 = vld [vmem:[#allocation49 + $0x214] ss:$8 sps:$4 sm:$0xff]   ;;  %v11296_v39 = vld [vmem:[#allocation49 + $0x210] ss:$8 sps:$4 sm:$0xff]   ;;  %v11307_v1 = vld [vmem:[#allocation49 + $0x244] ss:$8 sps:$4 sm:$0xff]  }
0x10b4   :  { %v11305_v52 = vld [vmem:[#allocation49 + $0x240] ss:$8 sps:$4 sm:$0xff]  }
0x10b5   :  { %v3241_v43 = vcombine.low %v3237_v36, %v3238_v40  ;;  %v11350_v33 = vld [vmem:[#allocation59 + $0x60] ss:$16 sps:$4 sm:$0xff]   ;;  %v11355_v34 = vld [vmem:[#allocation59 + $0x84] ss:$16 sps:$4 sm:$0xff]  }
0x10b6   :  { %v11353_v36 = vld [vmem:[#allocation59 + $0x80] ss:$16 sps:$4 sm:$0xff]   ;;  %v11358_v40 = vld [vmem:[#allocation59 + $0xa4] ss:$16 sps:$4 sm:$0xff]  }
0x10b7   :  { %v3248_v44 = vrot.slane %v3241_v43, %v14287_v0  ;;  %v11359_v43 = vld [vmem:[#allocation59 + $0xc0] ss:$16 sps:$4 sm:$0xff]  }
0x10b9   :  { %v3255_v13 = vrot.slane %v3248_v44, %v14287_v0  ;;  %v11364_v44 = vld [vmem:[#allocation59 + $0xe4] ss:$16 sps:$4 sm:$0xff]  }
0x10bb   :  { %v3257_v47 = vsub.f32 %v3225_v11, %v3255_v13  ;;  %v11362_v11 = vld [vmem:[#allocation59 + $0xe0] ss:$16 sps:$4 sm:$0xff]   ;;  %v11367_v13 = vld [vmem:[#allocation59 + $0x104] ss:$16 sps:$4 sm:$0xff]  }
0x10bd   :  { %v3268_v48 = vrot.slane %v3257_v47, %v14292_v25  ;;  %v3264_v49 = vrot.slane %v3257_v47, %v14077_v37  ;;  %v11365_v47 = vld [vmem:[#allocation59 + $0x100] ss:$16 sps:$4 sm:$0xff]  }
0x10bf   :  { %v3272_v50 = vadd.f32 %v3268_v48, %v3259_v41  ;;  %v3271_v51 = vadd.f32 %v3264_v49, %v3258_v42  ;;  %v11356_v41 = vld [vmem:[#allocation59 + $0xa0] ss:$16 sps:$4 sm:$0xff]   ;;  %v11361_v42 = vld [vmem:[#allocation59 + $0xc4] ss:$16 sps:$4 sm:$0xff]  }
0x10c0   :  { %v11370_v48 = vld [vmem:[#allocation59 + $0x124] ss:$16 sps:$4 sm:$0xff]   ;;  %v11368_v49 = vld [vmem:[#allocation59 + $0x120] ss:$16 sps:$4 sm:$0xff]  }
0x10c1   :  { %v3274_v53 = vmax.f32 %v3272_v50, 0.0  ;;  %v3273_v55 = vmax.f32 %v3271_v51, 0.0  ;;  %v11373_v50 = vld [vmem:[#allocation59 + $0x144] ss:$16 sps:$4 sm:$0xff]   ;;  %v11371_v51 = vld [vmem:[#allocation59 + $0x140] ss:$16 sps:$4 sm:$0xff]  }
0x10c3   :  { %v3276_v58 = vpack.c.bf16 %v3274_v53, %v3274_v53  ;;  %v3275_v60 = vpack.c.bf16 %v3273_v55, %v3273_v55  ;;  %v11376_v53 = vld [vmem:[#allocation59 + $0x164] ss:$16 sps:$4 sm:$0xff]   ;;  %v11374_v55 = vld [vmem:[#allocation59 + $0x160] ss:$16 sps:$4 sm:$0xff]  }
0x10c5   :  { %3926 = vmatprep.mubr.bf16.mxu0 %v3276_v58  ;;  %v11379_v58 = vld [vmem:[#allocation59 + $0x184] ss:$16 sps:$4 sm:$0xff]  }
0x10c6   :  { %3927 = vmatmul.mubr.bf16.vlgmr.msra.gmra.mrb[44].mxu0 %v3275_v60  ;;  %v11382_v60 = vld [vmem:[#allocation59 + $0x1a4] ss:$16 sps:$4 sm:$0xff]  }
0x10c7   :  { %3936 = vmatpush1.bf16.msra.mxu0 %v11293_v59  ;;  %3967 = vmatprep.mubr.bf16.mxu0 %v13560_v56  ;;  %v11377_v59 = vld [vmem:[#allocation59 + $0x180] ss:$16 sps:$4 sm:$0xff]  }
0x10c8   :  { %3937 = vmatprep.subr.bf16.mxu0 %v11298_v46  ;;  %v11380_v46 = vld [vmem:[#allocation59 + $0x1a0] ss:$16 sps:$4 sm:$0xff]  }
0x10cb   :  { %3938 = vmatpush1.bf16.msra.mxu0 %v11296_v39  ;;  %v11385_v39 = vld [vmem:[#allocation59 + $0x1c4] ss:$16 sps:$4 sm:$0xff]  }
0x10cc   :  { %3939 = vmatprep.subr.bf16.mxu0 %v11301_v61  ;;  %v11383_v61 = vld [vmem:[#allocation59 + $0x1c0] ss:$16 sps:$4 sm:$0xff]  }
0x10cf   :  { %3940 = vmatpush1.bf16.msra.mxu0 %v11299_v62  ;;  %v11388_v62 = vld [vmem:[#allocation59 + $0x1e4] ss:$16 sps:$4 sm:$0xff]  }
0x10d0   :  { %3941 = vmatprep.subr.bf16.mxu0 %v11304_v54  ;;  %v11386_v54 = vld [vmem:[#allocation59 + $0x1e0] ss:$16 sps:$4 sm:$0xff]  }
0x10d3   :  { %3942 = vmatpush1.bf16.msra.mxu0 %v11302_v63  ;;  %v11391_v63 = vld [vmem:[#allocation68 + $0x4] ss:$16 sps:$4 sm:$0xff]  }
0x10d4   :  { %3943 = vmatprep.subr.bf16.mxu0 %v11307_v1  ;;  %v11394_v1 = vld [vmem:[#allocation59 + $0x204] ss:$16 sps:$4 sm:$0xff]   ;;  %4474 = vmatprep.subr.bf16.mxu1 %v11391_v63 }
0x10d5   :  { %v11478_v63 = vld [vmem:[#allocation59 + $0x3c4] ss:$16 sps:$4 sm:$0xff]  }
0x10d7   :  { %3944 = vmatpush1.bf16.msra.mxu0 %v11305_v52  ;;  %v11389_v52 = vld [vmem:[#allocation68] ss:$16 sps:$4 sm:$0xff]  }
0x10d8   :  { %3945 = vmatprep.subr.bf16.mxu0 %v11310_v57  ;;  %v11392_v57 = vld [vmem:[#allocation59 + $0x200] ss:$16 sps:$4 sm:$0xff]   ;;  %4475 = vmatpush1.bf16.msra.mxu1 %v11389_v52 }
0x10d9   :  { %v11476_v52 = vld [vmem:[#allocation59 + $0x3c0] ss:$16 sps:$4 sm:$0xff]  }
0x10db   :  { %3946 = vmatpush1.bf16.msra.mxu0 %v11308_v2  ;;  %v11397_v2 = vld [vmem:[#allocation68 + $0x24] ss:$16 sps:$4 sm:$0xff]  }
0x10dc   :  { %3947 = vmatprep.subr.bf16.mxu0 %v11313_v3  ;;  %v11400_v3 = vld [vmem:[#allocation59 + $0x224] ss:$16 sps:$4 sm:$0xff]   ;;  %4476 = vmatprep.subr.bf16.mxu1 %v11397_v2 }
0x10dd   :  { %v11481_v2 = vld [vmem:[#allocation68 + $0x1e4] ss:$16 sps:$4 sm:$0xff]  }
0x10df   :  { %3948 = vmatpush1.bf16.msra.mxu0 %v11311_v4  ;;  %v11395_v4 = vld [vmem:[#allocation68 + $0x20] ss:$16 sps:$4 sm:$0xff]  }
0x10e0   :  { %3949 = vmatprep.subr.bf16.mxu0 %v11316_v5  ;;  %v11398_v5 = vld [vmem:[#allocation59 + $0x220] ss:$16 sps:$4 sm:$0xff]   ;;  %4477 = vmatpush1.bf16.msra.mxu1 %v11395_v4  ;;  %v11484_v4 = vld [vmem:[#allocation59 + $0x3e4] ss:$16 sps:$4 sm:$0xff]  }
0x10e3   :  { %3950 = vmatpush1.bf16.msra.mxu0 %v11314_v6  ;;  %v11403_v6 = vld [vmem:[#allocation68 + $0x44] ss:$16 sps:$4 sm:$0xff]  }
0x10e4   :  { %3951 = vmatprep.subr.bf16.mxu0 %v11319_v7  ;;  %v11406_v7 = vld [vmem:[#allocation59 + $0x244] ss:$16 sps:$4 sm:$0xff]   ;;  %4478 = vmatprep.subr.bf16.mxu1 %v11403_v6 }
0x10e5   :  { %v11490_v6 = vld [vmem:[#allocation59 + $0x404] ss:$16 sps:$4 sm:$0xff]  }
0x10e7   :  { %3952 = vmatpush1.bf16.msra.mxu0 %v11317_v8  ;;  %v11401_v8 = vld [vmem:[#allocation68 + $0x40] ss:$16 sps:$4 sm:$0xff]  }
0x10e8   :  { %3953 = vmatprep.subr.bf16.mxu0 %v11322_v9  ;;  %v11404_v9 = vld [vmem:[#allocation59 + $0x240] ss:$16 sps:$4 sm:$0xff]   ;;  %4479 = vmatpush1.bf16.msra.mxu1 %v11401_v8 }
0x10eb   :  { %3954 = vmatpush1.bf16.msra.mxu0 %v11320_v10  ;;  %v11409_v10 = vld [vmem:[#allocation68 + $0x64] ss:$16 sps:$4 sm:$0xff]  }
0x10ec   :  { %3955 = vmatprep.subr.bf16.mxu0 %v11325_v12  ;;  %v11412_v12 = vld [vmem:[#allocation59 + $0x264] ss:$16 sps:$4 sm:$0xff]   ;;  %4480 = vmatprep.subr.bf16.mxu1 %v11409_v10 }
0x10ef   :  { %3956 = vmatpush1.bf16.msra.mxu0 %v11323_v31  ;;  %v11407_v31 = vld [vmem:[#allocation68 + $0x60] ss:$16 sps:$4 sm:$0xff]  }
0x10f0   :  { %3957 = vmatprep.subr.bf16.mxu0 %v11328_v14  ;;  %v11410_v14 = vld [vmem:[#allocation59 + $0x260] ss:$16 sps:$4 sm:$0xff]   ;;  %4481 = vmatpush1.bf16.msra.mxu1 %v11407_v31 }
0x10f3   :  { %3958 = vmatpush1.bf16.msra.mxu0 %v11326_v15  ;;  %v11415_v15 = vld [vmem:[#allocation68 + $0x84] ss:$16 sps:$4 sm:$0xff]  }
0x10f4   :  { %3959 = vmatprep.subr.bf16.mxu0 %v11331_v16  ;;  %v11418_v16 = vld [vmem:[#allocation59 + $0x284] ss:$16 sps:$4 sm:$0xff]   ;;  %4482 = vmatprep.subr.bf16.mxu1 %v11415_v15 }
0x10f7   :  { %3960 = vmatpush1.bf16.msra.mxu0 %v11329_v17  ;;  %v11413_v17 = vld [vmem:[#allocation68 + $0x80] ss:$16 sps:$4 sm:$0xff]  }
0x10f8   :  { %3961 = vmatprep.subr.bf16.mxu0 %v11334_v18  ;;  %v11416_v18 = vld [vmem:[#allocation59 + $0x280] ss:$16 sps:$4 sm:$0xff]   ;;  %4483 = vmatpush1.bf16.msra.mxu1 %v11413_v17 }
0x10fb   :  { %3962 = vmatpush1.bf16.msra.mxu0 %v11332_v19  ;;  %v11421_v19 = vld [vmem:[#allocation68 + $0xa4] ss:$16 sps:$4 sm:$0xff]  }
0x10fc   :  { %3963 = vmatprep.subr.bf16.mxu0 %v11337_v20  ;;  %v11424_v20 = vld [vmem:[#allocation59 + $0x2a4] ss:$16 sps:$4 sm:$0xff]   ;;  %4484 = vmatprep.subr.bf16.mxu1 %v11421_v19 }
0x10ff   :  { %3964 = vmatpush1.bf16.msra.mxu0 %v11335_v21  ;;  %v11419_v21 = vld [vmem:[#allocation68 + $0xa0] ss:$16 sps:$4 sm:$0xff]  }
0x1100   :  { %3965 = vmatprep.subr.bf16.mxu0 %v11340_v22  ;;  %v11422_v22 = vld [vmem:[#allocation59 + $0x2a0] ss:$16 sps:$4 sm:$0xff]   ;;  %4485 = vmatpush1.bf16.msra.mxu1 %v11419_v21 }
0x1103   :  { %3966 = vmatpush1.bf16.msra.mxu0 %v11338_v23  ;;  %v11427_v23 = vld [vmem:[#allocation68 + $0xc4] ss:$16 sps:$4 sm:$0xff]  }
0x1104   :  { %5904 = vmatprep.subr.bf16.mxu0 %v11343_v24  ;;  %v11430_v24 = vld [vmem:[#allocation59 + $0x2c4] ss:$16 sps:$4 sm:$0xff]   ;;  %4486 = vmatprep.subr.bf16.mxu1 %v11427_v23 }
0x1106   :  { %3968 = vmatmul.mubr.bf16.vlgmr.msra.gmra.mrb[44].mxu0 %v13560_v56 }
0x1107   :  { %5905 = vmatpush1.bf16.msra.mxu0 %v11341_v26  ;;  %5936 = vmatprep.mubr.bf16.mxu0 %v13560_v56  ;;  %v11425_v26 = vld [vmem:[#allocation68 + $0xc0] ss:$16 sps:$4 sm:$0xff]  }
0x1108   :  { %5906 = vmatprep.subr.bf16.mxu0 %v11346_v27  ;;  %v11428_v27 = vld [vmem:[#allocation59 + $0x2c0] ss:$16 sps:$4 sm:$0xff]   ;;  %4487 = vmatpush1.bf16.msra.mxu1 %v11425_v26 }
0x110b   :  { %5907 = vmatpush1.bf16.msra.mxu0 %v11344_v28  ;;  %v11433_v28 = vld [vmem:[#allocation68 + $0xe4] ss:$16 sps:$4 sm:$0xff]  }
0x110c   :  { %5908 = vmatprep.subr.bf16.mxu0 %v11349_v29  ;;  %v11436_v29 = vld [vmem:[#allocation59 + $0x2e4] ss:$16 sps:$4 sm:$0xff]   ;;  %4488 = vmatprep.subr.bf16.mxu1 %v11433_v28 }
0x110f   :  { %5909 = vmatpush1.bf16.msra.mxu0 %v11347_v30  ;;  %v11431_v30 = vld [vmem:[#allocation68 + $0xe0] ss:$16 sps:$4 sm:$0xff]  }
0x1110   :  { %5910 = vmatprep.subr.bf16.mxu0 %v11352_v32  ;;  %v11434_v32 = vld [vmem:[#allocation59 + $0x2e0] ss:$16 sps:$4 sm:$0xff]   ;;  %4489 = vmatpush1.bf16.msra.mxu1 %v11431_v30 }
0x1113   :  { %5911 = vmatpush1.bf16.msra.mxu0 %v11350_v33  ;;  %v11439_v33 = vld [vmem:[#allocation68 + $0x104] ss:$16 sps:$4 sm:$0xff]  }
0x1114   :  { %5912 = vmatprep.subr.bf16.mxu0 %v11355_v34  ;;  %v11442_v34 = vld [vmem:[#allocation59 + $0x304] ss:$16 sps:$4 sm:$0xff]   ;;  %4490 = vmatprep.subr.bf16.mxu1 %v11439_v33 }
0x1117   :  { %5913 = vmatpush1.bf16.msra.mxu0 %v11353_v36  ;;  %v11437_v36 = vld [vmem:[#allocation68 + $0x100] ss:$16 sps:$4 sm:$0xff]  }
0x1118   :  { %5914 = vmatprep.subr.bf16.mxu0 %v11358_v40  ;;  %v11440_v40 = vld [vmem:[#allocation59 + $0x300] ss:$16 sps:$4 sm:$0xff]   ;;  %4491 = vmatpush1.bf16.msra.mxu1 %v11437_v36 }
0x111b   :  { %5915 = vmatpush1.bf16.msra.mxu0 %v11356_v41  ;;  %v11445_v41 = vld [vmem:[#allocation68 + $0x124] ss:$16 sps:$4 sm:$0xff]  }
0x111c   :  { %5916 = vmatprep.subr.bf16.mxu0 %v11361_v42  ;;  %v11448_v42 = vld [vmem:[#allocation59 + $0x324] ss:$16 sps:$4 sm:$0xff]   ;;  %4492 = vmatprep.subr.bf16.mxu1 %v11445_v41 }
0x111f   :  { %5917 = vmatpush1.bf16.msra.mxu0 %v11359_v43  ;;  %v11443_v43 = vld [vmem:[#allocation68 + $0x120] ss:$16 sps:$4 sm:$0xff]  }
0x1120   :  { %5918 = vmatprep.subr.bf16.mxu0 %v11364_v44  ;;  %v11446_v44 = vld [vmem:[#allocation59 + $0x320] ss:$16 sps:$4 sm:$0xff]   ;;  %4493 = vmatpush1.bf16.msra.mxu1 %v11443_v43 }
0x1123   :  { %5919 = vmatpush1.bf16.msra.mxu0 %v11362_v11  ;;  %v11451_v11 = vld [vmem:[#allocation68 + $0x144] ss:$16 sps:$4 sm:$0xff]  }
0x1124   :  { %5920 = vmatprep.subr.bf16.mxu0 %v11367_v13  ;;  %v11454_v13 = vld [vmem:[#allocation59 + $0x344] ss:$16 sps:$4 sm:$0xff]   ;;  %4494 = vmatprep.subr.bf16.mxu1 %v11451_v11 }
0x1127   :  { %5921 = vmatpush1.bf16.msra.mxu0 %v11365_v47  ;;  %v11449_v47 = vld [vmem:[#allocation68 + $0x140] ss:$16 sps:$4 sm:$0xff]  }
0x1128   :  { %5922 = vmatprep.subr.bf16.mxu0 %v11370_v48  ;;  %v11452_v48 = vld [vmem:[#allocation59 + $0x340] ss:$16 sps:$4 sm:$0xff]   ;;  %4495 = vmatpush1.bf16.msra.mxu1 %v11449_v47 }
0x112b   :  { %5923 = vmatpush1.bf16.msra.mxu0 %v11368_v49  ;;  %v11457_v49 = vld [vmem:[#allocation68 + $0x164] ss:$16 sps:$4 sm:$0xff]  }
0x112c   :  { %5924 = vmatprep.subr.bf16.mxu0 %v11373_v50  ;;  %v11460_v50 = vld [vmem:[#allocation59 + $0x364] ss:$16 sps:$4 sm:$0xff]   ;;  %4496 = vmatprep.subr.bf16.mxu1 %v11457_v49 }
0x112f   :  { %5925 = vmatpush1.bf16.msra.mxu0 %v11371_v51  ;;  %v11455_v51 = vld [vmem:[#allocation68 + $0x160] ss:$16 sps:$4 sm:$0xff]  }
0x1130   :  { %5926 = vmatprep.subr.bf16.mxu0 %v11376_v53  ;;  %v11458_v53 = vld [vmem:[#allocation59 + $0x360] ss:$16 sps:$4 sm:$0xff]   ;;  %4497 = vmatpush1.bf16.msra.mxu1 %v11455_v51 }
0x1133   :  { %5927 = vmatpush1.bf16.msra.mxu0 %v11374_v55  ;;  %v11463_v55 = vld [vmem:[#allocation68 + $0x184] ss:$16 sps:$4 sm:$0xff]  }
0x1134   :  { %5928 = vmatprep.subr.bf16.mxu0 %v11379_v58  ;;  %v11466_v58 = vld [vmem:[#allocation59 + $0x384] ss:$16 sps:$4 sm:$0xff]   ;;  %4498 = vmatprep.subr.bf16.mxu1 %v11463_v55 }
0x1137   :  { %5929 = vmatpush1.bf16.msra.mxu0 %v11377_v59  ;;  %v11461_v59 = vld [vmem:[#allocation68 + $0x180] ss:$16 sps:$4 sm:$0xff]  }
0x1138   :  { %5930 = vmatprep.subr.bf16.mxu0 %v11382_v60  ;;  %v11464_v60 = vld [vmem:[#allocation59 + $0x380] ss:$16 sps:$4 sm:$0xff]   ;;  %4499 = vmatpush1.bf16.msra.mxu1 %v11461_v59 }
0x113b   :  { %5931 = vmatpush1.bf16.msra.mxu0 %v11380_v46  ;;  %v11469_v46 = vld [vmem:[#allocation68 + $0x1a4] ss:$16 sps:$4 sm:$0xff]  }
0x113c   :  { %5932 = vmatprep.subr.bf16.mxu0 %v11385_v39  ;;  %v11472_v39 = vld [vmem:[#allocation59 + $0x3a4] ss:$16 sps:$4 sm:$0xff]   ;;  %4500 = vmatprep.subr.bf16.mxu1 %v11469_v46 }
0x113f   :  { %5933 = vmatpush1.bf16.msra.mxu0 %v11383_v61  ;;  %v11467_v61 = vld [vmem:[#allocation68 + $0x1a0] ss:$16 sps:$4 sm:$0xff]  }
0x1140   :  { %5934 = vmatprep.subr.bf16.mxu0 %v11388_v62  ;;  %v11470_v62 = vld [vmem:[#allocation59 + $0x3a0] ss:$16 sps:$4 sm:$0xff]   ;;  %4501 = vmatpush1.bf16.msra.mxu1 %v11467_v61 }
0x1143   :  { %5935 = vmatpush1.bf16.msra.mxu0 %v11386_v54  ;;  %v11475_v54 = vld [vmem:[#allocation68 + $0x1c4] ss:$16 sps:$4 sm:$0xff]  }
0x1144   :  { %5945 = vmatprep.subr.bf16.mxu0 %v11394_v1  ;;  %v11473_v1 = vld [vmem:[#allocation68 + $0x1c0] ss:$16 sps:$4 sm:$0xff]   ;;  %4502 = vmatprep.subr.bf16.mxu1 %v11475_v54 }
0x1145   :  { %4503 = vmatpush1.bf16.msra.mxu1 %v11473_v1 }
0x1146   :  { %5937 = vmatmul.mubr.bf16.vlgmr.msra.gmra.mrb[48].mxu0 %v13560_v56  ;;  %4504 = vmatprep.subr.bf16.mxu1 %v11481_v2 }
0x1147   :  { %5946 = vmatpush1.bf16.msra.mxu0 %v11392_v57  ;;  %v11479_v57 = vld [vmem:[#allocation68 + $0x1e0] ss:$16 sps:$4 sm:$0xff]  }
0x1148   :  { %5947 = vmatprep.subr.bf16.mxu0 %v11400_v3  ;;  %v11482_v3 = vld [vmem:[#allocation59 + $0x3e0] ss:$16 sps:$4 sm:$0xff]  }
0x1149   :  { %4505 = vmatpush1.bf16.msra.mxu1 %v11479_v57 }
0x114b   :  { %5948 = vmatpush1.bf16.msra.mxu0 %v11398_v5  ;;  %v11487_v5 = vld [vmem:[#allocation68 + $0xc] ss:$16 sps:$4 sm:$0xff]  }
0x114c   :  { %5949 = vmatprep.subr.bf16.mxu0 %v11406_v7  ;;  %4515 = vmatprep.subr.bf16.mxu1 %v11487_v5 }
0x114f   :  { %5950 = vmatpush1.bf16.msra.mxu0 %v11404_v9 }
0x1150   :  { %5951 = vmatprep.subr.bf16.mxu0 %v11412_v12 }
0x1153   :  { %5952 = vmatpush1.bf16.msra.mxu0 %v11410_v14 }
0x1154   :  { %5953 = vmatprep.subr.bf16.mxu0 %v11418_v16 }
0x1157   :  { %5954 = vmatpush1.bf16.msra.mxu0 %v11416_v18 }
0x1158   :  { %5955 = vmatprep.subr.bf16.mxu0 %v11424_v20 }
0x115b   :  { %5956 = vmatpush1.bf16.msra.mxu0 %v11422_v22 }
0x115c   :  { %5957 = vmatprep.subr.bf16.mxu0 %v11430_v24 }
0x115f   :  { %5958 = vmatpush1.bf16.msra.mxu0 %v11428_v27 }
0x1160   :  { %5959 = vmatprep.subr.bf16.mxu0 %v11436_v29 }
0x1163   :  { %5960 = vmatpush1.bf16.msra.mxu0 %v11434_v32 }
0x1164   :  { %5961 = vmatprep.subr.bf16.mxu0 %v11442_v34 }
0x1167   :  { %5962 = vmatpush1.bf16.msra.mxu0 %v11440_v40 }
0x1168   :  { %5963 = vmatprep.subr.bf16.mxu0 %v11448_v42 }
0x116b   :  { %5964 = vmatpush1.bf16.msra.mxu0 %v11446_v44 }
0x116c   :  { %5965 = vmatprep.subr.bf16.mxu0 %v11454_v13 }
0x116f   :  { %5966 = vmatpush1.bf16.msra.mxu0 %v11452_v48 }
0x1170   :  { %5967 = vmatprep.subr.bf16.mxu0 %v11460_v50 }
0x1173   :  { %5968 = vmatpush1.bf16.msra.mxu0 %v11458_v53 }
0x1174   :  { %5969 = vmatprep.subr.bf16.mxu0 %v11466_v58 }
0x1177   :  { %5970 = vmatpush1.bf16.msra.mxu0 %v11464_v60 }
0x1178   :  { %5971 = vmatprep.subr.bf16.mxu0 %v11472_v39 }
0x117b   :  { %5972 = vmatpush1.bf16.msra.mxu0 %v11470_v62  ;;  %v4012_v62 = vld [vmem:[#allocation50] sm:$0x3] }
0x117c   :  { %5973 = vmatprep.subr.bf16.mxu0 %v11478_v63 }
0x117f   :  { %5974 = vmatpush1.bf16.msra.mxu0 %v11476_v52 }
0x1180   :  { %5975 = vmatprep.subr.bf16.mxu0 %v11484_v4 }
0x1183   :  { %5976 = vmatpush1.bf16.msra.mxu0 %v11482_v3 }
0x1184   :  { %5986 = vmatprep.subr.bf16.mxu0 %v11490_v6 }
0x11d9   :  { %v3969_v7 = vpop.f32.mrb[44].mxu0 }
0x11da   :  { %v3976_v8 = vsel %vm954_vm9, %v3969_v7, 0.0  ;;  %v3971_v9 = vpop.f32.mrb[45].mxu0 }
0x11db   :  { %v3977_v10 = vrot.slane %v3976_v8, 4  ;;  %v3983_v12 = vsel %vm954_vm9, %v3971_v9, 0.0  ;;  %v3973_v31 = vpop.f32.mrb[46].mxu0 }
0x11dc   :  { %v3984_v14 = vrot.slane %v3983_v12, 4  ;;  %v3974_v15 = vpop.f32.mrb[47].mxu0 }
0x11dd   :  { %v3978_v16 = vadd.f32 %v3977_v10, %v3976_v8  ;;  %v4036_v8 = vld [vmem:[#allocation52] sm:$0x3] }
0x11de   :  { %v3985_v17 = vadd.f32 %v3984_v14, %v3983_v12 }
0x11df   :  { %v3979_v18 = vrot.slane %v3978_v16, 2 }
0x11e0   :  { %v3986_v19 = vrot.slane %v3985_v17, 2 }
0x11e1   :  { %v3980_v20 = vadd.f32 %v3979_v18, %v3978_v16 }
0x11e2   :  { %v3987_v21 = vadd.f32 %v3986_v19, %v3985_v17 }
0x11e3   :  { %v3981_v22 = vrot.slane %v3980_v20, 1 }
0x11e4   :  { %v3988_v23 = vrot.slane %v3987_v21, 1 }
0x11e5   :  { %v3982_v24 = vadd.f32 %v3981_v22, %v3980_v20  ;;  %v11485_v20 = vld [vmem:[#allocation68 + $0x8] ss:$16 sps:$4 sm:$0xff]  }
0x11e6   :  { %v3989_v26 = vadd.f32 %v3988_v23, %v3987_v21  ;;  %v11488_v21 = vld [vmem:[#allocation59 + $0x400] ss:$16 sps:$4 sm:$0xff]   ;;  %v11493_v23 = vld [vmem:[#allocation68 + $0x2c] ss:$16 sps:$4 sm:$0xff]  }
0x11e7   :  { %v3990_v27 = vmul.f32 0.5, %v3982_v24  ;;  %v11496_v24 = vld [vmem:[#allocation59 + $0x424] ss:$16 sps:$4 sm:$0xff]  }
0x11e8   :  { %v3991_v28 = vmul.f32 0.5, %v3989_v26  ;;  %v11499_v26 = vld [vmem:[#allocation68 + $0x4c] ss:$16 sps:$4 sm:$0xff]  }
0x11e9   :  { %v3992_v29 = vsub.f32 %v3969_v7, %v3990_v27 }
0x11ea   :  { %v3993_v30 = vsub.f32 %v3971_v9, %v3991_v28 }
0x11eb   :  { %v3994_v32 = vmul.f32 %v3992_v29, %v3992_v29  ;;  %v11500_v29 = vld [vmem:[#allocation59 + $0x440] ss:$16 sps:$4 sm:$0xff]  }
0x11ec   :  { %v3995_v33 = vmul.f32 %v3993_v30, %v3993_v30  ;;  %v11505_v30 = vld [vmem:[#allocation68 + $0x6c] ss:$16 sps:$4 sm:$0xff]  }
0x11ed   :  { %v3996_v34 = vsel %vm954_vm9, %v3994_v32, 0.0  ;;  %v11508_v32 = vld [vmem:[#allocation59 + $0x464] ss:$16 sps:$4 sm:$0xff]  }
0x11ee   :  { %v3997_v36 = vrot.slane %v3996_v34, 4  ;;  %v4003_v40 = vsel %vm954_vm9, %v3995_v33, 0.0  ;;  %v11503_v33 = vld [vmem:[#allocation68 + $0x68] ss:$16 sps:$4 sm:$0xff]  }
0x11ef   :  { %v4004_v41 = vrot.slane %v4003_v40, 4 }
0x11f0   :  { %v3998_v42 = vadd.f32 %v3997_v36, %v3996_v34  ;;  %v11506_v34 = vld [vmem:[#allocation59 + $0x460] ss:$16 sps:$4 sm:$0xff]   ;;  %v11511_v36 = vld [vmem:[#allocation68 + $0x8c] ss:$16 sps:$4 sm:$0xff]  }
0x11f1   :  { %v4005_v43 = vadd.f32 %v4004_v41, %v4003_v40  ;;  %v11514_v40 = vld [vmem:[#allocation59 + $0x484] ss:$16 sps:$4 sm:$0xff]   ;;  %v11509_v41 = vld [vmem:[#allocation68 + $0x88] ss:$16 sps:$4 sm:$0xff]  }
0x11f2   :  { %v3999_v44 = vrot.slane %v3998_v42, 2 }
0x11f3   :  { %v4006_v11 = vrot.slane %v4005_v43, 2 }
0x11f4   :  { %v4000_v13 = vadd.f32 %v3999_v44, %v3998_v42  ;;  %v11512_v42 = vld [vmem:[#allocation59 + $0x480] ss:$16 sps:$4 sm:$0xff]   ;;  %v11520_v44 = vld [vmem:[#allocation59 + $0x4a4] ss:$16 sps:$4 sm:$0xff]  }
0x11f5   :  { %v4007_v47 = vadd.f32 %v4006_v11, %v4005_v43  ;;  %v11517_v43 = vld [vmem:[#allocation68 + $0xac] ss:$16 sps:$4 sm:$0xff]   ;;  %v11515_v11 = vld [vmem:[#allocation68 + $0xa8] ss:$16 sps:$4 sm:$0xff]  }
0x11f6   :  { %v4001_v48 = vrot.slane %v4000_v13, 1 }
0x11f7   :  { %v4008_v49 = vrot.slane %v4007_v47, 1 }
0x11f8   :  { %v4002_v50 = vadd.f32 %v4001_v48, %v4000_v13  ;;  %v11518_v13 = vld [vmem:[#allocation59 + $0x4a0] ss:$16 sps:$4 sm:$0xff]   ;;  %v11526_v48 = vld [vmem:[#allocation59 + $0x4c4] ss:$16 sps:$4 sm:$0xff]  }
0x11f9   :  { %v4009_v51 = vadd.f32 %v4008_v49, %v4007_v47  ;;  %v11523_v47 = vld [vmem:[#allocation68 + $0xcc] ss:$16 sps:$4 sm:$0xff]   ;;  %v11521_v49 = vld [vmem:[#allocation68 + $0xc8] ss:$16 sps:$4 sm:$0xff]  }
0x11fa   :  { %v4010_v53 = vmul.f32 0.5, %v4002_v50  ;;  %v11524_v50 = vld [vmem:[#allocation59 + $0x4c0] ss:$16 sps:$4 sm:$0xff]  }
0x11fb   :  { %v4011_v55 = vmul.f32 0.5, %v4009_v51  ;;  %v11529_v51 = vld [vmem:[#allocation68 + $0xec] ss:$16 sps:$4 sm:$0xff]  }
0x11fc   :  { %v4013_v58 = vadd.f32 1e-05, %v4010_v53  ;;  %v11532_v53 = vld [vmem:[#allocation59 + $0x4e4] ss:$16 sps:$4 sm:$0xff]  }
0x11fd   :  { %v4014_v59 = vadd.f32 1e-05, %v4011_v55  ;;  %v11527_v55 = vld [vmem:[#allocation68 + $0xe8] ss:$16 sps:$4 sm:$0xff]  }
0x11fe   :  { %12321 = vrsqrt.f32 %v4013_v58  ;;  %v11530_v58 = vld [vmem:[#allocation59 + $0x4e0] ss:$16 sps:$4 sm:$0xff]  }
0x11ff   :  { %12323 = vrsqrt.f32 %v4014_v59  ;;  %v11535_v59 = vld [vmem:[#allocation68 + $0x10c] ss:$16 sps:$4 sm:$0xff]  }
0x1208   :  { %v12322_v60 = vpop.eup %12321 }
0x1209   :  { %v12324_v46 = vpop.eup %12323 }
0x120a   :  { %v4019_v39 = vcombine.low %v12322_v60, %v12324_v46  ;;  %v11538_v60 = vld [vmem:[#allocation59 + $0x504] ss:$16 sps:$4 sm:$0xff]   ;;  %v11533_v46 = vld [vmem:[#allocation68 + $0x108] ss:$16 sps:$4 sm:$0xff]  }
0x120c   :  { %v4026_v61 = vrot.slane %v4019_v39, %v14287_v0  ;;  %v11536_v39 = vld [vmem:[#allocation59 + $0x500] ss:$16 sps:$4 sm:$0xff]  }
0x120e   :  { %v4033_v54 = vrot.slane %v4026_v61, %v14287_v0  ;;  %v11541_v61 = vld [vmem:[#allocation68 + $0x12c] ss:$16 sps:$4 sm:$0xff]  }
0x1210   :  { %v4035_v63 = vmul.f32 %v4033_v54, %v4012_v62  ;;  %v11544_v62 = vld [vmem:[#allocation59 + $0x524] ss:$16 sps:$4 sm:$0xff]   ;;  %v11539_v54 = vld [vmem:[#allocation68 + $0x128] ss:$16 sps:$4 sm:$0xff]  }
0x1212   :  { %v4041_v1 = vrot.slane %v4035_v63, %v14077_v37  ;;  %v4045_v52 = vrot.slane %v4035_v63, %v14292_v25  ;;  %v11542_v63 = vld [vmem:[#allocation59 + $0x520] ss:$16 sps:$4 sm:$0xff]  }
0x1214   :  { %v4048_v57 = vmul.f32 %v4041_v1, %v3990_v27  ;;  %v4049_v2 = vmul.f32 %v4045_v52, %v3991_v28  ;;  %v4069_v3 = vmul.f32 %v4041_v1, %v3969_v7  ;;  %v4070_v4 = vmul.f32 %v4045_v52, %v3971_v9  ;;  %v11502_v27 = vld [vmem:[#allocation59 + $0x444] ss:$16 sps:$4 sm:$0xff]   ;;  %v11497_v28 = vld [vmem:[#allocation68 + $0x48] ss:$16 sps:$4 sm:$0xff]   ;;  %v11547_v1 = vld [vmem:[#allocation68 + $0x14c] ss:$16 sps:$4 sm:$0xff]  }
0x1215   :  { %v11550_v52 = vld [vmem:[#allocation59 + $0x544] ss:$16 sps:$4 sm:$0xff]  }
0x1216   :  { %v4052_v5 = vcombine.low %v4048_v57, %v4049_v2  ;;  %v11545_v57 = vld [vmem:[#allocation68 + $0x148] ss:$16 sps:$4 sm:$0xff]   ;;  %v11548_v2 = vld [vmem:[#allocation59 + $0x540] ss:$16 sps:$4 sm:$0xff]  }
0x1218   :  { %v4059_v6 = vrot.slane %v4052_v5, %v14287_v0  ;;  %v11551_v5 = vld [vmem:[#allocation68 + $0x168] ss:$16 sps:$4 sm:$0xff]  }
0x121a   :  { %v4066_v10 = vrot.slane %v4059_v6, %v14287_v0  ;;  %v11554_v6 = vld [vmem:[#allocation59 + $0x560] ss:$16 sps:$4 sm:$0xff]  }
0x121c   :  { %v4068_v12 = vsub.f32 %v4036_v8, %v4066_v10  ;;  %v11559_v8 = vld [vmem:[#allocation68 + $0x18c] ss:$16 sps:$4 sm:$0xff]   ;;  %v11562_v10 = vld [vmem:[#allocation59 + $0x584] ss:$16 sps:$4 sm:$0xff]  }
0x121e   :  { %v4075_v31 = vrot.slane %v4068_v12, %v14077_v37  ;;  %v4079_v14 = vrot.slane %v4068_v12, %v14292_v25  ;;  %v11557_v12 = vld [vmem:[#allocation68 + $0x188] ss:$16 sps:$4 sm:$0xff]  }
0x1220   :  { %v4083_v15 = vadd.f32 %v4079_v14, %v4070_v4  ;;  %v4082_v16 = vadd.f32 %v4075_v31, %v4069_v3  ;;  %v11553_v3 = vld [vmem:[#allocation68 + $0x16c] ss:$16 sps:$4 sm:$0xff]   ;;  %v11556_v4 = vld [vmem:[#allocation59 + $0x564] ss:$16 sps:$4 sm:$0xff]   ;;  %v11560_v31 = vld [vmem:[#allocation59 + $0x580] ss:$16 sps:$4 sm:$0xff]  }
0x1221   :  { %v11565_v14 = vld [vmem:[#allocation68 + $0x1ac] ss:$16 sps:$4 sm:$0xff]  }
0x1222   :  { %v4085_v17 = vadd.f32 %v4083_v15, %v14304_v45  ;;  %v4084_v18 = vadd.f32 %v4082_v16, %v14306_v38  ;;  %v11491_v45 = vld [vmem:[#allocation68 + $0x28] ss:$16 sps:$4 sm:$0xff]   ;;  %v11494_v38 = vld [vmem:[#allocation59 + $0x420] ss:$16 sps:$4 sm:$0xff]   ;;  %v11568_v15 = vld [vmem:[#allocation59 + $0x5a4] ss:$16 sps:$4 sm:$0xff]  }
0x1223   :  { %v11563_v16 = vld [vmem:[#allocation68 + $0x1a8] ss:$16 sps:$4 sm:$0xff]  }
0x1224   :  { %v4087_v19 = vmax.f32 %v4085_v17, 0.0  ;;  %v4086_v7 = vmax.f32 %v4084_v18, 0.0  ;;  %v11566_v17 = vld [vmem:[#allocation59 + $0x5a0] ss:$16 sps:$4 sm:$0xff]   ;;  %v11571_v18 = vld [vmem:[#allocation68 + $0x1cc] ss:$16 sps:$4 sm:$0xff]  }
0x1226   :  { %v14338_v9 = vpack.c.bf16 %v4087_v19, %v4087_v19  ;;  %v14340_v22 = vpack.c.bf16 %v4086_v7, %v4086_v7  ;;  %v11574_v19 = vld [vmem:[#allocation59 + $0x5c4] ss:$16 sps:$4 sm:$0xff]   ;;  %v11569_v7 = vld [vmem:[#allocation68 + $0x1c8] ss:$16 sps:$4 sm:$0xff]  }
0x1228   :  { %4506 = vmatprep.mubr.bf16.mxu1 %v14338_v9  ;;  %5977 = vmatprep.mubr.bf16.mxu0 %v14338_v9 }
0x1229   :  { %4507 = vmatmul.mubr.bf16.vlgmr.msra.gmra.mrb[44].mxu1 %v14340_v22  ;;  %5978 = vmatmul.mubr.bf16.vlgmr.msra.gmra.mrb[48].mxu0 %v14340_v22 }
0x122a   :  { %4516 = vmatpush1.bf16.msra.mxu1 %v11485_v20  ;;  %5987 = vmatpush1.bf16.msra.mxu0 %v11488_v21  ;;  %v11572_v20 = vld [vmem:[#allocation59 + $0x5c0] ss:$16 sps:$4 sm:$0xff]   ;;  %v11577_v21 = vld [vmem:[#allocation68 + $0x1ec] ss:$16 sps:$4 sm:$0xff]  }
0x122b   :  { %4547 = vmatprep.mubr.bf16.mxu1 %v14338_v9  ;;  %4517 = vmatprep.subr.bf16.mxu1 %v11493_v23  ;;  %v11580_v23 = vld [vmem:[#allocation59 + $0x5e4] ss:$16 sps:$4 sm:$0xff]  }
0x122c   :  { %5988 = vmatprep.subr.bf16.mxu0 %v11496_v24  ;;  %6018 = vmatprep.mubr.bf16.mxu0 %v13560_v56  ;;  %v11575_v24 = vld [vmem:[#allocation68 + $0x1e8] ss:$16 sps:$4 sm:$0xff]  }
0x122e   :  { %4518 = vmatpush1.bf16.msra.mxu1 %v11491_v45  ;;  %5989 = vmatpush1.bf16.msra.mxu0 %v11494_v38  ;;  %v11578_v45 = vld [vmem:[#allocation59 + $0x5e0] ss:$16 sps:$4 sm:$0xff]   ;;  %v11583_v38 = vld [vmem:[#allocation59 + $0xc] ss:$16 sps:$4 sm:$0xff]  }
0x122f   :  { %4519 = vmatprep.subr.bf16.mxu1 %v11499_v26  ;;  %5990 = vmatprep.subr.bf16.mxu0 %v11502_v27  ;;  %v11581_v26 = vld [vmem:[#allocation59 + $0x8] ss:$16 sps:$4 sm:$0xff]   ;;  %v11586_v27 = vld [vmem:[#allocation59 + $0x2c] ss:$16 sps:$4 sm:$0xff]  }
0x1232   :  { %4520 = vmatpush1.bf16.msra.mxu1 %v11497_v28  ;;  %5991 = vmatpush1.bf16.msra.mxu0 %v11500_v29  ;;  %v11584_v28 = vld [vmem:[#allocation59 + $0x28] ss:$16 sps:$4 sm:$0xff]   ;;  %v11589_v29 = vld [vmem:[#allocation59 + $0x4c] ss:$16 sps:$4 sm:$0xff]  }
0x1233   :  { %4521 = vmatprep.subr.bf16.mxu1 %v11505_v30  ;;  %5992 = vmatprep.subr.bf16.mxu0 %v11508_v32  ;;  %v11587_v30 = vld [vmem:[#allocation59 + $0x48] ss:$16 sps:$4 sm:$0xff]   ;;  %v11592_v32 = vld [vmem:[#allocation59 + $0x6c] ss:$16 sps:$4 sm:$0xff]  }
0x1236   :  { %4522 = vmatpush1.bf16.msra.mxu1 %v11503_v33  ;;  %5993 = vmatpush1.bf16.msra.mxu0 %v11506_v34  ;;  %v11590_v33 = vld [vmem:[#allocation59 + $0x68] ss:$16 sps:$4 sm:$0xff]   ;;  %v11595_v34 = vld [vmem:[#allocation59 + $0x8c] ss:$16 sps:$4 sm:$0xff]  }
0x1237   :  { %4523 = vmatprep.subr.bf16.mxu1 %v11511_v36  ;;  %5994 = vmatprep.subr.bf16.mxu0 %v11514_v40  ;;  %v11593_v36 = vld [vmem:[#allocation59 + $0x88] ss:$16 sps:$4 sm:$0xff]   ;;  %v11598_v40 = vld [vmem:[#allocation59 + $0xac] ss:$16 sps:$4 sm:$0xff]  }
0x123a   :  { %4524 = vmatpush1.bf16.msra.mxu1 %v11509_v41  ;;  %5995 = vmatpush1.bf16.msra.mxu0 %v11512_v42  ;;  %v11596_v41 = vld [vmem:[#allocation59 + $0xa8] ss:$16 sps:$4 sm:$0xff]   ;;  %v11601_v42 = vld [vmem:[#allocation59 + $0xcc] ss:$16 sps:$4 sm:$0xff]  }
0x123b   :  { %4525 = vmatprep.subr.bf16.mxu1 %v11517_v43  ;;  %5996 = vmatprep.subr.bf16.mxu0 %v11520_v44  ;;  %v11599_v43 = vld [vmem:[#allocation59 + $0xc8] ss:$16 sps:$4 sm:$0xff]   ;;  %v11604_v44 = vld [vmem:[#allocation59 + $0xec] ss:$16 sps:$4 sm:$0xff]  }
0x123e   :  { %4526 = vmatpush1.bf16.msra.mxu1 %v11515_v11  ;;  %5997 = vmatpush1.bf16.msra.mxu0 %v11518_v13  ;;  %v11602_v11 = vld [vmem:[#allocation59 + $0xe8] ss:$16 sps:$4 sm:$0xff]   ;;  %v11607_v13 = vld [vmem:[#allocation59 + $0x10c] ss:$16 sps:$4 sm:$0xff]  }
0x123f   :  { %4527 = vmatprep.subr.bf16.mxu1 %v11523_v47  ;;  %5998 = vmatprep.subr.bf16.mxu0 %v11526_v48  ;;  %v11605_v47 = vld [vmem:[#allocation59 + $0x108] ss:$16 sps:$4 sm:$0xff]   ;;  %v11610_v48 = vld [vmem:[#allocation59 + $0x12c] ss:$16 sps:$4 sm:$0xff]  }
0x1242   :  { %4528 = vmatpush1.bf16.msra.mxu1 %v11521_v49  ;;  %5999 = vmatpush1.bf16.msra.mxu0 %v11524_v50  ;;  %v11608_v49 = vld [vmem:[#allocation59 + $0x128] ss:$16 sps:$4 sm:$0xff]   ;;  %v11613_v50 = vld [vmem:[#allocation59 + $0x14c] ss:$16 sps:$4 sm:$0xff]  }
0x1243   :  { %4529 = vmatprep.subr.bf16.mxu1 %v11529_v51  ;;  %6000 = vmatprep.subr.bf16.mxu0 %v11532_v53  ;;  %v11611_v51 = vld [vmem:[#allocation59 + $0x148] ss:$16 sps:$4 sm:$0xff]   ;;  %v11616_v53 = vld [vmem:[#allocation59 + $0x16c] ss:$16 sps:$4 sm:$0xff]  }
0x1246   :  { %4530 = vmatpush1.bf16.msra.mxu1 %v11527_v55  ;;  %6001 = vmatpush1.bf16.msra.mxu0 %v11530_v58  ;;  %v11614_v55 = vld [vmem:[#allocation59 + $0x168] ss:$16 sps:$4 sm:$0xff]   ;;  %v11619_v58 = vld [vmem:[#allocation59 + $0x18c] ss:$16 sps:$4 sm:$0xff]  }
0x1247   :  { %4531 = vmatprep.subr.bf16.mxu1 %v11535_v59  ;;  %6002 = vmatprep.subr.bf16.mxu0 %v11538_v60  ;;  %v11617_v59 = vld [vmem:[#allocation59 + $0x188] ss:$16 sps:$4 sm:$0xff]   ;;  %v11622_v60 = vld [vmem:[#allocation59 + $0x1ac] ss:$16 sps:$4 sm:$0xff]  }
0x124a   :  { %4532 = vmatpush1.bf16.msra.mxu1 %v11533_v46  ;;  %6003 = vmatpush1.bf16.msra.mxu0 %v11536_v39  ;;  %v11620_v46 = vld [vmem:[#allocation59 + $0x1a8] ss:$16 sps:$4 sm:$0xff]   ;;  %v11625_v39 = vld [vmem:[#allocation59 + $0x1cc] ss:$16 sps:$4 sm:$0xff]  }
0x124b   :  { %4533 = vmatprep.subr.bf16.mxu1 %v11541_v61  ;;  %6004 = vmatprep.subr.bf16.mxu0 %v11544_v62  ;;  %v11623_v61 = vld [vmem:[#allocation59 + $0x1c8] ss:$16 sps:$4 sm:$0xff]   ;;  %v11628_v62 = vld [vmem:[#allocation59 + $0x1ec] ss:$16 sps:$4 sm:$0xff]  }
0x124e   :  { %4534 = vmatpush1.bf16.msra.mxu1 %v11539_v54  ;;  %6005 = vmatpush1.bf16.msra.mxu0 %v11542_v63  ;;  %v11626_v54 = vld [vmem:[#allocation59 + $0x1e8] ss:$16 sps:$4 sm:$0xff]   ;;  %v11631_v63 = vld [vmem:[#allocation59 + $0x20c] ss:$16 sps:$4 sm:$0xff]  }
0x124f   :  { %4535 = vmatprep.subr.bf16.mxu1 %v11547_v1  ;;  %6006 = vmatprep.subr.bf16.mxu0 %v11550_v52  ;;  %v11629_v1 = vld [vmem:[#allocation59 + $0x208] ss:$16 sps:$4 sm:$0xff]   ;;  %v11634_v52 = vld [vmem:[#allocation59 + $0x22c] ss:$16 sps:$4 sm:$0xff]  }
0x1252   :  { %4536 = vmatpush1.bf16.msra.mxu1 %v11545_v57  ;;  %6007 = vmatpush1.bf16.msra.mxu0 %v11548_v2  ;;  %v11632_v57 = vld [vmem:[#allocation59 + $0x228] ss:$16 sps:$4 sm:$0xff]   ;;  %v11637_v2 = vld [vmem:[#allocation59 + $0x24c] ss:$16 sps:$4 sm:$0xff]  }
0x1253   :  { %4537 = vmatprep.subr.bf16.mxu1 %v11553_v3  ;;  %6008 = vmatprep.subr.bf16.mxu0 %v11556_v4  ;;  %v11635_v3 = vld [vmem:[#allocation59 + $0x248] ss:$16 sps:$4 sm:$0xff]   ;;  %v11640_v4 = vld [vmem:[#allocation59 + $0x26c] ss:$16 sps:$4 sm:$0xff]  }
0x1256   :  { %4538 = vmatpush1.bf16.msra.mxu1 %v11551_v5  ;;  %6009 = vmatpush1.bf16.msra.mxu0 %v11554_v6  ;;  %v11638_v5 = vld [vmem:[#allocation59 + $0x268] ss:$16 sps:$4 sm:$0xff]   ;;  %v11643_v6 = vld [vmem:[#allocation59 + $0x28c] ss:$16 sps:$4 sm:$0xff]  }
0x1257   :  { %4539 = vmatprep.subr.bf16.mxu1 %v11559_v8  ;;  %6010 = vmatprep.subr.bf16.mxu0 %v11562_v10  ;;  %v11641_v8 = vld [vmem:[#allocation59 + $0x288] ss:$16 sps:$4 sm:$0xff]   ;;  %v11646_v10 = vld [vmem:[#allocation59 + $0x2ac] ss:$16 sps:$4 sm:$0xff]  }
0x125a   :  { %4540 = vmatpush1.bf16.msra.mxu1 %v11557_v12  ;;  %6011 = vmatpush1.bf16.msra.mxu0 %v11560_v31  ;;  %v11644_v12 = vld [vmem:[#allocation59 + $0x2a8] ss:$16 sps:$4 sm:$0xff]   ;;  %v11649_v31 = vld [vmem:[#allocation59 + $0x2cc] ss:$16 sps:$4 sm:$0xff]  }
0x125b   :  { %4541 = vmatprep.subr.bf16.mxu1 %v11565_v14  ;;  %6012 = vmatprep.subr.bf16.mxu0 %v11568_v15  ;;  %v11652_v14 = vld [vmem:[#allocation59 + $0x2ec] ss:$16 sps:$4 sm:$0xff]   ;;  %v11650_v15 = vld [vmem:[#allocation59 + $0x2e8] ss:$16 sps:$4 sm:$0xff]  }
0x125e   :  { %4542 = vmatpush1.bf16.msra.mxu1 %v11563_v16  ;;  %6013 = vmatpush1.bf16.msra.mxu0 %v11566_v17  ;;  %v11655_v16 = vld [vmem:[#allocation59 + $0x30c] ss:$16 sps:$4 sm:$0xff]   ;;  %v11653_v17 = vld [vmem:[#allocation59 + $0x308] ss:$16 sps:$4 sm:$0xff]  }
0x125f   :  { %4543 = vmatprep.subr.bf16.mxu1 %v11571_v18  ;;  %6014 = vmatprep.subr.bf16.mxu0 %v11574_v19  ;;  %v11658_v18 = vld [vmem:[#allocation59 + $0x32c] ss:$16 sps:$4 sm:$0xff]   ;;  %v11656_v19 = vld [vmem:[#allocation59 + $0x328] ss:$16 sps:$4 sm:$0xff]  }
0x1262   :  { %4544 = vmatpush1.bf16.msra.mxu1 %v11569_v7  ;;  %6015 = vmatpush1.bf16.msra.mxu0 %v11572_v20  ;;  %v11661_v7 = vld [vmem:[#allocation59 + $0x34c] ss:$16 sps:$4 sm:$0xff]   ;;  %v11659_v20 = vld [vmem:[#allocation59 + $0x348] ss:$16 sps:$4 sm:$0xff]  }
0x1263   :  { %4545 = vmatprep.subr.bf16.mxu1 %v11577_v21  ;;  %6016 = vmatprep.subr.bf16.mxu0 %v11580_v23  ;;  %v11664_v21 = vld [vmem:[#allocation59 + $0x36c] ss:$16 sps:$4 sm:$0xff]   ;;  %v11662_v23 = vld [vmem:[#allocation59 + $0x368] ss:$16 sps:$4 sm:$0xff]  }
0x1266   :  { %4546 = vmatpush1.bf16.msra.mxu1 %v11575_v24  ;;  %6017 = vmatpush1.bf16.msra.mxu0 %v11578_v45  ;;  %v11667_v24 = vld [vmem:[#allocation59 + $0x38c] ss:$16 sps:$4 sm:$0xff]   ;;  %v11665_v45 = vld [vmem:[#allocation59 + $0x388] ss:$16 sps:$4 sm:$0xff]  }
0x1267   :  { %6027 = vmatprep.subr.bf16.mxu1 %v11583_v38  ;;  %v11670_v38 = vld [vmem:[#allocation59 + $0x3ac] ss:$16 sps:$4 sm:$0xff]  }
0x1269   :  { %4548 = vmatmul.mubr.bf16.vlgmr.msra.gmra.mrb[48].mxu1 %v14340_v22  ;;  %6019 = vmatmul.mubr.bf16.vlgmr.msra.gmra.mrb[48].mxu0 %v13560_v56 }
0x126a   :  { %6028 = vmatpush1.bf16.msra.mxu1 %v11581_v26  ;;  %6059 = vmatprep.mubr.bf16.mxu1 %v13560_v56  ;;  %v11668_v26 = vld [vmem:[#allocation59 + $0x3a8] ss:$16 sps:$4 sm:$0xff]  }
0x126b   :  { %6029 = vmatprep.subr.bf16.mxu1 %v11586_v27  ;;  %8690 = vmatprep.mubr.bf16.mxu0 %v13560_v56  ;;  %v11673_v27 = vld [vmem:[#allocation59 + $0x3cc] ss:$16 sps:$4 sm:$0xff]  }
0x126e   :  { %6030 = vmatpush1.bf16.msra.mxu1 %v11584_v28  ;;  %v11671_v28 = vld [vmem:[#allocation59 + $0x3c8] ss:$16 sps:$4 sm:$0xff]  }
0x126f   :  { %6031 = vmatprep.subr.bf16.mxu1 %v11589_v29  ;;  %v11676_v29 = vld [vmem:[#allocation59 + $0x3ec] ss:$16 sps:$4 sm:$0xff]  }
0x1272   :  { %6032 = vmatpush1.bf16.msra.mxu1 %v11587_v30  ;;  %v11674_v30 = vld [vmem:[#allocation59 + $0x3e8] ss:$16 sps:$4 sm:$0xff]  }
0x1273   :  { %6033 = vmatprep.subr.bf16.mxu1 %v11592_v32  ;;  %v11679_v32 = vld [vmem:[#allocation59 + $0x40c] ss:$16 sps:$4 sm:$0xff]  }
0x1276   :  { %6034 = vmatpush1.bf16.msra.mxu1 %v11590_v33  ;;  %v11677_v33 = vld [vmem:[#allocation59 + $0x408] ss:$16 sps:$4 sm:$0xff]  }
0x1277   :  { %6035 = vmatprep.subr.bf16.mxu1 %v11595_v34  ;;  %v11682_v34 = vld [vmem:[#allocation59 + $0x42c] ss:$16 sps:$4 sm:$0xff]  }
0x127a   :  { %6036 = vmatpush1.bf16.msra.mxu1 %v11593_v36  ;;  %v11680_v36 = vld [vmem:[#allocation59 + $0x428] ss:$16 sps:$4 sm:$0xff]  }
0x127b   :  { %6037 = vmatprep.subr.bf16.mxu1 %v11598_v40  ;;  %v11685_v40 = vld [vmem:[#allocation59 + $0x44c] ss:$16 sps:$4 sm:$0xff]  }
0x127e   :  { %6038 = vmatpush1.bf16.msra.mxu1 %v11596_v41  ;;  %v11683_v41 = vld [vmem:[#allocation59 + $0x448] ss:$16 sps:$4 sm:$0xff]  }
0x127f   :  { %6039 = vmatprep.subr.bf16.mxu1 %v11601_v42  ;;  %v11688_v42 = vld [vmem:[#allocation59 + $0x46c] ss:$16 sps:$4 sm:$0xff]  }
0x1282   :  { %6040 = vmatpush1.bf16.msra.mxu1 %v11599_v43  ;;  %v11686_v43 = vld [vmem:[#allocation59 + $0x468] ss:$16 sps:$4 sm:$0xff]  }
0x1283   :  { %6041 = vmatprep.subr.bf16.mxu1 %v11604_v44  ;;  %v11691_v44 = vld [vmem:[#allocation59 + $0x48c] ss:$16 sps:$4 sm:$0xff]  }
0x1286   :  { %6042 = vmatpush1.bf16.msra.mxu1 %v11602_v11  ;;  %v11689_v11 = vld [vmem:[#allocation59 + $0x488] ss:$16 sps:$4 sm:$0xff]  }
0x1287   :  { %6043 = vmatprep.subr.bf16.mxu1 %v11607_v13  ;;  %v11694_v13 = vld [vmem:[#allocation59 + $0x4ac] ss:$16 sps:$4 sm:$0xff]  }
0x128a   :  { %6044 = vmatpush1.bf16.msra.mxu1 %v11605_v47  ;;  %v11697_v47 = vld [vmem:[#allocation59 + $0x4cc] ss:$16 sps:$4 sm:$0xff]  }
0x128b   :  { %6045 = vmatprep.subr.bf16.mxu1 %v11610_v48 }
0x128e   :  { %6046 = vmatpush1.bf16.msra.mxu1 %v11608_v49 }
0x128f   :  { %6047 = vmatprep.subr.bf16.mxu1 %v11613_v50 }
0x1292   :  { %6048 = vmatpush1.bf16.msra.mxu1 %v11611_v51 }
0x1293   :  { %6049 = vmatprep.subr.bf16.mxu1 %v11616_v53 }
0x1296   :  { %6050 = vmatpush1.bf16.msra.mxu1 %v11614_v55 }
0x1297   :  { %6051 = vmatprep.subr.bf16.mxu1 %v11619_v58  ;;  %v11695_v58 = vld [vmem:[#allocation59 + $0x4c8] ss:$16 sps:$4 sm:$0xff]  }
0x129a   :  { %6052 = vmatpush1.bf16.msra.mxu1 %v11617_v59 }
0x129b   :  { %6053 = vmatprep.subr.bf16.mxu1 %v11622_v60 }
0x129e   :  { %6054 = vmatpush1.bf16.msra.mxu1 %v11620_v46  ;;  %v11700_v46 = vld [vmem:[#allocation59 + $0x4ec] ss:$16 sps:$4 sm:$0xff]  }
0x129f   :  { %6055 = vmatprep.subr.bf16.mxu1 %v11625_v39 }
0x12a2   :  { %6056 = vmatpush1.bf16.msra.mxu1 %v11623_v61 }
0x12a3   :  { %6057 = vmatprep.subr.bf16.mxu1 %v11628_v62 }
0x12a6   :  { %6058 = vmatpush1.bf16.msra.mxu1 %v11626_v54  ;;  %v11698_v54 = vld [vmem:[#allocation59 + $0x4e8] ss:$16 sps:$4 sm:$0xff]  }
0x12a7   :  { %6068 = vmatprep.subr.bf16.mxu1 %v11631_v63 }
0x12a9   :  { %6060 = vmatmul.mubr.bf16.vlgmr.msra.gmra.mrb[52].mxu1 %v13560_v56 }
0x12aa   :  { %6069 = vmatpush1.bf16.msra.mxu1 %v11629_v1  ;;  %6100 = vmatprep.mubr.bf16.mxu1 %v14338_v9  ;;  %v11647_v9 = vld [vmem:[#allocation59 + $0x2c8] ss:$16 sps:$4 sm:$0xff]   ;;  %v11703_v1 = vld [vmem:[#allocation59 + $0x50c] ss:$16 sps:$4 sm:$0xff]  }
0x12ab   :  { %6070 = vmatprep.subr.bf16.mxu1 %v11634_v52 }
0x12ae   :  { %6071 = vmatpush1.bf16.msra.mxu1 %v11632_v57 }
0x12af   :  { %6072 = vmatprep.subr.bf16.mxu1 %v11637_v2 }
0x12b2   :  { %6073 = vmatpush1.bf16.msra.mxu1 %v11635_v3  ;;  %v11701_v3 = vld [vmem:[#allocation59 + $0x508] ss:$16 sps:$4 sm:$0xff]  }
0x12b3   :  { %6074 = vmatprep.subr.bf16.mxu1 %v11640_v4 }
0x12b6   :  { %6075 = vmatpush1.bf16.msra.mxu1 %v11638_v5  ;;  %v11706_v5 = vld [vmem:[#allocation59 + $0x52c] ss:$16 sps:$4 sm:$0xff]  }
0x12b7   :  { %6076 = vmatprep.subr.bf16.mxu1 %v11643_v6 }
0x12ba   :  { %6077 = vmatpush1.bf16.msra.mxu1 %v11641_v8  ;;  %v11725_v8 = vld [vmem:[#allocation64] ss:$16 sps:$4 sm:$0xff]  }
0x12bb   :  { %6078 = vmatprep.subr.bf16.mxu1 %v11646_v10  ;;  %v11727_v10 = vld [vmem:[#allocation64 + $0x4] ss:$16 sps:$4 sm:$0xff]  }
0x12bc   :  { %8658 = vmatprep.subr.bf16.mxu0 %v11727_v10  ;;  %v11773_v10 = vld [vmem:[#allocation64 + $0x100] ss:$16 sps:$4 sm:$0xff]  }
0x12bd   :  { %8659 = vmatpush1.bf16.msra.mxu0 %v11725_v8  ;;  %v11736_v8 = vld [vmem:[#allocation64 + $0x2c] ss:$16 sps:$4 sm:$0xff]  }
0x12be   :  { %6079 = vmatpush1.bf16.msra.mxu1 %v11644_v12 }
0x12bf   :  { %6080 = vmatprep.subr.bf16.mxu1 %v11649_v31  ;;  %v11733_v31 = vld [vmem:[#allocation64 + $0x24] ss:$16 sps:$4 sm:$0xff]  }
0x12c0   :  { %8660 = vmatprep.subr.bf16.mxu0 %v11733_v31  ;;  %v11734_v31 = vld [vmem:[#allocation64 + $0x28] ss:$16 sps:$4 sm:$0xff]  }
0x12c2   :  { %6081 = vmatpush1.bf16.msra.mxu1 %v11647_v9 }
0x12c3   :  { %6082 = vmatprep.subr.bf16.mxu1 %v11652_v14  ;;  %v11704_v14 = vld [vmem:[#allocation59 + $0x528] ss:$16 sps:$4 sm:$0xff]  }
0x12c6   :  { %6083 = vmatpush1.bf16.msra.mxu1 %v11650_v15 }
0x12c7   :  { %6084 = vmatprep.subr.bf16.mxu1 %v11655_v16  ;;  %v11709_v16 = vld [vmem:[#allocation59 + $0x54c] ss:$16 sps:$4 sm:$0xff]  }
0x12ca   :  { %6085 = vmatpush1.bf16.msra.mxu1 %v11653_v17  ;;  %v11731_v17 = vld [vmem:[#allocation64 + $0x20] ss:$16 sps:$4 sm:$0xff]  }
0x12cb   :  { %6086 = vmatprep.subr.bf16.mxu1 %v11658_v18  ;;  %8661 = vmatpush1.bf16.msra.mxu0 %v11731_v17  ;;  %v11779_v17 = vld [vmem:[#allocation64 + $0x120] ss:$16 sps:$4 sm:$0xff]  }
0x12ce   :  { %6087 = vmatpush1.bf16.msra.mxu1 %v11656_v19  ;;  %v11739_v19 = vld [vmem:[#allocation64 + $0x44] ss:$16 sps:$4 sm:$0xff]  }
0x12cf   :  { %6088 = vmatprep.subr.bf16.mxu1 %v11661_v7  ;;  %8662 = vmatprep.subr.bf16.mxu0 %v11739_v19  ;;  %v11787_v19 = vld [vmem:[#allocation64 + $0x144] ss:$16 sps:$4 sm:$0xff]  }
0x12d2   :  { %6089 = vmatpush1.bf16.msra.mxu1 %v11659_v20 }
0x12d3   :  { %6090 = vmatprep.subr.bf16.mxu1 %v11664_v21  ;;  %v11707_v21 = vld [vmem:[#allocation59 + $0x548] ss:$16 sps:$4 sm:$0xff]  }
0x12d6   :  { %6091 = vmatpush1.bf16.msra.mxu1 %v11662_v23 }
0x12d7   :  { %6092 = vmatprep.subr.bf16.mxu1 %v11667_v24  ;;  %v11712_v24 = vld [vmem:[#allocation59 + $0x56c] ss:$16 sps:$4 sm:$0xff]  }
0x12da   :  { %6093 = vmatpush1.bf16.msra.mxu1 %v11665_v45  ;;  %v11737_v45 = vld [vmem:[#allocation64 + $0x40] ss:$16 sps:$4 sm:$0xff]  }
0x12db   :  { %6094 = vmatprep.subr.bf16.mxu1 %v11670_v38  ;;  %8663 = vmatpush1.bf16.msra.mxu0 %v11737_v45  ;;  %v11746_v45 = vld [vmem:[#allocation64 + $0x68] ss:$16 sps:$4 sm:$0xff]  }
0x12de   :  { %6095 = vmatpush1.bf16.msra.mxu1 %v11668_v26  ;;  %v11745_v26 = vld [vmem:[#allocation64 + $0x64] ss:$16 sps:$4 sm:$0xff]  }
0x12df   :  { %6096 = vmatprep.subr.bf16.mxu1 %v11673_v27  ;;  %8664 = vmatprep.subr.bf16.mxu0 %v11745_v26  ;;  %v11791_v26 = vld [vmem:[#allocation64 + $0x160] ss:$16 sps:$4 sm:$0xff]  }
0x12e2   :  { %6097 = vmatpush1.bf16.msra.mxu1 %v11671_v28 }
0x12e3   :  { %6098 = vmatprep.subr.bf16.mxu1 %v11676_v29 }
0x12e6   :  { %6099 = vmatpush1.bf16.msra.mxu1 %v11674_v30  ;;  %v11710_v30 = vld [vmem:[#allocation59 + $0x568] ss:$16 sps:$4 sm:$0xff]  }
0x12e7   :  { %6109 = vmatprep.subr.bf16.mxu1 %v11679_v32 }
0x12e9   :  { %6101 = vmatmul.mubr.bf16.vlgmr.msra.gmra.mrb[52].mxu1 %v14340_v22  ;;  %v11692_v22 = vld [vmem:[#allocation59 + $0x4a8] ss:$16 sps:$4 sm:$0xff]  }
0x12ea   :  { %6110 = vmatpush1.bf16.msra.mxu1 %v11677_v33  ;;  %6141 = vmatprep.mubr.bf16.mxu1 %v13560_v56  ;;  %v11715_v33 = vld [vmem:[#allocation59 + $0x58c] ss:$16 sps:$4 sm:$0xff]  }
0x12eb   :  { %6111 = vmatprep.subr.bf16.mxu1 %v11682_v34  ;;  %v11743_v34 = vld [vmem:[#allocation64 + $0x60] ss:$16 sps:$4 sm:$0xff]  }
0x12ec   :  { %8665 = vmatpush1.bf16.msra.mxu0 %v11743_v34  ;;  %v11766_v34 = vld [vmem:[#allocation64 + $0xcc] ss:$16 sps:$4 sm:$0xff]  }
0x12ee   :  { %6112 = vmatpush1.bf16.msra.mxu1 %v11680_v36 }
0x12ef   :  { %6113 = vmatprep.subr.bf16.mxu1 %v11685_v40  ;;  %v11751_v40 = vld [vmem:[#allocation64 + $0x84] ss:$16 sps:$4 sm:$0xff]  }
0x12f0   :  { %8666 = vmatprep.subr.bf16.mxu0 %v11751_v40 }
0x12f2   :  { %6114 = vmatpush1.bf16.msra.mxu1 %v11683_v41 }
0x12f3   :  { %6115 = vmatprep.subr.bf16.mxu1 %v11688_v42 }
0x12f6   :  { %6116 = vmatpush1.bf16.msra.mxu1 %v11686_v43  ;;  %v11713_v43 = vld [vmem:[#allocation59 + $0x588] ss:$16 sps:$4 sm:$0xff]  }
0x12f7   :  { %6117 = vmatprep.subr.bf16.mxu1 %v11691_v44 }
0x12fa   :  { %6118 = vmatpush1.bf16.msra.mxu1 %v11689_v11  ;;  %v11718_v11 = vld [vmem:[#allocation59 + $0x5ac] ss:$16 sps:$4 sm:$0xff]  }
0x12fb   :  { %6119 = vmatprep.subr.bf16.mxu1 %v11694_v13  ;;  %v11749_v13 = vld [vmem:[#allocation64 + $0x80] ss:$16 sps:$4 sm:$0xff]  }
0x12fc   :  { %v14356_v48 = vpop.f32.mrb[44].mxu1  ;;  %8667 = vmatpush1.bf16.msra.mxu0 %v11749_v13 }
0x12fd   :  { %v4556_v49 = vsel %vm954_vm9, %v14356_v48, 0.0  ;;  %v14360_v50 = vpop.f32.mrb[45].mxu1 }
0x12fe   :  { %v4557_v51 = vrot.slane %v4556_v49, 4  ;;  %v4563_v53 = vsel %vm954_vm9, %v14360_v50, 0.0  ;;  %6120 = vmatpush1.bf16.msra.mxu1 %v11692_v22  ;;  %v4512_v55 = vpop.f32.mrb[46].mxu1 }
0x12ff   :  { %v4564_v59 = vrot.slane %v4563_v53, 4  ;;  %v4513_v60 = vpop.f32.mrb[47].mxu1  ;;  %6121 = vmatprep.subr.bf16.mxu1 %v11697_v47  ;;  %v11757_v47 = vld [vmem:[#allocation64 + $0xa4] ss:$16 sps:$4 sm:$0xff]  }
0x1300   :  { %v4558_v39 = vadd.f32 %v4557_v51, %v4556_v49  ;;  %8668 = vmatprep.subr.bf16.mxu0 %v11757_v47  ;;  %v11772_v47 = vld [vmem:[#allocation64 + $0xec] ss:$16 sps:$4 sm:$0xff]  }
0x1301   :  { %v4565_v61 = vadd.f32 %v4564_v59, %v4563_v53  ;;  %v11716_v53 = vld [vmem:[#allocation59 + $0x5a8] ss:$16 sps:$4 sm:$0xff]  }
0x1302   :  { %v4559_v62 = vrot.slane %v4558_v39, 2  ;;  %6122 = vmatpush1.bf16.msra.mxu1 %v11695_v58  ;;  %v11721_v58 = vld [vmem:[#allocation59 + $0x5cc] ss:$16 sps:$4 sm:$0xff]   ;;  %v11755_v59 = vld [vmem:[#allocation64 + $0xa0] ss:$16 sps:$4 sm:$0xff]  }
0x1303   :  { %v4566_v63 = vrot.slane %v4565_v61, 2  ;;  %6123 = vmatprep.subr.bf16.mxu1 %v11700_v46  ;;  %v11763_v46 = vld [vmem:[#allocation64 + $0xc4] ss:$16 sps:$4 sm:$0xff]   ;;  %8669 = vmatpush1.bf16.msra.mxu0 %v11755_v59 }
0x1304   :  { %v4560_v52 = vadd.f32 %v4559_v62, %v4558_v39  ;;  %v11719_v62 = vld [vmem:[#allocation59 + $0x5c8] ss:$16 sps:$4 sm:$0xff]   ;;  %8670 = vmatprep.subr.bf16.mxu0 %v11763_v46 }
0x1305   :  { %v4567_v57 = vadd.f32 %v4566_v63, %v4565_v61  ;;  %v11724_v63 = vld [vmem:[#allocation59 + $0x5ec] ss:$16 sps:$4 sm:$0xff]  }
0x1306   :  { %v4561_v2 = vrot.slane %v4560_v52, 1  ;;  %6124 = vmatpush1.bf16.msra.mxu1 %v11698_v54 }
0x1307   :  { %v4568_v4 = vrot.slane %v4567_v57, 1  ;;  %6125 = vmatprep.subr.bf16.mxu1 %v11703_v1  ;;  %v11761_v1 = vld [vmem:[#allocation64 + $0xc0] ss:$16 sps:$4 sm:$0xff]  }
0x1308   :  { %v4562_v6 = vadd.f32 %v4561_v2, %v4560_v52  ;;  %v11722_v2 = vld [vmem:[#allocation59 + $0x5e8] ss:$16 sps:$4 sm:$0xff]   ;;  %8671 = vmatpush1.bf16.msra.mxu0 %v11761_v1  ;;  %v11817_v1 = vld [vmem:[#allocation64 + $0x1e4] ss:$16 sps:$4 sm:$0xff]  }
0x1309   :  { %v4569_v12 = vadd.f32 %v4568_v4, %v4567_v57  ;;  %v11769_v57 = vld [vmem:[#allocation64 + $0xe4] ss:$16 sps:$4 sm:$0xff]   ;;  %v11767_v4 = vld [vmem:[#allocation64 + $0xe0] ss:$16 sps:$4 sm:$0xff]  }
0x130a   :  { %v14364_v9 = vmul.f32 0.5, %v4562_v6  ;;  %6126 = vmatpush1.bf16.msra.mxu1 %v11701_v3  ;;  %v11730_v3 = vld [vmem:[#allocation64 + $0xc] ss:$16 sps:$4 sm:$0xff]   ;;  %8672 = vmatprep.subr.bf16.mxu0 %v11769_v57  ;;  %v11728_v6 = vld [vmem:[#allocation64 + $0x8] ss:$16 sps:$4 sm:$0xff]  }
0x130b   :  { %v14366_v15 = vmul.f32 0.5, %v4569_v12  ;;  %6127 = vmatprep.subr.bf16.mxu1 %v11706_v5  ;;  %v11775_v5 = vld [vmem:[#allocation64 + $0x104] ss:$16 sps:$4 sm:$0xff]  }
0x130c   :  { %v4588_v18 = vsub.f32 %v14356_v48, %v14364_v9  ;;  %8673 = vmatpush1.bf16.msra.mxu0 %v11767_v4  ;;  %v11781_v12 = vld [vmem:[#allocation64 + $0x124] ss:$16 sps:$4 sm:$0xff]   ;;  %v11770_v4 = vld [vmem:[#allocation64 + $0xe8] ss:$16 sps:$4 sm:$0xff]  }
0x130d   :  { %v4589_v7 = vsub.f32 %v14360_v50, %v14366_v15  ;;  %8674 = vmatprep.subr.bf16.mxu0 %v11775_v5 }
0x130e   :  { %v4592_v20 = vmul.f32 %v4588_v18, %v4588_v18  ;;  %6128 = vmatpush1.bf16.msra.mxu1 %v11704_v14 }
0x130f   :  { %v4593_v23 = vmul.f32 %v4589_v7, %v4589_v7  ;;  %6129 = vmatprep.subr.bf16.mxu1 %v11709_v16  ;;  %v11742_v16 = vld [vmem:[#allocation64 + $0x4c] ss:$16 sps:$4 sm:$0xff]  }
0x1310   :  { %v4596_v38 = vsel %vm954_vm9, %v4592_v20, 0.0  ;;  %8675 = vmatpush1.bf16.msra.mxu0 %v11773_v10  ;;  %v11740_v20 = vld [vmem:[#allocation64 + $0x48] ss:$16 sps:$4 sm:$0xff]   ;;  %v11815_v10 = vld [vmem:[#allocation64 + $0x1e0] ss:$16 sps:$4 sm:$0xff]  }
0x1311   :  { %v4597_v27 = vrot.slane %v4596_v38, 4  ;;  %v4603_v28 = vsel %vm954_vm9, %v4593_v23, 0.0  ;;  %8676 = vmatprep.subr.bf16.mxu0 %v11781_v12  ;;  %v11785_v23 = vld [vmem:[#allocation64 + $0x140] ss:$16 sps:$4 sm:$0xff]  }
0x1312   :  { %v4604_v29 = vrot.slane %v4603_v28, 4  ;;  %6130 = vmatpush1.bf16.msra.mxu1 %v11707_v21  ;;  %v11748_v21 = vld [vmem:[#allocation64 + $0x6c] ss:$16 sps:$4 sm:$0xff]  }
0x1313   :  { %v4598_v32 = vadd.f32 %v4597_v27, %v4596_v38  ;;  %6131 = vmatprep.subr.bf16.mxu1 %v11712_v24  ;;  %v11793_v24 = vld [vmem:[#allocation64 + $0x164] ss:$16 sps:$4 sm:$0xff]   ;;  %v11754_v38 = vld [vmem:[#allocation64 + $0x8c] ss:$16 sps:$4 sm:$0xff]  }
0x1314   :  { %v4605_v36 = vadd.f32 %v4604_v29, %v4603_v28  ;;  %8677 = vmatpush1.bf16.msra.mxu0 %v11779_v17  ;;  %v11799_v27 = vld [vmem:[#allocation64 + $0x184] ss:$16 sps:$4 sm:$0xff]   ;;  %v11752_v28 = vld [vmem:[#allocation64 + $0x88] ss:$16 sps:$4 sm:$0xff]   ;;  %v11760_v29 = vld [vmem:[#allocation64 + $0xac] ss:$16 sps:$4 sm:$0xff]  }
0x1315   :  { %v4599_v41 = vrot.slane %v4598_v32, 2  ;;  %8678 = vmatprep.subr.bf16.mxu0 %v11787_v19 }
0x1316   :  { %v4606_v42 = vrot.slane %v4605_v36, 2  ;;  %6132 = vmatpush1.bf16.msra.mxu1 %v11710_v30  ;;  %v11797_v30 = vld [vmem:[#allocation64 + $0x180] ss:$16 sps:$4 sm:$0xff]  }
0x1317   :  { %v4600_v44 = vadd.f32 %v4599_v41, %v4598_v32  ;;  %6133 = vmatprep.subr.bf16.mxu1 %v11715_v33  ;;  %v11805_v32 = vld [vmem:[#allocation64 + $0x1a4] ss:$16 sps:$4 sm:$0xff]   ;;  %v11758_v33 = vld [vmem:[#allocation64 + $0xa8] ss:$16 sps:$4 sm:$0xff]  }
0x1318   :  { %v4607_v22 = vadd.f32 %v4606_v42, %v4605_v36  ;;  %8679 = vmatpush1.bf16.msra.mxu0 %v11785_v23  ;;  %v11803_v36 = vld [vmem:[#allocation64 + $0x1a0] ss:$16 sps:$4 sm:$0xff]   ;;  %v11764_v42 = vld [vmem:[#allocation64 + $0xc8] ss:$16 sps:$4 sm:$0xff]  }
0x1319   :  { %v4601_v49 = vrot.slane %v4600_v44, 1  ;;  %8680 = vmatprep.subr.bf16.mxu0 %v11793_v24  ;;  %v11776_v23 = vld [vmem:[#allocation64 + $0x108] ss:$16 sps:$4 sm:$0xff]  }
0x131a   :  { %v4608_v51 = vrot.slane %v4607_v22, 1  ;;  %6134 = vmatpush1.bf16.msra.mxu1 %v11713_v43  ;;  %v11811_v43 = vld [vmem:[#allocation64 + $0x1c4] ss:$16 sps:$4 sm:$0xff]  }
0x131b   :  { %v4602_v55 = vadd.f32 %v4601_v49, %v4600_v44  ;;  %6135 = vmatprep.subr.bf16.mxu1 %v11718_v11 }
0x131c   :  { %v4609_v60 = vadd.f32 %v4608_v51, %v4607_v22  ;;  %8681 = vmatpush1.bf16.msra.mxu0 %v11791_v26  ;;  %v11821_v26 = vld [vmem:[#allocation64 + $0x200] ss:$16 sps:$4 sm:$0xff]  }
0x131d   :  { %v4624_v39 = vmul.f32 0.5, %v4602_v55  ;;  %8682 = vmatprep.subr.bf16.mxu0 %v11799_v27 }
0x131e   :  { %v4625_v61 = vmul.f32 0.5, %v4609_v60  ;;  %6136 = vmatpush1.bf16.msra.mxu1 %v11716_v53 }
0x131f   :  { %v4629_v54 = vadd.f32 1e-05, %v4624_v39  ;;  %6137 = vmatprep.subr.bf16.mxu1 %v11721_v58 }
0x1320   :  { %v4630_v52 = vadd.f32 1e-05, %v4625_v61  ;;  %8683 = vmatpush1.bf16.msra.mxu0 %v11797_v30 }
0x1321   :  { %12325 = vrsqrt.f32 %v4629_v54  ;;  %8684 = vmatprep.subr.bf16.mxu0 %v11805_v32 }
0x1322   :  { %12327 = vrsqrt.f32 %v4630_v52  ;;  %6138 = vmatpush1.bf16.msra.mxu1 %v11719_v62  ;;  %v11809_v62 = vld [vmem:[#allocation64 + $0x1c0] ss:$16 sps:$4 sm:$0xff]  }
0x1323   :  { %6139 = vmatprep.subr.bf16.mxu1 %v11724_v63 }
0x1324   :  { %8685 = vmatpush1.bf16.msra.mxu0 %v11803_v36  ;;  %v11782_v36 = vld [vmem:[#allocation64 + $0x128] ss:$16 sps:$4 sm:$0xff]  }
0x1325   :  { %8686 = vmatprep.subr.bf16.mxu0 %v11811_v43 }
0x1326   :  { %6140 = vmatpush1.bf16.msra.mxu1 %v11722_v2 }
0x1327   :  { %8904 = vmatprep.subr.bf16.mxu1 %v11730_v3 }
0x1328   :  { %8687 = vmatpush1.bf16.msra.mxu0 %v11809_v62  ;;  %v11833_v62 = vld [vmem:[#allocation64 + $0x240] ss:$16 sps:$4 sm:$0xff]  }
0x1329   :  { %6142 = vmatmul.mubr.bf16.vlgmr.msra.gmra.mrb[52].mxu1 %v13560_v56  ;;  %8688 = vmatprep.subr.bf16.mxu0 %v11817_v1  ;;  %v11841_v1 = vld [vmem:[#allocation64 + $0x264] ss:$16 sps:$4 sm:$0xff]  }
0x132a   :  { %8905 = vmatpush1.bf16.msra.mxu1 %v11728_v6  ;;  %8936 = vmatprep.mubr.bf16.mxu1 %v13560_v56 }
0x132b   :  { %v14376_v14 = vpop.eup %12325  ;;  %8906 = vmatprep.subr.bf16.mxu1 %v11736_v8  ;;  %v11778_v8 = vld [vmem:[#allocation64 + $0x10c] ss:$16 sps:$4 sm:$0xff]  }
0x132c   :  { %v14378_v18 = vpop.eup %12327  ;;  %8689 = vmatpush1.bf16.msra.mxu0 %v11815_v10 }
0x132d   :  { %v4641_v7 = vcombine.low %v14376_v14, %v14378_v18  ;;  %v14438_v14 = vsub.s32 3, %v14074_v35 }
0x132e   :  { %8907 = vmatpush1.bf16.msra.mxu1 %v11734_v31 }
0x132f   :  { %8908 = vmatprep.subr.bf16.mxu1 %v11742_v16  ;;  %v11823_v16 = vld [vmem:[#allocation64 + $0x204] ss:$16 sps:$4 sm:$0xff]   ;;  %8691 = vmatmul.mubr.bf16.vlgmr.msra.gmra.mrb[52].mxu0 %v13560_v56 }
0x1330   :  { %8699 = vmatprep.subr.bf16.mxu0 %v11823_v16  ;;  %8731 = vmatprep.mubr.bf16.mxu0 %v13560_v56 }
0x1331   :  { %8700 = vmatpush1.bf16.msra.mxu0 %v11821_v26 }
0x1332   :  { %8909 = vmatpush1.bf16.msra.mxu1 %v11740_v20 }
0x1333   :  { %8910 = vmatprep.subr.bf16.mxu1 %v11748_v21 }
0x1336   :  { %8911 = vmatpush1.bf16.msra.mxu1 %v11746_v45 }
0x1337   :  { %8912 = vmatprep.subr.bf16.mxu1 %v11754_v38  ;;  %v11784_v38 = vld [vmem:[#allocation64 + $0x12c] ss:$16 sps:$4 sm:$0xff]  }
0x133a   :  { %8913 = vmatpush1.bf16.msra.mxu1 %v11752_v28 }
0x133b   :  { %8914 = vmatprep.subr.bf16.mxu1 %v11760_v29  ;;  %v11829_v29 = vld [vmem:[#allocation64 + $0x224] ss:$16 sps:$4 sm:$0xff]  }
0x133c   :  { %v14382_v40 = vpop.f32.mrb[48].mxu1  ;;  %v14384_v41 = vpop.f32.mrb[48].mxu0  ;;  %8701 = vmatprep.subr.bf16.mxu0 %v11829_v29 }
0x133d   :  { %v4570_v44 = vsel %vm954_vm9, %v14382_v40, 0.0  ;;  %v6150_v11 = vsel %vm954_vm9, %v14384_v41, 0.0  ;;  %v14390_v13 = vpop.f32.mrb[49].mxu1  ;;  %v14392_v22 = vpop.f32.mrb[49].mxu0 }
0x133e   :  { %v4571_v49 = vrot.slane %v4570_v44, 4  ;;  %v6151_v51 = vrot.slane %v6150_v11, 4  ;;  %v4577_v53 = vsel %vm954_vm9, %v14390_v13, 0.0  ;;  %v6157_v55 = vsel %vm954_vm9, %v14392_v22, 0.0  ;;  %v4553_v58 = vpop.f32.mrb[50].mxu1  ;;  %v6024_v59 = vpop.f32.mrb[50].mxu0  ;;  %8915 = vmatpush1.bf16.msra.mxu1 %v11758_v33 }
0x133f   :  { %v4578_v60 = vrot.slane %v4577_v53, 4  ;;  %v6158_v46 = vrot.slane %v6157_v55, 4  ;;  %v4554_v39 = vpop.f32.mrb[51].mxu1  ;;  %v6025_v61 = vpop.f32.mrb[51].mxu0  ;;  %8916 = vmatprep.subr.bf16.mxu1 %v11766_v34 }
0x1340   :  { %v4572_v54 = vadd.f32 %v4571_v49, %v4570_v44  ;;  %v6152_v63 = vadd.f32 %v6151_v51, %v6150_v11  ;;  %v11790_v44 = vld [vmem:[#allocation64 + $0x14c] ss:$16 sps:$4 sm:$0xff]   ;;  %v11827_v11 = vld [vmem:[#allocation64 + $0x220] ss:$16 sps:$4 sm:$0xff]   ;;  %v11835_v51 = vld [vmem:[#allocation64 + $0x244] ss:$16 sps:$4 sm:$0xff]  }
0x1341   :  { %v4579_v52 = vadd.f32 %v4578_v60, %v4577_v53  ;;  %v6159_v57 = vadd.f32 %v6158_v46, %v6157_v55  ;;  %v11788_v60 = vld [vmem:[#allocation64 + $0x148] ss:$16 sps:$4 sm:$0xff]   ;;  %v11796_v61 = vld [vmem:[#allocation64 + $0x16c] ss:$16 sps:$4 sm:$0xff]   ;;  %8702 = vmatpush1.bf16.msra.mxu0 %v11827_v11 }
0x1342   :  { %v4573_v2 = vrot.slane %v4572_v54, 2  ;;  %v6153_v3 = vrot.slane %v6152_v63, 2  ;;  %8917 = vmatpush1.bf16.msra.mxu1 %v11764_v42  ;;  %8703 = vmatprep.subr.bf16.mxu0 %v11835_v51 }
0x1343   :  { %v4580_v5 = vrot.slane %v4579_v52, 2  ;;  %v6160_v6 = vrot.slane %v6159_v57, 2  ;;  %8918 = vmatprep.subr.bf16.mxu1 %v11772_v47 }
0x1344   :  { %v4574_v12 = vadd.f32 %v4573_v2, %v4572_v54  ;;  %v6154_v31 = vadd.f32 %v6153_v3, %v6152_v63 }
0x1345   :  { %v4581_v17 = vadd.f32 %v4580_v5, %v4579_v52  ;;  %v6161_v19 = vadd.f32 %v6160_v6, %v6159_v57  ;;  %v11794_v6 = vld [vmem:[#allocation64 + $0x168] ss:$16 sps:$4 sm:$0xff]   ;;  %8704 = vmatpush1.bf16.msra.mxu0 %v11833_v62 }
0x1346   :  { %v4575_v20 = vrot.slane %v4574_v12, 1  ;;  %v6155_v21 = vrot.slane %v6154_v31, 1  ;;  %8919 = vmatpush1.bf16.msra.mxu1 %v11770_v4  ;;  %8705 = vmatprep.subr.bf16.mxu0 %v11841_v1  ;;  %v11820_v1 = vld [vmem:[#allocation64 + $0x1ec] ss:$16 sps:$4 sm:$0xff]  }
0x1347   :  { %v4582_v24 = vrot.slane %v4581_v17, 1  ;;  %v6162_v45 = vrot.slane %v6161_v19, 1  ;;  %8920 = vmatprep.subr.bf16.mxu1 %v11778_v8 }
0x1348   :  { %v4576_v27 = vadd.f32 %v4575_v20, %v4574_v12  ;;  %v6156_v28 = vadd.f32 %v6155_v21, %v6154_v31  ;;  %v11802_v12 = vld [vmem:[#allocation64 + $0x18c] ss:$16 sps:$4 sm:$0xff]   ;;  %v11839_v31 = vld [vmem:[#allocation64 + $0x260] ss:$16 sps:$4 sm:$0xff]  }
0x1349   :  { %v4583_v30 = vadd.f32 %v4582_v24, %v4581_v17  ;;  %v6163_v32 = vadd.f32 %v6162_v45, %v6161_v19  ;;  %v11847_v19 = vld [vmem:[#allocation64 + $0x284] ss:$16 sps:$4 sm:$0xff]   ;;  %v11800_v45 = vld [vmem:[#allocation64 + $0x188] ss:$16 sps:$4 sm:$0xff]   ;;  %8706 = vmatpush1.bf16.msra.mxu0 %v11839_v31 }
0x134a   :  { %v14398_v33 = vmul.f32 0.5, %v4576_v27  ;;  %v14400_v34 = vmul.f32 0.5, %v6156_v28  ;;  %8921 = vmatpush1.bf16.msra.mxu1 %v11776_v23  ;;  %v11808_v27 = vld [vmem:[#allocation64 + $0x1ac] ss:$16 sps:$4 sm:$0xff]   ;;  %v11845_v28 = vld [vmem:[#allocation64 + $0x280] ss:$16 sps:$4 sm:$0xff]   ;;  %8707 = vmatprep.subr.bf16.mxu0 %v11847_v19 }
0x134b   :  { %v14403_v42 = vmul.f32 0.5, %v4583_v30  ;;  %v14405_v43 = vmul.f32 0.5, %v6163_v32  ;;  %8922 = vmatprep.subr.bf16.mxu1 %v11784_v38  ;;  %v11853_v32 = vld [vmem:[#allocation64 + $0x2a4] ss:$16 sps:$4 sm:$0xff]   ;;  %v11824_v31 = vld [vmem:[#allocation64 + $0x208] ss:$16 sps:$4 sm:$0xff]  }
0x134c   :  { %v4590_v47 = vsub.f32 %v14382_v40, %v14398_v33  ;;  %v6182_v49 = vsub.f32 %v14384_v41, %v14400_v34  ;;  %v11877_v19 = vld [vmem:[#allocation64 + $0x324] ss:$16 sps:$4 sm:$0xff]  }
0x134d   :  { %v4591_v53 = vsub.f32 %v14390_v13, %v14403_v42  ;;  %v6183_v55 = vsub.f32 %v14392_v22, %v14405_v43  ;;  %8708 = vmatpush1.bf16.msra.mxu0 %v11845_v28 }
0x134e   :  { %v4594_v58 = vmul.f32 %v4590_v47, %v4590_v47  ;;  %v6186_v59 = vmul.f32 %v6182_v49, %v6182_v49  ;;  %8923 = vmatpush1.bf16.msra.mxu1 %v11782_v36  ;;  %v11806_v49 = vld [vmem:[#allocation64 + $0x1a8] ss:$16 sps:$4 sm:$0xff]   ;;  %8709 = vmatprep.subr.bf16.mxu0 %v11853_v32  ;;  %v11881_v32 = vld [vmem:[#allocation64 + $0x340] ss:$16 sps:$4 sm:$0xff]  }
0x134f   :  { %v4595_v46 = vmul.f32 %v4591_v53, %v4591_v53  ;;  %v6187_v39 = vmul.f32 %v6183_v55, %v6183_v55  ;;  %8924 = vmatprep.subr.bf16.mxu1 %v11790_v44  ;;  %v11814_v55 = vld [vmem:[#allocation64 + $0x1cc] ss:$16 sps:$4 sm:$0xff]  }
0x1350   :  { %v4610_v54 = vsel %vm954_vm9, %v4594_v58, 0.0  ;;  %v6190_v63 = vsel %vm954_vm9, %v6186_v59, 0.0  ;;  %v11851_v58 = vld [vmem:[#allocation64 + $0x2a0] ss:$16 sps:$4 sm:$0xff]  }
0x1351   :  { %v4611_v52 = vrot.slane %v4610_v54, 4  ;;  %v6191_v57 = vrot.slane %v6190_v63, 4  ;;  %v4617_v2 = vsel %vm954_vm9, %v4595_v46, 0.0  ;;  %v6197_v3 = vsel %vm954_vm9, %v6187_v39, 0.0  ;;  %v11859_v46 = vld [vmem:[#allocation64 + $0x2c4] ss:$16 sps:$4 sm:$0xff]   ;;  %8710 = vmatpush1.bf16.msra.mxu0 %v11851_v58 }
0x1352   :  { %v4618_v4 = vrot.slane %v4617_v2, 4  ;;  %v6198_v5 = vrot.slane %v6197_v3, 4  ;;  %8925 = vmatpush1.bf16.msra.mxu1 %v11788_v60  ;;  %8711 = vmatprep.subr.bf16.mxu0 %v11859_v46  ;;  %v11887_v58 = vld [vmem:[#allocation64 + $0x360] ss:$16 sps:$4 sm:$0xff]   ;;  %v11856_v46 = vld [vmem:[#allocation64 + $0x2ac] ss:$16 sps:$4 sm:$0xff]  }
0x1353   :  { %v4612_v8 = vadd.f32 %v4611_v52, %v4610_v54  ;;  %v6192_v10 = vadd.f32 %v6191_v57, %v6190_v63  ;;  %8926 = vmatprep.subr.bf16.mxu1 %v11796_v61  ;;  %v11812_v63 = vld [vmem:[#allocation64 + $0x1c8] ss:$16 sps:$4 sm:$0xff]  }
0x1354   :  { %v4619_v16 = vadd.f32 %v4618_v4, %v4617_v2  ;;  %v6199_v17 = vadd.f32 %v6198_v5, %v6197_v3  ;;  %v11857_v2 = vld [vmem:[#allocation64 + $0x2c0] ss:$16 sps:$4 sm:$0xff]   ;;  %v11865_v5 = vld [vmem:[#allocation64 + $0x2e4] ss:$16 sps:$4 sm:$0xff]  }
0x1355   :  { %v4613_v20 = vrot.slane %v4612_v8, 2  ;;  %v6193_v21 = vrot.slane %v6192_v10, 2  ;;  %8712 = vmatpush1.bf16.msra.mxu0 %v11857_v2 }
0x1356   :  { %v4620_v23 = vrot.slane %v4619_v16, 2  ;;  %v6200_v24 = vrot.slane %v6199_v17, 2  ;;  %8927 = vmatpush1.bf16.msra.mxu1 %v11794_v6  ;;  %v11818_v6 = vld [vmem:[#allocation64 + $0x1e8] ss:$16 sps:$4 sm:$0xff]   ;;  %8713 = vmatprep.subr.bf16.mxu0 %v11865_v5 }
0x1357   :  { %v4614_v38 = vadd.f32 %v4613_v20, %v4612_v8  ;;  %v6194_v26 = vadd.f32 %v6193_v21, %v6192_v10  ;;  %8928 = vmatprep.subr.bf16.mxu1 %v11802_v12  ;;  %v11826_v8 = vld [vmem:[#allocation64 + $0x20c] ss:$16 sps:$4 sm:$0xff]   ;;  %v11863_v10 = vld [vmem:[#allocation64 + $0x2e0] ss:$16 sps:$4 sm:$0xff]   ;;  %v11871_v12 = vld [vmem:[#allocation64 + $0x304] ss:$16 sps:$4 sm:$0xff]  }
0x1358   :  { %v4621_v29 = vadd.f32 %v4620_v23, %v4619_v16  ;;  %v6201_v30 = vadd.f32 %v6200_v24, %v6199_v17  ;;  %v11832_v16 = vld [vmem:[#allocation64 + $0x22c] ss:$16 sps:$4 sm:$0xff]   ;;  %v11869_v17 = vld [vmem:[#allocation64 + $0x300] ss:$16 sps:$4 sm:$0xff]   ;;  %v11830_v20 = vld [vmem:[#allocation64 + $0x228] ss:$16 sps:$4 sm:$0xff]  }
0x1359   :  { %v4615_v36 = vrot.slane %v4614_v38, 1  ;;  %v6195_v44 = vrot.slane %v6194_v26, 1  ;;  %8714 = vmatpush1.bf16.msra.mxu0 %v11863_v10  ;;  %v11838_v23 = vld [vmem:[#allocation64 + $0x24c] ss:$16 sps:$4 sm:$0xff]   ;;  %v11875_v24 = vld [vmem:[#allocation64 + $0x320] ss:$16 sps:$4 sm:$0xff]  }
0x135a   :  { %v4622_v11 = vrot.slane %v4621_v29, 1  ;;  %v6202_v47 = vrot.slane %v6201_v30, 1  ;;  %8929 = vmatpush1.bf16.msra.mxu1 %v11800_v45  ;;  %8715 = vmatprep.subr.bf16.mxu0 %v11871_v12  ;;  %v11895_v10 = vld [vmem:[#allocation64 + $0x384] ss:$16 sps:$4 sm:$0xff]   ;;  %v11893_v12 = vld [vmem:[#allocation64 + $0x380] ss:$16 sps:$4 sm:$0xff]  }
0x135b   :  { %v4616_v51 = vadd.f32 %v4615_v36, %v4614_v38  ;;  %v6196_v53 = vadd.f32 %v6195_v44, %v6194_v26  ;;  %8930 = vmatprep.subr.bf16.mxu1 %v11808_v27  ;;  %v11883_v38 = vld [vmem:[#allocation64 + $0x344] ss:$16 sps:$4 sm:$0xff]   ;;  %v4649_v44 = vrot.slane %v4641_v7, %v14287_v0  ;;  %v11848_v7 = vld [vmem:[#allocation64 + $0x288] ss:$16 sps:$4 sm:$0xff]  }
0x135c   :  { %v4623_v59 = vadd.f32 %v4622_v11, %v4621_v29  ;;  %v6203_v60 = vadd.f32 %v6202_v47, %v6201_v30  ;;  %v11836_v29 = vld [vmem:[#allocation64 + $0x248] ss:$16 sps:$4 sm:$0xff]   ;;  %v11844_v30 = vld [vmem:[#allocation64 + $0x26c] ss:$16 sps:$4 sm:$0xff]   ;;  %v11889_v47 = vld [vmem:[#allocation64 + $0x364] ss:$16 sps:$4 sm:$0xff]  }
0x135d   :  { %v4626_v39 = vmul.f32 0.5, %v4616_v51  ;;  %v6218_v61 = vmul.f32 0.5, %v6196_v53  ;;  %8716 = vmatpush1.bf16.msra.mxu0 %v11869_v17  ;;  %v11842_v51 = vld [vmem:[#allocation64 + $0x268] ss:$16 sps:$4 sm:$0xff]   ;;  %v11899_v17 = vld [vmem:[#allocation64 + $0x3a0] ss:$16 sps:$4 sm:$0xff]  }
0x135e   :  { %v4627_v62 = vmul.f32 0.5, %v4623_v59  ;;  %v6219_v54 = vmul.f32 0.5, %v6203_v60  ;;  %8931 = vmatpush1.bf16.msra.mxu1 %v11806_v49  ;;  %8717 = vmatprep.subr.bf16.mxu0 %v11877_v19  ;;  %v4628_v53 = vld [vmem:[#allocation70] sm:$0xf]  ;;  %v14435_v60 = vsub.s32 2, %v14074_v35 }
0x135f   :  { %v4631_v52 = vadd.f32 1e-05, %v4626_v39  ;;  %v6223_v57 = vadd.f32 1e-05, %v6218_v61  ;;  %8932 = vmatprep.subr.bf16.mxu1 %v11814_v55  ;;  %v11850_v55 = vld [vmem:[#allocation64 + $0x28c] ss:$16 sps:$4 sm:$0xff]  }
0x1360   :  { %v4632_v3 = vadd.f32 1e-05, %v4627_v62  ;;  %v6224_v4 = vadd.f32 1e-05, %v6219_v54  ;;  %v11874_v19 = vld [vmem:[#allocation64 + $0x30c] ss:$16 sps:$4 sm:$0xff]  }
0x1361   :  { %12329 = vrsqrt.f32 %v4631_v52  ;;  %8718 = vmatpush1.bf16.msra.mxu0 %v11875_v24  ;;  %v11872_v24 = vld [vmem:[#allocation64 + $0x308] ss:$16 sps:$4 sm:$0xff]  }
0x1362   :  { %12331 = vrsqrt.f32 %v6223_v57  ;;  %8933 = vmatpush1.bf16.msra.mxu1 %v11812_v63  ;;  %8719 = vmatprep.subr.bf16.mxu0 %v11883_v38  ;;  %v11854_v57 = vld [vmem:[#allocation64 + $0x2a8] ss:$16 sps:$4 sm:$0xff]   ;;  %v11905_v38 = vld [vmem:[#allocation64 + $0x3c0] ss:$16 sps:$4 sm:$0xff]  }
0x1363   :  { %12333 = vrsqrt.f32 %v4632_v3  ;;  %8934 = vmatprep.subr.bf16.mxu1 %v11820_v1  ;;  %v11862_v3 = vld [vmem:[#allocation64 + $0x2cc] ss:$16 sps:$4 sm:$0xff]  }
0x1364   :  { %12335 = vrsqrt.f32 %v6224_v4 }
0x1365   :  { %8720 = vmatpush1.bf16.msra.mxu0 %v11881_v32 }
0x1366   :  { %8935 = vmatpush1.bf16.msra.mxu1 %v11818_v6  ;;  %8721 = vmatprep.subr.bf16.mxu0 %v11889_v47 }
0x1367   :  { %8945 = vmatprep.subr.bf16.mxu1 %v11826_v8 }
0x1369   :  { %8937 = vmatmul.mubr.bf16.vlgmr.msra.gmra.mrb[56].mxu1 %v13560_v56  ;;  %8722 = vmatpush1.bf16.msra.mxu0 %v11887_v58  ;;  %v11919_v58 = vld [vmem:[#allocation64 + $0x404] ss:$16 sps:$4 sm:$0xff]  }
0x136a   :  { %8946 = vmatpush1.bf16.msra.mxu1 %v11824_v31  ;;  %8977 = vmatprep.mubr.bf16.mxu1 %v13560_v56 }
0x136b   :  { %v12330_v21 = vpop.eup %12329  ;;  %8947 = vmatprep.subr.bf16.mxu1 %v11832_v16  ;;  %8723 = vmatprep.subr.bf16.mxu0 %v11895_v10  ;;  %v11901_v16 = vld [vmem:[#allocation64 + $0x3a4] ss:$16 sps:$4 sm:$0xff]   ;;  %v11914_v10 = vld [vmem:[#allocation64 + $0x3e8] ss:$16 sps:$4 sm:$0xff]  }
0x136c   :  { %v14422_v45 = vpop.eup %12331 }
0x136d   :  { %v12334_v26 = vpop.eup %12333  ;;  %8724 = vmatpush1.bf16.msra.mxu0 %v11893_v12  ;;  %v11920_v12 = vld [vmem:[#allocation64 + $0x408] ss:$16 sps:$4 sm:$0xff]  }
0x136e   :  { %v14424_v27 = vpop.eup %12335  ;;  %v4642_v28 = vcombine.low %v12330_v21, %v12334_v26  ;;  %8948 = vmatpush1.bf16.msra.mxu1 %v11830_v20  ;;  %8725 = vmatprep.subr.bf16.mxu0 %v11901_v16  ;;  %v11907_v21 = vld [vmem:[#allocation64 + $0x3c4] ss:$16 sps:$4 sm:$0xff]   ;;  %v11926_v16 = vld [vmem:[#allocation64 + $0x428] ss:$16 sps:$4 sm:$0xff]  }
0x136f   :  { %8949 = vmatprep.subr.bf16.mxu1 %v11838_v23  ;;  %v6235_v36 = vcombine.low %v14422_v45, %v14424_v27 }
0x1370   :  { %v4656_v11 = vrot.slane %v4642_v28, %v14287_v0 }
0x1371   :  { %8726 = vmatpush1.bf16.msra.mxu0 %v11899_v17  ;;  %v11967_v17 = vld [vmem:[#allocation64 + $0x504] ss:$16 sps:$4 sm:$0xff]  }
0x1372   :  { %v4657_v49 = vcombine.low %v4649_v44, %v4656_v11  ;;  %8950 = vmatpush1.bf16.msra.mxu1 %v11836_v29  ;;  %8727 = vmatprep.subr.bf16.mxu0 %v11907_v21  ;;  %v11940_v21 = vld [vmem:[#allocation64 + $0x46c] ss:$16 sps:$4 sm:$0xff]  }
0x1373   :  { %8951 = vmatprep.subr.bf16.mxu1 %v11844_v30  ;;  %v11880_v30 = vld [vmem:[#allocation64 + $0x32c] ss:$16 sps:$4 sm:$0xff]  }
0x1374   :  { %v4664_v59 = vrot.slane %v4657_v49, %v14287_v0  ;;  %v11913_v49 = vld [vmem:[#allocation64 + $0x3e4] ss:$16 sps:$4 sm:$0xff]  }
0x1375   :  { %8728 = vmatpush1.bf16.msra.mxu0 %v11905_v38  ;;  %v11971_v38 = vld [vmem:[#allocation64 + $0x520] ss:$16 sps:$4 sm:$0xff]  }
0x1376   :  { %v4666_v18 = vmul.f32 %v4664_v59, %v4628_v53  ;;  %8952 = vmatpush1.bf16.msra.mxu1 %v11842_v51  ;;  %v11878_v51 = vld [vmem:[#allocation64 + $0x328] ss:$16 sps:$4 sm:$0xff]   ;;  %v11911_v53 = vld [vmem:[#allocation64 + $0x3e0] ss:$16 sps:$4 sm:$0xff]   ;;  %8729 = vmatprep.subr.bf16.mxu0 %v11913_v49  ;;  %v11952_v49 = vld [vmem:[#allocation64 + $0x4ac] ss:$16 sps:$4 sm:$0xff]  }
0x1377   :  { %8953 = vmatprep.subr.bf16.mxu1 %v11850_v55  ;;  %v11886_v55 = vld [vmem:[#allocation64 + $0x34c] ss:$16 sps:$4 sm:$0xff]   ;;  %v11884_v59 = vld [vmem:[#allocation64 + $0x348] ss:$16 sps:$4 sm:$0xff]  }
0x1378   :  { %v4672_v39 = vrot.slane %v4666_v18, %v14077_v37  ;;  %v4676_v61 = vrot.slane %v4666_v18, %v14292_v25  ;;  %v4680_v62 = vrot.slane %v4666_v18, %v14435_v60  ;;  %v4684_v54 = vrot.slane %v4666_v18, %v14438_v14  ;;  %v11917_v18 = vld [vmem:[#allocation64 + $0x400] ss:$16 sps:$4 sm:$0xff]  }
0x1379   :  { %8730 = vmatpush1.bf16.msra.mxu0 %v11911_v53  ;;  %v11950_v53 = vld [vmem:[#allocation64 + $0x4a8] ss:$16 sps:$4 sm:$0xff]  }
0x137a   :  { %v4689_v63 = vmul.f32 %v4672_v39, %v14364_v9  ;;  %v4690_v35 = vmul.f32 %v4676_v61, %v14366_v15  ;;  %v4691_v1 = vmul.f32 %v4680_v62, %v14398_v33  ;;  %v4692_v52 = vmul.f32 %v4684_v54, %v14403_v42  ;;  %8954 = vmatpush1.bf16.msra.mxu1 %v11848_v7  ;;  %v11860_v42 = vld [vmem:[#allocation64 + $0x2c8] ss:$16 sps:$4 sm:$0xff]   ;;  %v11892_v7 = vld [vmem:[#allocation64 + $0x36c] ss:$16 sps:$4 sm:$0xff]  }
0x137b   :  { %v4726_v2 = vmul.f32 %v4684_v54, %v14390_v13  ;;  %8955 = vmatprep.subr.bf16.mxu1 %v11856_v46  ;;  %v4724_v4 = vmul.f32 %v4676_v61, %v14360_v50  ;;  %v4723_v5 = vmul.f32 %v4672_v39, %v14356_v48  ;;  %v4725_v6 = vmul.f32 %v4680_v62, %v14382_v40  ;;  %v11868_v13 = vld [vmem:[#allocation64 + $0x2ec] ss:$16 sps:$4 sm:$0xff]   ;;  %v11866_v40 = vld [vmem:[#allocation64 + $0x2e8] ss:$16 sps:$4 sm:$0xff]   ;;  %v11925_v46 = vld [vmem:[#allocation64 + $0x424] ss:$16 sps:$4 sm:$0xff]  }
0x137c   :  { %v4697_v8 = vcombine.low %v4689_v63, %v4690_v35  ;;  %v4698_v9 = vcombine.low %v4691_v1, %v4692_v52  ;;  %v4667_v50 = vld [vmem:[#allocation71] sm:$0xf]  ;;  %8740 = vmatprep.subr.bf16.mxu0 %v11919_v58  ;;  %8732 = vmatmul.mubr.bf16.vlgmr.msra.gmra.mrb[52].mxu0 %v13560_v56  ;;  %v11890_v39 = vld [vmem:[#allocation64 + $0x368] ss:$16 sps:$4 sm:$0xff]   ;;  %v11923_v61 = vld [vmem:[#allocation64 + $0x420] ss:$16 sps:$4 sm:$0xff]  }
0x137d   :  { %8741 = vmatpush1.bf16.msra.mxu0 %v11917_v18  ;;  %v11898_v62 = vld [vmem:[#allocation64 + $0x38c] ss:$16 sps:$4 sm:$0xff]   ;;  %v11931_v54 = vld [vmem:[#allocation64 + $0x444] ss:$16 sps:$4 sm:$0xff]   ;;  %v11896_v63 = vld [vmem:[#allocation64 + $0x388] ss:$16 sps:$4 sm:$0xff]  }
0x137e   :  { %v4705_v15 = vrot.slane %v4697_v8, %v14287_v0  ;;  %v4712_v33 = vrot.slane %v4698_v9, %v14287_v0  ;;  %8956 = vmatpush1.bf16.msra.mxu1 %v11854_v57  ;;  %8742 = vmatprep.subr.bf16.mxu0 %v11925_v46  ;;  %v11929_v35 = vld [vmem:[#allocation64 + $0x440] ss:$16 sps:$4 sm:$0xff]   ;;  %v11904_v1 = vld [vmem:[#allocation64 + $0x3ac] ss:$16 sps:$4 sm:$0xff]   ;;  %v11937_v52 = vld [vmem:[#allocation64 + $0x464] ss:$16 sps:$4 sm:$0xff]  }
0x137f   :  { %8957 = vmatprep.subr.bf16.mxu1 %v11862_v3  ;;  %v11902_v57 = vld [vmem:[#allocation64 + $0x3a8] ss:$16 sps:$4 sm:$0xff]   ;;  %v11910_v3 = vld [vmem:[#allocation64 + $0x3cc] ss:$16 sps:$4 sm:$0xff]   ;;  %v11949_v9 = vld [vmem:[#allocation64 + $0x4a4] ss:$16 sps:$4 sm:$0xff]  }
0x1380   :  { %v4713_v31 = vcombine.low %v4705_v15, %v4712_v33  ;;  %v11916_v8 = vld [vmem:[#allocation64 + $0x3ec] ss:$16 sps:$4 sm:$0xff]   ;;  %v11947_v15 = vld [vmem:[#allocation64 + $0x4a0] ss:$16 sps:$4 sm:$0xff]   ;;  %v11991_v18 = vld [vmem:[#allocation64 + $0x584] ss:$16 sps:$4 sm:$0xff]  }
0x1381   :  { %8743 = vmatpush1.bf16.msra.mxu0 %v11923_v61  ;;  %v11922_v33 = vld [vmem:[#allocation64 + $0x40c] ss:$16 sps:$4 sm:$0xff]   ;;  %v11997_v46 = vld [vmem:[#allocation64 + $0x5a4] ss:$16 sps:$4 sm:$0xff]   ;;  %v11995_v61 = vld [vmem:[#allocation64 + $0x5a0] ss:$16 sps:$4 sm:$0xff]  }
0x1382   :  { %v4720_v48 = vrot.slane %v4713_v31, %v14287_v0  ;;  %8958 = vmatpush1.bf16.msra.mxu1 %v11860_v42  ;;  %8744 = vmatprep.subr.bf16.mxu0 %v11931_v54  ;;  %v11955_v42 = vld [vmem:[#allocation64 + $0x4c4] ss:$16 sps:$4 sm:$0xff]   ;;  %v11928_v31 = vld [vmem:[#allocation64 + $0x42c] ss:$16 sps:$4 sm:$0xff]  }
0x1383   :  { %8959 = vmatprep.subr.bf16.mxu1 %v11868_v13  ;;  %v11953_v13 = vld [vmem:[#allocation64 + $0x4c0] ss:$16 sps:$4 sm:$0xff]   ;;  %v11958_v58 = vld [vmem:[#allocation64 + $0x4cc] ss:$16 sps:$4 sm:$0xff]   ;;  %v12003_v54 = vld [vmem:[#allocation64 + $0x5c4] ss:$16 sps:$4 sm:$0xff]  }
0x1384   :  { %v4722_v20 = vsub.f32 %v4667_v50, %v4720_v48  ;;  %v11961_v50 = vld [vmem:[#allocation64 + $0x4e4] ss:$16 sps:$4 sm:$0xff]   ;;  %v11959_v48 = vld [vmem:[#allocation64 + $0x4e0] ss:$16 sps:$4 sm:$0xff]  }
0x1385   :  { %8745 = vmatpush1.bf16.msra.mxu0 %v11929_v35  ;;  %v12001_v35 = vld [vmem:[#allocation64 + $0x5c0] ss:$16 sps:$4 sm:$0xff]  }
0x1386   :  { %v4743_v23 = vrot.slane %v4722_v20, %v14438_v14  ;;  %8960 = vmatpush1.bf16.msra.mxu1 %v11866_v40  ;;  %v4735_v26 = vrot.slane %v4722_v20, %v14292_v25  ;;  %v4731_v28 = vrot.slane %v4722_v20, %v14077_v37  ;;  %v4739_v29 = vrot.slane %v4722_v20, %v14435_v60  ;;  %v11934_v40 = vld [vmem:[#allocation64 + $0x44c] ss:$16 sps:$4 sm:$0xff]   ;;  %v11965_v20 = vld [vmem:[#allocation64 + $0x500] ss:$16 sps:$4 sm:$0xff]  }
0x1387   :  { %8961 = vmatprep.subr.bf16.mxu1 %v11874_v19  ;;  %8746 = vmatprep.subr.bf16.mxu0 %v11937_v52  ;;  %v11932_v19 = vld [vmem:[#allocation64 + $0x448] ss:$16 sps:$4 sm:$0xff]   ;;  %v12009_v52 = vld [vmem:[#allocation64 + $0x5e4] ss:$16 sps:$4 sm:$0xff]  }
0x1388   :  { %v14459_v32 = vadd.f32 %v4743_v23, %v4726_v2  ;;  %v14461_v44 = vadd.f32 %v4735_v26, %v4724_v4  ;;  %v14463_v11 = vadd.f32 %v4731_v28, %v4723_v5  ;;  %v14465_v47 = vadd.f32 %v4739_v29, %v4725_v6  ;;  %v11935_v2 = vld [vmem:[#allocation64 + $0x460] ss:$16 sps:$4 sm:$0xff]   ;;  %v11943_v4 = vld [vmem:[#allocation64 + $0x484] ss:$16 sps:$4 sm:$0xff]   ;;  %v11908_v5 = vld [vmem:[#allocation64 + $0x3c8] ss:$16 sps:$4 sm:$0xff]  }
0x1389   :  { %8747 = vmatpush1.bf16.msra.mxu0 %v11935_v2  ;;  %v11941_v6 = vld [vmem:[#allocation64 + $0x480] ss:$16 sps:$4 sm:$0xff]   ;;  %v11973_v23 = vld [vmem:[#allocation64 + $0x524] ss:$16 sps:$4 sm:$0xff]   ;;  %v11946_v26 = vld [vmem:[#allocation64 + $0x48c] ss:$16 sps:$4 sm:$0xff]  }
0x138a   :  { %8962 = vmatpush1.bf16.msra.mxu1 %v11872_v24  ;;  %8748 = vmatprep.subr.bf16.mxu0 %v11943_v4  ;;  %v11938_v24 = vld [vmem:[#allocation64 + $0x468] ss:$16 sps:$4 sm:$0xff]   ;;  %v11979_v28 = vld [vmem:[#allocation64 + $0x544] ss:$16 sps:$4 sm:$0xff]   ;;  %v12007_v2 = vld [vmem:[#allocation64 + $0x5e0] ss:$16 sps:$4 sm:$0xff]  }
0x138b   :  { %8963 = vmatprep.subr.bf16.mxu1 %v11880_v30  ;;  %v11944_v29 = vld [vmem:[#allocation64 + $0x488] ss:$16 sps:$4 sm:$0xff]   ;;  %v11977_v30 = vld [vmem:[#allocation64 + $0x540] ss:$16 sps:$4 sm:$0xff]   ;;  %v11982_v4 = vld [vmem:[#allocation64 + $0x54c] ss:$16 sps:$4 sm:$0xff]  }
0x138d   :  { %8749 = vmatpush1.bf16.msra.mxu0 %v11941_v6  ;;  %v11980_v6 = vld [vmem:[#allocation64 + $0x548] ss:$16 sps:$4 sm:$0xff]  }
0x138e   :  { %8964 = vmatpush1.bf16.msra.mxu1 %v11878_v51  ;;  %8750 = vmatprep.subr.bf16.mxu0 %v11949_v9  ;;  %v11985_v51 = vld [vmem:[#allocation64 + $0x564] ss:$16 sps:$4 sm:$0xff]   ;;  %v11986_v9 = vld [vmem:[#allocation64 + $0x568] ss:$16 sps:$4 sm:$0xff]  }
0x138f   :  { %8965 = vmatprep.subr.bf16.mxu1 %v11886_v55  ;;  %v11983_v55 = vld [vmem:[#allocation64 + $0x560] ss:$16 sps:$4 sm:$0xff]  }
0x1391   :  { %8751 = vmatpush1.bf16.msra.mxu0 %v11947_v15  ;;  %v11992_v15 = vld [vmem:[#allocation64 + $0x588] ss:$16 sps:$4 sm:$0xff]  }
0x1392   :  { %8966 = vmatpush1.bf16.msra.mxu1 %v11884_v59  ;;  %8752 = vmatprep.subr.bf16.mxu0 %v11955_v42  ;;  %v11989_v59 = vld [vmem:[#allocation64 + $0x580] ss:$16 sps:$4 sm:$0xff]   ;;  %v11998_v42 = vld [vmem:[#allocation64 + $0x5a8] ss:$16 sps:$4 sm:$0xff]  }
0x1393   :  { %8967 = vmatprep.subr.bf16.mxu1 %v11892_v7  ;;  %v11956_v7 = vld [vmem:[#allocation64 + $0x4c8] ss:$16 sps:$4 sm:$0xff]  }
0x1395   :  { %8753 = vmatpush1.bf16.msra.mxu0 %v11953_v13  ;;  %v12004_v13 = vld [vmem:[#allocation64 + $0x5c8] ss:$16 sps:$4 sm:$0xff]  }
0x1396   :  { %8968 = vmatpush1.bf16.msra.mxu1 %v11890_v39  ;;  %8754 = vmatprep.subr.bf16.mxu0 %v11961_v50  ;;  %v11964_v39 = vld [vmem:[#allocation64 + $0x4ec] ss:$16 sps:$4 sm:$0xff]   ;;  %v12010_v50 = vld [vmem:[#allocation64 + $0x5e8] ss:$16 sps:$4 sm:$0xff]  }
0x1397   :  { %8969 = vmatprep.subr.bf16.mxu1 %v11898_v62  ;;  %v11962_v62 = vld [vmem:[#allocation64 + $0x4e8] ss:$16 sps:$4 sm:$0xff]  }
0x1399   :  { %8755 = vmatpush1.bf16.msra.mxu0 %v11959_v48 }
0x139a   :  { %8970 = vmatpush1.bf16.msra.mxu1 %v11896_v63  ;;  %8756 = vmatprep.subr.bf16.mxu0 %v11967_v17  ;;  %v11970_v63 = vld [vmem:[#allocation64 + $0x50c] ss:$16 sps:$4 sm:$0xff]  }
0x139b   :  { %8971 = vmatprep.subr.bf16.mxu1 %v11904_v1  ;;  %v11968_v1 = vld [vmem:[#allocation64 + $0x508] ss:$16 sps:$4 sm:$0xff]  }
0x139d   :  { %8757 = vmatpush1.bf16.msra.mxu0 %v11965_v20 }
0x139e   :  { %8972 = vmatpush1.bf16.msra.mxu1 %v11902_v57  ;;  %8758 = vmatprep.subr.bf16.mxu0 %v11973_v23  ;;  %v11976_v57 = vld [vmem:[#allocation64 + $0x52c] ss:$16 sps:$4 sm:$0xff]  }
0x139f   :  { %8973 = vmatprep.subr.bf16.mxu1 %v11910_v3  ;;  %v11974_v3 = vld [vmem:[#allocation64 + $0x528] ss:$16 sps:$4 sm:$0xff]  }
0x13a1   :  { %8759 = vmatpush1.bf16.msra.mxu0 %v11971_v38 }
0x13a2   :  { %8974 = vmatpush1.bf16.msra.mxu1 %v11908_v5  ;;  %8760 = vmatprep.subr.bf16.mxu0 %v11979_v28  ;;  %v12015_v5 = vld [vmem:[#allocation64 + $0x604] ss:$16 sps:$4 sm:$0xff]  }
0x13a3   :  { %8975 = vmatprep.subr.bf16.mxu1 %v11916_v8  ;;  %v11988_v8 = vld [vmem:[#allocation64 + $0x56c] ss:$16 sps:$4 sm:$0xff]  }
0x13a5   :  { %8761 = vmatpush1.bf16.msra.mxu0 %v11977_v30 }
0x13a6   :  { %8976 = vmatpush1.bf16.msra.mxu1 %v11914_v10  ;;  %8762 = vmatprep.subr.bf16.mxu0 %v11985_v51  ;;  %v11994_v10 = vld [vmem:[#allocation64 + $0x58c] ss:$16 sps:$4 sm:$0xff]  }
0x13a7   :  { %8986 = vmatprep.subr.bf16.mxu1 %v11922_v33  ;;  %v12000_v33 = vld [vmem:[#allocation64 + $0x5ac] ss:$16 sps:$4 sm:$0xff]  }
0x13a9   :  { %8978 = vmatmul.mubr.bf16.vlgmr.msra.gmra.mrb[56].mxu1 %v13560_v56  ;;  %8763 = vmatpush1.bf16.msra.mxu0 %v11983_v55 }
0x13aa   :  { %8987 = vmatpush1.bf16.msra.mxu1 %v11920_v12  ;;  %8764 = vmatprep.subr.bf16.mxu0 %v11991_v18  ;;  %v12006_v12 = vld [vmem:[#allocation64 + $0x5cc] ss:$16 sps:$4 sm:$0xff]  }
0x13ab   :  { %8988 = vmatprep.subr.bf16.mxu1 %v11928_v31  ;;  %v12012_v31 = vld [vmem:[#allocation64 + $0x5ec] ss:$16 sps:$4 sm:$0xff]  }
0x13ad   :  { %8765 = vmatpush1.bf16.msra.mxu0 %v11989_v59 }
0x13ae   :  { %8989 = vmatpush1.bf16.msra.mxu1 %v11926_v16  ;;  %8766 = vmatprep.subr.bf16.mxu0 %v11997_v46  ;;  %v12018_v16 = vld [vmem:[#allocation64 + $0x60c] ss:$16 sps:$4 sm:$0xff]  }
0x13af   :  { %8990 = vmatprep.subr.bf16.mxu1 %v11934_v40 }
0x13b1   :  { %8767 = vmatpush1.bf16.msra.mxu0 %v11995_v61 }
0x13b2   :  { %8991 = vmatpush1.bf16.msra.mxu1 %v11932_v19  ;;  %8768 = vmatprep.subr.bf16.mxu0 %v12003_v54 }
0x13b3   :  { %8992 = vmatprep.subr.bf16.mxu1 %v11940_v21 }
0x13b5   :  { %8769 = vmatpush1.bf16.msra.mxu0 %v12001_v35 }
0x13b6   :  { %8993 = vmatpush1.bf16.msra.mxu1 %v11938_v24  ;;  %8770 = vmatprep.subr.bf16.mxu0 %v12009_v52 }
0x13b7   :  { %8994 = vmatprep.subr.bf16.mxu1 %v11946_v26 }
0x13b9   :  { %8771 = vmatpush1.bf16.msra.mxu0 %v12007_v2 }
0x13ba   :  { %8995 = vmatpush1.bf16.msra.mxu1 %v11944_v29  ;;  %8781 = vmatprep.subr.bf16.mxu0 %v12015_v5 }
0x13bb   :  { %8996 = vmatprep.subr.bf16.mxu1 %v11952_v49 }
0x13be   :  { %8997 = vmatpush1.bf16.msra.mxu1 %v11950_v53 }
0x13bf   :  { %8998 = vmatprep.subr.bf16.mxu1 %v11958_v58 }
0x13c2   :  { %8999 = vmatpush1.bf16.msra.mxu1 %v11956_v7 }
0x13c3   :  { %9000 = vmatprep.subr.bf16.mxu1 %v11964_v39 }
0x13c6   :  { %9001 = vmatpush1.bf16.msra.mxu1 %v11962_v62 }
0x13c7   :  { %9002 = vmatprep.subr.bf16.mxu1 %v11970_v63 }
0x13ca   :  { %9003 = vmatpush1.bf16.msra.mxu1 %v11968_v1 }
0x13cb   :  { %9004 = vmatprep.subr.bf16.mxu1 %v11976_v57 }
0x13ce   :  { %9005 = vmatpush1.bf16.msra.mxu1 %v11974_v3 }
0x13cf   :  { %9006 = vmatprep.subr.bf16.mxu1 %v11982_v4 }
0x13d2   :  { %9007 = vmatpush1.bf16.msra.mxu1 %v11980_v6 }
0x13d3   :  { %9008 = vmatprep.subr.bf16.mxu1 %v11988_v8 }
0x13d6   :  { %9009 = vmatpush1.bf16.msra.mxu1 %v11986_v9 }
0x13d7   :  { %9010 = vmatprep.subr.bf16.mxu1 %v11994_v10 }
0x13da   :  { %9011 = vmatpush1.bf16.msra.mxu1 %v11992_v15 }
0x13db   :  { %9012 = vmatprep.subr.bf16.mxu1 %v12000_v33 }
0x13de   :  { %9013 = vmatpush1.bf16.msra.mxu1 %v11998_v42 }
0x13df   :  { %9014 = vmatprep.subr.bf16.mxu1 %v12006_v12 }
0x13e2   :  { %9015 = vmatpush1.bf16.msra.mxu1 %v12004_v13 }
0x13e3   :  { %9016 = vmatprep.subr.bf16.mxu1 %v12012_v31 }
0x13e6   :  { %9017 = vmatpush1.bf16.msra.mxu1 %v12010_v50  ;;  %v6243_v50 = vrot.slane %v6235_v36, %v14287_v0 }
0x13e7   :  { %9027 = vmatprep.subr.bf16.mxu1 %v12018_v16 }
0x13fc   :  { %v14469_v48 = vpop.f32.mrb[52].mxu1 }
0x13fd   :  { %v6164_v40 = vsel %vm954_vm9, %v14469_v48, 0.0  ;;  %v6145_v17 = vpop.f32.mrb[53].mxu1 }
0x13fe   :  { %v6165_v19 = vrot.slane %v6164_v40, 4  ;;  %v6171_v20 = vsel %vm954_vm9, %v6145_v17, 0.0  ;;  %v6147_v21 = vpop.f32.mrb[54].mxu1 }
0x13ff   :  { %v6172_v23 = vrot.slane %v6171_v20, 4  ;;  %v6148_v24 = vpop.f32.mrb[55].mxu1 }
0x1400   :  { %v6166_v38 = vadd.f32 %v6165_v19, %v6164_v40  ;;  %v6222_v19 = vld [vmem:[#allocation61] sm:$0xf] }
0x1401   :  { %v6173_v26 = vadd.f32 %v6172_v23, %v6171_v20 }
0x1402   :  { %v6167_v28 = vrot.slane %v6166_v38, 2 }
0x1403   :  { %v6174_v29 = vrot.slane %v6173_v26, 2 }
0x1404   :  { %v6168_v30 = vadd.f32 %v6167_v28, %v6166_v38 }
0x1405   :  { %v6175_v49 = vadd.f32 %v6174_v29, %v6173_v26 }
0x1406   :  { %v6169_v51 = vrot.slane %v6168_v30, 1 }
0x1407   :  { %v6176_v53 = vrot.slane %v6175_v49, 1 }
0x1408   :  { %v6170_v55 = vadd.f32 %v6169_v51, %v6168_v30 }
0x1409   :  { %v6177_v58 = vadd.f32 %v6176_v53, %v6175_v49 }
0x140a   :  { %v6180_v59 = vmul.f32 0.5, %v6170_v55 }
0x140b   :  { %v6181_v18 = vmul.f32 0.5, %v6177_v58 }
0x140c   :  { %v6184_v7 = vsub.f32 %v14469_v48, %v6180_v59 }
0x140d   :  { %v6185_v46 = vsub.f32 %v6145_v17, %v6181_v18 }
0x140e   :  { %v6188_v39 = vmul.f32 %v6184_v7, %v6184_v7 }
0x140f   :  { %v6189_v61 = vmul.f32 %v6185_v46, %v6185_v46 }
0x1410   :  { %v6204_v62 = vsel %vm954_vm9, %v6188_v39, 0.0 }
0x1411   :  { %v6205_v54 = vrot.slane %v6204_v62, 4  ;;  %v6211_v63 = vsel %vm954_vm9, %v6189_v61, 0.0 }
0x1412   :  { %v6212_v35 = vrot.slane %v6211_v63, 4 }
0x1413   :  { %v6206_v1 = vadd.f32 %v6205_v54, %v6204_v62 }
0x1414   :  { %v6213_v52 = vadd.f32 %v6212_v35, %v6211_v63 }
0x1415   :  { %v6207_v57 = vrot.slane %v6206_v1, 2 }
0x1416   :  { %v6214_v2 = vrot.slane %v6213_v52, 2 }
0x1417   :  { %v6208_v3 = vadd.f32 %v6207_v57, %v6206_v1  ;;  %v12016_v57 = vld [vmem:[#allocation64 + $0x608] ss:$16 sps:$4 sm:$0xff]  }
0x1418   :  { %v6215_v4 = vadd.f32 %v6214_v2, %v6213_v52  ;;  %v12013_v52 = vld [vmem:[#allocation64 + $0x600] ss:$16 sps:$4 sm:$0xff]  }
0x1419   :  { %v6209_v5 = vrot.slane %v6208_v3, 1 }
0x141a   :  { %v6216_v6 = vrot.slane %v6215_v4, 1 }
0x141b   :  { %v6210_v8 = vadd.f32 %v6209_v5, %v6208_v3  ;;  %v12021_v3 = vld [vmem:[#allocation64 + $0x624] ss:$16 sps:$4 sm:$0xff]  }
0x141c   :  { %v6217_v9 = vadd.f32 %v6216_v6, %v6215_v4  ;;  %v12024_v4 = vld [vmem:[#allocation64 + $0x62c] ss:$16 sps:$4 sm:$0xff]   ;;  %v12019_v6 = vld [vmem:[#allocation64 + $0x620] ss:$16 sps:$4 sm:$0xff]  }
0x141d   :  { %v6220_v10 = vmul.f32 0.5, %v6210_v8  ;;  %v12022_v8 = vld [vmem:[#allocation64 + $0x628] ss:$16 sps:$4 sm:$0xff]  }
0x141e   :  { %v6221_v15 = vmul.f32 0.5, %v6217_v9  ;;  %v12027_v9 = vld [vmem:[#allocation64 + $0x644] ss:$16 sps:$4 sm:$0xff]  }
0x141f   :  { %v6225_v33 = vadd.f32 1e-05, %v6220_v10  ;;  %v12030_v10 = vld [vmem:[#allocation64 + $0x64c] ss:$16 sps:$4 sm:$0xff]  }
0x1420   :  { %v6226_v42 = vadd.f32 1e-05, %v6221_v15  ;;  %v12025_v15 = vld [vmem:[#allocation64 + $0x640] ss:$16 sps:$4 sm:$0xff]  }
0x1421   :  { %12337 = vrsqrt.f32 %v6225_v33  ;;  %v12028_v33 = vld [vmem:[#allocation64 + $0x648] ss:$16 sps:$4 sm:$0xff]  }
0x1422   :  { %12339 = vrsqrt.f32 %v6226_v42  ;;  %v12033_v42 = vld [vmem:[#allocation64 + $0x664] ss:$16 sps:$4 sm:$0xff]  }
0x142b   :  { %v12338_v12 = vpop.eup %12337 }
0x142c   :  { %v12340_v13 = vpop.eup %12339 }
0x142d   :  { %v6236_v31 = vcombine.low %v12338_v12, %v12340_v13  ;;  %v12036_v12 = vld [vmem:[#allocation64 + $0x66c] ss:$16 sps:$4 sm:$0xff]   ;;  %v12031_v13 = vld [vmem:[#allocation64 + $0x660] ss:$16 sps:$4 sm:$0xff]  }
0x142f   :  { %v6250_v16 = vrot.slane %v6236_v31, %v14287_v0  ;;  %v12034_v31 = vld [vmem:[#allocation64 + $0x668] ss:$16 sps:$4 sm:$0xff]  }
0x1431   :  { %v6251_v40 = vcombine.low %v6243_v50, %v6250_v16  ;;  %v12039_v50 = vld [vmem:[#allocation64 + $0x684] ss:$16 sps:$4 sm:$0xff]   ;;  %v12042_v16 = vld [vmem:[#allocation64 + $0x68c] ss:$16 sps:$4 sm:$0xff]  }
0x1433   :  { %v6258_v20 = vrot.slane %v6251_v40, %v14287_v0  ;;  %v12037_v40 = vld [vmem:[#allocation64 + $0x680] ss:$16 sps:$4 sm:$0xff]  }
0x1435   :  { %v6260_v21 = vmul.f32 %v6258_v20, %v6222_v19  ;;  %v12040_v19 = vld [vmem:[#allocation64 + $0x688] ss:$16 sps:$4 sm:$0xff]   ;;  %v12045_v20 = vld [vmem:[#allocation64 + $0x6a4] ss:$16 sps:$4 sm:$0xff]  }
0x1437   :  { %v6274_v23 = vrot.slane %v6260_v21, %v14435_v60  ;;  %v6278_v24 = vrot.slane %v6260_v21, %v14438_v14  ;;  %v6266_v38 = vrot.slane %v6260_v21, %v14077_v37  ;;  %v6270_v26 = vrot.slane %v6260_v21, %v14292_v25  ;;  %v12048_v21 = vld [vmem:[#allocation64 + $0x6ac] ss:$16 sps:$4 sm:$0xff]  }
0x1439   :  { %v6285_v28 = vmul.f32 %v6274_v23, %v6180_v59  ;;  %v6286_v29 = vmul.f32 %v6278_v24, %v6181_v18  ;;  %v6320_v30 = vmul.f32 %v6278_v24, %v6145_v17  ;;  %v6283_v45 = vmul.f32 %v6266_v38, %v14400_v34  ;;  %v6261_v59 = vld [vmem:[#allocation62] sm:$0xf]  ;;  %v12046_v24 = vld [vmem:[#allocation64 + $0x6a8] ss:$16 sps:$4 sm:$0xff]  }
0x143a   :  { %v6284_v27 = vmul.f32 %v6270_v26, %v14405_v43  ;;  %v6318_v36 = vmul.f32 %v6270_v26, %v14392_v22  ;;  %v6317_v49 = vmul.f32 %v6266_v38, %v14384_v41  ;;  %v6319_v51 = vmul.f32 %v6274_v23, %v14469_v48  ;;  %v12043_v23 = vld [vmem:[#allocation64 + $0x6a0] ss:$16 sps:$4 sm:$0xff]   ;;  %v12051_v38 = vld [vmem:[#allocation64 + $0x6c4] ss:$16 sps:$4 sm:$0xff]   ;;  %v12054_v26 = vld [vmem:[#allocation64 + $0x6cc] ss:$16 sps:$4 sm:$0xff]  }
0x143b   :  { %v6292_v53 = vcombine.low %v6285_v28, %v6286_v29  ;;  %v12049_v28 = vld [vmem:[#allocation64 + $0x6c0] ss:$16 sps:$4 sm:$0xff]   ;;  %v12052_v29 = vld [vmem:[#allocation64 + $0x6c8] ss:$16 sps:$4 sm:$0xff]  }
0x143c   :  { %v6291_v55 = vcombine.low %v6283_v45, %v6284_v27  ;;  %v12060_v45 = vld [vmem:[#allocation64 + $0x6ec] ss:$16 sps:$4 sm:$0xff]   ;;  %v12055_v27 = vld [vmem:[#allocation64 + $0x6e0] ss:$16 sps:$4 sm:$0xff]  }
0x143d   :  { %v6306_v58 = vrot.slane %v6292_v53, %v14287_v0  ;;  %v12061_v53 = vld [vmem:[#allocation64 + $0x700] ss:$16 sps:$4 sm:$0xff]  }
0x143e   :  { %v6299_v7 = vrot.slane %v6291_v55, %v14287_v0  ;;  %v12064_v55 = vld [vmem:[#allocation64 + $0x708] ss:$16 sps:$4 sm:$0xff]  }
0x1440   :  { %v6307_v46 = vcombine.low %v6299_v7, %v6306_v58  ;;  %v12069_v58 = vld [vmem:[#allocation64 + $0x724] ss:$16 sps:$4 sm:$0xff]   ;;  %v12072_v7 = vld [vmem:[#allocation64 + $0x72c] ss:$16 sps:$4 sm:$0xff]  }
0x1442   :  { %v6314_v17 = vrot.slane %v6307_v46, %v14287_v0  ;;  %v12067_v46 = vld [vmem:[#allocation64 + $0x720] ss:$16 sps:$4 sm:$0xff]  }
0x1444   :  { %v6316_v18 = vsub.f32 %v6261_v59, %v6314_v17  ;;  %v12070_v59 = vld [vmem:[#allocation64 + $0x728] ss:$16 sps:$4 sm:$0xff]   ;;  %v12075_v17 = vld [vmem:[#allocation64 + $0x744] ss:$16 sps:$4 sm:$0xff]  }
0x1446   :  { %v6329_v34 = vrot.slane %v6316_v18, %v14292_v25  ;;  %v6325_v43 = vrot.slane %v6316_v18, %v14077_v37  ;;  %v6337_v22 = vrot.slane %v6316_v18, %v14438_v14  ;;  %v6333_v41 = vrot.slane %v6316_v18, %v14435_v60  ;;  %v12078_v18 = vld [vmem:[#allocation64 + $0x74c] ss:$16 sps:$4 sm:$0xff]  }
0x1448   :  { %v6343_v48 = vadd.f32 %v6329_v34, %v6318_v36  ;;  %v6342_v39 = vadd.f32 %v6325_v43, %v6317_v49  ;;  %v6345_v61 = vadd.f32 %v6337_v22, %v6320_v30  ;;  %v14499_v62 = vadd.f32 %v6333_v41, %v6319_v51  ;;  %v12057_v30 = vld [vmem:[#allocation64 + $0x6e4] ss:$16 sps:$4 sm:$0xff]   ;;  %v12058_v36 = vld [vmem:[#allocation64 + $0x6e8] ss:$16 sps:$4 sm:$0xff]   ;;  %v12066_v51 = vld [vmem:[#allocation64 + $0x70c] ss:$16 sps:$4 sm:$0xff]  }
0x1449   :  { %v12063_v49 = vld [vmem:[#allocation64 + $0x704] ss:$16 sps:$4 sm:$0xff]   ;;  %v12073_v34 = vld [vmem:[#allocation64 + $0x740] ss:$16 sps:$4 sm:$0xff]   ;;  %v12076_v43 = vld [vmem:[#allocation64 + $0x748] ss:$16 sps:$4 sm:$0xff]  }
0x144a   :  { %v6347_v54 = vmax.f32 %v6343_v48, 0.0  ;;  %v6346_v63 = vmax.f32 %v6342_v39, 0.0  ;;  %v6349_v35 = vmax.f32 %v6345_v61, 0.0  ;;  %v12081_v22 = vld [vmem:[#allocation64 + $0x764] ss:$16 sps:$4 sm:$0xff]  }
0x144b   :  { %v12084_v41 = vld [vmem:[#allocation64 + $0x76c] ss:$16 sps:$4 sm:$0xff]   ;;  %v12079_v48 = vld [vmem:[#allocation64 + $0x760] ss:$16 sps:$4 sm:$0xff]   ;;  %v12082_v39 = vld [vmem:[#allocation64 + $0x768] ss:$16 sps:$4 sm:$0xff]  }
0x144c   :  { %v6351_v1 = vpack.c.bf16 %v6347_v54, %v6347_v54  ;;  %v6350_v2 = vpack.c.bf16 %v6346_v63, %v6346_v63  ;;  %v6353_v5 = vpack.c.bf16 %v6349_v35, %v6349_v35  ;;  %v12087_v61 = vld [vmem:[#allocation64 + $0x784] ss:$16 sps:$4 sm:$0xff]   ;;  %v12090_v54 = vld [vmem:[#allocation64 + $0x78c] ss:$16 sps:$4 sm:$0xff]   ;;  %v12085_v63 = vld [vmem:[#allocation64 + $0x780] ss:$16 sps:$4 sm:$0xff]  }
0x144d   :  { %v12088_v35 = vld [vmem:[#allocation64 + $0x788] ss:$16 sps:$4 sm:$0xff]  }
0x144e   :  { %8772 = vmatprep.mubr.bf16.mxu0 %v6351_v1  ;;  %9018 = vmatprep.mubr.bf16.mxu1 %v6351_v1  ;;  %v12093_v1 = vld [vmem:[#allocation64 + $0x7a4] ss:$16 sps:$4 sm:$0xff]  }
0x144f   :  { %8773 = vmatmul.mubr.bf16.vlgmr.msra.gmra.mrb[52].mxu0 %v6350_v2  ;;  %9019 = vmatmul.mubr.bf16.vlgmr.msra.gmra.mrb[56].mxu1 %v6350_v2  ;;  %v12094_v2 = vld [vmem:[#allocation64 + $0x7a8] ss:$16 sps:$4 sm:$0xff]  }
0x1450   :  { %8782 = vmatpush1.bf16.msra.mxu0 %v12013_v52  ;;  %9028 = vmatpush1.bf16.msra.mxu1 %v12016_v57  ;;  %v12096_v52 = vld [vmem:[#allocation64 + $0x7ac] ss:$16 sps:$4 sm:$0xff]   ;;  %v12091_v57 = vld [vmem:[#allocation64 + $0x7a0] ss:$16 sps:$4 sm:$0xff]  }
0x1451   :  { %8813 = vmatprep.mubr.bf16.mxu0 %v6353_v5  ;;  %9059 = vmatprep.mubr.bf16.mxu1 %v6353_v5  ;;  %v12097_v5 = vld [vmem:[#allocation64 + $0x7c0] ss:$16 sps:$4 sm:$0xff]  }
0x1452   :  { %8783 = vmatprep.subr.bf16.mxu0 %v12021_v3  ;;  %9029 = vmatprep.subr.bf16.mxu1 %v12024_v4  ;;  %v12099_v3 = vld [vmem:[#allocation64 + $0x7c4] ss:$16 sps:$4 sm:$0xff]   ;;  %v12102_v4 = vld [vmem:[#allocation64 + $0x7cc] ss:$16 sps:$4 sm:$0xff]  }
0x1454   :  { %8784 = vmatpush1.bf16.msra.mxu0 %v12019_v6  ;;  %9030 = vmatpush1.bf16.msra.mxu1 %v12022_v8  ;;  %v12100_v6 = vld [vmem:[#allocation64 + $0x7c8] ss:$16 sps:$4 sm:$0xff]   ;;  %v12105_v8 = vld [vmem:[#allocation64 + $0x7e4] ss:$16 sps:$4 sm:$0xff]  }
0x1455   :  { %8785 = vmatprep.subr.bf16.mxu0 %v12027_v9  ;;  %9031 = vmatprep.subr.bf16.mxu1 %v12030_v10  ;;  %v12108_v9 = vld [vmem:[#allocation64 + $0x7ec] ss:$16 sps:$4 sm:$0xff]   ;;  %v12103_v10 = vld [vmem:[#allocation64 + $0x7e0] ss:$16 sps:$4 sm:$0xff]  }
0x1458   :  { %8786 = vmatpush1.bf16.msra.mxu0 %v12025_v15  ;;  %9032 = vmatpush1.bf16.msra.mxu1 %v12028_v33  ;;  %v12106_v15 = vld [vmem:[#allocation64 + $0x7e8] ss:$16 sps:$4 sm:$0xff]   ;;  %v6348_v33 = vmax.f32 %v14499_v62, 0.0  ;;  %v12123_v62 = vld [vmem:[#allocation64 + $0x844] ss:$16 sps:$4 sm:$0xff]  }
0x1459   :  { %8787 = vmatprep.subr.bf16.mxu0 %v12033_v42  ;;  %9033 = vmatprep.subr.bf16.mxu1 %v12036_v12  ;;  %v12111_v42 = vld [vmem:[#allocation64 + $0x804] ss:$16 sps:$4 sm:$0xff]   ;;  %v12114_v12 = vld [vmem:[#allocation64 + $0x80c] ss:$16 sps:$4 sm:$0xff]  }
0x145c   :  { %8788 = vmatpush1.bf16.msra.mxu0 %v12031_v13  ;;  %9034 = vmatpush1.bf16.msra.mxu1 %v12034_v31  ;;  %v12109_v13 = vld [vmem:[#allocation64 + $0x800] ss:$16 sps:$4 sm:$0xff]   ;;  %v12112_v31 = vld [vmem:[#allocation64 + $0x808] ss:$16 sps:$4 sm:$0xff]  }
0x145d   :  { %8789 = vmatprep.subr.bf16.mxu0 %v12039_v50  ;;  %9035 = vmatprep.subr.bf16.mxu1 %v12042_v16  ;;  %v6352_v50 = vpack.c.bf16 %v6348_v33, %v6348_v33  ;;  %v12117_v16 = vld [vmem:[#allocation64 + $0x824] ss:$16 sps:$4 sm:$0xff]  }
0x145e   :  { %v12189_v33 = vld [vmem:[#allocation64 + $0x9a4] ss:$16 sps:$4 sm:$0xff]  }
0x1460   :  { %8790 = vmatpush1.bf16.msra.mxu0 %v12037_v40  ;;  %9036 = vmatpush1.bf16.msra.mxu1 %v12040_v19  ;;  %v12120_v40 = vld [vmem:[#allocation64 + $0x82c] ss:$16 sps:$4 sm:$0xff]   ;;  %v12115_v19 = vld [vmem:[#allocation64 + $0x820] ss:$16 sps:$4 sm:$0xff]  }
0x1461   :  { %8791 = vmatprep.subr.bf16.mxu0 %v12045_v20  ;;  %9037 = vmatprep.subr.bf16.mxu1 %v12048_v21  ;;  %v12118_v20 = vld [vmem:[#allocation64 + $0x828] ss:$16 sps:$4 sm:$0xff]   ;;  %v12126_v21 = vld [vmem:[#allocation64 + $0x84c] ss:$16 sps:$4 sm:$0xff]  }
0x1464   :  { %8792 = vmatpush1.bf16.msra.mxu0 %v12043_v23  ;;  %9038 = vmatpush1.bf16.msra.mxu1 %v12046_v24  ;;  %v12121_v23 = vld [vmem:[#allocation64 + $0x840] ss:$16 sps:$4 sm:$0xff]   ;;  %v12124_v24 = vld [vmem:[#allocation64 + $0x848] ss:$16 sps:$4 sm:$0xff]  }
0x1465   :  { %8793 = vmatprep.subr.bf16.mxu0 %v12051_v38  ;;  %9039 = vmatprep.subr.bf16.mxu1 %v12054_v26  ;;  %v12129_v38 = vld [vmem:[#allocation64 + $0x864] ss:$16 sps:$4 sm:$0xff]   ;;  %v12132_v26 = vld [vmem:[#allocation64 + $0x86c] ss:$16 sps:$4 sm:$0xff]  }
0x1468   :  { %8794 = vmatpush1.bf16.msra.mxu0 %v12049_v28  ;;  %9040 = vmatpush1.bf16.msra.mxu1 %v12052_v29  ;;  %v12127_v28 = vld [vmem:[#allocation64 + $0x860] ss:$16 sps:$4 sm:$0xff]   ;;  %v12130_v29 = vld [vmem:[#allocation64 + $0x868] ss:$16 sps:$4 sm:$0xff]  }
0x1469   :  { %8795 = vmatprep.subr.bf16.mxu0 %v12057_v30  ;;  %9041 = vmatprep.subr.bf16.mxu1 %v12060_v45  ;;  %v12135_v30 = vld [vmem:[#allocation64 + $0x884] ss:$16 sps:$4 sm:$0xff]   ;;  %v12138_v45 = vld [vmem:[#allocation64 + $0x88c] ss:$16 sps:$4 sm:$0xff]  }
0x146c   :  { %8796 = vmatpush1.bf16.msra.mxu0 %v12055_v27  ;;  %9042 = vmatpush1.bf16.msra.mxu1 %v12058_v36  ;;  %v12133_v27 = vld [vmem:[#allocation64 + $0x880] ss:$16 sps:$4 sm:$0xff]   ;;  %v12136_v36 = vld [vmem:[#allocation64 + $0x888] ss:$16 sps:$4 sm:$0xff]  }
0x146d   :  { %8797 = vmatprep.subr.bf16.mxu0 %v12063_v49  ;;  %9043 = vmatprep.subr.bf16.mxu1 %v12066_v51  ;;  %v12141_v49 = vld [vmem:[#allocation64 + $0x8a4] ss:$16 sps:$4 sm:$0xff]   ;;  %v12144_v51 = vld [vmem:[#allocation64 + $0x8ac] ss:$16 sps:$4 sm:$0xff]  }
0x1470   :  { %8798 = vmatpush1.bf16.msra.mxu0 %v12061_v53  ;;  %9044 = vmatpush1.bf16.msra.mxu1 %v12064_v55  ;;  %v12139_v53 = vld [vmem:[#allocation64 + $0x8a0] ss:$16 sps:$4 sm:$0xff]   ;;  %v12142_v55 = vld [vmem:[#allocation64 + $0x8a8] ss:$16 sps:$4 sm:$0xff]  }
0x1471   :  { %8799 = vmatprep.subr.bf16.mxu0 %v12069_v58  ;;  %9045 = vmatprep.subr.bf16.mxu1 %v12072_v7  ;;  %v12147_v58 = vld [vmem:[#allocation64 + $0x8c4] ss:$16 sps:$4 sm:$0xff]   ;;  %v12150_v7 = vld [vmem:[#allocation64 + $0x8cc] ss:$16 sps:$4 sm:$0xff]  }
0x1474   :  { %8800 = vmatpush1.bf16.msra.mxu0 %v12067_v46  ;;  %9046 = vmatpush1.bf16.msra.mxu1 %v12070_v59  ;;  %v12145_v46 = vld [vmem:[#allocation64 + $0x8c0] ss:$16 sps:$4 sm:$0xff]   ;;  %v12148_v59 = vld [vmem:[#allocation64 + $0x8c8] ss:$16 sps:$4 sm:$0xff]  }
0x1475   :  { %8801 = vmatprep.subr.bf16.mxu0 %v12075_v17  ;;  %9047 = vmatprep.subr.bf16.mxu1 %v12078_v18  ;;  %v12153_v17 = vld [vmem:[#allocation64 + $0x8e4] ss:$16 sps:$4 sm:$0xff]   ;;  %v12156_v18 = vld [vmem:[#allocation64 + $0x8ec] ss:$16 sps:$4 sm:$0xff]  }
0x1478   :  { %8802 = vmatpush1.bf16.msra.mxu0 %v12073_v34  ;;  %9048 = vmatpush1.bf16.msra.mxu1 %v12076_v43  ;;  %v12151_v34 = vld [vmem:[#allocation64 + $0x8e0] ss:$16 sps:$4 sm:$0xff]   ;;  %v12154_v43 = vld [vmem:[#allocation64 + $0x8e8] ss:$16 sps:$4 sm:$0xff]  }
0x1479   :  { %8803 = vmatprep.subr.bf16.mxu0 %v12081_v22  ;;  %9049 = vmatprep.subr.bf16.mxu1 %v12084_v41  ;;  %v12159_v22 = vld [vmem:[#allocation64 + $0x904] ss:$16 sps:$4 sm:$0xff]   ;;  %v12162_v41 = vld [vmem:[#allocation64 + $0x90c] ss:$16 sps:$4 sm:$0xff]  }
0x147c   :  { %8804 = vmatpush1.bf16.msra.mxu0 %v12079_v48  ;;  %9050 = vmatpush1.bf16.msra.mxu1 %v12082_v39  ;;  %v12157_v48 = vld [vmem:[#allocation64 + $0x900] ss:$16 sps:$4 sm:$0xff]   ;;  %v12160_v39 = vld [vmem:[#allocation64 + $0x908] ss:$16 sps:$4 sm:$0xff]  }
0x147d   :  { %8805 = vmatprep.subr.bf16.mxu0 %v12087_v61  ;;  %9051 = vmatprep.subr.bf16.mxu1 %v12090_v54  ;;  %v12165_v61 = vld [vmem:[#allocation64 + $0x924] ss:$16 sps:$4 sm:$0xff]   ;;  %v12168_v54 = vld [vmem:[#allocation64 + $0x92c] ss:$16 sps:$4 sm:$0xff]  }
0x1480   :  { %8806 = vmatpush1.bf16.msra.mxu0 %v12085_v63  ;;  %9052 = vmatpush1.bf16.msra.mxu1 %v12088_v35  ;;  %v12163_v63 = vld [vmem:[#allocation64 + $0x920] ss:$16 sps:$4 sm:$0xff]   ;;  %v12166_v35 = vld [vmem:[#allocation64 + $0x928] ss:$16 sps:$4 sm:$0xff]  }
0x1481   :  { %8807 = vmatprep.subr.bf16.mxu0 %v12093_v1  ;;  %9053 = vmatprep.subr.bf16.mxu1 %v12096_v52  ;;  %v12171_v1 = vld [vmem:[#allocation64 + $0x944] ss:$16 sps:$4 sm:$0xff]   ;;  %v12174_v52 = vld [vmem:[#allocation64 + $0x94c] ss:$16 sps:$4 sm:$0xff]  }
0x1484   :  { %8808 = vmatpush1.bf16.msra.mxu0 %v12091_v57  ;;  %9054 = vmatpush1.bf16.msra.mxu1 %v12094_v2  ;;  %v12169_v57 = vld [vmem:[#allocation64 + $0x940] ss:$16 sps:$4 sm:$0xff]   ;;  %v12172_v2 = vld [vmem:[#allocation64 + $0x948] ss:$16 sps:$4 sm:$0xff]  }
0x1485   :  { %8809 = vmatprep.subr.bf16.mxu0 %v12099_v3  ;;  %9055 = vmatprep.subr.bf16.mxu1 %v12102_v4  ;;  %v12177_v3 = vld [vmem:[#allocation64 + $0x964] ss:$16 sps:$4 sm:$0xff]   ;;  %v12180_v4 = vld [vmem:[#allocation64 + $0x96c] ss:$16 sps:$4 sm:$0xff]  }
0x1488   :  { %8810 = vmatpush1.bf16.msra.mxu0 %v12097_v5  ;;  %9056 = vmatpush1.bf16.msra.mxu1 %v12100_v6  ;;  %v12175_v5 = vld [vmem:[#allocation64 + $0x960] ss:$16 sps:$4 sm:$0xff]   ;;  %v12178_v6 = vld [vmem:[#allocation64 + $0x968] ss:$16 sps:$4 sm:$0xff]  }
0x1489   :  { %8811 = vmatprep.subr.bf16.mxu0 %v12105_v8  ;;  %9057 = vmatprep.subr.bf16.mxu1 %v12108_v9  ;;  %v12183_v8 = vld [vmem:[#allocation64 + $0x984] ss:$16 sps:$4 sm:$0xff]   ;;  %v12186_v9 = vld [vmem:[#allocation64 + $0x98c] ss:$16 sps:$4 sm:$0xff]  }
0x148c   :  { %8812 = vmatpush1.bf16.msra.mxu0 %v12103_v10  ;;  %9058 = vmatpush1.bf16.msra.mxu1 %v12106_v15  ;;  %v12181_v10 = vld [vmem:[#allocation64 + $0x980] ss:$16 sps:$4 sm:$0xff]   ;;  %v12184_v15 = vld [vmem:[#allocation64 + $0x988] ss:$16 sps:$4 sm:$0xff]  }
0x148d   :  { %8822 = vmatprep.subr.bf16.mxu0 %v12111_v42  ;;  %9068 = vmatprep.subr.bf16.mxu1 %v12114_v12  ;;  %v12192_v42 = vld [vmem:[#allocation64 + $0x9ac] ss:$16 sps:$4 sm:$0xff]   ;;  %v12187_v12 = vld [vmem:[#allocation64 + $0x9a0] ss:$16 sps:$4 sm:$0xff]  }
0x148f   :  { %8814 = vmatmul.mubr.bf16.vlgmr.msra.gmra.mrb[52].mxu0 %v6352_v50  ;;  %9060 = vmatmul.mubr.bf16.vlgmr.msra.gmra.mrb[56].mxu1 %v6352_v50  ;;  %v12198_v50 = vld [vmem:[#allocation64 + $0x9cc] ss:$16 sps:$4 sm:$0xff]  }
0x1490   :  { %8823 = vmatpush1.bf16.msra.mxu0 %v12109_v13  ;;  %9069 = vmatpush1.bf16.msra.mxu1 %v12112_v31  ;;  %v12190_v13 = vld [vmem:[#allocation64 + $0x9a8] ss:$16 sps:$4 sm:$0xff]   ;;  %v12195_v31 = vld [vmem:[#allocation64 + $0x9c4] ss:$16 sps:$4 sm:$0xff]  }
0x1491   :  { %8824 = vmatprep.subr.bf16.mxu0 %v12117_v16  ;;  %9070 = vmatprep.subr.bf16.mxu1 %v12120_v40  ;;  %v12193_v16 = vld [vmem:[#allocation64 + $0x9c0] ss:$16 sps:$4 sm:$0xff]   ;;  %v12196_v40 = vld [vmem:[#allocation64 + $0x9c8] ss:$16 sps:$4 sm:$0xff]  }
0x1492   :  { %8854 = vmatprep.mubr.bf16.mxu0 %v13560_v56  ;;  %9100 = vmatprep.mubr.bf16.mxu1 %v13560_v56 }
0x1494   :  { %8825 = vmatpush1.bf16.msra.mxu0 %v12115_v19  ;;  %9071 = vmatpush1.bf16.msra.mxu1 %v12118_v20  ;;  %v12201_v19 = vld [vmem:[#allocation64 + $0x9e4] ss:$16 sps:$4 sm:$0xff]   ;;  %v12204_v20 = vld [vmem:[#allocation64 + $0x9ec] ss:$16 sps:$4 sm:$0xff]  }
0x1495   :  { %8826 = vmatprep.subr.bf16.mxu0 %v12123_v62  ;;  %9072 = vmatprep.subr.bf16.mxu1 %v12126_v21  ;;  %v12199_v62 = vld [vmem:[#allocation64 + $0x9e0] ss:$16 sps:$4 sm:$0xff]   ;;  %v12202_v21 = vld [vmem:[#allocation64 + $0x9e8] ss:$16 sps:$4 sm:$0xff]  }
0x1498   :  { %8827 = vmatpush1.bf16.msra.mxu0 %v12121_v23  ;;  %9073 = vmatpush1.bf16.msra.mxu1 %v12124_v24  ;;  %v12207_v23 = vld [vmem:[#allocation64 + $0xa04] ss:$16 sps:$4 sm:$0xff]   ;;  %v12210_v24 = vld [vmem:[#allocation64 + $0xa0c] ss:$16 sps:$4 sm:$0xff]  }
0x1499   :  { %8828 = vmatprep.subr.bf16.mxu0 %v12129_v38  ;;  %9074 = vmatprep.subr.bf16.mxu1 %v12132_v26  ;;  %v12205_v38 = vld [vmem:[#allocation64 + $0xa00] ss:$16 sps:$4 sm:$0xff]   ;;  %v12208_v26 = vld [vmem:[#allocation64 + $0xa08] ss:$16 sps:$4 sm:$0xff]  }
0x149c   :  { %8829 = vmatpush1.bf16.msra.mxu0 %v12127_v28  ;;  %9075 = vmatpush1.bf16.msra.mxu1 %v12130_v29  ;;  %v12213_v28 = vld [vmem:[#allocation64 + $0xa24] ss:$16 sps:$4 sm:$0xff]   ;;  %v12216_v29 = vld [vmem:[#allocation64 + $0xa2c] ss:$16 sps:$4 sm:$0xff]  }
0x149d   :  { %8830 = vmatprep.subr.bf16.mxu0 %v12135_v30  ;;  %9076 = vmatprep.subr.bf16.mxu1 %v12138_v45  ;;  %v12211_v30 = vld [vmem:[#allocation64 + $0xa20] ss:$16 sps:$4 sm:$0xff]   ;;  %v12214_v45 = vld [vmem:[#allocation64 + $0xa28] ss:$16 sps:$4 sm:$0xff]  }
0x14a0   :  { %8831 = vmatpush1.bf16.msra.mxu0 %v12133_v27  ;;  %9077 = vmatpush1.bf16.msra.mxu1 %v12136_v36  ;;  %v12219_v27 = vld [vmem:[#allocation64 + $0xa44] ss:$16 sps:$4 sm:$0xff]   ;;  %v12222_v36 = vld [vmem:[#allocation64 + $0xa4c] ss:$16 sps:$4 sm:$0xff]  }
0x14a1   :  { %8832 = vmatprep.subr.bf16.mxu0 %v12141_v49  ;;  %9078 = vmatprep.subr.bf16.mxu1 %v12144_v51  ;;  %v12217_v49 = vld [vmem:[#allocation64 + $0xa40] ss:$16 sps:$4 sm:$0xff]   ;;  %v12220_v51 = vld [vmem:[#allocation64 + $0xa48] ss:$16 sps:$4 sm:$0xff]  }
0x14a4   :  { %8833 = vmatpush1.bf16.msra.mxu0 %v12139_v53  ;;  %9079 = vmatpush1.bf16.msra.mxu1 %v12142_v55  ;;  %v12225_v53 = vld [vmem:[#allocation64 + $0xa64] ss:$16 sps:$4 sm:$0xff]   ;;  %v12228_v55 = vld [vmem:[#allocation64 + $0xa6c] ss:$16 sps:$4 sm:$0xff]  }
0x14a5   :  { %8834 = vmatprep.subr.bf16.mxu0 %v12147_v58  ;;  %9080 = vmatprep.subr.bf16.mxu1 %v12150_v7  ;;  %v12223_v58 = vld [vmem:[#allocation64 + $0xa60] ss:$16 sps:$4 sm:$0xff]   ;;  %v12226_v7 = vld [vmem:[#allocation64 + $0xa68] ss:$16 sps:$4 sm:$0xff]  }
0x14a8   :  { %8835 = vmatpush1.bf16.msra.mxu0 %v12145_v46  ;;  %9081 = vmatpush1.bf16.msra.mxu1 %v12148_v59  ;;  %v12231_v46 = vld [vmem:[#allocation64 + $0xa84] ss:$16 sps:$4 sm:$0xff]   ;;  %v12234_v59 = vld [vmem:[#allocation64 + $0xa8c] ss:$16 sps:$4 sm:$0xff]  }
0x14a9   :  { %8836 = vmatprep.subr.bf16.mxu0 %v12153_v17  ;;  %9082 = vmatprep.subr.bf16.mxu1 %v12156_v18  ;;  %v12229_v17 = vld [vmem:[#allocation64 + $0xa80] ss:$16 sps:$4 sm:$0xff]   ;;  %v12232_v18 = vld [vmem:[#allocation64 + $0xa88] ss:$16 sps:$4 sm:$0xff]  }
0x14ac   :  { %8837 = vmatpush1.bf16.msra.mxu0 %v12151_v34  ;;  %9083 = vmatpush1.bf16.msra.mxu1 %v12154_v43  ;;  %v12237_v34 = vld [vmem:[#allocation64 + $0xaa4] ss:$16 sps:$4 sm:$0xff]   ;;  %v12240_v43 = vld [vmem:[#allocation64 + $0xaac] ss:$16 sps:$4 sm:$0xff]  }
0x14ad   :  { %8838 = vmatprep.subr.bf16.mxu0 %v12159_v22  ;;  %9084 = vmatprep.subr.bf16.mxu1 %v12162_v41  ;;  %v12235_v22 = vld [vmem:[#allocation64 + $0xaa0] ss:$16 sps:$4 sm:$0xff]   ;;  %v12238_v41 = vld [vmem:[#allocation64 + $0xaa8] ss:$16 sps:$4 sm:$0xff]  }
0x14b0   :  { %8839 = vmatpush1.bf16.msra.mxu0 %v12157_v48  ;;  %9085 = vmatpush1.bf16.msra.mxu1 %v12160_v39  ;;  %v12243_v48 = vld [vmem:[#allocation64 + $0xac4] ss:$16 sps:$4 sm:$0xff]   ;;  %v12246_v39 = vld [vmem:[#allocation64 + $0xacc] ss:$16 sps:$4 sm:$0xff]  }
0x14b1   :  { %8840 = vmatprep.subr.bf16.mxu0 %v12165_v61  ;;  %9086 = vmatprep.subr.bf16.mxu1 %v12168_v54  ;;  %v12241_v61 = vld [vmem:[#allocation64 + $0xac0] ss:$16 sps:$4 sm:$0xff]   ;;  %v12244_v54 = vld [vmem:[#allocation64 + $0xac8] ss:$16 sps:$4 sm:$0xff]  }
0x14b4   :  { %8841 = vmatpush1.bf16.msra.mxu0 %v12163_v63  ;;  %9087 = vmatpush1.bf16.msra.mxu1 %v12166_v35  ;;  %v12249_v63 = vld [vmem:[#allocation64 + $0xae4] ss:$16 sps:$4 sm:$0xff]   ;;  %v12252_v35 = vld [vmem:[#allocation64 + $0xaec] ss:$16 sps:$4 sm:$0xff]  }
0x14b5   :  { %8842 = vmatprep.subr.bf16.mxu0 %v12171_v1  ;;  %9088 = vmatprep.subr.bf16.mxu1 %v12174_v52  ;;  %v12247_v1 = vld [vmem:[#allocation64 + $0xae0] ss:$16 sps:$4 sm:$0xff]   ;;  %v12250_v52 = vld [vmem:[#allocation64 + $0xae8] ss:$16 sps:$4 sm:$0xff]  }
0x14b8   :  { %8843 = vmatpush1.bf16.msra.mxu0 %v12169_v57  ;;  %9089 = vmatpush1.bf16.msra.mxu1 %v12172_v2  ;;  %v12255_v57 = vld [vmem:[#allocation64 + $0xb04] ss:$16 sps:$4 sm:$0xff]   ;;  %v12258_v2 = vld [vmem:[#allocation64 + $0xb0c] ss:$16 sps:$4 sm:$0xff]  }
0x14b9   :  { %8844 = vmatprep.subr.bf16.mxu0 %v12177_v3  ;;  %9090 = vmatprep.subr.bf16.mxu1 %v12180_v4  ;;  %v12253_v3 = vld [vmem:[#allocation64 + $0xb00] ss:$16 sps:$4 sm:$0xff]   ;;  %v12256_v4 = vld [vmem:[#allocation64 + $0xb08] ss:$16 sps:$4 sm:$0xff]  }
0x14bc   :  { %8845 = vmatpush1.bf16.msra.mxu0 %v12175_v5  ;;  %9091 = vmatpush1.bf16.msra.mxu1 %v12178_v6  ;;  %v12261_v5 = vld [vmem:[#allocation64 + $0xb24] ss:$16 sps:$4 sm:$0xff]   ;;  %v12264_v6 = vld [vmem:[#allocation64 + $0xb2c] ss:$16 sps:$4 sm:$0xff]  }
0x14bd   :  { %8846 = vmatprep.subr.bf16.mxu0 %v12183_v8  ;;  %9092 = vmatprep.subr.bf16.mxu1 %v12186_v9  ;;  %v12259_v8 = vld [vmem:[#allocation64 + $0xb20] ss:$16 sps:$4 sm:$0xff]   ;;  %v12262_v9 = vld [vmem:[#allocation64 + $0xb28] ss:$16 sps:$4 sm:$0xff]  }
0x14c0   :  { %8847 = vmatpush1.bf16.msra.mxu0 %v12181_v10  ;;  %9093 = vmatpush1.bf16.msra.mxu1 %v12184_v15  ;;  %v12267_v10 = vld [vmem:[#allocation64 + $0xb44] ss:$16 sps:$4 sm:$0xff]   ;;  %v12270_v15 = vld [vmem:[#allocation64 + $0xb4c] ss:$16 sps:$4 sm:$0xff]  }
0x14c1   :  { %8848 = vmatprep.subr.bf16.mxu0 %v12189_v33  ;;  %9094 = vmatprep.subr.bf16.mxu1 %v12192_v42  ;;  %v12265_v33 = vld [vmem:[#allocation64 + $0xb40] ss:$16 sps:$4 sm:$0xff]   ;;  %v12268_v42 = vld [vmem:[#allocation64 + $0xb48] ss:$16 sps:$4 sm:$0xff]  }
0x14c4   :  { %8849 = vmatpush1.bf16.msra.mxu0 %v12187_v12  ;;  %9095 = vmatpush1.bf16.msra.mxu1 %v12190_v13  ;;  %v12273_v12 = vld [vmem:[#allocation64 + $0xb64] ss:$16 sps:$4 sm:$0xff]   ;;  %v12276_v13 = vld [vmem:[#allocation64 + $0xb6c] ss:$16 sps:$4 sm:$0xff]  }
0x14c5   :  { %8850 = vmatprep.subr.bf16.mxu0 %v12195_v31  ;;  %9096 = vmatprep.subr.bf16.mxu1 %v12198_v50  ;;  %v12271_v31 = vld [vmem:[#allocation64 + $0xb60] ss:$16 sps:$4 sm:$0xff]   ;;  %v12274_v50 = vld [vmem:[#allocation64 + $0xb68] ss:$16 sps:$4 sm:$0xff]  }
0x14c8   :  { %8851 = vmatpush1.bf16.msra.mxu0 %v12193_v16  ;;  %9097 = vmatpush1.bf16.msra.mxu1 %v12196_v40  ;;  %v12279_v16 = vld [vmem:[#allocation64 + $0xb84] ss:$16 sps:$4 sm:$0xff]   ;;  %v12282_v40 = vld [vmem:[#allocation64 + $0xb8c] ss:$16 sps:$4 sm:$0xff]  }
0x14c9   :  { %8852 = vmatprep.subr.bf16.mxu0 %v12201_v19  ;;  %9098 = vmatprep.subr.bf16.mxu1 %v12204_v20  ;;  %v12277_v19 = vld [vmem:[#allocation64 + $0xb80] ss:$16 sps:$4 sm:$0xff]   ;;  %v12280_v20 = vld [vmem:[#allocation64 + $0xb88] ss:$16 sps:$4 sm:$0xff]  }
0x14cc   :  { %8853 = vmatpush1.bf16.msra.mxu0 %v12199_v62  ;;  %9099 = vmatpush1.bf16.msra.mxu1 %v12202_v21  ;;  %v12285_v62 = vld [vmem:[#allocation64 + $0xba4] ss:$16 sps:$4 sm:$0xff]   ;;  %v12288_v21 = vld [vmem:[#allocation64 + $0xbac] ss:$16 sps:$4 sm:$0xff]  }
0x14cd   :  { %8863 = vmatprep.subr.bf16.mxu0 %v12207_v23  ;;  %9109 = vmatprep.subr.bf16.mxu1 %v12210_v24  ;;  %v12283_v23 = vld [vmem:[#allocation64 + $0xba0] ss:$16 sps:$4 sm:$0xff]   ;;  %v12286_v24 = vld [vmem:[#allocation64 + $0xba8] ss:$16 sps:$4 sm:$0xff]  }
0x14cf   :  { %8855 = vmatmul.mubr.bf16.vlgmr.msra.gmra.mrb[52].mxu0 %v13560_v56  ;;  %9101 = vmatmul.mubr.bf16.vlgmr.msra.gmra.mrb[56].mxu1 %v13560_v56 }
0x14d0   :  { %8864 = vmatpush1.bf16.msra.mxu0 %v12205_v38  ;;  %9110 = vmatpush1.bf16.msra.mxu1 %v12208_v26  ;;  %v12291_v38 = vld [vmem:[#allocation64 + $0xbc4] ss:$16 sps:$4 sm:$0xff]   ;;  %v12294_v26 = vld [vmem:[#allocation64 + $0xbcc] ss:$16 sps:$4 sm:$0xff]  }
0x14d1   :  { %8865 = vmatprep.subr.bf16.mxu0 %v12213_v28  ;;  %9111 = vmatprep.subr.bf16.mxu1 %v12216_v29  ;;  %v12289_v28 = vld [vmem:[#allocation64 + $0xbc0] ss:$16 sps:$4 sm:$0xff]   ;;  %v12292_v29 = vld [vmem:[#allocation64 + $0xbc8] ss:$16 sps:$4 sm:$0xff]  }
0x14d2   :  { %8895 = vmatprep.mubr.bf16.mxu0 %v13560_v56  ;;  %9141 = vmatprep.mubr.bf16.mxu1 %v13560_v56 }
0x14d4   :  { %8866 = vmatpush1.bf16.msra.mxu0 %v12211_v30  ;;  %9112 = vmatpush1.bf16.msra.mxu1 %v12214_v45  ;;  %v12297_v30 = vld [vmem:[#allocation64 + $0xbe4] ss:$16 sps:$4 sm:$0xff]   ;;  %v12300_v45 = vld [vmem:[#allocation64 + $0xbec] ss:$16 sps:$4 sm:$0xff]  }
0x14d5   :  { %8867 = vmatprep.subr.bf16.mxu0 %v12219_v27  ;;  %9113 = vmatprep.subr.bf16.mxu1 %v12222_v36  ;;  %v12295_v27 = vld [vmem:[#allocation64 + $0xbe0] ss:$16 sps:$4 sm:$0xff]   ;;  %v12298_v36 = vld [vmem:[#allocation64 + $0xbe8] ss:$16 sps:$4 sm:$0xff]  }
0x14d8   :  { %8868 = vmatpush1.bf16.msra.mxu0 %v12217_v49  ;;  %9114 = vmatpush1.bf16.msra.mxu1 %v12220_v51  ;;  %v9370_v49 = vld [vmem:[%s13811_s27 + $0x80] sm:$0xff]  ;;  %v9371_v51 = vld [vmem:[%s13811_s27 + $0x88] sm:$0xff] }
0x14d9   :  { %8869 = vmatprep.subr.bf16.mxu0 %v12225_v53  ;;  %9115 = vmatprep.subr.bf16.mxu1 %v12228_v55  ;;  %v9402_v53 = vld [vmem:[%s13811_s27 + $0x180] sm:$0xff]  ;;  %v10794_v55 = vpack.c.bf16 %v9371_v51, %v9370_v49 }
0x14dc   :  { %8870 = vmatpush1.bf16.msra.mxu0 %v12223_v58  ;;  %9116 = vmatpush1.bf16.msra.mxu1 %v12226_v7  ;;  %v9403_v58 = vld [vmem:[%s13811_s27 + $0x188] sm:$0xff]  ;;  %v9354_v7 = vld [vmem:[%s13811_s27] sm:$0xff] }
0x14dd   :  { %8871 = vmatprep.subr.bf16.mxu0 %v12231_v46  ;;  %9117 = vmatprep.subr.bf16.mxu1 %v12234_v59  ;;  %v9355_v46 = vld [vmem:[%s13811_s27 + $0x8] sm:$0xff]  ;;  %v10826_v59 = vpack.c.bf16 %v9403_v58, %v9402_v53  ;;  %v9394_v53 = vld [vmem:[%s13811_s27 + $0x140] sm:$0xff] }
0x14e0   :  { %8872 = vmatpush1.bf16.msra.mxu0 %v12229_v17  ;;  %9118 = vmatpush1.bf16.msra.mxu1 %v12232_v18  ;;  %v10796_v17 = vpack.c.bf16 %v9355_v46, %v9354_v7  ;;  %v9386_v18 = vld [vmem:[%s13811_s27 + $0x100] sm:$0xff]  ;;  %v9380_v7 = vld [vmem:[%s13811_s27 + $0xd0] sm:$0xff]  ;;  %v9381_v46 = vld [vmem:[%s13811_s27 + $0xd8] sm:$0xff] }
0x14e1   :  { %8873 = vmatprep.subr.bf16.mxu0 %v12237_v34  ;;  %9119 = vmatprep.subr.bf16.mxu1 %v12240_v43  ;;  %v9387_v34 = vld [vmem:[%s13811_s27 + $0x108] sm:$0xff]  ;;  %v9372_v43 = vld [vmem:[%s13811_s27 + $0x90] sm:$0xff] }
0x14e4   :  { %8874 = vmatpush1.bf16.msra.mxu0 %v12235_v22  ;;  %9120 = vmatpush1.bf16.msra.mxu1 %v12238_v41  ;;  %v9373_v22 = vld [vmem:[%s13811_s27 + $0x98] sm:$0xff]  ;;  %v9404_v41 = vld [vmem:[%s13811_s27 + $0x190] sm:$0xff] }
0x14e5   :  { %8875 = vmatprep.subr.bf16.mxu0 %v12243_v48  ;;  %9121 = vmatprep.subr.bf16.mxu1 %v12246_v39  ;;  %v10798_v48 = vpack.c.bf16 %v9373_v22, %v9372_v43  ;;  %v9405_v39 = vld [vmem:[%s13811_s27 + $0x198] sm:$0xff] }
0x14e8   :  { %8876 = vmatpush1.bf16.msra.mxu0 %v12241_v61  ;;  %9122 = vmatpush1.bf16.msra.mxu1 %v12244_v54  ;;  %v9356_v61 = vld [vmem:[%s13811_s27 + $0x10] sm:$0xff]  ;;  %v9357_v54 = vld [vmem:[%s13811_s27 + $0x18] sm:$0xff] }
0x14e9   :  { %8877 = vmatprep.subr.bf16.mxu0 %v12249_v63  ;;  %9123 = vmatprep.subr.bf16.mxu1 %v12252_v35  ;;  %v10830_v63 = vpack.c.bf16 %v9405_v39, %v9404_v41  ;;  %v10800_v35 = vpack.c.bf16 %v9357_v54, %v9356_v61  ;;  %v9396_v41 = vld [vmem:[%s13811_s27 + $0x150] sm:$0xff]  ;;  %v9382_v61 = vld [vmem:[%s13811_s27 + $0xe0] sm:$0xff]  ;;  %v9383_v54 = vld [vmem:[%s13811_s27 + $0xe8] sm:$0xff] }
0x14ec   :  { %8878 = vmatpush1.bf16.msra.mxu0 %v12247_v1  ;;  %9124 = vmatpush1.bf16.msra.mxu1 %v12250_v52  ;;  %v9388_v1 = vld [vmem:[%s13811_s27 + $0x110] sm:$0xff]  ;;  %v9389_v52 = vld [vmem:[%s13811_s27 + $0x118] sm:$0xff] }
0x14ed   :  { %8879 = vmatprep.subr.bf16.mxu0 %v12255_v57  ;;  %9125 = vmatprep.subr.bf16.mxu1 %v12258_v2  ;;  %v10832_v57 = vpack.c.bf16 %v9389_v52, %v9388_v1  ;;  %v9374_v2 = vld [vmem:[%s13811_s27 + $0xa0] sm:$0xff]  ;;  %v9415_v1 = vld [vmem:[%s13811_s27 + $0x1e8] sm:$0xff] }
0x14ee   :  { %v9366_v52 = vld [vmem:[%s13811_s27 + $0x60] sm:$0xff] }
0x14f0   :  { %8880 = vmatpush1.bf16.msra.mxu0 %v12253_v3  ;;  %9126 = vmatpush1.bf16.msra.mxu1 %v12256_v4  ;;  %v9375_v3 = vld [vmem:[%s13811_s27 + $0xa8] sm:$0xff]  ;;  %v9406_v4 = vld [vmem:[%s13811_s27 + $0x1a0] sm:$0xff] }
0x14f1   :  { %8881 = vmatprep.subr.bf16.mxu0 %v12261_v5  ;;  %9127 = vmatprep.subr.bf16.mxu1 %v12264_v6  ;;  %v10802_v5 = vpack.c.bf16 %v9375_v3, %v9374_v2  ;;  %v9407_v6 = vld [vmem:[%s13811_s27 + $0x1a8] sm:$0xff] }
0x14f4   :  { %8882 = vmatpush1.bf16.msra.mxu0 %v12259_v8  ;;  %9128 = vmatpush1.bf16.msra.mxu1 %v12262_v9  ;;  %v9358_v8 = vld [vmem:[%s13811_s27 + $0x20] sm:$0xff]  ;;  %v10834_v9 = vpack.c.bf16 %v9407_v6, %v9406_v4 }
0x14f5   :  { %8883 = vmatprep.subr.bf16.mxu0 %v12267_v10  ;;  %9129 = vmatprep.subr.bf16.mxu1 %v12270_v15  ;;  %v9359_v10 = vld [vmem:[%s13811_s27 + $0x28] sm:$0xff]  ;;  %v9390_v15 = vld [vmem:[%s13811_s27 + $0x120] sm:$0xff] }
0x14f6   :  { %v9398_v4 = vld [vmem:[%s13811_s27 + $0x160] sm:$0xff] }
0x14f8   :  { %8884 = vmatpush1.bf16.msra.mxu0 %v12265_v33  ;;  %9130 = vmatpush1.bf16.msra.mxu1 %v12268_v42  ;;  %v9391_v33 = vld [vmem:[%s13811_s27 + $0x128] sm:$0xff]  ;;  %v10804_v42 = vpack.c.bf16 %v9359_v10, %v9358_v8  ;;  %v9384_v8 = vld [vmem:[%s13811_s27 + $0xf0] sm:$0xff] }
0x14f9   :  { %8885 = vmatprep.subr.bf16.mxu0 %v12273_v12  ;;  %9131 = vmatprep.subr.bf16.mxu1 %v12276_v13  ;;  %v10836_v12 = vpack.c.bf16 %v9391_v33, %v9390_v15  ;;  %v9376_v13 = vld [vmem:[%s13811_s27 + $0xb0] sm:$0xff]  ;;  %v9417_v33 = vld [vmem:[%s13811_s27 + $0x1f8] sm:$0xff] }
0x14fa   :  { %v9416_v10 = vld [vmem:[%s13811_s27 + $0x1f0] sm:$0xff] }
0x14fc   :  { %8886 = vmatpush1.bf16.msra.mxu0 %v12271_v31  ;;  %9132 = vmatpush1.bf16.msra.mxu1 %v12274_v50  ;;  %v9377_v31 = vld [vmem:[%s13811_s27 + $0xb8] sm:$0xff]  ;;  %v9408_v50 = vld [vmem:[%s13811_s27 + $0x1b0] sm:$0xff] }
0x14fd   :  { %8887 = vmatprep.subr.bf16.mxu0 %v12279_v16  ;;  %9133 = vmatprep.subr.bf16.mxu1 %v12282_v40  ;;  %v10806_v16 = vpack.c.bf16 %v9377_v31, %v9376_v13  ;;  %v9409_v40 = vld [vmem:[%s13811_s27 + $0x1b8] sm:$0xff]  ;;  %v10854_v13 = vpack.c.bf16 %v9417_v33, %v9416_v10 }
0x1500   :  { %8888 = vmatpush1.bf16.msra.mxu0 %v12277_v19  ;;  %9134 = vmatpush1.bf16.msra.mxu1 %v12280_v20  ;;  %v9360_v19 = vld [vmem:[%s13811_s27 + $0x30] sm:$0xff]  ;;  %v9361_v20 = vld [vmem:[%s13811_s27 + $0x38] sm:$0xff] }
0x1501   :  { %8889 = vmatprep.subr.bf16.mxu0 %v12285_v62  ;;  %9135 = vmatprep.subr.bf16.mxu1 %v12288_v21  ;;  %v10838_v62 = vpack.c.bf16 %v9409_v40, %v9408_v50  ;;  %v10808_v21 = vpack.c.bf16 %v9361_v20, %v9360_v19  ;;  %v9400_v50 = vld [vmem:[%s13811_s27 + $0x170] sm:$0xff] }
0x1504   :  { %8890 = vmatpush1.bf16.msra.mxu0 %v12283_v23  ;;  %9136 = vmatpush1.bf16.msra.mxu1 %v12286_v24  ;;  %v9392_v23 = vld [vmem:[%s13811_s27 + $0x130] sm:$0xff]  ;;  %v9393_v24 = vld [vmem:[%s13811_s27 + $0x138] sm:$0xff] }
0x1505   :  { %8891 = vmatprep.subr.bf16.mxu0 %v12291_v38  ;;  %9137 = vmatprep.subr.bf16.mxu1 %v12294_v26  ;;  %v10840_v38 = vpack.c.bf16 %v9393_v24, %v9392_v23  ;;  %v9378_v26 = vld [vmem:[%s13811_s27 + $0xc0] sm:$0xff] }
0x1508   :  { %8892 = vmatpush1.bf16.msra.mxu0 %v12289_v28  ;;  %9138 = vmatpush1.bf16.msra.mxu1 %v12292_v29  ;;  %v9379_v28 = vld [vmem:[%s13811_s27 + $0xc8] sm:$0xff]  ;;  %v9410_v29 = vld [vmem:[%s13811_s27 + $0x1c0] sm:$0xff] }
0x1509   :  { %8893 = vmatprep.subr.bf16.mxu0 %v12297_v30  ;;  %9139 = vmatprep.subr.bf16.mxu1 %v12300_v45  ;;  %v10810_v30 = vpack.c.bf16 %v9379_v28, %v9378_v26  ;;  %v9411_v45 = vld [vmem:[%s13811_s27 + $0x1c8] sm:$0xff] }
0x150a   :  { %v10842_v49 = vpack.c.bf16 %v9411_v45, %v9410_v29 }
0x150c   :  { %8894 = vmatpush1.bf16.msra.mxu0 %v12295_v27  ;;  %9140 = vmatpush1.bf16.msra.mxu1 %v12298_v36  ;;  %v9362_v27 = vld [vmem:[%s13811_s27 + $0x40] sm:$0xff]  ;;  %v9363_v36 = vld [vmem:[%s13811_s27 + $0x48] sm:$0xff] }
0x150d   :  { %10795 = vmatprep.subr.bf16.mxu0 %v10794_v55  ;;  %10827 = vmatprep.subr.bf16.mxu1 %v10826_v59  ;;  %v10812_v51 = vpack.c.bf16 %v9363_v36, %v9362_v27  ;;  %v9395_v55 = vld [vmem:[%s13811_s27 + $0x148] sm:$0xff]  ;;  %v9412_v59 = vld [vmem:[%s13811_s27 + $0x1d0] sm:$0xff] }
0x150e   :  { %v10844_v58 = vpack.c.bf16 %v9395_v55, %v9394_v53 }
0x150f   :  { %8896 = vmatmul.mubr.bf16.vlgmr.msra.gmra.mrb[52].mxu0 %v13560_v56  ;;  %9142 = vmatmul.mubr.bf16.vlgmr.msra.gmra.mrb[56].mxu1 %v13560_v56  ;;  %v10828_v56 = vpack.c.bf16 %v9387_v34, %v9386_v18  ;;  %v9413_v18 = vld [vmem:[%s13811_s27 + $0x1d8] sm:$0xff]  ;;  %v9364_v34 = vld [vmem:[%s13811_s27 + $0x50] sm:$0xff] }
0x1510   :  { %10797 = vmatpush3.bf16.msra.mxu0 %v10796_v17  ;;  %v10814_v17 = vpack.c.bf16 %v9381_v46, %v9380_v7  ;;  %v10846_v43 = vpack.c.bf16 %v9413_v18, %v9412_v59 }
0x1511   :  { %10829 = vmatpush3.bf16.msra.mxu1 %v10828_v56  ;;  %10799 = vmatprep.subr.bf16.mxu0 %v10798_v48  ;;  %v9365_v56 = vld [vmem:[%s13811_s27 + $0x58] sm:$0xff] }
0x1512   :  { %10831 = vmatprep.subr.bf16.mxu1 %v10830_v63  ;;  %v10816_v22 = vpack.c.bf16 %v9365_v56, %v9364_v34  ;;  %v9397_v48 = vld [vmem:[%s13811_s27 + $0x158] sm:$0xff]  ;;  %v9414_v63 = vld [vmem:[%s13811_s27 + $0x1e0] sm:$0xff] }
0x1513   :  { %v10848_v39 = vpack.c.bf16 %v9397_v48, %v9396_v41  ;;  %v10850_v2 = vpack.c.bf16 %v9415_v1, %v9414_v63 }
0x1514   :  { %10801 = vmatpush3.bf16.msra.mxu0 %v10800_v35  ;;  %v10818_v35 = vpack.c.bf16 %v9383_v54, %v9382_v61 }
0x1515   :  { %10833 = vmatpush3.bf16.msra.mxu1 %v10832_v57  ;;  %10803 = vmatprep.subr.bf16.mxu0 %v10802_v5  ;;  %v9367_v57 = vld [vmem:[%s13811_s27 + $0x68] sm:$0xff] }
0x1516   :  { %10835 = vmatprep.subr.bf16.mxu1 %v10834_v9  ;;  %v10820_v3 = vpack.c.bf16 %v9367_v57, %v9366_v52  ;;  %v9399_v5 = vld [vmem:[%s13811_s27 + $0x168] sm:$0xff]  ;;  %v9385_v9 = vld [vmem:[%s13811_s27 + $0xf8] sm:$0xff] }
0x1517   :  { %v10852_v6 = vpack.c.bf16 %v9399_v5, %v9398_v4  ;;  %v10822_v15 = vpack.c.bf16 %v9385_v9, %v9384_v8 }
0x1518   :  { %10805 = vmatpush3.bf16.msra.mxu0 %v10804_v42  ;;  %v9368_v42 = vld [vmem:[%s13811_s27 + $0x70] sm:$0xff] }
0x1519   :  { %10837 = vmatpush3.bf16.msra.mxu1 %v10836_v12  ;;  %10807 = vmatprep.subr.bf16.mxu0 %v10806_v16  ;;  %v9369_v12 = vld [vmem:[%s13811_s27 + $0x78] sm:$0xff] }
0x151a   :  { %10839 = vmatprep.subr.bf16.mxu1 %v10838_v62  ;;  %v10824_v31 = vpack.c.bf16 %v9369_v12, %v9368_v42  ;;  %v9401_v16 = vld [vmem:[%s13811_s27 + $0x178] sm:$0xff]  ;;  %s13562_s27 = smov [#allocation74]  }
0x151b   :  { %v10856_v40 = vpack.c.bf16 %v9401_v16, %v9400_v50  ;;  %s9573_s26 = sshll.u32 %s13562_s27, 4  ;;  %s9574_s26 = int_to_ptr.vmem [resolvable:$true] %s9573_s26 }
0x151c   :  { %10809 = vmatpush3.bf16.msra.mxu0 %v10808_v21  ;;  %s13383_s18 = scalar_lea.vmem %s9574_s26, 32  ;;  %p13388_p13 = scmp.lt.s32.totalorder %s9574_s26, %s9574_s26 }
0x151d   :  { %10841 = vmatpush3.bf16.msra.mxu1 %v10840_v38  ;;  %10811 = vmatprep.subr.bf16.mxu0 %v10810_v30  ;;  %p13384_p12 = scmp.ne.s32.totalorder %s9574_s26, %s13383_s18  ;;  %p13389_p0 = scmp.lt.s32.totalorder %s13383_s18, %s13383_s18 }
0x151e   :  { %10843 = vmatprep.subr.bf16.mxu1 %v10842_v49 }
0x151f   :  { %p13390_p1 = por %p13389_p0, %p13388_p13 }
0x1520   :  { %10813 = vmatpush3.bf16.msra.mxu0 %v10812_v51 }
0x1521   :  { %10845 = vmatpush3.bf16.msra.mxu1 %v10844_v58  ;;  %10815 = vmatprep.subr.bf16.mxu0 %v10814_v17  ;;  %p13391_p2 = pnand %p13390_p1, %p13384_p12 }
0x1522   :  { %10847 = vmatprep.subr.bf16.mxu1 %v10846_v43 }
0x1524   :  { %10817 = vmatpush3.bf16.msra.mxu0 %v10816_v22 }
0x1525   :  { %10849 = vmatpush3.bf16.msra.mxu1 %v10848_v39  ;;  %10819 = vmatprep.subr.bf16.mxu0 %v10818_v35 }
0x1526   :  { %10851 = vmatprep.subr.bf16.mxu1 %v10850_v2 }
0x1528   :  { %10821 = vmatpush3.bf16.msra.mxu0 %v10820_v3 }
0x1529   :  { %10853 = vmatpush3.bf16.msra.mxu1 %v10852_v6  ;;  %10823 = vmatprep.subr.bf16.mxu0 %v10822_v15 }
0x152a   :  { %10855 = vmatprep.subr.bf16.mxu1 %v10854_v13 }
0x152c   :  { %10825 = vmatpush3.bf16.msra.mxu0 %v10824_v31 }
0x152d   :  { %10857 = vmatpush3.bf16.msra.mxu1 %v10856_v40 }
0x15e2   :  { %v14574_v19 = vpop.f32.mrb[52].mxu0  ;;  %v14576_v20 = vpop.f32.mrb[56].mxu1 }
0x15e3   :  { %v9150_v62 = vsel %vm954_vm9, %v14574_v19, 0.0  ;;  %v9164_v21 = vsel %vm954_vm9, %v14576_v20, 0.0  ;;  %v14582_v23 = vpop.f32.mrb[53].mxu0  ;;  %v14584_v24 = vpop.f32.mrb[57].mxu1 }
0x15e4   :  { %v9151_v38 = vrot.slane %v9150_v62, 4  ;;  %v9165_v26 = vrot.slane %v9164_v21, 4  ;;  %v9157_v28 = vsel %vm954_vm9, %v14582_v23, 0.0  ;;  %v9171_v29 = vsel %vm954_vm9, %v14584_v24, 0.0  ;;  %v8901_v30 = vpop.f32.mrb[54].mxu0  ;;  %v9147_v45 = vpop.f32.mrb[58].mxu1 }
0x15e5   :  { %v9158_v27 = vrot.slane %v9157_v28, 4  ;;  %v9172_v36 = vrot.slane %v9171_v29, 4  ;;  %v8902_v49 = vpop.f32.mrb[55].mxu0  ;;  %v9148_v51 = vpop.f32.mrb[59].mxu1 }
0x15e6   :  { %v9152_v53 = vadd.f32 %v9151_v38, %v9150_v62  ;;  %v9166_v55 = vadd.f32 %v9165_v26, %v9164_v21 }
0x15e7   :  { %v9159_v58 = vadd.f32 %v9158_v27, %v9157_v28  ;;  %v9173_v7 = vadd.f32 %v9172_v36, %v9171_v29 }
0x15e8   :  { %v9153_v46 = vrot.slane %v9152_v53, 2  ;;  %v9167_v59 = vrot.slane %v9166_v55, 2 }
0x15e9   :  { %v9160_v17 = vrot.slane %v9159_v58, 2  ;;  %v9174_v18 = vrot.slane %v9173_v7, 2 }
0x15ea   :  { %v9154_v34 = vadd.f32 %v9153_v46, %v9152_v53  ;;  %v9168_v56 = vadd.f32 %v9167_v59, %v9166_v55 }
0x15eb   :  { %v9161_v43 = vadd.f32 %v9160_v17, %v9159_v58  ;;  %v9175_v22 = vadd.f32 %v9174_v18, %v9173_v7 }
0x15ec   :  { %v9155_v41 = vrot.slane %v9154_v34, 1  ;;  %v9169_v48 = vrot.slane %v9168_v56, 1 }
0x15ed   :  { %v9162_v39 = vrot.slane %v9161_v43, 1  ;;  %v9176_v61 = vrot.slane %v9175_v22, 1 }
0x15ee   :  { %v9156_v54 = vadd.f32 %v9155_v41, %v9154_v34  ;;  %v9170_v63 = vadd.f32 %v9169_v48, %v9168_v56 }
0x15ef   :  { %v9163_v35 = vadd.f32 %v9162_v39, %v9161_v43  ;;  %v9177_v1 = vadd.f32 %v9176_v61, %v9175_v22 }
0x15f0   :  { %v14590_v52 = vmul.f32 0.5, %v9156_v54  ;;  %v14592_v57 = vmul.f32 0.5, %v9170_v63 }
0x15f1   :  { %v14594_v2 = vmul.f32 0.5, %v9163_v35  ;;  %v14596_v3 = vmul.f32 0.5, %v9177_v1 }
0x15f2   :  { %v9182_v4 = vsub.f32 %v14574_v19, %v14590_v52  ;;  %v9184_v5 = vsub.f32 %v14576_v20, %v14592_v57 }
0x15f3   :  { %v9183_v6 = vsub.f32 %v14582_v23, %v14594_v2  ;;  %v9185_v8 = vsub.f32 %v14584_v24, %v14596_v3 }
0x15f4   :  { %v9186_v9 = vmul.f32 %v9182_v4, %v9182_v4  ;;  %v9188_v10 = vmul.f32 %v9184_v5, %v9184_v5 }
0x15f5   :  { %v9187_v15 = vmul.f32 %v9183_v6, %v9183_v6  ;;  %v9189_v33 = vmul.f32 %v9185_v8, %v9185_v8 }
0x15f6   :  { %v9190_v42 = vsel %vm954_vm9, %v9186_v9, 0.0  ;;  %v9204_v12 = vsel %vm954_vm9, %v9188_v10, 0.0 }
0x15f7   :  { %v9191_v13 = vrot.slane %v9190_v42, 4  ;;  %v9205_v31 = vrot.slane %v9204_v12, 4  ;;  %v9197_v50 = vsel %vm954_vm9, %v9187_v15, 0.0  ;;  %v9211_v16 = vsel %vm954_vm9, %v9189_v33, 0.0  ;;  %v9222_v15 = vld [vmem:[#allocation65] sm:$0xf] }
0x15f8   :  { %v9198_v40 = vrot.slane %v9197_v50, 4  ;;  %v9212_v62 = vrot.slane %v9211_v16, 4 }
0x15f9   :  { %v9192_v21 = vadd.f32 %v9191_v13, %v9190_v42  ;;  %v9206_v38 = vadd.f32 %v9205_v31, %v9204_v12 }
0x15fa   :  { %v9199_v26 = vadd.f32 %v9198_v40, %v9197_v50  ;;  %v9213_v28 = vadd.f32 %v9212_v62, %v9211_v16 }
0x15fb   :  { %v9193_v29 = vrot.slane %v9192_v21, 2  ;;  %v9207_v30 = vrot.slane %v9206_v38, 2 }
0x15fc   :  { %v9200_v45 = vrot.slane %v9199_v26, 2  ;;  %v9214_v27 = vrot.slane %v9213_v28, 2 }
0x15fd   :  { %v9194_v36 = vadd.f32 %v9193_v29, %v9192_v21  ;;  %v9208_v49 = vadd.f32 %v9207_v30, %v9206_v38 }
0x15fe   :  { %v9201_v51 = vadd.f32 %v9200_v45, %v9199_v26  ;;  %v9215_v53 = vadd.f32 %v9214_v27, %v9213_v28 }
0x15ff   :  { %v9195_v55 = vrot.slane %v9194_v36, 1  ;;  %v9209_v58 = vrot.slane %v9208_v49, 1 }
0x1600   :  { %v9202_v7 = vrot.slane %v9201_v51, 1  ;;  %v9216_v46 = vrot.slane %v9215_v53, 1 }
0x1601   :  { %v9196_v59 = vadd.f32 %v9195_v55, %v9194_v36  ;;  %v9210_v17 = vadd.f32 %v9209_v58, %v9208_v49 }
0x1602   :  { %v9203_v18 = vadd.f32 %v9202_v7, %v9201_v51  ;;  %v9217_v34 = vadd.f32 %v9216_v46, %v9215_v53 }
0x1603   :  { %v9218_v56 = vmul.f32 0.5, %v9196_v59  ;;  %v9220_v43 = vmul.f32 0.5, %v9210_v17 }
0x1604   :  { %v9219_v22 = vmul.f32 0.5, %v9203_v18  ;;  %v9221_v41 = vmul.f32 0.5, %v9217_v34  ;;  %v10540_v18 = vld [vmem:[#allocation73] ss:$0 sm:$0xff] }
0x1605   :  { %v9223_v48 = vadd.f32 1e-05, %v9218_v56  ;;  %v9225_v39 = vadd.f32 1e-05, %v9220_v43 }
0x1606   :  { %v9224_v61 = vadd.f32 1e-05, %v9219_v22  ;;  %v9226_v54 = vadd.f32 1e-05, %v9221_v41 }
0x1607   :  { %12341 = vrsqrt.f32 %v9223_v48 }
0x1608   :  { %12343 = vrsqrt.f32 %v9225_v39 }
0x1609   :  { %12345 = vrsqrt.f32 %v9224_v61 }
0x160a   :  { %12347 = vrsqrt.f32 %v9226_v54 }
0x1611   :  { %v12342_v63 = vpop.eup %12341 }
0x1612   :  { %v12344_v35 = vpop.eup %12343 }
0x1613   :  { %v12346_v1 = vpop.eup %12345 }
0x1614   :  { %v12348_v4 = vpop.eup %12347  ;;  %v9235_v5 = vcombine.low %v12342_v63, %v12346_v1 }
0x1615   :  { %v9236_v6 = vcombine.low %v12344_v35, %v12348_v4 }
0x1616   :  { %v9243_v8 = vrot.slane %v9235_v5, %v14287_v0 }
0x1617   :  { %v9250_v9 = vrot.slane %v9236_v6, %v14287_v0 }
0x1619   :  { %v9251_v10 = vcombine.low %v9243_v8, %v9250_v9 }
0x161b   :  { %v9258_v33 = vrot.slane %v9251_v10, %v14287_v0 }
0x161d   :  { %v9260_v42 = vmul.f32 %v9258_v33, %v9222_v15 }
0x161f   :  { %v9266_v12 = vrot.slane %v9260_v42, %v14077_v37  ;;  %v9270_v13 = vrot.slane %v9260_v42, %v14292_v25  ;;  %v9274_v31 = vrot.slane %v9260_v42, %v14435_v60  ;;  %v9278_v50 = vrot.slane %v9260_v42, %v14438_v14 }
0x1621   :  { %v9283_v16 = vmul.f32 %v9266_v12, %v14590_v52  ;;  %v9284_v40 = vmul.f32 %v9270_v13, %v14594_v2  ;;  %v9285_v62 = vmul.f32 %v9274_v31, %v14592_v57  ;;  %v9286_v21 = vmul.f32 %v9278_v50, %v14596_v3  ;;  %v9261_v2 = vld [vmem:[#allocation67] sm:$0xf] }
0x1622   :  { %v9320_v38 = vmul.f32 %v9278_v50, %v14584_v24  ;;  %v9318_v26 = vmul.f32 %v9270_v13, %v14582_v23  ;;  %v9317_v28 = vmul.f32 %v9266_v12, %v14574_v19  ;;  %v9319_v29 = vmul.f32 %v9274_v31, %v14576_v20 }
0x1623   :  { %v9291_v30 = vcombine.low %v9283_v16, %v9284_v40  ;;  %v9292_v45 = vcombine.low %v9285_v62, %v9286_v21 }
0x1625   :  { %v9299_v27 = vrot.slane %v9291_v30, %v14287_v0  ;;  %v9306_v52 = vrot.slane %v9292_v45, %v14287_v0 }
0x1627   :  { %v9307_v36 = vcombine.low %v9299_v27, %v9306_v52 }
0x1629   :  { %v9314_v57 = vrot.slane %v9307_v36, %v14287_v0 }
0x162b   :  { %v9316_v49 = vsub.f32 %v9261_v2, %v9314_v57 }
0x162d   :  { %v9337_v3 = vrot.slane %v9316_v49, %v14438_v14  ;;  %v9329_v24 = vrot.slane %v9316_v49, %v14292_v25  ;;  %v9325_v23 = vrot.slane %v9316_v49, %v14077_v37  ;;  %v9333_v19 = vrot.slane %v9316_v49, %v14435_v60 }
0x162f   :  { %v9345_v20 = vadd.f32 %v9337_v3, %v9320_v38  ;;  %v9343_v51 = vadd.f32 %v9329_v24, %v9318_v26  ;;  %v9342_v53 = vadd.f32 %v9325_v23, %v9317_v28  ;;  %v9344_v55 = vadd.f32 %v9333_v19, %v9319_v29 }
0x1631   :  { %v9347_v58 = vadd.f32 %v9343_v51, %v14461_v44  ;;  %v9349_v7 = vadd.f32 %v9345_v20, %v14459_v32  ;;  %v9346_v46 = vadd.f32 %v9342_v53, %v14463_v11  ;;  %v9348_v0 = vadd.f32 %v9344_v55, %v14465_v47 }
0x1633   :  { %v9351_v59 = vmax.f32 %v9347_v58, 0.0  ;;  %v9353_v14 = vmax.f32 %v9349_v7, 0.0  ;;  %v9350_v17 = vmax.f32 %v9346_v46, 0.0  ;;  %v9352_v25 = vmax.f32 %v9348_v0, 0.0 }
0x1635   :  { %9489 = vmatprep.mubr.f32.mxu0 %v9351_v59  ;;  %9559 = vmatprep.mubr.f32.mxu1 %v9353_v14 }
0x1636   :  { %9490 = vmatmul.mubr.f32.vlgmr.msra.gmra.mrb[56].mxu0 %v9350_v17  ;;  %9560 = vmatmul.mubr.f32.vlgmr.msra.gmra.mrb[60].mxu1 %v9352_v25 }
0x1709   :  { %v10638_v37 = vpop.f32.mrb[56].mxu0  ;;  %v10673_v60 = vpop.f32.mrb[60].mxu1 }
0x170a   :  { %v10639_v34 = vpop.f32.mrb[57].mxu0  ;;  %v10674_v56 = vpop.f32.mrb[61].mxu1 }
0x170b   :  { %v10640_v44 = vadd.f32 %v10639_v34, %v10638_v37  ;;  %v10675_v43 = vadd.f32 %v10674_v56, %v10673_v60 }
0x170d   :  { %v9492_v32 = vadd.f32 %v10640_v44, %v10540_v18 }
0x170f   :  { %v9562_v11 = vadd.f32 %v10675_v43, %v9492_v32 }
0x1711   :  { %9566 = vst.msk [vmem:[#allocation74] sm:$0x3] %vm9565_vm0, %v9562_v11 }
0x1712   :  { %13394 = shalt.err (!%p13391_p2)
}
0x1713   :  { %s13395_s6 = scalar_lea.hbm %s13821_s14, 32 }
0x1714   :  { %p13396_p3 = scmp.ne.s32.totalorder %s13821_s14, %s13395_s6  ;;  %p13399_p4 = scmp.lt.u32.totalorder %s13395_s6, %s13821_s14 }
0x1716   :  { %p13401_p5 = pnand %p13399_p4, %p13396_p3 }
0x1718   :  { %13404 = shalt.err (!%p13401_p5)
}
0x1719   :  { %9576 = dma.vmem_to_hbm [thread:$0]  %s9574_s26, 32, %s13821_s14, [#allocation4]  }
0x171a   :  { %13453 = dma.done.wait [#allocation4], 32  }
0x171b   :  { %13454 = vsyncadd [#allocation4], 4294967264 }
0x171c   :  { %9580 = vsyncpa [#allocation3], 1 }
0x171d   :  { %9581 = vsyncpa [#allocation6], 1 }
0x171e   :  { %9582 = vsyncpa [#allocation9], 1 }
0x171f   :  { %9583 = vsyncpa [#allocation12], 1 }
0x1720   :  { %9584 = vsyncpa [#allocation15], 1 }
0x1721   :  { %9585 = vsyncpa [#allocation18], 1 }
0x1722   :  { %9586 = vsyncpa [#allocation21], 1 }
0x1723   :  { %9587 = vsyncpa [#allocation24], 1 }
0x1724   :  { %9588 = vsyncpa [#allocation27], 1 }
0x1725   :  { %9589 = vsyncpa [#allocation30], 1 }
0x1726   :  { %9590 = vsyncpa [#allocation33], 1 }
0x1727   :  { %9591 = vsyncpa [#allocation36], 1 }
0x1728   :  { %9592 = vsyncpa [#allocation39], 1 }
0x1729   :  { %9593 = vsyncpa [#allocation42], 1 }
0x172a   :  { %9594 = vsyncpa [#allocation45], 1 }
0x172b   :  { %9595 = vsyncpa [#allocation48], 1 }
0x172c   :  { %9596 = vsyncpa [#allocation51], 1 }
0x172d   :  { %9597 = vsyncpa [#allocation54], 1 }
0x172e   :  { %9598 = vsyncpa [#allocation57], 1 }
0x172f   :  { %9599 = vsyncpa [#allocation60], 1 }
0x1730   :  { %9600 = vsyncpa [#allocation63], 1 }
0x1731   :  { %9601 = vsyncpa [#allocation66], 1 }
0x1732   :  { %9602 = vsyncpa [#allocation69], 1 }
0x1733   :  { %9603 = vsyncpa [#allocation72], 1 }
0x1734   :  { %9604 = vsyncpa [#allocation4], 1 }

</bundles_post_ra>
